<compile_context>
chip_gen: v7x
topology: tpu7x:2x2x1
jax: 0.10.0
libtpu: 0.0.40
codegen_flags: <defaults>
</compile_context>

<pallas_src>
import functools

import jax
import jax.numpy as jnp
from jax.experimental import pallas as pl
from jax.experimental.pallas import tpu as pltpu

BN_EPS = 1e-5
LANE = 128


def _rup(c, m=LANE):
    return ((c + m - 1) // m) * m


def doubleconv_kernel(x_ref, w1_ref, cb1_ref, g1_ref, b1_ref,
                      w2_ref, cb2_ref, g2_ref, b2_ref,
                      o_ref, pad_ref, *, H, W, K):
    """x_ref:  (N, H, W, CH)        bf16, channels zero-padded to CH (lane-dense)
       w*_ref: (K*K*CH, C*_P)       bf16 im2col weight matrices
       cb/g/b: (1, C*_P)            f32  conv bias / BN gamma / BN beta
       o_ref:  (N*H*W, COUT_P)      f32  lane-dense output slab
       pad_ref: VMEM (N, H+2, W+2, CH) f32 scratch, reused by both convs."""
    N = x_ref.shape[0]
    CH = pad_ref.shape[-1]
    M = N * H * W
    Hp = H + K - 1
    Wp = W + K - 1

    # ---- zero only the 1-pixel halo of the scratch (interior is overwritten below) ----
    zrow = jnp.zeros((N, 1, Wp, CH), pad_ref.dtype)
    zcol = jnp.zeros((N, Hp, 1, CH), pad_ref.dtype)
    pad_ref[:, 0:1, :, :] = zrow
    pad_ref[:, Hp - 1:Hp, :, :] = zrow
    pad_ref[:, :, 0:1, :] = zcol
    pad_ref[:, :, Wp - 1:Wp, :] = zcol

    def conv3x3(w_mat):
        # im2col-lite: one (M, K*K*CH) x (K*K*CH, Co) MXU matmul, bf16 in / f32 acc.
        taps = [pad_ref[:, kh:kh + H, kw:kw + W, :]
                .reshape(M, CH).astype(jnp.bfloat16)
                for kh in range(K) for kw in range(K)]
        a = jnp.concatenate(taps, axis=1)                       # (M, K*K*CH) bf16
        return jnp.dot(a, w_mat, preferred_element_type=jnp.float32)

    def bn_relu(z, g, b):
        # Training-mode batch statistics (biased variance), single pass, f32.
        inv_m = 1.0 / M
        mean = jnp.sum(z, axis=0, keepdims=True) * inv_m
        var = jnp.sum(z * z, axis=0, keepdims=True) * inv_m - mean * mean
        scale = g * jax.lax.rsqrt(var + BN_EPS)
        return jnp.maximum(z * scale + (b - mean * scale), 0.0)

    # ---------------- conv1 -> BN -> ReLU ----------------
    pad_ref[:, 1:H + 1, 1:W + 1, :] = x_ref[...].astype(pad_ref.dtype)
    z1 = conv3x3(w1_ref[...]) + cb1_ref[...]                    # (M, CMID_P) f32
    y1 = bn_relu(z1, g1_ref[...], b1_ref[...])

    # ---------------- conv2 -> BN -> ReLU ----------------
    cmid_p = y1.shape[-1]
    if cmid_p < CH:  # static: pad mid channels up to scratch width with zeros
        y1 = jnp.concatenate(
            [y1, jnp.zeros((M, CH - cmid_p), y1.dtype)], axis=1)
    pad_ref[:, 1:H + 1, 1:W + 1, :] = y1.reshape(N, H, W, CH)   # halo still zero
    z2 = conv3x3(w2_ref[...]) + cb2_ref[...]                    # (M, COUT_P) f32
    o_ref[...] = bn_relu(z2, g2_ref[...], b2_ref[...]).astype(o_ref.dtype)


def double_conv(x_nchw, params, *, K=3, pad=1):
    """Pallas-backed DoubleConv. x_nchw: (N, Cin, H, W) f32 -> (N, Cout, H, W) f32."""
    assert 2 * pad == K - 1, "same-size output assumed (kernel_size=3, padding=1)"
    w1, cb1, g1, b1, w2, cb2, g2, b2 = params
    N, Cin, H, W = x_nchw.shape
    assert w1.shape[:2] == (K, K) and w2.shape[:2] == (K, K)
    Cmid, Cout = w1.shape[-1], w2.shape[-1]

    CMID_P, COUT_P = _rup(Cmid), _rup(Cout)
    CH = max(_rup(Cin), CMID_P)          # shared scratch / contraction channel width
    M = N * H * W

    # ----- layout glue at the boundary: NCHW->NHWC, lane-pad channels, bf16 cast -----
    x = jnp.transpose(x_nchw, (0, 2, 3, 1))
    x = jnp.pad(x, ((0, 0), (0, 0), (0, 0), (0, CH - Cin))).astype(jnp.bfloat16)

    def pack_w(w, c_in, c_out, c_in_p, c_out_p):   # (K,K,ci,co) -> (K*K*ci_p, co_p) bf16
        wp = jnp.zeros((K, K, c_in_p, c_out_p), jnp.float32)
        wp = wp.at[:, :, :c_in, :c_out].set(w)
        return wp.reshape(K * K * c_in_p, c_out_p).astype(jnp.bfloat16)

    def pack_v(v, c, c_p):                         # (c,) -> (1, c_p) f32, zero-padded
        return jnp.zeros((1, c_p), jnp.float32).at[:, :c].set(v.reshape(1, c))

    w1m = pack_w(w1, Cin, Cmid, CH, CMID_P)
    w2m = pack_w(w2, Cmid, Cout, CH, COUT_P)
    cb1p, g1p, b1p = (pack_v(v, Cmid, CMID_P) for v in (cb1, g1, b1))
    cb2p, g2p, b2p = (pack_v(v, Cout, COUT_P) for v in (cb2, g2, b2))

    def fs(shape):  # full-array block
        n = len(shape)
        return pl.BlockSpec(shape, lambda i, n=n: (0,) * n)

    kernel = functools.partial(doubleconv_kernel, H=H, W=W, K=K)

    out2d = pl.pallas_call(
        kernel,
        grid=(1,),
        in_specs=[fs(x.shape),
                  fs(w1m.shape), fs(cb1p.shape), fs(g1p.shape), fs(b1p.shape),
                  fs(w2m.shape), fs(cb2p.shape), fs(g2p.shape), fs(b2p.shape)],
        out_specs=fs((M, COUT_P)),
        out_shape=jax.ShapeDtypeStruct((M, COUT_P), jnp.float32),
        scratch_shapes=[pltpu.VMEM((N, H + 2 * pad, W + 2 * pad, CH), jnp.float32)],
        compiler_params=pltpu.CompilerParams(
            dimension_semantics=("arbitrary",),
            vmem_limit_bytes=32 * 1024 * 1024),
    )(x, w1m, cb1p, g1p, b1p, w2m, cb2p, g2p, b2p)

    out = out2d.reshape(N, H, W, COUT_P)[..., :Cout]            # drop lane padding
    return jnp.transpose(out, (0, 3, 1, 2))                     # NHWC -> NCHW


def ref_double_conv(x_nchw, params, *, pad=1):
    """Pure-JAX f32 reference (lax.conv), training-mode BN — matches module semantics."""
    w1, cb1, g1, b1, w2, cb2, g2, b2 = params
    x = jnp.transpose(x_nchw, (0, 2, 3, 1))

    def conv_bn_relu(x, w, cb, g, b):
        y = jax.lax.conv_general_dilated(
            x, w, (1, 1), ((pad, pad), (pad, pad)),
            dimension_numbers=('NHWC', 'HWIO', 'NHWC')) + cb
        m = y.mean((0, 1, 2), keepdims=True)
        v = ((y - m) ** 2).mean((0, 1, 2), keepdims=True)
        return jnp.maximum(g * (y - m) * jax.lax.rsqrt(v + BN_EPS) + b, 0.0)

    y = conv_bn_relu(x, w1, cb1, g1, b1)
    y = conv_bn_relu(y, w2, cb2, g2, b2)
    return jnp.transpose(y, (0, 3, 1, 2))


if __name__ == "__main__":
    N, Cin, Cmid, Cout, H, W = 2, 4, 8, 8, 16, 16

    key = jax.random.PRNGKey(0)
    ks = jax.random.split(key, 9)
    x = jax.random.normal(ks[0], (N, Cin, H, W), jnp.float32)

    # Synthetic DoubleConv(4, 8) parameters; conv weights stored as (kh, kw, c_in, c_out).
    w1 = 0.1 * jax.random.normal(ks[1], (3, 3, Cin, Cmid), jnp.float32)
    cb1 = 0.1 * jax.random.normal(ks[2], (Cmid,), jnp.float32)
    g1 = 1.0 + 0.1 * jax.random.normal(ks[3], (Cmid,), jnp.float32)
    b1 = 0.1 * jax.random.normal(ks[4], (Cmid,), jnp.float32)
    w2 = 0.1 * jax.random.normal(ks[5], (3, 3, Cmid, Cout), jnp.float32)
    cb2 = 0.1 * jax.random.normal(ks[6], (Cout,), jnp.float32)
    g2 = 1.0 + 0.1 * jax.random.normal(ks[7], (Cout,), jnp.float32)
    b2 = 0.1 * jax.random.normal(ks[8], (Cout,), jnp.float32)
    params = (w1, cb1, g1, b1, w2, cb2, g2, b2)

    out = jax.block_until_ready(double_conv(x, params))
    ref = jax.block_until_ready(ref_double_conv(x, params))

    assert out.shape == (N, Cout, H, W), out.shape
    max_err = float(jnp.max(jnp.abs(out - ref)))
    mean_err = float(jnp.mean(jnp.abs(out - ref)))
    # bf16 MXU operands (f32 accumulation) => looser tolerance than a pure-f32 kernel;
    # a tap/halo misalignment bug would produce O(1) errors and still be caught.
    assert max_err < 1e-1 and mean_err < 1e-2, (max_err, mean_err)

    print("KERNEL_OK")
</pallas_src>

<mosaic_0001>
module attributes {stable_mosaic.version = 11 : i64} {
  func.func @doubleconv_kernel(%arg0: i32, %arg1: memref<2x16x16x128xbf16, #tpu.memory_space<vmem>>, %arg2: memref<1152x128xbf16, #tpu.memory_space<vmem>>, %arg3: memref<1x128xf32, #tpu.memory_space<vmem>>, %arg4: memref<1x128xf32, #tpu.memory_space<vmem>>, %arg5: memref<1x128xf32, #tpu.memory_space<vmem>>, %arg6: memref<1152x128xbf16, #tpu.memory_space<vmem>>, %arg7: memref<1x128xf32, #tpu.memory_space<vmem>>, %arg8: memref<1x128xf32, #tpu.memory_space<vmem>>, %arg9: memref<1x128xf32, #tpu.memory_space<vmem>>, %arg10: memref<512x128xf32, #tpu.memory_space<vmem>>, %arg11: memref<2x18x18x128xf32, #tpu.memory_space<vmem>>) attributes {dimension_semantics = [#tpu.dimension_semantics<arbitrary>], iteration_bounds = array<i64: 1>, scalar_prefetch = 0 : i64, scratch_operands = 1 : i64, tpu.core_type = #tpu.core_type<tc>, window_params = [{pipeline_mode = #tpu.pipeline_mode<synchronous>, transform_indices = @transform_0, window_bounds = array<i64: 2, 16, 16, 128>}, {pipeline_mode = #tpu.pipeline_mode<synchronous>, transform_indices = @transform_1, window_bounds = array<i64: 1152, 128>}, {pipeline_mode = #tpu.pipeline_mode<synchronous>, transform_indices = @transform_2, window_bounds = array<i64: 1, 128>}, {pipeline_mode = #tpu.pipeline_mode<synchronous>, transform_indices = @transform_3, window_bounds = array<i64: 1, 128>}, {pipeline_mode = #tpu.pipeline_mode<synchronous>, transform_indices = @transform_4, window_bounds = array<i64: 1, 128>}, {pipeline_mode = #tpu.pipeline_mode<synchronous>, transform_indices = @transform_5, window_bounds = array<i64: 1152, 128>}, {pipeline_mode = #tpu.pipeline_mode<synchronous>, transform_indices = @transform_6, window_bounds = array<i64: 1, 128>}, {pipeline_mode = #tpu.pipeline_mode<synchronous>, transform_indices = @transform_7, window_bounds = array<i64: 1, 128>}, {pipeline_mode = #tpu.pipeline_mode<synchronous>, transform_indices = @transform_8, window_bounds = array<i64: 1, 128>}, {pipeline_mode = #tpu.pipeline_mode<synchronous>, transform_indices = @transform_9, window_bounds = array<i64: 512, 128>}]} {
    %cst = arith.constant 0.000000e+00 : f32
    %0 = vector.broadcast %cst : f32 to vector<2x1x18x128xf32>
    %cst_0 = arith.constant 0.000000e+00 : f32
    %1 = vector.broadcast %cst_0 : f32 to vector<2x18x1x128xf32>
    %c0 = arith.constant 0 : index
    %c0_1 = arith.constant 0 : index
    %c0_2 = arith.constant 0 : index
    %c0_3 = arith.constant 0 : index
    %2 = vector.load %arg11[%c0, %c0_1, %c0_2, %c0_3] : memref<2x18x18x128xf32, #tpu.memory_space<vmem>>, vector<2x1x18x128xf32>
    tpu.vector_store %arg11[%c0, %c0_1, %c0_2, %c0_3], %0 {strides = array<i32>} : memref<2x18x18x128xf32, #tpu.memory_space<vmem>>, vector<2x1x18x128xf32>,
    %c0_4 = arith.constant 0 : index
    %c17 = arith.constant 17 : index
    %c0_5 = arith.constant 0 : index
    %c0_6 = arith.constant 0 : index
    %3 = vector.load %arg11[%c0_4, %c17, %c0_5, %c0_6] : memref<2x18x18x128xf32, #tpu.memory_space<vmem>>, vector<2x1x18x128xf32>
    tpu.vector_store %arg11[%c0_4, %c17, %c0_5, %c0_6], %0 {strides = array<i32>} : memref<2x18x18x128xf32, #tpu.memory_space<vmem>>, vector<2x1x18x128xf32>,
    %c0_7 = arith.constant 0 : index
    %c0_8 = arith.constant 0 : index
    %c0_9 = arith.constant 0 : index
    %c0_10 = arith.constant 0 : index
    %4 = vector.load %arg11[%c0_7, %c0_8, %c0_9, %c0_10] : memref<2x18x18x128xf32, #tpu.memory_space<vmem>>, vector<2x18x1x128xf32>
    tpu.vector_store %arg11[%c0_7, %c0_8, %c0_9, %c0_10], %1 {strides = array<i32>} : memref<2x18x18x128xf32, #tpu.memory_space<vmem>>, vector<2x18x1x128xf32>,
    %c0_11 = arith.constant 0 : index
    %c0_12 = arith.constant 0 : index
    %c17_13 = arith.constant 17 : index
    %c0_14 = arith.constant 0 : index
    %5 = vector.load %arg11[%c0_11, %c0_12, %c17_13, %c0_14] : memref<2x18x18x128xf32, #tpu.memory_space<vmem>>, vector<2x18x1x128xf32>
    tpu.vector_store %arg11[%c0_11, %c0_12, %c17_13, %c0_14], %1 {strides = array<i32>} : memref<2x18x18x128xf32, #tpu.memory_space<vmem>>, vector<2x18x1x128xf32>,
    %c0_15 = arith.constant 0 : index
    %c0_16 = arith.constant 0 : index
    %c0_17 = arith.constant 0 : index
    %c0_18 = arith.constant 0 : index
    %6 = vector.load %arg1[%c0_15, %c0_16, %c0_17, %c0_18] : memref<2x16x16x128xbf16, #tpu.memory_space<vmem>>, vector<2x16x16x128xbf16>
    %7 = arith.extf %6 : vector<2x16x16x128xbf16> to vector<2x16x16x128xf32>
    %c0_19 = arith.constant 0 : index
    %c1 = arith.constant 1 : index
    %c1_20 = arith.constant 1 : index
    %c0_21 = arith.constant 0 : index
    %8 = vector.load %arg11[%c0_19, %c1, %c1_20, %c0_21] : memref<2x18x18x128xf32, #tpu.memory_space<vmem>>, vector<2x16x16x128xf32>
    tpu.vector_store %arg11[%c0_19, %c1, %c1_20, %c0_21], %7 {strides = array<i32>} : memref<2x18x18x128xf32, #tpu.memory_space<vmem>>, vector<2x16x16x128xf32>,
    %c0_22 = arith.constant 0 : index
    %c0_23 = arith.constant 0 : index
    %9 = vector.load %arg2[%c0_22, %c0_23] : memref<1152x128xbf16, #tpu.memory_space<vmem>>, vector<1152x128xbf16>
    %c0_24 = arith.constant 0 : index
    %c0_25 = arith.constant 0 : index
    %c0_26 = arith.constant 0 : index
    %c0_27 = arith.constant 0 : index
    %10 = vector.load %arg11[%c0_24, %c0_25, %c0_26, %c0_27] : memref<2x18x18x128xf32, #tpu.memory_space<vmem>>, vector<2x16x16x128xf32>
    %11 = vector.shape_cast %10 : vector<2x16x16x128xf32> to vector<512x128xf32>
    %12 = arith.truncf %11 : vector<512x128xf32> to vector<512x128xbf16>
    %c0_28 = arith.constant 0 : index
    %c0_29 = arith.constant 0 : index
    %c1_30 = arith.constant 1 : index
    %c0_31 = arith.constant 0 : index
    %13 = vector.load %arg11[%c0_28, %c0_29, %c1_30, %c0_31] : memref<2x18x18x128xf32, #tpu.memory_space<vmem>>, vector<2x16x16x128xf32>
    %14 = vector.shape_cast %13 : vector<2x16x16x128xf32> to vector<512x128xf32>
    %15 = arith.truncf %14 : vector<512x128xf32> to vector<512x128xbf16>
    %c0_32 = arith.constant 0 : index
    %c0_33 = arith.constant 0 : index
    %c2 = arith.constant 2 : index
    %c0_34 = arith.constant 0 : index
    %16 = vector.load %arg11[%c0_32, %c0_33, %c2, %c0_34] : memref<2x18x18x128xf32, #tpu.memory_space<vmem>>, vector<2x16x16x128xf32>
    %17 = vector.shape_cast %16 : vector<2x16x16x128xf32> to vector<512x128xf32>
    %18 = arith.truncf %17 : vector<512x128xf32> to vector<512x128xbf16>
    %c0_35 = arith.constant 0 : index
    %c1_36 = arith.constant 1 : index
    %c0_37 = arith.constant 0 : index
    %c0_38 = arith.constant 0 : index
    %19 = vector.load %arg11[%c0_35, %c1_36, %c0_37, %c0_38] : memref<2x18x18x128xf32, #tpu.memory_space<vmem>>, vector<2x16x16x128xf32>
    %20 = vector.shape_cast %19 : vector<2x16x16x128xf32> to vector<512x128xf32>
    %21 = arith.truncf %20 : vector<512x128xf32> to vector<512x128xbf16>
    %c0_39 = arith.constant 0 : index
    %c1_40 = arith.constant 1 : index
    %c1_41 = arith.constant 1 : index
    %c0_42 = arith.constant 0 : index
    %22 = vector.load %arg11[%c0_39, %c1_40, %c1_41, %c0_42] : memref<2x18x18x128xf32, #tpu.memory_space<vmem>>, vector<2x16x16x128xf32>
    %23 = vector.shape_cast %22 : vector<2x16x16x128xf32> to vector<512x128xf32>
    %24 = arith.truncf %23 : vector<512x128xf32> to vector<512x128xbf16>
    %c0_43 = arith.constant 0 : index
    %c1_44 = arith.constant 1 : index
    %c2_45 = arith.constant 2 : index
    %c0_46 = arith.constant 0 : index
    %25 = vector.load %arg11[%c0_43, %c1_44, %c2_45, %c0_46] : memref<2x18x18x128xf32, #tpu.memory_space<vmem>>, vector<2x16x16x128xf32>
    %26 = vector.shape_cast %25 : vector<2x16x16x128xf32> to vector<512x128xf32>
    %27 = arith.truncf %26 : vector<512x128xf32> to vector<512x128xbf16>
    %c0_47 = arith.constant 0 : index
    %c2_48 = arith.constant 2 : index
    %c0_49 = arith.constant 0 : index
    %c0_50 = arith.constant 0 : index
    %28 = vector.load %arg11[%c0_47, %c2_48, %c0_49, %c0_50] : memref<2x18x18x128xf32, #tpu.memory_space<vmem>>, vector<2x16x16x128xf32>
    %29 = vector.shape_cast %28 : vector<2x16x16x128xf32> to vector<512x128xf32>
    %30 = arith.truncf %29 : vector<512x128xf32> to vector<512x128xbf16>
    %c0_51 = arith.constant 0 : index
    %c2_52 = arith.constant 2 : index
    %c1_53 = arith.constant 1 : index
    %c0_54 = arith.constant 0 : index
    %31 = vector.load %arg11[%c0_51, %c2_52, %c1_53, %c0_54] : memref<2x18x18x128xf32, #tpu.memory_space<vmem>>, vector<2x16x16x128xf32>
    %32 = vector.shape_cast %31 : vector<2x16x16x128xf32> to vector<512x128xf32>
    %33 = arith.truncf %32 : vector<512x128xf32> to vector<512x128xbf16>
    %c0_55 = arith.constant 0 : index
    %c2_56 = arith.constant 2 : index
    %c2_57 = arith.constant 2 : index
    %c0_58 = arith.constant 0 : index
    %34 = vector.load %arg11[%c0_55, %c2_56, %c2_57, %c0_58] : memref<2x18x18x128xf32, #tpu.memory_space<vmem>>, vector<2x16x16x128xf32>
    %35 = vector.shape_cast %34 : vector<2x16x16x128xf32> to vector<512x128xf32>
    %36 = arith.truncf %35 : vector<512x128xf32> to vector<512x128xbf16>
    %37 = tpu.concatenate %12, %15, %18, %21, %24, %27, %30, %33, %36 in 1 : vector<512x128xbf16>, vector<512x128xbf16>, vector<512x128xbf16>, vector<512x128xbf16>, vector<512x128xbf16>, vector<512x128xbf16>, vector<512x128xbf16>, vector<512x128xbf16>, vector<512x128xbf16> -> vector<512x1152xbf16>
    %cst_59 = arith.constant dense<0.000000e+00> : vector<512x128xf32>
    %38 = tpu.matmul %37, %9, %cst_59 {dimension_numbers = #tpu.dot_dimension_numbers<[1], [0], [0], [1], [0, 0, 1, 1], [], []>} : vector<512x1152xbf16>, vector<1152x128xbf16>, vector<512x128xf32> -> vector<512x128xf32>
    %c0_60 = arith.constant 0 : index
    %c0_61 = arith.constant 0 : index
    %39 = vector.load %arg3[%c0_60, %c0_61] : memref<1x128xf32, #tpu.memory_space<vmem>>, vector<1x128xf32>
    %40 = vector.broadcast %39 : vector<1x128xf32> to vector<512x128xf32>
    %41 = arith.addf %38, %40 : vector<512x128xf32>
    %c0_62 = arith.constant 0 : index
    %c0_63 = arith.constant 0 : index
    %42 = vector.load %arg4[%c0_62, %c0_63] : memref<1x128xf32, #tpu.memory_space<vmem>>, vector<1x128xf32>
    %c0_64 = arith.constant 0 : index
    %c0_65 = arith.constant 0 : index
    %43 = vector.load %arg5[%c0_64, %c0_65] : memref<1x128xf32, #tpu.memory_space<vmem>>, vector<1x128xf32>
    %cst_66 = arith.constant dense<0.000000e+00> : vector<128xf32>
    %44 = vector.multi_reduction <add>, %41, %cst_66 [0] : vector<512x128xf32> to vector<128xf32>
    %45 = vector.shape_cast %44 : vector<128xf32> to vector<1x128xf32>
    %cst_67 = arith.constant 0.001953125 : f32
    %46 = vector.broadcast %cst_67 : f32 to vector<1x128xf32>
    %47 = arith.mulf %45, %46 : vector<1x128xf32>
    %48 = arith.mulf %41, %41 : vector<512x128xf32>
    %cst_68 = arith.constant dense<0.000000e+00> : vector<128xf32>
    %49 = vector.multi_reduction <add>, %48, %cst_68 [0] : vector<512x128xf32> to vector<128xf32>
    %50 = vector.shape_cast %49 : vector<128xf32> to vector<1x128xf32>
    %cst_69 = arith.constant 0.001953125 : f32
    %51 = vector.broadcast %cst_69 : f32 to vector<1x128xf32>
    %52 = arith.mulf %50, %51 : vector<1x128xf32>
    %53 = arith.mulf %47, %47 : vector<1x128xf32>
    %54 = arith.subf %52, %53 : vector<1x128xf32>
    %cst_70 = arith.constant 9.99999974E-6 : f32
    %55 = vector.broadcast %cst_70 : f32 to vector<1x128xf32>
    %56 = arith.addf %54, %55 : vector<1x128xf32>
    %57 = math.rsqrt %56 : vector<1x128xf32>
    %58 = arith.mulf %42, %57 : vector<1x128xf32>
    %59 = vector.broadcast %58 : vector<1x128xf32> to vector<512x128xf32>
    %60 = arith.mulf %41, %59 : vector<512x128xf32>
    %61 = arith.mulf %47, %58 : vector<1x128xf32>
    %62 = arith.subf %43, %61 : vector<1x128xf32>
    %63 = vector.broadcast %62 : vector<1x128xf32> to vector<512x128xf32>
    %64 = arith.addf %60, %63 : vector<512x128xf32>
    %cst_71 = arith.constant 0.000000e+00 : f32
    %65 = vector.broadcast %cst_71 : f32 to vector<512x128xf32>
    %66 = arith.maximumf %64, %65 : vector<512x128xf32>
    %67 = vector.shape_cast %66 : vector<512x128xf32> to vector<2x16x16x128xf32>
    %c0_72 = arith.constant 0 : index
    %c1_73 = arith.constant 1 : index
    %c1_74 = arith.constant 1 : index
    %c0_75 = arith.constant 0 : index
    %68 = vector.load %arg11[%c0_72, %c1_73, %c1_74, %c0_75] : memref<2x18x18x128xf32, #tpu.memory_space<vmem>>, vector<2x16x16x128xf32>
    tpu.vector_store %arg11[%c0_72, %c1_73, %c1_74, %c0_75], %67 {strides = array<i32>} : memref<2x18x18x128xf32, #tpu.memory_space<vmem>>, vector<2x16x16x128xf32>,
    %c0_76 = arith.constant 0 : index
    %c0_77 = arith.constant 0 : index
    %69 = vector.load %arg6[%c0_76, %c0_77] : memref<1152x128xbf16, #tpu.memory_space<vmem>>, vector<1152x128xbf16>
    %c0_78 = arith.constant 0 : index
    %c0_79 = arith.constant 0 : index
    %c0_80 = arith.constant 0 : index
    %c0_81 = arith.constant 0 : index
    %70 = vector.load %arg11[%c0_78, %c0_79, %c0_80, %c0_81] : memref<2x18x18x128xf32, #tpu.memory_space<vmem>>, vector<2x16x16x128xf32>
    %71 = vector.shape_cast %70 : vector<2x16x16x128xf32> to vector<512x128xf32>
    %72 = arith.truncf %71 : vector<512x128xf32> to vector<512x128xbf16>
    %c0_82 = arith.constant 0 : index
    %c0_83 = arith.constant 0 : index
    %c1_84 = arith.constant 1 : index
    %c0_85 = arith.constant 0 : index
    %73 = vector.load %arg11[%c0_82, %c0_83, %c1_84, %c0_85] : memref<2x18x18x128xf32, #tpu.memory_space<vmem>>, vector<2x16x16x128xf32>
    %74 = vector.shape_cast %73 : vector<2x16x16x128xf32> to vector<512x128xf32>
    %75 = arith.truncf %74 : vector<512x128xf32> to vector<512x128xbf16>
    %c0_86 = arith.constant 0 : index
    %c0_87 = arith.constant 0 : index
    %c2_88 = arith.constant 2 : index
    %c0_89 = arith.constant 0 : index
    %76 = vector.load %arg11[%c0_86, %c0_87, %c2_88, %c0_89] : memref<2x18x18x128xf32, #tpu.memory_space<vmem>>, vector<2x16x16x128xf32>
    %77 = vector.shape_cast %76 : vector<2x16x16x128xf32> to vector<512x128xf32>
    %78 = arith.truncf %77 : vector<512x128xf32> to vector<512x128xbf16>
    %c0_90 = arith.constant 0 : index
    %c1_91 = arith.constant 1 : index
    %c0_92 = arith.constant 0 : index
    %c0_93 = arith.constant 0 : index
    %79 = vector.load %arg11[%c0_90, %c1_91, %c0_92, %c0_93] : memref<2x18x18x128xf32, #tpu.memory_space<vmem>>, vector<2x16x16x128xf32>
    %80 = vector.shape_cast %79 : vector<2x16x16x128xf32> to vector<512x128xf32>
    %81 = arith.truncf %80 : vector<512x128xf32> to vector<512x128xbf16>
    %c0_94 = arith.constant 0 : index
    %c1_95 = arith.constant 1 : index
    %c1_96 = arith.constant 1 : index
    %c0_97 = arith.constant 0 : index
    %82 = vector.load %arg11[%c0_94, %c1_95, %c1_96, %c0_97] : memref<2x18x18x128xf32, #tpu.memory_space<vmem>>, vector<2x16x16x128xf32>
    %83 = vector.shape_cast %82 : vector<2x16x16x128xf32> to vector<512x128xf32>
    %84 = arith.truncf %83 : vector<512x128xf32> to vector<512x128xbf16>
    %c0_98 = arith.constant 0 : index
    %c1_99 = arith.constant 1 : index
    %c2_100 = arith.constant 2 : index
    %c0_101 = arith.constant 0 : index
    %85 = vector.load %arg11[%c0_98, %c1_99, %c2_100, %c0_101] : memref<2x18x18x128xf32, #tpu.memory_space<vmem>>, vector<2x16x16x128xf32>
    %86 = vector.shape_cast %85 : vector<2x16x16x128xf32> to vector<512x128xf32>
    %87 = arith.truncf %86 : vector<512x128xf32> to vector<512x128xbf16>
    %c0_102 = arith.constant 0 : index
    %c2_103 = arith.constant 2 : index
    %c0_104 = arith.constant 0 : index
    %c0_105 = arith.constant 0 : index
    %88 = vector.load %arg11[%c0_102, %c2_103, %c0_104, %c0_105] : memref<2x18x18x128xf32, #tpu.memory_space<vmem>>, vector<2x16x16x128xf32>
    %89 = vector.shape_cast %88 : vector<2x16x16x128xf32> to vector<512x128xf32>
    %90 = arith.truncf %89 : vector<512x128xf32> to vector<512x128xbf16>
    %c0_106 = arith.constant 0 : index
    %c2_107 = arith.constant 2 : index
    %c1_108 = arith.constant 1 : index
    %c0_109 = arith.constant 0 : index
    %91 = vector.load %arg11[%c0_106, %c2_107, %c1_108, %c0_109] : memref<2x18x18x128xf32, #tpu.memory_space<vmem>>, vector<2x16x16x128xf32>
    %92 = vector.shape_cast %91 : vector<2x16x16x128xf32> to vector<512x128xf32>
    %93 = arith.truncf %92 : vector<512x128xf32> to vector<512x128xbf16>
    %c0_110 = arith.constant 0 : index
    %c2_111 = arith.constant 2 : index
    %c2_112 = arith.constant 2 : index
    %c0_113 = arith.constant 0 : index
    %94 = vector.load %arg11[%c0_110, %c2_111, %c2_112, %c0_113] : memref<2x18x18x128xf32, #tpu.memory_space<vmem>>, vector<2x16x16x128xf32>
    %95 = vector.shape_cast %94 : vector<2x16x16x128xf32> to vector<512x128xf32>
    %96 = arith.truncf %95 : vector<512x128xf32> to vector<512x128xbf16>
    %97 = tpu.concatenate %72, %75, %78, %81, %84, %87, %90, %93, %96 in 1 : vector<512x128xbf16>, vector<512x128xbf16>, vector<512x128xbf16>, vector<512x128xbf16>, vector<512x128xbf16>, vector<512x128xbf16>, vector<512x128xbf16>, vector<512x128xbf16>, vector<512x128xbf16> -> vector<512x1152xbf16>
    %cst_114 = arith.constant dense<0.000000e+00> : vector<512x128xf32>
    %98 = tpu.matmul %97, %69, %cst_114 {dimension_numbers = #tpu.dot_dimension_numbers<[1], [0], [0], [1], [0, 0, 1, 1], [], []>} : vector<512x1152xbf16>, vector<1152x128xbf16>, vector<512x128xf32> -> vector<512x128xf32>
    %c0_115 = arith.constant 0 : index
    %c0_116 = arith.constant 0 : index
    %99 = vector.load %arg7[%c0_115, %c0_116] : memref<1x128xf32, #tpu.memory_space<vmem>>, vector<1x128xf32>
    %100 = vector.broadcast %99 : vector<1x128xf32> to vector<512x128xf32>
    %101 = arith.addf %98, %100 : vector<512x128xf32>
    %c0_117 = arith.constant 0 : index
    %c0_118 = arith.constant 0 : index
    %102 = vector.load %arg8[%c0_117, %c0_118] : memref<1x128xf32, #tpu.memory_space<vmem>>, vector<1x128xf32>
    %c0_119 = arith.constant 0 : index
    %c0_120 = arith.constant 0 : index
    %103 = vector.load %arg9[%c0_119, %c0_120] : memref<1x128xf32, #tpu.memory_space<vmem>>, vector<1x128xf32>
    %cst_121 = arith.constant dense<0.000000e+00> : vector<128xf32>
    %104 = vector.multi_reduction <add>, %101, %cst_121 [0] : vector<512x128xf32> to vector<128xf32>
    %105 = vector.shape_cast %104 : vector<128xf32> to vector<1x128xf32>
    %cst_122 = arith.constant 0.001953125 : f32
    %106 = vector.broadcast %cst_122 : f32 to vector<1x128xf32>
    %107 = arith.mulf %105, %106 : vector<1x128xf32>
    %108 = arith.mulf %101, %101 : vector<512x128xf32>
    %cst_123 = arith.constant dense<0.000000e+00> : vector<128xf32>
    %109 = vector.multi_reduction <add>, %108, %cst_123 [0] : vector<512x128xf32> to vector<128xf32>
    %110 = vector.shape_cast %109 : vector<128xf32> to vector<1x128xf32>
    %cst_124 = arith.constant 0.001953125 : f32
    %111 = vector.broadcast %cst_124 : f32 to vector<1x128xf32>
    %112 = arith.mulf %110, %111 : vector<1x128xf32>
    %113 = arith.mulf %107, %107 : vector<1x128xf32>
    %114 = arith.subf %112, %113 : vector<1x128xf32>
    %cst_125 = arith.constant 9.99999974E-6 : f32
    %115 = vector.broadcast %cst_125 : f32 to vector<1x128xf32>
    %116 = arith.addf %114, %115 : vector<1x128xf32>
    %117 = math.rsqrt %116 : vector<1x128xf32>
    %118 = arith.mulf %102, %117 : vector<1x128xf32>
    %119 = vector.broadcast %118 : vector<1x128xf32> to vector<512x128xf32>
    %120 = arith.mulf %101, %119 : vector<512x128xf32>
    %121 = arith.mulf %107, %118 : vector<1x128xf32>
    %122 = arith.subf %103, %121 : vector<1x128xf32>
    %123 = vector.broadcast %122 : vector<1x128xf32> to vector<512x128xf32>
    %124 = arith.addf %120, %123 : vector<512x128xf32>
    %cst_126 = arith.constant 0.000000e+00 : f32
    %125 = vector.broadcast %cst_126 : f32 to vector<512x128xf32>
    %126 = arith.maximumf %124, %125 : vector<512x128xf32>
    %c0_127 = arith.constant 0 : index
    %c0_128 = arith.constant 0 : index
    %127 = vector.load %arg10[%c0_127, %c0_128] : memref<512x128xf32, #tpu.memory_space<vmem>>, vector<512x128xf32>
    tpu.vector_store %arg10[%c0_127, %c0_128], %126 {strides = array<i32>} : memref<512x128xf32, #tpu.memory_space<vmem>>, vector<512x128xf32>,
    return
  }
  func.func @transform_0(%arg0: i32) -> (i32, i32, i32, i32) {
    %c0_i32 = arith.constant 0 : i32
    %c0_i32_0 = arith.constant 0 : i32
    %c0_i32_1 = arith.constant 0 : i32
    %c0_i32_2 = arith.constant 0 : i32
    %c0_i32_3 = arith.constant 0 : i32
    return %c0_i32, %c0_i32_0, %c0_i32_1, %c0_i32_2 : i32, i32, i32, i32
  }
  func.func @transform_1(%arg0: i32) -> (i32, i32) {
    %c0_i32 = arith.constant 0 : i32
    %c0_i32_0 = arith.constant 0 : i32
    %c0_i32_1 = arith.constant 0 : i32
    return %c0_i32, %c0_i32_0 : i32, i32
  }
  func.func @transform_2(%arg0: i32) -> (i32, i32) {
    %c0_i32 = arith.constant 0 : i32
    %c0_i32_0 = arith.constant 0 : i32
    %c0_i32_1 = arith.constant 0 : i32
    return %c0_i32, %c0_i32_0 : i32, i32
  }
  func.func @transform_3(%arg0: i32) -> (i32, i32) {
    %c0_i32 = arith.constant 0 : i32
    %c0_i32_0 = arith.constant 0 : i32
    %c0_i32_1 = arith.constant 0 : i32
    return %c0_i32, %c0_i32_0 : i32, i32
  }
  func.func @transform_4(%arg0: i32) -> (i32, i32) {
    %c0_i32 = arith.constant 0 : i32
    %c0_i32_0 = arith.constant 0 : i32
    %c0_i32_1 = arith.constant 0 : i32
    return %c0_i32, %c0_i32_0 : i32, i32
  }
  func.func @transform_5(%arg0: i32) -> (i32, i32) {
    %c0_i32 = arith.constant 0 : i32
    %c0_i32_0 = arith.constant 0 : i32
    %c0_i32_1 = arith.constant 0 : i32
    return %c0_i32, %c0_i32_0 : i32, i32
  }
  func.func @transform_6(%arg0: i32) -> (i32, i32) {
    %c0_i32 = arith.constant 0 : i32
    %c0_i32_0 = arith.constant 0 : i32
    %c0_i32_1 = arith.constant 0 : i32
    return %c0_i32, %c0_i32_0 : i32, i32
  }
  func.func @transform_7(%arg0: i32) -> (i32, i32) {
    %c0_i32 = arith.constant 0 : i32
    %c0_i32_0 = arith.constant 0 : i32
    %c0_i32_1 = arith.constant 0 : i32
    return %c0_i32, %c0_i32_0 : i32, i32
  }
  func.func @transform_8(%arg0: i32) -> (i32, i32) {
    %c0_i32 = arith.constant 0 : i32
    %c0_i32_0 = arith.constant 0 : i32
    %c0_i32_1 = arith.constant 0 : i32
    return %c0_i32, %c0_i32_0 : i32, i32
  }
  func.func @transform_9(%arg0: i32) -> (i32, i32) {
    %c0_i32 = arith.constant 0 : i32
    %c0_i32_0 = arith.constant 0 : i32
    %c0_i32_1 = arith.constant 0 : i32
    return %c0_i32, %c0_i32_0 : i32, i32
  }
}

</mosaic_0001>

<bundles_post_ra>
// kernel: tpu_custom_call.1
= control target key start
LH: loop header
LB: loop body
LE: loop exit
PB: predicated region body
PF: predicated region fallthrough
CT: control target
= control target key end

     0   :  { %14 = vsyncpa [#allocation4], 0  ;;  %s12550_s0 = inlined_call_operand.hbm [shape: bf16[2,16,16,128], index: 0, kind: input, shape index: {}]   ;;  %s12551_s1 = inlined_call_operand.hbm [shape: bf16[1152,128], index: 1, kind: input, shape index: {}]   ;;  %s12552_s2 = inlined_call_operand.vmem [shape: f32[1,128], index: 2, kind: input, shape index: {}]   ;;  %s12553_s3 = inlined_call_operand.vmem [shape: f32[1,128], index: 3, kind: input, shape index: {}]   ;;  %s12554_s4 = inlined_call_operand.vmem [shape: f32[1,128], index: 4, kind: input, shape index: {}]   ;;  %s12555_s5 = inlined_call_operand.hbm [shape: bf16[1152,128], index: 5, kind: input, shape index: {}]   ;;  %s12556_s6 = inlined_call_operand.vmem [shape: f32[1,128], index: 6, kind: input, shape index: {}]   ;;  %s12557_s7 = inlined_call_operand.vmem [shape: f32[1,128], index: 7, kind: input, shape index: {}]   ;;  %s12558_s8 = inlined_call_operand.vmem [shape: f32[1,128], index: 8, kind: input, shape index: {}]   ;;  %s12559_s9 = inlined_call_operand.hbm [shape: f32[512,128], index: 9, kind: output, shape index: {}]  }
   0x1   :  { %15 = vsyncpa [#allocation7], 0 }
   0x2   :  { %16 = vsyncpa [#allocation5], 0  ;;  %s8873_s30 = smov [#allocation6]   ;;  %s8874_s11 = smov [#allocation3]  }
   0x3   :  { %s34_s10 = sshll.u32 %s8873_s30, 4  ;;  %s22_s12 = sshll.u32 %s8874_s11, 4  ;;  %s35_s10 = int_to_ptr.vmem [resolvable:$true] %s34_s10  ;;  %s8933_s12 = int_to_ptr.vmem [resolvable:$true] %s22_s12 }
   0x4   :  { %s8779_s15 = scalar_lea.hbm %s12551_s1, 9216 }
   0x5   :  { %p8780_p0 = scmp.ne.s32.totalorder %s12551_s1, %s8779_s15  ;;  %p8783_p1 = scmp.lt.u32.totalorder %s8779_s15, %s12551_s1 }
   0x7   :  { %p8785_p2 = pnand %p8783_p1, %p8780_p0 }
   0x9   :  { %8788 = shalt.err (!%p8785_p2)
}
   0xa   :  { %s8789_s20 = scalar_lea.vmem %s35_s10, 9216  ;;  %p8794_p4 = scmp.lt.s32.totalorder %s35_s10, %s35_s10 }
   0xb   :  { %p8790_p3 = scmp.ne.s32.totalorder %s35_s10, %s8789_s20  ;;  %p8795_p5 = scmp.lt.s32.totalorder %s8789_s20, %s8789_s20 }
   0xd   :  { %p8796_p6 = por %p8795_p5, %p8794_p4 }
   0xf   :  { %p8797_p7 = pnand %p8796_p6, %p8790_p3 }
  0x11   :  { %8800 = shalt.err (!%p8797_p7)
}
  0x12   :  { %s8875_s21 = smov 64   ;;  %s8876_s22 = smov 4  }
  0x13   :  { %40 = dma.hbm_to_vmem [thread:$0]  %s12551_s1, 9216, %s35_s10, [#allocation7], %s8875_s21, %s8875_s21, %s8876_s22  }
  0x14   :  { %s8801_s27 = scalar_lea.hbm %s12550_s0, 4096 }
  0x15   :  { %p8802_p8 = scmp.ne.s32.totalorder %s12550_s0, %s8801_s27  ;;  %p8805_p9 = scmp.lt.u32.totalorder %s8801_s27, %s12550_s0 }
  0x17   :  { %p8807_p10 = pnand %p8805_p9, %p8802_p8 }
  0x19   :  { %8810 = shalt.err (!%p8807_p10)
}
  0x1a   :  { %s8811_s13 = scalar_lea.vmem %s8933_s12, 4096  ;;  %p8816_p12 = scmp.lt.s32.totalorder %s8933_s12, %s8933_s12 }
  0x1b   :  { %p8812_p11 = scmp.ne.s32.totalorder %s8933_s12, %s8811_s13  ;;  %p8817_p13 = scmp.lt.s32.totalorder %s8811_s13, %s8811_s13 }
  0x1d   :  { %p8818_p0 = por %p8817_p13, %p8816_p12 }
  0x1f   :  { %p8819_p1 = pnand %p8818_p0, %p8812_p11 }
  0x21   :  { %8822 = shalt.err (!%p8819_p1)
}
  0x22   :  { %28 = dma.hbm_to_vmem [thread:$0]  %s12550_s0, 4096, %s8933_s12, [#allocation4], %s8875_s21, %s8875_s21, %s8876_s22  }
  0x23   :  { %s8877_s14 = smov [#allocation8]   ;;  %s8823_s18 = scalar_lea.hbm %s12555_s5, 9216 }
  0x24   :  { %s52_s15 = sshll.u32 %s8877_s14, 4  ;;  %p8824_p2 = scmp.ne.s32.totalorder %s12555_s5, %s8823_s18  ;;  %s53_s15 = int_to_ptr.vmem [resolvable:$true] %s52_s15 }
  0x25   :  { %p8827_p3 = scmp.lt.u32.totalorder %s8823_s18, %s12555_s5 }
  0x27   :  { %p8829_p4 = pnand %p8827_p3, %p8824_p2 }
  0x29   :  { %8832 = shalt.err (!%p8829_p4)
}
  0x2a   :  { %s8833_s25 = scalar_lea.vmem %s53_s15, 9216  ;;  %p8838_p6 = scmp.lt.s32.totalorder %s53_s15, %s53_s15 }
  0x2b   :  { %p8834_p5 = scmp.ne.s32.totalorder %s53_s15, %s8833_s25  ;;  %p8839_p7 = scmp.lt.s32.totalorder %s8833_s25, %s8833_s25 }
  0x2d   :  { %p8840_p8 = por %p8839_p7, %p8838_p6 }
  0x2f   :  { %p8841_p9 = pnand %p8840_p8, %p8834_p5 }
  0x31   :  { %8844 = shalt.err (!%p8841_p9)
}
  0x32   :  { %58 = dma.hbm_to_vmem [thread:$0]  %s12555_s5, 9216, %s53_s15, [#allocation7], %s8875_s21, %s8875_s21, %s8876_s22  }
  0x33   :  { %8867 = dma.done.wait [#allocation4], 4096  }
  0x34   :  { %8868 = vsyncadd [#allocation4], 4294963200 }
  0x35   :  { %8869 = dma.done.wait [#allocation7], 18432  }
  0x36   :  { %8870 = vsyncadd [#allocation7], 4294948864  ;;  %v12560_v0 = vmov 0   ;;  %v8879_v1 = vmov 0.0   ;;  %v8585_v2 = vld [vmem:[#allocation6] sm:$0xff]   ;;  %v8586_v3 = vld [vmem:[#allocation6 + $0x8] sm:$0xff]  }
  0x37   :  { %1801 = vmatprep.subr.bf16.mxu0 %v12560_v0  ;;  %75 = vst [vmem:[#allocation2] sm:$0xff] %v8879_v1  ;;  %76 = vst [vmem:[#allocation2 + $0x8] sm:$0xff] %v8879_v1  ;;  %v8587_v4 = vld [vmem:[#allocation6 + $0x10] sm:$0xff]   ;;  %v8588_v5 = vld [vmem:[#allocation6 + $0x18] sm:$0xff]  }
  0x38   :  { %77 = vst [vmem:[#allocation2 + $0x10] sm:$0x3] %v8879_v1  ;;  %78 = vst [vmem:[#allocation2 + $0x1b0] sm:$0xff] %v8879_v1  ;;  %1802 = vmatpush1.bf16.msra.mxu0 %v8585_v2  ;;  %v8589_v6 = vld [vmem:[#allocation6 + $0x20] sm:$0xff]   ;;  %v8590_v10 = vld [vmem:[#allocation6 + $0x28] sm:$0xff]  }
  0x39   :  { %79 = vst [vmem:[#allocation2 + $0x1b8] sm:$0xff] %v8879_v1  ;;  %80 = vst [vmem:[#allocation2 + $0x1c0] sm:$0x3] %v8879_v1  ;;  %1803 = vmatprep.subr.bf16.mxu0 %v12560_v0  ;;  %v7265_v11 = vld [vmem:[#allocation3] sm:$0xff]   ;;  %v7392_v12 = vld [vmem:[#allocation3 + $0x8] sm:$0xff]  }
  0x3a   :  { %82 = vst [vmem:[#allocation2 + $0x198] sm:$0xff] %v8879_v1  ;;  %83 = vst [vmem:[#allocation2 + $0x1a0] sm:$0xff] %v8879_v1  ;;  %v7266_v13 = vunpack.c.l.bf16 %v7265_v11  ;;  %v7267_v14 = vunpack.c.h.bf16 %v7265_v11  ;;  %v7270_v15 = vunpack.c.l.bf16 %v7392_v12  ;;  %v7271_v16 = vunpack.c.h.bf16 %v7392_v12  ;;  %v7393_v17 = vld [vmem:[#allocation3 + $0x10] sm:$0xff]   ;;  %v7394_v20 = vld [vmem:[#allocation3 + $0x18] sm:$0xff]  }
  0x3b   :  { %84 = vst [vmem:[#allocation2 + $0x1a8] sm:$0x3] %v8879_v1  ;;  %85 = vst [vmem:[#allocation2 + $0x348] sm:$0xff] %v8879_v1  ;;  %v7274_v18 = vunpack.c.l.bf16 %v7393_v17  ;;  %v7275_v19 = vunpack.c.h.bf16 %v7393_v17  ;;  %v8591_v21 = vld [vmem:[#allocation6 + $0x30] sm:$0xff]   ;;  %v7278_v22 = vunpack.c.l.bf16 %v7394_v20  ;;  %v7279_v23 = vunpack.c.h.bf16 %v7394_v20  ;;  %v7395_v24 = vld [vmem:[#allocation3 + $0x20] sm:$0xff]  }
  0x3c   :  { %86 = vst [vmem:[#allocation2 + $0x350] sm:$0xff] %v8879_v1  ;;  %87 = vst [vmem:[#allocation2 + $0x358] sm:$0x3] %v8879_v1  ;;  %1804 = vmatpush1.bf16.msra.mxu0 %v8586_v3  ;;  %v7282_v25 = vunpack.c.l.bf16 %v7395_v24  ;;  %v7283_v26 = vunpack.c.h.bf16 %v7395_v24  ;;  %v7396_v27 = vld [vmem:[#allocation3 + $0x28] sm:$0xff]   ;;  %v7397_v30 = vld [vmem:[#allocation3 + $0x30] sm:$0xff]  }
  0x3d   :  { %89 = vst [vmem:[#allocation2 + $0x18] sm:$0x1] %v8879_v1  ;;  %90 = vst [vmem:[#allocation2 + $0x30] sm:$0x1] %v8879_v1  ;;  %1805 = vmatprep.subr.bf16.mxu0 %v12560_v0  ;;  %v7286_v28 = vunpack.c.l.bf16 %v7396_v27  ;;  %v7287_v29 = vunpack.c.h.bf16 %v7396_v27  ;;  %v7398_v31 = vld [vmem:[#allocation3 + $0x38] sm:$0xff]   ;;  %v7290_v33 = vunpack.c.l.bf16 %v7397_v30  ;;  %v7291_v34 = vunpack.c.h.bf16 %v7397_v30  ;;  %v7399_v37 = vld [vmem:[#allocation3 + $0x40] sm:$0xff]  }
  0x3e   :  { %91 = vst [vmem:[#allocation2 + $0x48] sm:$0x1] %v8879_v1  ;;  %92 = vst [vmem:[#allocation2 + $0x60] sm:$0x1] %v8879_v1  ;;  %v593_v7 = vld [vmem:[#allocation2 + $0x1] sm:$0xff]  ;;  %v8592_v32 = vld [vmem:[#allocation6 + $0x38] sm:$0xff]   ;;  %v7294_v35 = vunpack.c.l.bf16 %v7398_v31  ;;  %v7295_v36 = vunpack.c.h.bf16 %v7398_v31  ;;  %v7298_v38 = vunpack.c.l.bf16 %v7399_v37  ;;  %v7299_v39 = vunpack.c.h.bf16 %v7399_v37 }
  0x3f   :  { %93 = vst [vmem:[#allocation2 + $0x78] sm:$0x1] %v8879_v1  ;;  %94 = vst [vmem:[#allocation2 + $0x90] sm:$0x1] %v8879_v1  ;;  %v594_v8 = vld [vmem:[#allocation2 + $0x9] sm:$0xff]  ;;  %v8593_v41 = vld [vmem:[#allocation6 + $0x40] sm:$0xff]  }
  0x40   :  { %95 = vst [vmem:[#allocation2 + $0xa8] sm:$0x1] %v8879_v1  ;;  %96 = vst [vmem:[#allocation2 + $0xc0] sm:$0x1] %v8879_v1  ;;  %1806 = vmatpush1.bf16.msra.mxu0 %v8587_v4  ;;  %v657_v9 = vpack.c.bf16 %v594_v8, %v593_v7  ;;  %v7400_v40 = vld [vmem:[#allocation3 + $0x48] sm:$0xff]   ;;  %v7401_v44 = vld [vmem:[#allocation3 + $0x50] sm:$0xff]  }
  0x41   :  { %97 = vst [vmem:[#allocation2 + $0xd8] sm:$0x1] %v8879_v1  ;;  %98 = vst [vmem:[#allocation2 + $0xf0] sm:$0x1] %v8879_v1  ;;  %1807 = vmatprep.subr.bf16.mxu0 %v12560_v0  ;;  %v7302_v42 = vunpack.c.l.bf16 %v7400_v40  ;;  %v7303_v43 = vunpack.c.h.bf16 %v7400_v40  ;;  %v8594_v45 = vld [vmem:[#allocation6 + $0x48] sm:$0xff]   ;;  %v7306_v46 = vunpack.c.l.bf16 %v7401_v44  ;;  %v7307_v47 = vunpack.c.h.bf16 %v7401_v44  ;;  %v7402_v48 = vld [vmem:[#allocation3 + $0x58] sm:$0xff]  }
  0x42   :  { %99 = vst [vmem:[#allocation2 + $0x108] sm:$0x1] %v8879_v1  ;;  %100 = vst [vmem:[#allocation2 + $0x120] sm:$0x1] %v8879_v1  ;;  %1833 = vmatprep.mubr.bf16.mxu0 %v657_v9  ;;  %v7310_v49 = vunpack.c.l.bf16 %v7402_v48  ;;  %v7311_v50 = vunpack.c.h.bf16 %v7402_v48  ;;  %v8595_v51 = vld [vmem:[#allocation6 + $0x50] sm:$0xff]   ;;  %v7403_v52 = vld [vmem:[#allocation3 + $0x60] sm:$0xff]  }
  0x43   :  { %101 = vst [vmem:[#allocation2 + $0x138] sm:$0x1] %v8879_v1  ;;  %102 = vst [vmem:[#allocation2 + $0x150] sm:$0x1] %v8879_v1  ;;  %v7404_v53 = vld [vmem:[#allocation3 + $0x68] sm:$0xff]   ;;  %v7314_v54 = vunpack.c.l.bf16 %v7403_v52  ;;  %v7315_v55 = vunpack.c.h.bf16 %v7403_v52  ;;  %v8596_v58 = vld [vmem:[#allocation6 + $0x58] sm:$0xff]  }
  0x44   :  { %103 = vst [vmem:[#allocation2 + $0x168] sm:$0x1] %v8879_v1  ;;  %104 = vst [vmem:[#allocation2 + $0x180] sm:$0x1] %v8879_v1  ;;  %1808 = vmatpush1.bf16.msra.mxu0 %v8588_v5  ;;  %v7318_v56 = vunpack.c.l.bf16 %v7404_v53  ;;  %v7319_v57 = vunpack.c.h.bf16 %v7404_v53  ;;  %v8597_v59 = vld [vmem:[#allocation6 + $0x60] sm:$0xff]   ;;  %v7405_v60 = vld [vmem:[#allocation3 + $0x70] sm:$0xff]  }
  0x45   :  { %107 = vst [vmem:[#allocation2 + $0x1c8] sm:$0x1] %v8879_v1  ;;  %108 = vst [vmem:[#allocation2 + $0x1e0] sm:$0x1] %v8879_v1  ;;  %1809 = vmatprep.subr.bf16.mxu0 %v12560_v0  ;;  %v7322_v61 = vunpack.c.l.bf16 %v7405_v60  ;;  %v7323_v62 = vunpack.c.h.bf16 %v7405_v60  ;;  %v8598_v63 = vld [vmem:[#allocation6 + $0x68] sm:$0xff]   ;;  %v8599_v2 = vld [vmem:[#allocation6 + $0x70] sm:$0xff]  }
  0x46   :  { %109 = vst [vmem:[#allocation2 + $0x1f8] sm:$0x1] %v8879_v1  ;;  %110 = vst [vmem:[#allocation2 + $0x210] sm:$0x1] %v8879_v1  ;;  %v8600_v3 = vld [vmem:[#allocation6 + $0x78] sm:$0xff]   ;;  %v8601_v5 = vld [vmem:[#allocation6 + $0x80] sm:$0xff]  }
  0x47   :  { %111 = vst [vmem:[#allocation2 + $0x228] sm:$0x1] %v8879_v1  ;;  %112 = vst [vmem:[#allocation2 + $0x240] sm:$0x1] %v8879_v1  ;;  %v7407_v7 = vld [vmem:[#allocation3 + $0x80] sm:$0xff]   ;;  %v8604_v11 = vld [vmem:[#allocation6 + $0x88] sm:$0xff]  }
  0x48   :  { %113 = vst [vmem:[#allocation2 + $0x258] sm:$0x1] %v8879_v1  ;;  %114 = vst [vmem:[#allocation2 + $0x270] sm:$0x1] %v8879_v1  ;;  %1810 = vmatpush1.bf16.msra.mxu0 %v8589_v6  ;;  %v8602_v6 = vld [vmem:[#allocation3] sm:$0xff]  ;;  %v7330_v9 = vunpack.c.l.bf16 %v7407_v7  ;;  %v8603_v17 = vld [vmem:[#allocation3 + $0x8] sm:$0xff] }
  0x49   :  { %115 = vst [vmem:[#allocation2 + $0x288] sm:$0x1] %v8879_v1  ;;  %116 = vst [vmem:[#allocation2 + $0x2a0] sm:$0x1] %v8879_v1  ;;  %1811 = vmatprep.subr.bf16.mxu0 %v12560_v0  ;;  %v8610_v20 = vld [vmem:[#allocation6 + $0x98] sm:$0xff]   ;;  %v8613_v27 = vld [vmem:[#allocation6 + $0xa0] sm:$0xff]  }
  0x4a   :  { %117 = vst [vmem:[#allocation2 + $0x2b8] sm:$0x1] %v8879_v1  ;;  %118 = vst [vmem:[#allocation2 + $0x2d0] sm:$0x1] %v8879_v1  ;;  %v8616_v30 = vld [vmem:[#allocation6 + $0xa8] sm:$0xff]   ;;  %v7410_v31 = vld [vmem:[#allocation3 + $0x98] sm:$0xff]  }
  0x4b   :  { %119 = vst [vmem:[#allocation2 + $0x2e8] sm:$0x1] %v8879_v1  ;;  %120 = vst [vmem:[#allocation2 + $0x300] sm:$0x1] %v8879_v1  ;;  %v7411_v40 = vld [vmem:[#allocation3 + $0xa0] sm:$0xff]   ;;  %v8627_v48 = vld [vmem:[#allocation6 + $0xc8] sm:$0xff]  }
  0x4c   :  { %121 = vst [vmem:[#allocation2 + $0x318] sm:$0x1] %v8879_v1  ;;  %122 = vst [vmem:[#allocation2 + $0x330] sm:$0x1] %v8879_v1  ;;  %1812 = vmatpush1.bf16.msra.mxu0 %v8590_v10  ;;  %v7331_v10 = vunpack.c.h.bf16 %v7407_v7  ;;  %v8608_v44 = vld [vmem:[#allocation3 + $0x20] sm:$0xff]  ;;  %v8609_v53 = vld [vmem:[#allocation3 + $0x28] sm:$0xff] }
  0x4d   :  { %125 = vst [vmem:[#allocation2 + $0x29] sm:$0x1] %v8879_v1  ;;  %126 = vst [vmem:[#allocation2 + $0x41] sm:$0x1] %v8879_v1  ;;  %1813 = vmatprep.subr.bf16.mxu0 %v12560_v0  ;;  %v8612_v7 = vld [vmem:[#allocation3 + $0x38] sm:$0xff] }
  0x4e   :  { %127 = vst [vmem:[#allocation2 + $0x59] sm:$0x1] %v8879_v1  ;;  %128 = vst [vmem:[#allocation2 + $0x71] sm:$0x1] %v8879_v1 }
  0x4f   :  { %129 = vst [vmem:[#allocation2 + $0x89] sm:$0x1] %v8879_v1  ;;  %130 = vst [vmem:[#allocation2 + $0xa1] sm:$0x1] %v8879_v1 }
  0x50   :  { %131 = vst [vmem:[#allocation2 + $0xb9] sm:$0x1] %v8879_v1  ;;  %132 = vst [vmem:[#allocation2 + $0xd1] sm:$0x1] %v8879_v1  ;;  %1814 = vmatpush1.bf16.msra.mxu0 %v8591_v21 }
  0x51   :  { %133 = vst [vmem:[#allocation2 + $0xe9] sm:$0x1] %v8879_v1  ;;  %134 = vst [vmem:[#allocation2 + $0x101] sm:$0x1] %v8879_v1  ;;  %1815 = vmatprep.subr.bf16.mxu0 %v12560_v0 }
  0x52   :  { %135 = vst [vmem:[#allocation2 + $0x119] sm:$0x1] %v8879_v1  ;;  %136 = vst [vmem:[#allocation2 + $0x131] sm:$0x1] %v8879_v1 }
  0x53   :  { %137 = vst [vmem:[#allocation2 + $0x149] sm:$0x1] %v8879_v1  ;;  %138 = vst [vmem:[#allocation2 + $0x161] sm:$0x1] %v8879_v1 }
  0x54   :  { %139 = vst [vmem:[#allocation2 + $0x179] sm:$0x1] %v8879_v1  ;;  %140 = vst [vmem:[#allocation2 + $0x191] sm:$0x1] %v8879_v1  ;;  %1816 = vmatpush1.bf16.msra.mxu0 %v8592_v32 }
  0x55   :  { %143 = vst [vmem:[#allocation2 + $0x1d9] sm:$0x1] %v8879_v1  ;;  %144 = vst [vmem:[#allocation2 + $0x1f1] sm:$0x1] %v8879_v1  ;;  %1817 = vmatprep.subr.bf16.mxu0 %v12560_v0 }
  0x56   :  { %145 = vst [vmem:[#allocation2 + $0x209] sm:$0x1] %v8879_v1  ;;  %146 = vst [vmem:[#allocation2 + $0x221] sm:$0x1] %v8879_v1 }
  0x57   :  { %147 = vst [vmem:[#allocation2 + $0x239] sm:$0x1] %v8879_v1  ;;  %148 = vst [vmem:[#allocation2 + $0x251] sm:$0x1] %v8879_v1 }
  0x58   :  { %149 = vst [vmem:[#allocation2 + $0x269] sm:$0x1] %v8879_v1  ;;  %150 = vst [vmem:[#allocation2 + $0x281] sm:$0x1] %v8879_v1  ;;  %1818 = vmatpush1.bf16.msra.mxu0 %v8593_v41 }
  0x59   :  { %151 = vst [vmem:[#allocation2 + $0x299] sm:$0x1] %v8879_v1  ;;  %152 = vst [vmem:[#allocation2 + $0x2b1] sm:$0x1] %v8879_v1  ;;  %1819 = vmatprep.subr.bf16.mxu0 %v12560_v0 }
  0x5a   :  { %153 = vst [vmem:[#allocation2 + $0x2c9] sm:$0x1] %v8879_v1  ;;  %154 = vst [vmem:[#allocation2 + $0x2e1] sm:$0x1] %v8879_v1 }
  0x5b   :  { %155 = vst [vmem:[#allocation2 + $0x2f9] sm:$0x1] %v8879_v1  ;;  %156 = vst [vmem:[#allocation2 + $0x311] sm:$0x1] %v8879_v1 }
  0x5c   :  { %157 = vst [vmem:[#allocation2 + $0x329] sm:$0x1] %v8879_v1  ;;  %158 = vst [vmem:[#allocation2 + $0x341] sm:$0x1] %v8879_v1  ;;  %1820 = vmatpush1.bf16.msra.mxu0 %v8594_v45  ;;  %v8624_v45 = vld [vmem:[#allocation6 + $0xc0] sm:$0xff]  }
  0x5d   :  { %124 = vst [vmem:[#allocation2 + $0x11] sm:$0x1] %v8879_v1  ;;  %88 = vst [vmem:[#allocation2] sm:$0x1] %v8879_v1  ;;  %1821 = vmatprep.subr.bf16.mxu0 %v12560_v0 }
  0x5e   :  { %105 = vst [vmem:[#allocation2 + $0x198] sm:$0x1] %v8879_v1  ;;  %106 = vst [vmem:[#allocation2 + $0x1b0] sm:$0x1] %v8879_v1 }
  0x5f   :  { %123 = vst [vmem:[#allocation2 + $0x348] sm:$0x1] %v8879_v1  ;;  %141 = vst [vmem:[#allocation2 + $0x1a9] sm:$0x1] %v8879_v1 }
  0x60   :  { %142 = vst [vmem:[#allocation2 + $0x1c1] sm:$0x1] %v8879_v1  ;;  %159 = vst [vmem:[#allocation2 + $0x359] sm:$0x1] %v8879_v1  ;;  %1822 = vmatpush1.bf16.msra.mxu0 %v8595_v51 }
  0x61   :  { %289 = vst [vmem:[#allocation2 + $0x19] sm:$0xff] %v7266_v13  ;;  %290 = vst [vmem:[#allocation2 + $0x21] sm:$0xff] %v7267_v14  ;;  %1823 = vmatprep.subr.bf16.mxu0 %v12560_v0  ;;  %v7408_v14 = vld [vmem:[#allocation3 + $0x88] sm:$0xff]  }
  0x62   :  { %291 = vst [vmem:[#allocation2 + $0x31] sm:$0xff] %v7270_v15  ;;  %292 = vst [vmem:[#allocation2 + $0x39] sm:$0xff] %v7271_v16  ;;  %v7334_v16 = vunpack.c.l.bf16 %v7408_v14 }
  0x63   :  { %293 = vst [vmem:[#allocation2 + $0x49] sm:$0xff] %v7274_v18  ;;  %294 = vst [vmem:[#allocation2 + $0x51] sm:$0xff] %v7275_v19  ;;  %v8607_v18 = vld [vmem:[#allocation6 + $0x90] sm:$0xff]  }
  0x64   :  { %295 = vst [vmem:[#allocation2 + $0x61] sm:$0xff] %v7278_v22  ;;  %296 = vst [vmem:[#allocation2 + $0x69] sm:$0xff] %v7279_v23  ;;  %1824 = vmatpush1.bf16.msra.mxu0 %v8596_v58  ;;  %v497_v4 = vld [vmem:[#allocation2] sm:$0xff]  ;;  %v7409_v22 = vld [vmem:[#allocation3 + $0x90] sm:$0xff]  }
  0x65   :  { %297 = vst [vmem:[#allocation2 + $0x79] sm:$0xff] %v7282_v25  ;;  %298 = vst [vmem:[#allocation2 + $0x81] sm:$0xff] %v7283_v26  ;;  %1825 = vmatprep.subr.bf16.mxu0 %v12560_v0  ;;  %v561_v8 = vpack.c.bf16 %v8879_v1, %v497_v4  ;;  %v7335_v1 = vunpack.c.h.bf16 %v7408_v14  ;;  %v7338_v24 = vunpack.c.l.bf16 %v7409_v22  ;;  %v7339_v25 = vunpack.c.h.bf16 %v7409_v22  ;;  %v8605_v26 = vld [vmem:[#allocation3 + $0x10] sm:$0xff]  ;;  %v8614_v14 = vld [vmem:[#allocation3 + $0x40] sm:$0xff] }
  0x66   :  { %299 = vst [vmem:[#allocation2 + $0x91] sm:$0xff] %v7286_v28  ;;  %300 = vst [vmem:[#allocation2 + $0x99] sm:$0xff] %v7287_v29  ;;  %v8615_v22 = vld [vmem:[#allocation3 + $0x48] sm:$0xff] }
  0x67   :  { %301 = vst [vmem:[#allocation2 + $0xa9] sm:$0xff] %v7290_v33  ;;  %302 = vst [vmem:[#allocation2 + $0xb1] sm:$0xff] %v7291_v34  ;;  %v7342_v33 = vunpack.c.l.bf16 %v7410_v31  ;;  %v7343_v34 = vunpack.c.h.bf16 %v7410_v31  ;;  %v8639_v31 = vld [vmem:[#allocation6 + $0xe8] sm:$0xff]  }
  0x68   :  { %303 = vst [vmem:[#allocation2 + $0xc1] sm:$0xff] %v7294_v35  ;;  %304 = vst [vmem:[#allocation2 + $0xc9] sm:$0xff] %v7295_v36  ;;  %1826 = vmatpush1.bf16.msra.mxu0 %v8597_v59  ;;  %v499_v12 = vld [vmem:[#allocation2 + $0x18] sm:$0xff]  ;;  %v500_v13 = vld [vmem:[#allocation2 + $0x20] sm:$0xff] }
  0x69   :  { %305 = vst [vmem:[#allocation2 + $0xd9] sm:$0xff] %v7298_v38  ;;  %306 = vst [vmem:[#allocation2 + $0xe1] sm:$0xff] %v7299_v39  ;;  %1827 = vmatprep.subr.bf16.mxu0 %v12560_v0  ;;  %v9088_v15 = vpack.c.bf16 %v500_v13, %v499_v12  ;;  %v501_v19 = vld [vmem:[#allocation2 + $0x30] sm:$0xff]  ;;  %v502_v21 = vld [vmem:[#allocation2 + $0x38] sm:$0xff] }
  0x6a   :  { %307 = vst [vmem:[#allocation2 + $0xf1] sm:$0xff] %v7302_v42  ;;  %308 = vst [vmem:[#allocation2 + $0xf9] sm:$0xff] %v7303_v43  ;;  %v9093_v23 = vpack.c.bf16 %v502_v21, %v501_v19  ;;  %v503_v28 = vld [vmem:[#allocation2 + $0x48] sm:$0xff]  ;;  %v504_v29 = vld [vmem:[#allocation2 + $0x50] sm:$0xff]  ;;  %v7346_v42 = vunpack.c.l.bf16 %v7411_v40  ;;  %v7347_v43 = vunpack.c.h.bf16 %v7411_v40 }
  0x6b   :  { %309 = vst [vmem:[#allocation2 + $0x109] sm:$0xff] %v7306_v46  ;;  %310 = vst [vmem:[#allocation2 + $0x111] sm:$0xff] %v7307_v47  ;;  %v9098_v32 = vpack.c.bf16 %v504_v29, %v503_v28  ;;  %v8606_v35 = vld [vmem:[#allocation3 + $0x18] sm:$0xff]  ;;  %v8619_v36 = vld [vmem:[#allocation6 + $0xb0] sm:$0xff]  }
  0x6c   :  { %311 = vst [vmem:[#allocation2 + $0x121] sm:$0xff] %v7310_v49  ;;  %312 = vst [vmem:[#allocation2 + $0x129] sm:$0xff] %v7311_v50  ;;  %1828 = vmatpush1.bf16.msra.mxu0 %v8598_v63  ;;  %v505_v37 = vld [vmem:[#allocation2 + $0x60] sm:$0xff]  ;;  %v506_v38 = vld [vmem:[#allocation2 + $0x68] sm:$0xff] }
  0x6d   :  { %313 = vst [vmem:[#allocation2 + $0x139] sm:$0xff] %v7314_v54  ;;  %314 = vst [vmem:[#allocation2 + $0x141] sm:$0xff] %v7315_v55  ;;  %1829 = vmatprep.subr.bf16.mxu0 %v12560_v0  ;;  %v8622_v39 = vld [vmem:[#allocation6 + $0xb8] sm:$0xff]   ;;  %v9103_v41 = vpack.c.bf16 %v506_v38, %v505_v37  ;;  %v508_v47 = vld [vmem:[#allocation2 + $0x80] sm:$0xff] }
  0x6e   :  { %315 = vst [vmem:[#allocation2 + $0x151] sm:$0xff] %v7318_v56  ;;  %316 = vst [vmem:[#allocation2 + $0x159] sm:$0xff] %v7319_v57  ;;  %v507_v46 = vld [vmem:[#allocation2 + $0x78] sm:$0xff]  ;;  %v7412_v49 = vld [vmem:[#allocation3 + $0xa8] sm:$0xff]  }
  0x6f   :  { %317 = vst [vmem:[#allocation2 + $0x169] sm:$0xff] %v7322_v61  ;;  %318 = vst [vmem:[#allocation2 + $0x171] sm:$0xff] %v7323_v62  ;;  %v9108_v50 = vpack.c.bf16 %v508_v47, %v507_v46  ;;  %v7350_v51 = vunpack.c.l.bf16 %v7412_v49  ;;  %v7351_v52 = vunpack.c.h.bf16 %v7412_v49  ;;  %v8630_v54 = vld [vmem:[#allocation6 + $0xd0] sm:$0xff]   ;;  %v510_v56 = vld [vmem:[#allocation2 + $0x98] sm:$0xff] }
  0x70   :  { %1830 = vmatpush1.bf16.msra.mxu0 %v8599_v2  ;;  %321 = vst [vmem:[#allocation2 + $0x1c9] sm:$0xff] %v7330_v9  ;;  %322 = vst [vmem:[#allocation2 + $0x1d1] sm:$0xff] %v7331_v10  ;;  %v509_v55 = vld [vmem:[#allocation2 + $0x90] sm:$0xff]  ;;  %v511_v62 = vld [vmem:[#allocation2 + $0xa8] sm:$0xff] }
  0x71   :  { %1831 = vmatprep.subr.bf16.mxu0 %v12560_v0  ;;  %323 = vst [vmem:[#allocation2 + $0x1e1] sm:$0xff] %v7334_v16  ;;  %324 = vst [vmem:[#allocation2 + $0x1e9] sm:$0xff] %v7335_v1  ;;  %v7413_v57 = vld [vmem:[#allocation3 + $0xb0] sm:$0xff]   ;;  %v9113_v58 = vpack.c.bf16 %v510_v56, %v509_v55  ;;  %v8633_v2 = vld [vmem:[#allocation6 + $0xd8] sm:$0xff]  }
  0x72   :  { %325 = vst [vmem:[#allocation2 + $0x1f9] sm:$0xff] %v7338_v24  ;;  %326 = vst [vmem:[#allocation2 + $0x201] sm:$0xff] %v7339_v25  ;;  %v7354_v59 = vunpack.c.l.bf16 %v7413_v57  ;;  %v7355_v60 = vunpack.c.h.bf16 %v7413_v57  ;;  %v8611_v61 = vld [vmem:[#allocation3 + $0x30] sm:$0xff]  ;;  %v514_v9 = vld [vmem:[#allocation2 + $0xc8] sm:$0xff] }
  0x73   :  { %327 = vst [vmem:[#allocation2 + $0x211] sm:$0xff] %v7342_v33  ;;  %328 = vst [vmem:[#allocation2 + $0x219] sm:$0xff] %v7343_v34  ;;  %v512_v63 = vld [vmem:[#allocation2 + $0xb0] sm:$0xff]  ;;  %v7415_v10 = vld [vmem:[#allocation3 + $0xc0] sm:$0xff]  }
  0x74   :  { %1832 = vmatpush1.bf16.msra.mxu0 %v8600_v3  ;;  %329 = vst [vmem:[#allocation2 + $0x229] sm:$0xff] %v7346_v42  ;;  %330 = vst [vmem:[#allocation2 + $0x231] sm:$0xff] %v7347_v43  ;;  %v7414_v3 = vld [vmem:[#allocation3 + $0xb8] sm:$0xff]   ;;  %v9117_v4 = vpack.c.bf16 %v512_v63, %v511_v62  ;;  %v7362_v12 = vunpack.c.l.bf16 %v7415_v10  ;;  %v7363_v13 = vunpack.c.h.bf16 %v7415_v10  ;;  %v516_v1 = vld [vmem:[#allocation2 + $0xe0] sm:$0xff] }
  0x75   :  { %2090 = vmatprep.subr.bf16.mxu0 %v12560_v0  ;;  %331 = vst [vmem:[#allocation2 + $0x241] sm:$0xff] %v7350_v51  ;;  %332 = vst [vmem:[#allocation2 + $0x249] sm:$0xff] %v7351_v52  ;;  %v515_v16 = vld [vmem:[#allocation2 + $0xd8] sm:$0xff]  ;;  %v517_v24 = vld [vmem:[#allocation2 + $0xf0] sm:$0xff] }
  0x76   :  { %333 = vst [vmem:[#allocation2 + $0x259] sm:$0xff] %v7354_v59  ;;  %334 = vst [vmem:[#allocation2 + $0x261] sm:$0xff] %v7355_v60  ;;  %v9124_v19 = vpack.c.bf16 %v516_v1, %v515_v16  ;;  %v518_v25 = vld [vmem:[#allocation2 + $0xf8] sm:$0xff]  ;;  %v519_v33 = vld [vmem:[#allocation2 + $0x108] sm:$0xff] }
  0x77   :  { %1834 = vmatmul.mubr.bf16.vlgmr.msra.gmra.mrb[0].mxu0 %v561_v8  ;;  %v513_v8 = vld [vmem:[#allocation2 + $0xc0] sm:$0xff]  ;;  %337 = vst [vmem:[#allocation2 + $0x289] sm:$0xff] %v7362_v12  ;;  %338 = vst [vmem:[#allocation2 + $0x291] sm:$0xff] %v7363_v13  ;;  %v520_v34 = vld [vmem:[#allocation2 + $0x110] sm:$0xff] }
  0x78   :  { %2091 = vmatpush1.bf16.msra.mxu0 %v8601_v5  ;;  %1841 = vmatprep.mubr.bf16.mxu0 %v8602_v6  ;;  %v7358_v5 = vunpack.c.l.bf16 %v7414_v3  ;;  %v7359_v6 = vunpack.c.h.bf16 %v7414_v3  ;;  %v521_v40 = vld [vmem:[#allocation2 + $0x120] sm:$0xff]  ;;  %v522_v42 = vld [vmem:[#allocation2 + $0x128] sm:$0xff]  ;;  %v523_v49 = vld [vmem:[#allocation2 + $0x138] sm:$0xff] }
  0x79   :  { %2092 = vmatprep.subr.bf16.mxu0 %v12560_v0  ;;  %v7419_v43 = vld [vmem:[#allocation3 + $0xe0] sm:$0xff]   ;;  %v7420_v52 = vld [vmem:[#allocation3 + $0xe8] sm:$0xff]   ;;  %v525_v57 = vld [vmem:[#allocation2 + $0x150] sm:$0xff] }
  0x7a   :  { %335 = vst [vmem:[#allocation2 + $0x271] sm:$0xff] %v7358_v5  ;;  %336 = vst [vmem:[#allocation2 + $0x279] sm:$0xff] %v7359_v6  ;;  %v7379_v46 = vunpack.c.h.bf16 %v7419_v43  ;;  %v8620_v47 = vld [vmem:[#allocation3 + $0x60] sm:$0xff]  ;;  %v7383_v55 = vunpack.c.h.bf16 %v7420_v52  ;;  %v8621_v56 = vld [vmem:[#allocation3 + $0x68] sm:$0xff] }
  0x7b   :  { %v524_v51 = vld [vmem:[#allocation2 + $0x140] sm:$0xff]  ;;  %v526_v59 = vld [vmem:[#allocation2 + $0x158] sm:$0xff]  ;;  %v7421_v60 = vld [vmem:[#allocation3 + $0xf0] sm:$0xff]  }
  0x7c   :  { %2093 = vmatpush1.bf16.msra.mxu0 %v8604_v11  ;;  %v9120_v11 = vpack.c.bf16 %v514_v9, %v513_v8  ;;  %346 = vst [vmem:[#allocation2 + $0x2f1] sm:$0xff] %v7379_v46  ;;  %348 = vst [vmem:[#allocation2 + $0x309] sm:$0xff] %v7383_v55  ;;  %v7386_v62 = vunpack.c.l.bf16 %v7421_v60  ;;  %v7387_v63 = vunpack.c.h.bf16 %v7421_v60  ;;  %v8645_v3 = vld [vmem:[#allocation6 + $0xf8] sm:$0xff]   ;;  %v527_v5 = vld [vmem:[#allocation2 + $0x168] sm:$0xff] }
  0x7d   :  { %2094 = vmatprep.subr.bf16.mxu0 %v12560_v0  ;;  %v528_v6 = vld [vmem:[#allocation2 + $0x170] sm:$0xff]  ;;  %v626_v8 = vld [vmem:[#allocation2 + $0x1b9] sm:$0xff]  ;;  %v8765_v13 = vld [vmem:[#allocation2 + $0x8] sm:$0xff] }
  0x7e   :  { %349 = vst [vmem:[#allocation2 + $0x319] sm:$0xff] %v7386_v62  ;;  %350 = vst [vmem:[#allocation2 + $0x321] sm:$0xff] %v7387_v63  ;;  %v9145_v9 = vpack.c.bf16 %v528_v6, %v527_v5  ;;  %v529_v12 = vld [vmem:[#allocation2 + $0x1b0] sm:$0xff]  ;;  %v8625_v16 = vld [vmem:[#allocation3 + $0x80] sm:$0xff] }
  0x7f   :  { %1842 = vmatmul.mubr.bf16.gmra.mrb[4].mxu0 %v9088_v15  ;;  %v531_v1 = vld [vmem:[#allocation2 + $0x1c8] sm:$0xff]  ;;  %v8634_v46 = vld [vmem:[#allocation3 + $0xb0] sm:$0xff] }
  0x80   :  { %1849 = vmatprep.mubr.bf16.mxu0 %v8603_v17  ;;  %2095 = vmatpush1.bf16.msra.mxu0 %v8607_v18  ;;  %v8636_v17 = vld [vmem:[#allocation6 + $0xe0] sm:$0xff]   ;;  %v7416_v18 = vld [vmem:[#allocation3 + $0xc8] sm:$0xff]   ;;  %v8640_v5 = vld [vmem:[#allocation3 + $0xd0] sm:$0xff] }
  0x81   :  { %2096 = vmatprep.subr.bf16.mxu0 %v12560_v0  ;;  %v7367_v21 = vunpack.c.h.bf16 %v7416_v18  ;;  %v8638_v62 = vld [vmem:[#allocation3 + $0xc8] sm:$0xff] }
  0x83   :  { %340 = vst [vmem:[#allocation2 + $0x2a9] sm:$0xff] %v7367_v21  ;;  %v533_v21 = vld [vmem:[#allocation2 + $0x1e0] sm:$0xff] }
  0x84   :  { %2097 = vmatpush1.bf16.msra.mxu0 %v8610_v20  ;;  %v7366_v20 = vunpack.c.l.bf16 %v7416_v18 }
  0x85   :  { %2098 = vmatprep.subr.bf16.mxu0 %v12560_v0 }
  0x86   :  { %339 = vst [vmem:[#allocation2 + $0x2a1] sm:$0xff] %v7366_v20  ;;  %v8626_v20 = vld [vmem:[#allocation3 + $0x88] sm:$0xff] }
  0x87   :  { %1850 = vmatmul.mubr.bf16.gmra.mrb[8].mxu0 %v9093_v23 }
  0x88   :  { %1857 = vmatprep.mubr.bf16.mxu0 %v8605_v26  ;;  %2099 = vmatpush1.bf16.msra.mxu0 %v8613_v27  ;;  %v7417_v26 = vld [vmem:[#allocation3 + $0xd0] sm:$0xff]   ;;  %v9127_v27 = vpack.c.bf16 %v518_v25, %v517_v24 }
  0x89   :  { %2100 = vmatprep.subr.bf16.mxu0 %v12560_v0  ;;  %v7370_v28 = vunpack.c.l.bf16 %v7417_v26  ;;  %v7371_v29 = vunpack.c.h.bf16 %v7417_v26  ;;  %v8628_v25 = vld [vmem:[#allocation3 + $0x90] sm:$0xff]  ;;  %v535_v26 = vld [vmem:[#allocation2 + $0x1f8] sm:$0xff] }
  0x8b   :  { %341 = vst [vmem:[#allocation2 + $0x2b9] sm:$0xff] %v7370_v28  ;;  %342 = vst [vmem:[#allocation2 + $0x2c1] sm:$0xff] %v7371_v29  ;;  %v536_v28 = vld [vmem:[#allocation2 + $0x200] sm:$0xff] }
  0x8c   :  { %2101 = vmatpush1.bf16.msra.mxu0 %v8616_v30  ;;  %v8617_v30 = vld [vmem:[#allocation3 + $0x50] sm:$0xff]  ;;  %v9154_v29 = vpack.c.bf16 %v536_v28, %v535_v26  ;;  %v7406_v26 = vld [vmem:[#allocation3 + $0x78] sm:$0xff]  }
  0x8d   :  { %2102 = vmatprep.subr.bf16.mxu0 %v12560_v0  ;;  %v549_v63 = vld [vmem:[#allocation2 + $0x2a0] sm:$0xff]  ;;  %v7326_v28 = vunpack.c.l.bf16 %v7406_v26 }
  0x8f   :  { %1858 = vmatmul.mubr.bf16.gmra.mrb[12].mxu0 %v9098_v32  ;;  %319 = vst [vmem:[#allocation2 + $0x181] sm:$0xff] %v7326_v28  ;;  %v704_v28 = vld [vmem:[#allocation2 + $0xb2] sm:$0xff] }
  0x90   :  { %1865 = vmatprep.mubr.bf16.mxu0 %v8606_v35  ;;  %2103 = vmatpush1.bf16.msra.mxu0 %v8619_v36  ;;  %v7418_v35 = vld [vmem:[#allocation3 + $0xd8] sm:$0xff]   ;;  %v9131_v36 = vpack.c.bf16 %v520_v34, %v519_v33 }
  0x91   :  { %2104 = vmatprep.subr.bf16.mxu0 %v12560_v0  ;;  %v7374_v37 = vunpack.c.l.bf16 %v7418_v35  ;;  %v7375_v38 = vunpack.c.h.bf16 %v7418_v35  ;;  %v538_v33 = vld [vmem:[#allocation2 + $0x218] sm:$0xff]  ;;  %v8631_v35 = vld [vmem:[#allocation3 + $0xa0] sm:$0xff] }
  0x92   :  { %v551_v6 = vld [vmem:[#allocation2 + $0x2b8] sm:$0xff] }
  0x93   :  { %343 = vst [vmem:[#allocation2 + $0x2d1] sm:$0xff] %v7374_v37  ;;  %344 = vst [vmem:[#allocation2 + $0x2d9] sm:$0xff] %v7375_v38  ;;  %v539_v37 = vld [vmem:[#allocation2 + $0x228] sm:$0xff]  ;;  %v540_v38 = vld [vmem:[#allocation2 + $0x230] sm:$0xff] }
  0x94   :  { %2105 = vmatpush1.bf16.msra.mxu0 %v8622_v39  ;;  %v8618_v39 = vld [vmem:[#allocation3 + $0x58] sm:$0xff] }
  0x95   :  { %2106 = vmatprep.subr.bf16.mxu0 %v12560_v0 }
  0x97   :  { %1866 = vmatmul.mubr.bf16.gmra.mrb[16].mxu0 %v9103_v41 }
  0x98   :  { %1873 = vmatprep.mubr.bf16.mxu0 %v8608_v44  ;;  %2107 = vmatpush1.bf16.msra.mxu0 %v8624_v45  ;;  %v9134_v44 = vpack.c.bf16 %v522_v42, %v521_v40  ;;  %v7378_v45 = vunpack.c.l.bf16 %v7419_v43  ;;  %v8632_v40 = vld [vmem:[#allocation3 + $0xa8] sm:$0xff]  ;;  %v541_v42 = vld [vmem:[#allocation2 + $0x240] sm:$0xff] }
  0x99   :  { %2108 = vmatprep.subr.bf16.mxu0 %v12560_v0  ;;  %v542_v43 = vld [vmem:[#allocation2 + $0x248] sm:$0xff] }
  0x9a   :  { %345 = vst [vmem:[#allocation2 + $0x2e9] sm:$0xff] %v7378_v45  ;;  %v9163_v45 = vpack.c.bf16 %v542_v43, %v541_v42  ;;  %v690_v42 = vld [vmem:[#allocation2 + $0xa] sm:$0xff] }
  0x9c   :  { %2109 = vmatpush1.bf16.msra.mxu0 %v8627_v48  ;;  %v8642_v48 = vld [vmem:[#allocation6 + $0xf0] sm:$0xff]  }
  0x9d   :  { %2110 = vmatprep.subr.bf16.mxu0 %v12560_v0 }
  0x9f   :  { %1874 = vmatmul.mubr.bf16.gmra.mrb[20].mxu0 %v9108_v50 }
  0xa0   :  { %1881 = vmatprep.mubr.bf16.mxu0 %v8609_v53  ;;  %2111 = vmatpush1.bf16.msra.mxu0 %v8630_v54  ;;  %v9138_v53 = vpack.c.bf16 %v524_v51, %v523_v49  ;;  %v7382_v54 = vunpack.c.l.bf16 %v7420_v52  ;;  %v8635_v51 = vld [vmem:[#allocation3 + $0xb8] sm:$0xff]  ;;  %v545_v52 = vld [vmem:[#allocation2 + $0x270] sm:$0xff] }
  0xa1   :  { %2112 = vmatprep.subr.bf16.mxu0 %v12560_v0 }
  0xa2   :  { %347 = vst [vmem:[#allocation2 + $0x301] sm:$0xff] %v7382_v54  ;;  %v546_v54 = vld [vmem:[#allocation2 + $0x278] sm:$0xff] }
  0xa3   :  { %v9169_v55 = vpack.c.bf16 %v546_v54, %v545_v52  ;;  %v8649_v54 = vld [vmem:[#allocation6 + $0x110] sm:$0xff]  }
  0xa4   :  { %2113 = vmatpush1.bf16.msra.mxu0 %v8633_v2  ;;  %v8623_v2 = vld [vmem:[#allocation3 + $0x70] sm:$0xff] }
  0xa5   :  { %2114 = vmatprep.subr.bf16.mxu0 %v12560_v0 }
  0xa7   :  { %1882 = vmatmul.mubr.bf16.gmra.mrb[24].mxu0 %v9113_v58 }
  0xa8   :  { %1889 = vmatprep.mubr.bf16.mxu0 %v8611_v61  ;;  %2115 = vmatpush1.bf16.msra.mxu0 %v8636_v17  ;;  %v9141_v61 = vpack.c.bf16 %v526_v59, %v525_v57  ;;  %v532_v17 = vld [vmem:[#allocation2 + $0x1d0] sm:$0xff]  ;;  %v547_v57 = vld [vmem:[#allocation2 + $0x288] sm:$0xff] }
  0xa9   :  { %2116 = vmatprep.subr.bf16.mxu0 %v12560_v0  ;;  %v9148_v18 = vpack.c.bf16 %v532_v17, %v531_v1  ;;  %v548_v59 = vld [vmem:[#allocation2 + $0x290] sm:$0xff]  ;;  %v555_v1 = vld [vmem:[#allocation2 + $0x2e8] sm:$0xff] }
  0xaa   :  { %v9172_v60 = vpack.c.bf16 %v548_v59, %v547_v57  ;;  %v556_v17 = vld [vmem:[#allocation2 + $0x2f0] sm:$0xff]  ;;  %v8650_v57 = vld [vmem:[#allocation6 + $0x118] sm:$0xff]   ;;  %v8651_v59 = vld [vmem:[#allocation6 + $0x120] sm:$0xff]  }
  0xac   :  { %2117 = vmatpush1.bf16.msra.mxu0 %v8639_v31  ;;  %v537_v31 = vld [vmem:[#allocation2 + $0x210] sm:$0xff] }
  0xad   :  { %2118 = vmatprep.subr.bf16.mxu0 %v12560_v0  ;;  %v9157_v34 = vpack.c.bf16 %v538_v33, %v537_v31  ;;  %v8646_v33 = vld [vmem:[#allocation3 + $0xf0] sm:$0xff] }
  0xaf   :  { %1890 = vmatmul.mubr.bf16.gmra.mrb[28].mxu0 %v9117_v4 }
  0xb0   :  { %1897 = vmatprep.mubr.bf16.mxu0 %v8612_v7  ;;  %2119 = vmatpush1.bf16.msra.mxu0 %v8642_v48  ;;  %v625_v7 = vld [vmem:[#allocation2 + $0x1b1] sm:$0xff]  ;;  %v544_v48 = vld [vmem:[#allocation2 + $0x260] sm:$0xff] }
  0xb1   :  { %2120 = vmatprep.subr.bf16.mxu0 %v12560_v0  ;;  %v673_v10 = vpack.c.bf16 %v626_v8, %v625_v7  ;;  %v552_v7 = vld [vmem:[#allocation2 + $0x2c0] sm:$0xff] }
  0xb2   :  { %v9178_v8 = vpack.c.bf16 %v552_v7, %v551_v6  ;;  %v697_v6 = vld [vmem:[#allocation2 + $0x62] sm:$0xff]  ;;  %v698_v7 = vld [vmem:[#allocation2 + $0x6a] sm:$0xff] }
  0xb4   :  { %2121 = vmatpush1.bf16.msra.mxu0 %v8645_v3 }
  0xb5   :  { %2379 = vmatprep.subr.bf16.mxu0 %v12560_v0 }
  0xb7   :  { %1898 = vmatmul.mubr.bf16.gmra.mrb[32].mxu0 %v9120_v11 }
  0xb8   :  { %1905 = vmatprep.mubr.bf16.mxu0 %v8614_v14  ;;  %v577_v14 = vpack.c.bf16 %v8765_v13, %v529_v12  ;;  %v553_v12 = vld [vmem:[#allocation2 + $0x2d0] sm:$0xff]  ;;  %v554_v13 = vld [vmem:[#allocation2 + $0x2d8] sm:$0xff] }
  0xbf   :  { %1906 = vmatmul.mubr.bf16.gmra.mrb[36].mxu0 %v9124_v19 }
  0xc0   :  { %1913 = vmatprep.mubr.bf16.mxu0 %v8615_v22  ;;  %v534_v22 = vld [vmem:[#allocation2 + $0x1e8] sm:$0xff] }
  0xc1   :  { %v9151_v24 = vpack.c.bf16 %v534_v22, %v533_v21  ;;  %v8644_v21 = vld [vmem:[#allocation3 + $0xe8] sm:$0xff]  ;;  %v557_v22 = vld [vmem:[#allocation2 + $0x300] sm:$0xff] }
  0xc7   :  { %1914 = vmatmul.mubr.bf16.gmra.mrb[40].mxu0 %v9127_v27 }
  0xc8   :  { %1921 = vmatprep.mubr.bf16.mxu0 %v8617_v30  ;;  %v8629_v30 = vld [vmem:[#allocation3 + $0x98] sm:$0xff] }
  0xcf   :  { %1922 = vmatmul.mubr.bf16.gmra.mrb[44].mxu0 %v9131_v36 }
  0xd0   :  { %1929 = vmatprep.mubr.bf16.mxu0 %v8618_v39  ;;  %v9160_v39 = vpack.c.bf16 %v540_v38, %v539_v37  ;;  %v560_v37 = vld [vmem:[#allocation2 + $0x320] sm:$0xff] }
  0xd7   :  { %1930 = vmatmul.mubr.bf16.gmra.mrb[48].mxu0 %v9134_v44 }
  0xd8   :  { %1937 = vmatprep.mubr.bf16.mxu0 %v8620_v47  ;;  %v543_v47 = vld [vmem:[#allocation2 + $0x258] sm:$0xff] }
  0xd9   :  { %v9166_v49 = vpack.c.bf16 %v544_v48, %v543_v47  ;;  %v691_v47 = vld [vmem:[#allocation2 + $0x1a] sm:$0xff]  ;;  %v692_v48 = vld [vmem:[#allocation2 + $0x22] sm:$0xff] }
  0xda   :  { %v9196_v52 = vpack.c.bf16 %v692_v48, %v691_v47  ;;  %v8660_v47 = vld [vmem:[#allocation6 + $0x168] sm:$0xff]   ;;  %v712_v48 = vld [vmem:[#allocation2 + $0x112] sm:$0xff] }
  0xdf   :  { %1938 = vmatmul.mubr.bf16.gmra.mrb[52].mxu0 %v9138_v53 }
  0xe0   :  { %1945 = vmatprep.mubr.bf16.mxu0 %v8621_v56  ;;  %v8637_v56 = vld [vmem:[#allocation3 + $0xc0] sm:$0xff] }
  0xe7   :  { %1946 = vmatmul.mubr.bf16.gmra.mrb[56].mxu0 %v9141_v61 }
  0xe8   :  { %1953 = vmatprep.mubr.bf16.mxu0 %v8623_v2  ;;  %v550_v2 = vld [vmem:[#allocation2 + $0x2a8] sm:$0xff] }
  0xe9   :  { %v9175_v3 = vpack.c.bf16 %v550_v2, %v549_v63  ;;  %v696_v63 = vld [vmem:[#allocation2 + $0x52] sm:$0xff] }
  0xef   :  { %1954 = vmatmul.mubr.bf16.gmra.mrb[60].mxu0 %v9145_v9 }
  0xf0   :  { %1961 = vmatprep.mubr.bf16.mxu0 %v673_v10  ;;  %v8641_v10 = vld [vmem:[#allocation3 + $0xd8] sm:$0xff] }
  0xf7   :  { %1962 = vmatmul.mubr.bf16.gmra.mrb[64].mxu0 %v577_v14  ;;  %v9181_v14 = vpack.c.bf16 %v554_v13, %v553_v12  ;;  %v8655_v12 = vld [vmem:[#allocation6 + $0x140] sm:$0xff]  }
  0xf8   :  { %1969 = vmatprep.mubr.bf16.mxu0 %v8625_v16  ;;  %v8643_v16 = vld [vmem:[#allocation3 + $0xe0] sm:$0xff] }
  0xf9   :  { %v699_v13 = vld [vmem:[#allocation2 + $0x7a] sm:$0xff] }
  0xff   :  { %1970 = vmatmul.mubr.bf16.gmra.mrb[68].mxu0 %v9148_v18 }
 0x100   :  { %1977 = vmatprep.mubr.bf16.mxu0 %v8626_v20  ;;  %v9184_v20 = vpack.c.bf16 %v556_v17, %v555_v1  ;;  %v8657_v17 = vld [vmem:[#allocation6 + $0x150] sm:$0xff]  }
 0x107   :  { %1978 = vmatmul.mubr.bf16.gmra.mrb[72].mxu0 %v9151_v24 }
 0x108   :  { %1985 = vmatprep.mubr.bf16.mxu0 %v8628_v25  ;;  %v558_v25 = vld [vmem:[#allocation2 + $0x308] sm:$0xff] }
 0x109   :  { %v9187_v31 = vpack.c.bf16 %v558_v25, %v557_v22  ;;  %v702_v22 = vld [vmem:[#allocation2 + $0x9a] sm:$0xff] }
 0x10a   :  { %v8658_v25 = vld [vmem:[#allocation6 + $0x158] sm:$0xff]  }
 0x10f   :  { %1986 = vmatmul.mubr.bf16.gmra.mrb[76].mxu0 %v9154_v29 }
 0x110   :  { %1993 = vmatprep.mubr.bf16.mxu0 %v8629_v30  ;;  %v7327_v30 = vunpack.c.h.bf16 %v7406_v26  ;;  %v703_v26 = vld [vmem:[#allocation2 + $0xaa] sm:$0xff] }
 0x112   :  { %320 = vst [vmem:[#allocation2 + $0x189] sm:$0xff] %v7327_v30  ;;  %v9231_v30 = vpack.c.bf16 %v704_v28, %v703_v26  ;;  %v725_v28 = vld [vmem:[#allocation2 + $0x1e2] sm:$0xff] }
 0x117   :  { %1994 = vmatmul.mubr.bf16.gmra.mrb[80].mxu0 %v9157_v34 }
 0x118   :  { %2001 = vmatprep.mubr.bf16.mxu0 %v8631_v35  ;;  %v559_v35 = vld [vmem:[#allocation2 + $0x318] sm:$0xff] }
 0x119   :  { %v9190_v38 = vpack.c.bf16 %v560_v37, %v559_v35  ;;  %v8659_v37 = vld [vmem:[#allocation6 + $0x160] sm:$0xff]  }
 0x11f   :  { %2002 = vmatmul.mubr.bf16.gmra.mrb[84].mxu0 %v9160_v39 }
 0x120   :  { %2009 = vmatprep.mubr.bf16.mxu0 %v8632_v40  ;;  %v689_v40 = vld [vmem:[#allocation2 + $0x2] sm:$0xff] }
 0x121   :  { %v753_v43 = vpack.c.bf16 %v690_v42, %v689_v40  ;;  %v708_v40 = vld [vmem:[#allocation2 + $0xe2] sm:$0xff] }
 0x127   :  { %2010 = vmatmul.mubr.bf16.gmra.mrb[88].mxu0 %v9163_v45 }
 0x128   :  { %2017 = vmatprep.mubr.bf16.mxu0 %v8634_v46  ;;  %v8647_v46 = vld [vmem:[#allocation6 + $0x100] sm:$0xff]  }
 0x12f   :  { %2018 = vmatmul.mubr.bf16.gmra.mrb[92].mxu0 %v9166_v49 }
 0x130   :  { %2025 = vmatprep.mubr.bf16.mxu0 %v8635_v51  ;;  %v8648_v51 = vld [vmem:[#allocation6 + $0x108] sm:$0xff]  }
 0x137   :  { %2026 = vmatmul.mubr.bf16.gmra.mrb[96].mxu0 %v9169_v55 }
 0x138   :  { %2033 = vmatprep.mubr.bf16.mxu0 %v8637_v56  ;;  %v694_v56 = vld [vmem:[#allocation2 + $0x3a] sm:$0xff] }
 0x13f   :  { %2034 = vmatmul.mubr.bf16.gmra.mrb[100].mxu0 %v9172_v60 }
 0x140   :  { %2041 = vmatprep.mubr.bf16.mxu0 %v8638_v62  ;;  %v695_v62 = vld [vmem:[#allocation2 + $0x4a] sm:$0xff] }
 0x141   :  { %v9208_v2 = vpack.c.bf16 %v696_v63, %v695_v62  ;;  %v718_v62 = vld [vmem:[#allocation2 + $0x15a] sm:$0xff] }
 0x142   :  { %v815_v63 = vld [vmem:[#allocation2 + $0x180] sm:$0xff] }
 0x147   :  { %2042 = vmatmul.mubr.bf16.gmra.mrb[104].mxu0 %v9175_v3 }
 0x148   :  { %2049 = vmatprep.mubr.bf16.mxu0 %v8640_v5  ;;  %v8653_v5 = vld [vmem:[#allocation6 + $0x130] sm:$0xff]  }
 0x14f   :  { %2050 = vmatmul.mubr.bf16.gmra.mrb[108].mxu0 %v9178_v8 }
 0x150   :  { %2057 = vmatprep.mubr.bf16.mxu0 %v8641_v10  ;;  %v9214_v10 = vpack.c.bf16 %v698_v7, %v697_v6 }
 0x157   :  { %2058 = vmatmul.mubr.bf16.gmra.mrb[112].mxu0 %v9181_v14 }
 0x158   :  { %2065 = vmatprep.mubr.bf16.mxu0 %v8643_v16  ;;  %v700_v16 = vld [vmem:[#allocation2 + $0x82] sm:$0xff] }
 0x159   :  { %v9220_v1 = vpack.c.bf16 %v700_v16, %v699_v13  ;;  %v719_v13 = vld [vmem:[#allocation2 + $0x16a] sm:$0xff]  ;;  %v720_v16 = vld [vmem:[#allocation2 + $0x172] sm:$0xff] }
 0x15f   :  { %2066 = vmatmul.mubr.bf16.gmra.mrb[116].mxu0 %v9184_v20 }
 0x160   :  { %2073 = vmatprep.mubr.bf16.mxu0 %v8644_v21  ;;  %v701_v21 = vld [vmem:[#allocation2 + $0x92] sm:$0xff] }
 0x167   :  { %2074 = vmatmul.mubr.bf16.gmra.mrb[120].mxu0 %v9187_v31 }
 0x168   :  { %2081 = vmatprep.mubr.bf16.mxu0 %v8646_v33  ;;  %v706_v33 = vld [vmem:[#allocation2 + $0xca] sm:$0xff] }
 0x16f   :  { %2082 = vmatmul.mubr.bf16.gmra.mrb[124].mxu0 %v9190_v38 }
 0x170   :  { %2122 = vmatprep.mubr.bf16.mxu0 %v9088_v15  ;;  %v693_v15 = vld [vmem:[#allocation2 + $0x32] sm:$0xff] }
 0x177   :  { %2123 = vmatmul.mubr.bf16.vlgmr.msra.gmra.mrb[0].mxu0 %v753_v43  ;;  %v710_v43 = vld [vmem:[#allocation2 + $0xfa] sm:$0xff] }
 0x178   :  { %2380 = vmatpush1.bf16.msra.mxu0 %v8647_v46  ;;  %2130 = vmatprep.mubr.bf16.mxu0 %v9093_v23  ;;  %v9202_v23 = vpack.c.bf16 %v694_v56, %v693_v15  ;;  %v8661_v56 = vld [vmem:[#allocation6 + $0x170] sm:$0xff]  }
 0x179   :  { %2381 = vmatprep.subr.bf16.mxu0 %v12560_v0 }
 0x17c   :  { %2382 = vmatpush1.bf16.msra.mxu0 %v8648_v51 }
 0x17d   :  { %2383 = vmatprep.subr.bf16.mxu0 %v12560_v0 }
 0x17f   :  { %2131 = vmatmul.mubr.bf16.gmra.mrb[4].mxu0 %v9196_v52 }
 0x180   :  { %2138 = vmatprep.mubr.bf16.mxu0 %v9098_v32  ;;  %2384 = vmatpush1.bf16.msra.mxu0 %v8649_v54  ;;  %v8652_v32 = vld [vmem:[#allocation6 + $0x128] sm:$0xff]  }
 0x181   :  { %2385 = vmatprep.subr.bf16.mxu0 %v12560_v0  ;;  %v714_v54 = vld [vmem:[#allocation2 + $0x12a] sm:$0xff] }
 0x184   :  { %2386 = vmatpush1.bf16.msra.mxu0 %v8650_v57  ;;  %v716_v57 = vld [vmem:[#allocation2 + $0x142] sm:$0xff] }
 0x185   :  { %2387 = vmatprep.subr.bf16.mxu0 %v12560_v0 }
 0x187   :  { %2139 = vmatmul.mubr.bf16.gmra.mrb[8].mxu0 %v9202_v23 }
 0x188   :  { %2146 = vmatprep.mubr.bf16.mxu0 %v9103_v41  ;;  %2388 = vmatpush1.bf16.msra.mxu0 %v8651_v59  ;;  %v8654_v41 = vld [vmem:[#allocation6 + $0x138] sm:$0xff]  }
 0x189   :  { %2389 = vmatprep.subr.bf16.mxu0 %v12560_v0 }
 0x18c   :  { %2390 = vmatpush1.bf16.msra.mxu0 %v8652_v32  ;;  %v816_v32 = vld [vmem:[#allocation2 + $0x188] sm:$0xff] }
 0x18d   :  { %2391 = vmatprep.subr.bf16.mxu0 %v12560_v0 }
 0x18f   :  { %2147 = vmatmul.mubr.bf16.gmra.mrb[12].mxu0 %v9208_v2 }
 0x190   :  { %2154 = vmatprep.mubr.bf16.mxu0 %v9108_v50  ;;  %2392 = vmatpush1.bf16.msra.mxu0 %v8653_v5  ;;  %v8656_v50 = vld [vmem:[#allocation6 + $0x148] sm:$0xff]   ;;  %v7422_v5 = vld [vmem:[#allocation3 + $0xf8] sm:$0xff]  }
 0x191   :  { %2393 = vmatprep.subr.bf16.mxu0 %v12560_v0  ;;  %v7390_v6 = vunpack.c.l.bf16 %v7422_v5  ;;  %v7391_v7 = vunpack.c.h.bf16 %v7422_v5 }
 0x193   :  { %351 = vst [vmem:[#allocation2 + $0x331] sm:$0xff] %v7390_v6  ;;  %352 = vst [vmem:[#allocation2 + $0x339] sm:$0xff] %v7391_v7  ;;  %v746_v6 = vld [vmem:[#allocation2 + $0x2da] sm:$0xff] }
 0x194   :  { %2394 = vmatpush1.bf16.msra.mxu0 %v8654_v41 }
 0x195   :  { %2395 = vmatprep.subr.bf16.mxu0 %v12560_v0 }
 0x197   :  { %2155 = vmatmul.mubr.bf16.gmra.mrb[16].mxu0 %v9214_v10 }
 0x198   :  { %2162 = vmatprep.mubr.bf16.mxu0 %v9113_v58  ;;  %2396 = vmatpush1.bf16.msra.mxu0 %v8655_v12  ;;  %v9226_v58 = vpack.c.bf16 %v702_v22, %v701_v21  ;;  %v8662_v12 = vld [vmem:[#allocation6 + $0x178] sm:$0xff]   ;;  %v723_v22 = vld [vmem:[#allocation2 + $0x1ca] sm:$0xff] }
 0x199   :  { %2397 = vmatprep.subr.bf16.mxu0 %v12560_v0 }
 0x19c   :  { %2398 = vmatpush1.bf16.msra.mxu0 %v8656_v50  ;;  %v721_v50 = vld [vmem:[#allocation2 + $0x1b2] sm:$0xff] }
 0x19d   :  { %2399 = vmatprep.subr.bf16.mxu0 %v12560_v0 }
 0x19f   :  { %2163 = vmatmul.mubr.bf16.gmra.mrb[20].mxu0 %v9220_v1 }
 0x1a0   :  { %2170 = vmatprep.mubr.bf16.mxu0 %v9117_v4  ;;  %2400 = vmatpush1.bf16.msra.mxu0 %v8657_v17  ;;  %v705_v4 = vld [vmem:[#allocation2 + $0xc2] sm:$0xff]  ;;  %v722_v17 = vld [vmem:[#allocation2 + $0x1ba] sm:$0xff] }
 0x1a1   :  { %2401 = vmatprep.subr.bf16.mxu0 %v12560_v0  ;;  %v9235_v35 = vpack.c.bf16 %v706_v33, %v705_v4  ;;  %v769_v21 = vpack.c.bf16 %v722_v17, %v721_v50  ;;  %v726_v4 = vld [vmem:[#allocation2 + $0x1ea] sm:$0xff] }
 0x1a2   :  { %v9275_v33 = vpack.c.bf16 %v726_v4, %v725_v28  ;;  %v8663_v4 = vld [vmem:[#allocation6 + $0x180] sm:$0xff]  }
 0x1a4   :  { %2402 = vmatpush1.bf16.msra.mxu0 %v8658_v25  ;;  %v724_v25 = vld [vmem:[#allocation2 + $0x1d2] sm:$0xff] }
 0x1a5   :  { %2403 = vmatprep.subr.bf16.mxu0 %v12560_v0  ;;  %v9271_v26 = vpack.c.bf16 %v724_v25, %v723_v22  ;;  %v881_v25 = vld [vmem:[#allocation2 + $0x19] sm:$0xff] }
 0x1a7   :  { %2171 = vmatmul.mubr.bf16.gmra.mrb[24].mxu0 %v9226_v58 }
 0x1a8   :  { %2178 = vmatprep.mubr.bf16.mxu0 %v9120_v11  ;;  %v707_v11 = vld [vmem:[#allocation2 + $0xda] sm:$0xff]  ;;  %2404 = vmatpush1.bf16.msra.mxu0 %v8659_v37  ;;  %v728_v37 = vld [vmem:[#allocation2 + $0x202] sm:$0xff] }
 0x1a9   :  { %2405 = vmatprep.subr.bf16.mxu0 %v12560_v0  ;;  %v9240_v42 = vpack.c.bf16 %v708_v40, %v707_v11  ;;  %v730_v40 = vld [vmem:[#allocation2 + $0x21a] sm:$0xff] }
 0x1ac   :  { %2406 = vmatpush1.bf16.msra.mxu0 %v8660_v47 }
 0x1ad   :  { %2407 = vmatprep.subr.bf16.mxu0 %v12560_v0 }
 0x1af   :  { %2179 = vmatmul.mubr.bf16.gmra.mrb[28].mxu0 %v9231_v30 }
 0x1b0   :  { %2186 = vmatprep.mubr.bf16.mxu0 %v9124_v19  ;;  %v709_v19 = vld [vmem:[#allocation2 + $0xf2] sm:$0xff]  ;;  %2408 = vmatpush1.bf16.msra.mxu0 %v8661_v56  ;;  %v738_v56 = vld [vmem:[#allocation2 + $0x27a] sm:$0xff] }
 0x1b1   :  { %v9244_v46 = vpack.c.bf16 %v710_v43, %v709_v19  ;;  %2409 = vmatprep.subr.bf16.mxu0 %v12560_v0  ;;  %v732_v43 = vld [vmem:[#allocation2 + $0x232] sm:$0xff] }
 0x1b4   :  { %2410 = vmatpush1.bf16.msra.mxu0 %v8662_v12 }
 0x1b5   :  { %2668 = vmatprep.subr.bf16.mxu0 %v12560_v0 }
 0x1b7   :  { %2187 = vmatmul.mubr.bf16.gmra.mrb[32].mxu0 %v9235_v35 }
 0x1b8   :  { %2194 = vmatprep.mubr.bf16.mxu0 %v9127_v27  ;;  %v711_v27 = vld [vmem:[#allocation2 + $0x10a] sm:$0xff] }
 0x1b9   :  { %v9249_v51 = vpack.c.bf16 %v712_v48, %v711_v27  ;;  %v734_v27 = vld [vmem:[#allocation2 + $0x24a] sm:$0xff] }
 0x1bf   :  { %2195 = vmatmul.mubr.bf16.gmra.mrb[36].mxu0 %v9240_v42 }
 0x1c0   :  { %2202 = vmatprep.mubr.bf16.mxu0 %v9131_v36  ;;  %v713_v36 = vld [vmem:[#allocation2 + $0x122] sm:$0xff] }
 0x1c1   :  { %v9253_v15 = vpack.c.bf16 %v714_v54, %v713_v36  ;;  %v736_v36 = vld [vmem:[#allocation2 + $0x262] sm:$0xff] }
 0x1c7   :  { %2203 = vmatmul.mubr.bf16.gmra.mrb[40].mxu0 %v9244_v46 }
 0x1c8   :  { %2210 = vmatprep.mubr.bf16.mxu0 %v9134_v44  ;;  %v715_v44 = vld [vmem:[#allocation2 + $0x13a] sm:$0xff] }
 0x1c9   :  { %v9258_v59 = vpack.c.bf16 %v716_v57, %v715_v44  ;;  %v740_v57 = vld [vmem:[#allocation2 + $0x292] sm:$0xff] }
 0x1cf   :  { %2211 = vmatmul.mubr.bf16.gmra.mrb[44].mxu0 %v9249_v51 }
 0x1d0   :  { %2218 = vmatprep.mubr.bf16.mxu0 %v9138_v53  ;;  %v717_v53 = vld [vmem:[#allocation2 + $0x152] sm:$0xff] }
 0x1d1   :  { %v9262_v41 = vpack.c.bf16 %v718_v62, %v717_v53  ;;  %v742_v62 = vld [vmem:[#allocation2 + $0x2aa] sm:$0xff] }
 0x1d7   :  { %2219 = vmatmul.mubr.bf16.gmra.mrb[48].mxu0 %v9253_v15 }
 0x1d8   :  { %2226 = vmatprep.mubr.bf16.mxu0 %v9141_v61  ;;  %v864_v61 = vpack.c.bf16 %v816_v32, %v815_v63  ;;  %v744_v32 = vld [vmem:[#allocation2 + $0x2c2] sm:$0xff] }
 0x1df   :  { %2227 = vmatmul.mubr.bf16.gmra.mrb[52].mxu0 %v9258_v59 }
 0x1e0   :  { %2234 = vmatprep.mubr.bf16.mxu0 %v9145_v9  ;;  %v9266_v9 = vpack.c.bf16 %v720_v16, %v719_v13  ;;  %v750_v13 = vld [vmem:[#allocation2 + $0x30a] sm:$0xff] }
 0x1e1   :  { %v847_v16 = vld [vmem:[#allocation2 + $0x330] sm:$0xff] }
 0x1e7   :  { %2235 = vmatmul.mubr.bf16.gmra.mrb[56].mxu0 %v9262_v41 }
 0x1e8   :  { %2242 = vmatprep.mubr.bf16.mxu0 %v864_v61  ;;  %v748_v61 = vld [vmem:[#allocation2 + $0x2f2] sm:$0xff] }
 0x1ef   :  { %2243 = vmatmul.mubr.bf16.gmra.mrb[60].mxu0 %v9266_v9 }
 0x1f0   :  { %2250 = vmatprep.mubr.bf16.mxu0 %v9148_v18  ;;  %v727_v18 = vld [vmem:[#allocation2 + $0x1fa] sm:$0xff] }
 0x1f1   :  { %v9279_v11 = vpack.c.bf16 %v728_v37, %v727_v18  ;;  %v883_v18 = vld [vmem:[#allocation2 + $0x31] sm:$0xff]  ;;  %v884_v37 = vld [vmem:[#allocation2 + $0x39] sm:$0xff] }
 0x1f7   :  { %2251 = vmatmul.mubr.bf16.gmra.mrb[64].mxu0 %v769_v21  ;;  %v751_v21 = vld [vmem:[#allocation2 + $0x31a] sm:$0xff] }
 0x1f8   :  { %2258 = vmatprep.mubr.bf16.mxu0 %v9151_v24  ;;  %v729_v24 = vld [vmem:[#allocation2 + $0x212] sm:$0xff] }
 0x1f9   :  { %v9283_v19 = vpack.c.bf16 %v730_v40, %v729_v24  ;;  %v8664_v24 = vld [vmem:[#allocation6 + $0x188] sm:$0xff]   ;;  %v9332_v40 = vpack.c.bf16 %v884_v37, %v883_v18 }
 0x1fa   :  { %v8677_v18 = vld [vmem:[#allocation6 + $0x1e8] sm:$0xff]  }
 0x1fb   :  { %v904_v37 = vld [vmem:[#allocation2 + $0x129] sm:$0xff] }
 0x1ff   :  { %2259 = vmatmul.mubr.bf16.gmra.mrb[68].mxu0 %v9271_v26 }
 0x200   :  { %2266 = vmatprep.mubr.bf16.mxu0 %v9154_v29  ;;  %v731_v29 = vld [vmem:[#allocation2 + $0x22a] sm:$0xff] }
 0x201   :  { %v9287_v47 = vpack.c.bf16 %v732_v43, %v731_v29  ;;  %v8665_v29 = vld [vmem:[#allocation6 + $0x190] sm:$0xff]  }
 0x202   :  { %v886_v43 = vld [vmem:[#allocation2 + $0x51] sm:$0xff] }
 0x207   :  { %2267 = vmatmul.mubr.bf16.gmra.mrb[72].mxu0 %v9275_v33 }
 0x208   :  { %2274 = vmatprep.mubr.bf16.mxu0 %v9157_v34  ;;  %v733_v34 = vld [vmem:[#allocation2 + $0x242] sm:$0xff] }
 0x209   :  { %v9291_v48 = vpack.c.bf16 %v734_v27, %v733_v34  ;;  %v8666_v34 = vld [vmem:[#allocation6 + $0x198] sm:$0xff]   ;;  %v8667_v27 = vld [vmem:[#allocation6 + $0x1a0] sm:$0xff]  }
 0x20f   :  { %2275 = vmatmul.mubr.bf16.gmra.mrb[76].mxu0 %v9279_v11 }
 0x210   :  { %2282 = vmatprep.mubr.bf16.mxu0 %v9160_v39  ;;  %v735_v39 = vld [vmem:[#allocation2 + $0x25a] sm:$0xff] }
 0x211   :  { %v9295_v54 = vpack.c.bf16 %v736_v36, %v735_v39  ;;  %v887_v39 = vld [vmem:[#allocation2 + $0x61] sm:$0xff]  ;;  %v888_v36 = vld [vmem:[#allocation2 + $0x69] sm:$0xff] }
 0x217   :  { %2283 = vmatmul.mubr.bf16.gmra.mrb[80].mxu0 %v9283_v19 }
 0x218   :  { %2290 = vmatprep.mubr.bf16.mxu0 %v9163_v45  ;;  %v737_v45 = vld [vmem:[#allocation2 + $0x272] sm:$0xff] }
 0x219   :  { %v9299_v44 = vpack.c.bf16 %v738_v56, %v737_v45  ;;  %v9344_v45 = vpack.c.bf16 %v888_v36, %v887_v39  ;;  %v8669_v56 = vld [vmem:[#allocation6 + $0x1b0] sm:$0xff]   ;;  %v908_v39 = vld [vmem:[#allocation2 + $0x159] sm:$0xff] }
 0x21a   :  { %v8681_v36 = vld [vmem:[#allocation6 + $0x210] sm:$0xff]  }
 0x21f   :  { %2291 = vmatmul.mubr.bf16.gmra.mrb[84].mxu0 %v9287_v47 }
 0x220   :  { %2298 = vmatprep.mubr.bf16.mxu0 %v9166_v49  ;;  %v739_v49 = vld [vmem:[#allocation2 + $0x28a] sm:$0xff] }
 0x221   :  { %v9303_v53 = vpack.c.bf16 %v740_v57, %v739_v49  ;;  %v889_v49 = vld [vmem:[#allocation2 + $0x79] sm:$0xff]  ;;  %v890_v57 = vld [vmem:[#allocation2 + $0x81] sm:$0xff] }
 0x227   :  { %2299 = vmatmul.mubr.bf16.gmra.mrb[88].mxu0 %v9291_v48 }
 0x228   :  { %2306 = vmatprep.mubr.bf16.mxu0 %v9169_v55  ;;  %v741_v55 = vld [vmem:[#allocation2 + $0x2a2] sm:$0xff] }
 0x229   :  { %v9307_v63 = vpack.c.bf16 %v742_v62, %v741_v55  ;;  %v9350_v55 = vpack.c.bf16 %v890_v57, %v889_v49  ;;  %v8672_v62 = vld [vmem:[#allocation6 + $0x1c0] sm:$0xff]   ;;  %v910_v49 = vld [vmem:[#allocation2 + $0x171] sm:$0xff] }
 0x22a   :  { %v1008_v57 = vld [vmem:[#allocation2 + $0x18a] sm:$0xff] }
 0x22f   :  { %2307 = vmatmul.mubr.bf16.gmra.mrb[92].mxu0 %v9295_v54 }
 0x230   :  { %2314 = vmatprep.mubr.bf16.mxu0 %v9172_v60  ;;  %v743_v60 = vld [vmem:[#allocation2 + $0x2ba] sm:$0xff] }
 0x231   :  { %v9311_v5 = vpack.c.bf16 %v744_v32, %v743_v60  ;;  %v891_v60 = vld [vmem:[#allocation2 + $0x91] sm:$0xff]  ;;  %v892_v32 = vld [vmem:[#allocation2 + $0x99] sm:$0xff] }
 0x237   :  { %2315 = vmatmul.mubr.bf16.gmra.mrb[96].mxu0 %v9299_v44 }
 0x238   :  { %2322 = vmatprep.mubr.bf16.mxu0 %v9175_v3  ;;  %v745_v3 = vld [vmem:[#allocation2 + $0x2d2] sm:$0xff] }
 0x239   :  { %v9315_v7 = vpack.c.bf16 %v746_v6, %v745_v3  ;;  %v9356_v3 = vpack.c.bf16 %v892_v32, %v891_v60  ;;  %v8674_v6 = vld [vmem:[#allocation6 + $0x1d0] sm:$0xff]   ;;  %v8684_v60 = vld [vmem:[#allocation6 + $0x220] sm:$0xff]   ;;  %v8683_v32 = vld [vmem:[#allocation6 + $0x1f8] sm:$0xff]  }
 0x23f   :  { %2323 = vmatmul.mubr.bf16.gmra.mrb[100].mxu0 %v9303_v53 }
 0x240   :  { %2330 = vmatprep.mubr.bf16.mxu0 %v9178_v8  ;;  %v747_v8 = vld [vmem:[#allocation2 + $0x2ea] sm:$0xff] }
 0x241   :  { %v9319_v12 = vpack.c.bf16 %v748_v61, %v747_v8  ;;  %v893_v8 = vld [vmem:[#allocation2 + $0xa9] sm:$0xff]  ;;  %v894_v61 = vld [vmem:[#allocation2 + $0xb1] sm:$0xff] }
 0x247   :  { %2331 = vmatmul.mubr.bf16.gmra.mrb[104].mxu0 %v9307_v63 }
 0x248   :  { %2338 = vmatprep.mubr.bf16.mxu0 %v9181_v14  ;;  %v749_v14 = vld [vmem:[#allocation2 + $0x302] sm:$0xff] }
 0x249   :  { %v9323_v50 = vpack.c.bf16 %v750_v13, %v749_v14  ;;  %v8675_v14 = vld [vmem:[#allocation6 + $0x1d8] sm:$0xff]   ;;  %v895_v13 = vld [vmem:[#allocation2 + $0xc1] sm:$0xff] }
 0x24f   :  { %2339 = vmatmul.mubr.bf16.gmra.mrb[108].mxu0 %v9311_v5 }
 0x250   :  { %2346 = vmatprep.mubr.bf16.mxu0 %v9184_v20  ;;  %v848_v20 = vld [vmem:[#allocation2 + $0x338] sm:$0xff] }
 0x251   :  { %v880_v17 = vpack.c.bf16 %v848_v20, %v847_v16  ;;  %v896_v16 = vld [vmem:[#allocation2 + $0xc9] sm:$0xff] }
 0x252   :  { %v9367_v20 = vpack.c.bf16 %v896_v16, %v895_v13  ;;  %v1266_v16 = vld [vmem:[#allocation2 + $0x32] sm:$0xff] }
 0x257   :  { %2347 = vmatmul.mubr.bf16.gmra.mrb[112].mxu0 %v9315_v7 }
 0x258   :  { %2354 = vmatprep.mubr.bf16.mxu0 %v9187_v31  ;;  %v752_v31 = vld [vmem:[#allocation2 + $0x322] sm:$0xff] }
 0x259   :  { %v9326_v22 = vpack.c.bf16 %v752_v31, %v751_v21  ;;  %v8676_v31 = vld [vmem:[#allocation6 + $0x1e0] sm:$0xff]  }
 0x25f   :  { %2355 = vmatmul.mubr.bf16.gmra.mrb[116].mxu0 %v9319_v12 }
 0x260   :  { %2362 = vmatprep.mubr.bf16.mxu0 %v9190_v38  ;;  %v882_v38 = vld [vmem:[#allocation2 + $0x21] sm:$0xff] }
 0x261   :  { %v945_v28 = vpack.c.bf16 %v882_v38, %v881_v25  ;;  %v900_v25 = vld [vmem:[#allocation2 + $0xf9] sm:$0xff] }
 0x267   :  { %2363 = vmatmul.mubr.bf16.gmra.mrb[120].mxu0 %v9323_v50 }
 0x268   :  { %2370 = vmatprep.mubr.bf16.mxu0 %v880_v17  ;;  %v898_v17 = vld [vmem:[#allocation2 + $0xe1] sm:$0xff] }
 0x26f   :  { %2371 = vmatmul.mubr.bf16.gmra.mrb[124].mxu0 %v9326_v22 }
 0x270   :  { %2411 = vmatprep.mubr.bf16.mxu0 %v9196_v52  ;;  %v885_v52 = vld [vmem:[#allocation2 + $0x49] sm:$0xff] }
 0x277   :  { %2412 = vmatmul.mubr.bf16.vlgmr.msra.gmra.mrb[0].mxu0 %v945_v28  ;;  %v902_v28 = vld [vmem:[#allocation2 + $0x111] sm:$0xff] }
 0x278   :  { %2669 = vmatpush1.bf16.msra.mxu0 %v8663_v4  ;;  %2419 = vmatprep.mubr.bf16.mxu0 %v9202_v23  ;;  %v9338_v23 = vpack.c.bf16 %v886_v43, %v885_v52  ;;  %v8679_v43 = vld [vmem:[#allocation6 + $0x200] sm:$0xff]  }
 0x279   :  { %2670 = vmatprep.subr.bf16.mxu0 %v12560_v0  ;;  %7503 = vmatprep.subr.bf16.mxu1 %v8679_v43 }
 0x27a   :  { %7504 = vmatpush3.bf16.msra.mxu1 %v8679_v43 }
 0x27c   :  { %2671 = vmatpush1.bf16.msra.mxu0 %v8664_v24 }
 0x27d   :  { %2672 = vmatprep.subr.bf16.mxu0 %v12560_v0 }
 0x27f   :  { %2420 = vmatmul.mubr.bf16.gmra.mrb[4].mxu0 %v9332_v40 }
 0x280   :  { %2427 = vmatprep.mubr.bf16.mxu0 %v9208_v2  ;;  %2673 = vmatpush1.bf16.msra.mxu0 %v8665_v29  ;;  %v8668_v2 = vld [vmem:[#allocation6 + $0x1a8] sm:$0xff]  }
 0x281   :  { %2674 = vmatprep.subr.bf16.mxu0 %v12560_v0  ;;  %v906_v29 = vld [vmem:[#allocation2 + $0x141] sm:$0xff] }
 0x284   :  { %2675 = vmatpush1.bf16.msra.mxu0 %v8666_v34  ;;  %v8678_v34 = vld [vmem:[#allocation6 + $0x1f0] sm:$0xff]  }
 0x285   :  { %2676 = vmatprep.subr.bf16.mxu0 %v12560_v0 }
 0x287   :  { %2428 = vmatmul.mubr.bf16.gmra.mrb[8].mxu0 %v9338_v23 }
 0x288   :  { %2435 = vmatprep.mubr.bf16.mxu0 %v9214_v10  ;;  %2677 = vmatpush1.bf16.msra.mxu0 %v8667_v27  ;;  %v8670_v10 = vld [vmem:[#allocation6 + $0x1b8] sm:$0xff]  }
 0x289   :  { %2678 = vmatprep.subr.bf16.mxu0 %v12560_v0  ;;  %v907_v27 = vld [vmem:[#allocation2 + $0x151] sm:$0xff] }
 0x28c   :  { %2679 = vmatpush1.bf16.msra.mxu0 %v8668_v2  ;;  %v8682_v2 = vld [vmem:[#allocation6 + $0x218] sm:$0xff]  }
 0x28d   :  { %2680 = vmatprep.subr.bf16.mxu0 %v12560_v0 }
 0x28f   :  { %2436 = vmatmul.mubr.bf16.gmra.mrb[12].mxu0 %v9344_v45 }
 0x290   :  { %2443 = vmatprep.mubr.bf16.mxu0 %v9220_v1  ;;  %2681 = vmatpush1.bf16.msra.mxu0 %v8669_v56  ;;  %v8673_v1 = vld [vmem:[#allocation6 + $0x1c8] sm:$0xff]  }
 0x291   :  { %2682 = vmatprep.subr.bf16.mxu0 %v12560_v0  ;;  %v909_v56 = vld [vmem:[#allocation2 + $0x169] sm:$0xff] }
 0x294   :  { %2683 = vmatpush1.bf16.msra.mxu0 %v8670_v10  ;;  %v9398_v10 = vpack.c.bf16 %v910_v49, %v909_v56  ;;  %v1274_v49 = vld [vmem:[#allocation2 + $0x92] sm:$0xff] }
 0x295   :  { %2684 = vmatprep.subr.bf16.mxu0 %v12560_v0 }
 0x297   :  { %2444 = vmatmul.mubr.bf16.gmra.mrb[16].mxu0 %v9350_v55 }
 0x298   :  { %2451 = vmatprep.mubr.bf16.mxu0 %v9226_v58  ;;  %2685 = vmatpush1.bf16.msra.mxu0 %v8672_v62  ;;  %v9362_v58 = vpack.c.bf16 %v894_v61, %v893_v8  ;;  %v8688_v8 = vld [vmem:[#allocation6 + $0x238] sm:$0xff]   ;;  %v913_v61 = vld [vmem:[#allocation2 + $0x1c9] sm:$0xff] }
 0x299   :  { %2686 = vmatprep.subr.bf16.mxu0 %v12560_v0 }
 0x29c   :  { %2687 = vmatpush1.bf16.msra.mxu0 %v8673_v1  ;;  %v8685_v1 = vld [vmem:[#allocation6 + $0x228] sm:$0xff]  }
 0x29d   :  { %2688 = vmatprep.subr.bf16.mxu0 %v12560_v0 }
 0x29f   :  { %2452 = vmatmul.mubr.bf16.gmra.mrb[20].mxu0 %v9356_v3 }
 0x2a0   :  { %2459 = vmatprep.mubr.bf16.mxu0 %v9231_v30  ;;  %2689 = vmatpush1.bf16.msra.mxu0 %v8674_v6  ;;  %v897_v30 = vld [vmem:[#allocation2 + $0xd9] sm:$0xff]  ;;  %v8687_v6 = vld [vmem:[#allocation6 + $0x230] sm:$0xff]  }
 0x2a1   :  { %2690 = vmatprep.subr.bf16.mxu0 %v12560_v0  ;;  %v9371_v21 = vpack.c.bf16 %v898_v17, %v897_v30  ;;  %v1267_v30 = vld [vmem:[#allocation2 + $0x3a] sm:$0xff] }
 0x2a2   :  { %v1330_v17 = vpack.c.bf16 %v1267_v30, %v1266_v16  ;;  %v1280_v30 = vld [vmem:[#allocation2 + $0xda] sm:$0xff] }
 0x2a4   :  { %2691 = vmatpush1.bf16.msra.mxu0 %v8675_v14  ;;  %v914_v14 = vld [vmem:[#allocation2 + $0x1d1] sm:$0xff]  ;;  %7519 = vmatprep.mubr.bf16.mxu1 %v1330_v17  ;;  %v1281_v17 = vld [vmem:[#allocation2 + $0xe2] sm:$0xff] }
 0x2a5   :  { %2692 = vmatprep.subr.bf16.mxu0 %v12560_v0  ;;  %v961_v13 = vpack.c.bf16 %v914_v14, %v913_v61  ;;  %v1278_v14 = vld [vmem:[#allocation2 + $0xc2] sm:$0xff] }
 0x2a7   :  { %2460 = vmatmul.mubr.bf16.gmra.mrb[24].mxu0 %v9362_v58 }
 0x2a8   :  { %2467 = vmatprep.mubr.bf16.mxu0 %v9235_v35  ;;  %v899_v35 = vld [vmem:[#allocation2 + $0xf1] sm:$0xff]  ;;  %2693 = vmatpush1.bf16.msra.mxu0 %v8676_v31 }
 0x2a9   :  { %2694 = vmatprep.subr.bf16.mxu0 %v12560_v0  ;;  %v9376_v38 = vpack.c.bf16 %v900_v25, %v899_v35  ;;  %v1268_v31 = vld [vmem:[#allocation2 + $0x4a] sm:$0xff]  ;;  %v1269_v35 = vld [vmem:[#allocation2 + $0x52] sm:$0xff] }
 0x2aa   :  { %v1331_v25 = vpack.c.bf16 %v1269_v35, %v1268_v31  ;;  %v1337_v31 = vpack.c.bf16 %v1281_v17, %v1280_v30  ;;  %v928_v35 = vld [vmem:[#allocation2 + $0x279] sm:$0xff]  ;;  %v940_v17 = vld [vmem:[#allocation2 + $0x309] sm:$0xff] }
 0x2ac   :  { %2695 = vmatpush1.bf16.msra.mxu0 %v8677_v18  ;;  %v917_v18 = vld [vmem:[#allocation2 + $0x1f9] sm:$0xff] }
 0x2ad   :  { %2696 = vmatprep.subr.bf16.mxu0 %v12560_v0 }
 0x2af   :  { %2468 = vmatmul.mubr.bf16.gmra.mrb[28].mxu0 %v9367_v20 }
 0x2b0   :  { %2475 = vmatprep.mubr.bf16.mxu0 %v9240_v42  ;;  %v901_v42 = vld [vmem:[#allocation2 + $0x109] sm:$0xff]  ;;  %2697 = vmatpush1.bf16.msra.mxu0 %v8678_v34  ;;  %v1272_v34 = vld [vmem:[#allocation2 + $0x7a] sm:$0xff] }
 0x2b1   :  { %v9380_v4 = vpack.c.bf16 %v902_v28, %v901_v42  ;;  %2698 = vmatprep.subr.bf16.mxu0 %v12560_v0  ;;  %v916_v42 = vld [vmem:[#allocation2 + $0x1e9] sm:$0xff] }
 0x2b4   :  { %2699 = vmatpush1.bf16.msra.mxu0 %v8683_v32  ;;  %v1277_v32 = vld [vmem:[#allocation2 + $0xb2] sm:$0xff] }
 0x2b7   :  { %2476 = vmatmul.mubr.bf16.gmra.mrb[32].mxu0 %v9371_v21 }
 0x2b8   :  { %2483 = vmatprep.mubr.bf16.mxu0 %v9244_v46  ;;  %v903_v46 = vld [vmem:[#allocation2 + $0x121] sm:$0xff] }
 0x2b9   :  { %v9385_v24 = vpack.c.bf16 %v904_v37, %v903_v46  ;;  %v918_v46 = vld [vmem:[#allocation2 + $0x201] sm:$0xff] }
 0x2ba   :  { %v9411_v37 = vpack.c.bf16 %v918_v46, %v917_v18  ;;  %v1282_v18 = vld [vmem:[#allocation2 + $0xf2] sm:$0xff]  ;;  %v1283_v46 = vld [vmem:[#allocation2 + $0xfa] sm:$0xff] }
 0x2bf   :  { %2484 = vmatmul.mubr.bf16.gmra.mrb[36].mxu0 %v9376_v38 }
 0x2c0   :  { %2491 = vmatprep.mubr.bf16.mxu0 %v9249_v51  ;;  %v905_v51 = vld [vmem:[#allocation2 + $0x139] sm:$0xff] }
 0x2c1   :  { %v9389_v52 = vpack.c.bf16 %v906_v29, %v905_v51  ;;  %v1270_v51 = vld [vmem:[#allocation2 + $0x62] sm:$0xff]  ;;  %v1271_v29 = vld [vmem:[#allocation2 + $0x6a] sm:$0xff] }
 0x2c2   :  { %v1332_v43 = vpack.c.bf16 %v1271_v29, %v1270_v51  ;;  %v1338_v51 = vpack.c.bf16 %v1283_v46, %v1282_v18  ;;  %v1284_v29 = vld [vmem:[#allocation2 + $0x10a] sm:$0xff]  ;;  %v1297_v46 = vld [vmem:[#allocation2 + $0x1a2] sm:$0xff] }
 0x2c7   :  { %2492 = vmatmul.mubr.bf16.gmra.mrb[40].mxu0 %v9380_v4 }
 0x2c8   :  { %2499 = vmatprep.mubr.bf16.mxu0 %v9253_v15  ;;  %v8680_v15 = vld [vmem:[#allocation6 + $0x208] sm:$0xff]  }
 0x2c9   :  { %7505 = vmatprep.subr.bf16.mxu1 %v8680_v15 }
 0x2ca   :  { %7506 = vmatpush3.bf16.msra.mxu1 %v8680_v15  ;;  %v1273_v15 = vld [vmem:[#allocation2 + $0x82] sm:$0xff] }
 0x2cb   :  { %7507 = vmatprep.subr.bf16.mxu1 %v8681_v36 }
 0x2ce   :  { %7508 = vmatpush3.bf16.msra.mxu1 %v8681_v36 }
 0x2cf   :  { %2500 = vmatmul.mubr.bf16.gmra.mrb[44].mxu0 %v9385_v24  ;;  %7509 = vmatprep.subr.bf16.mxu1 %v8682_v2 }
 0x2d0   :  { %2507 = vmatprep.mubr.bf16.mxu0 %v9258_v59  ;;  %v9394_v59 = vpack.c.bf16 %v908_v39, %v907_v27  ;;  %v1333_v27 = vpack.c.bf16 %v1273_v15, %v1272_v34  ;;  %v920_v39 = vld [vmem:[#allocation2 + $0x219] sm:$0xff]  ;;  %v932_v15 = vld [vmem:[#allocation2 + $0x2a9] sm:$0xff] }
 0x2d2   :  { %7510 = vmatpush3.bf16.msra.mxu1 %v8682_v2  ;;  %v922_v2 = vld [vmem:[#allocation2 + $0x231] sm:$0xff] }
 0x2d3   :  { %7511 = vmatprep.subr.bf16.mxu1 %v8684_v60 }
 0x2d6   :  { %7512 = vmatpush3.bf16.msra.mxu1 %v8684_v60  ;;  %v1276_v60 = vld [vmem:[#allocation2 + $0xaa] sm:$0xff] }
 0x2d7   :  { %2508 = vmatmul.mubr.bf16.gmra.mrb[48].mxu0 %v9389_v52  ;;  %7513 = vmatprep.subr.bf16.mxu1 %v8685_v1 }
 0x2d8   :  { %2515 = vmatprep.mubr.bf16.mxu0 %v9262_v41  ;;  %v1007_v41 = vld [vmem:[#allocation2 + $0x182] sm:$0xff] }
 0x2d9   :  { %v9400_v62 = vpack.c.bf16 %v1008_v57, %v1007_v41  ;;  %v1275_v41 = vld [vmem:[#allocation2 + $0x9a] sm:$0xff] }
 0x2da   :  { %7514 = vmatpush3.bf16.msra.mxu1 %v8685_v1  ;;  %v1334_v57 = vpack.c.bf16 %v1275_v41, %v1274_v49  ;;  %v1335_v1 = vpack.c.bf16 %v1277_v32, %v1276_v60  ;;  %v1288_v41 = vld [vmem:[#allocation2 + $0x13a] sm:$0xff] }
 0x2db   :  { %7515 = vmatprep.subr.bf16.mxu1 %v8687_v6  ;;  %v936_v32 = vld [vmem:[#allocation2 + $0x2d9] sm:$0xff] }
 0x2de   :  { %7516 = vmatpush3.bf16.msra.mxu1 %v8687_v6 }
 0x2df   :  { %2516 = vmatmul.mubr.bf16.gmra.mrb[52].mxu0 %v9394_v59  ;;  %7517 = vmatprep.subr.bf16.mxu1 %v8688_v8 }
 0x2e0   :  { %2523 = vmatprep.mubr.bf16.mxu0 %v9266_v9  ;;  %v8671_v9 = vld [vmem:[#allocation3 + $0x78] sm:$0xff] }
 0x2e2   :  { %7518 = vmatpush3.bf16.msra.mxu1 %v8688_v8  ;;  %v926_v8 = vld [vmem:[#allocation2 + $0x261] sm:$0xff] }
 0x2e3   :  { %5174 = vmatprep.subr.bf16.mxu1 %v12560_v0 }
 0x2e5   :  { %7520 = vmatmul.mubr.bf16.vlgmr.msra.gmra.mrb[0].mxu1 %v1331_v25 }
 0x2e6   :  { %7523 = vmatprep.mubr.bf16.mxu1 %v1332_v43  ;;  %v1285_v43 = vld [vmem:[#allocation2 + $0x112] sm:$0xff] }
 0x2e7   :  { %2524 = vmatmul.mubr.bf16.gmra.mrb[56].mxu0 %v9398_v10  ;;  %v1339_v34 = vpack.c.bf16 %v1285_v43, %v1284_v29  ;;  %v1075_v29 = vld [vmem:[#allocation2 + $0x38] sm:$0xff] }
 0x2e8   :  { %2531 = vmatprep.mubr.bf16.mxu0 %v9400_v62 }
 0x2ed   :  { %7524 = vmatmul.mubr.bf16.gmra.mrb[4].mxu1 %v1333_v27 }
 0x2ee   :  { %7527 = vmatprep.mubr.bf16.mxu1 %v1334_v57  ;;  %v1289_v57 = vld [vmem:[#allocation2 + $0x142] sm:$0xff] }
 0x2ef   :  { %2532 = vmatmul.mubr.bf16.gmra.mrb[60].mxu0 %v8671_v9  ;;  %v924_v9 = vld [vmem:[#allocation2 + $0x249] sm:$0xff]  ;;  %v1341_v60 = vpack.c.bf16 %v1289_v57, %v1288_v41 }
 0x2f0   :  { %2539 = vmatprep.mubr.bf16.mxu0 %v9271_v26  ;;  %v915_v26 = vld [vmem:[#allocation2 + $0x1e1] sm:$0xff] }
 0x2f1   :  { %v9407_v28 = vpack.c.bf16 %v916_v42, %v915_v26  ;;  %v930_v26 = vld [vmem:[#allocation2 + $0x291] sm:$0xff]  ;;  %v1079_v57 = vld [vmem:[#allocation2 + $0x68] sm:$0xff] }
 0x2f5   :  { %7528 = vmatmul.mubr.bf16.gmra.mrb[8].mxu1 %v1335_v1 }
 0x2f7   :  { %2540 = vmatmul.mubr.bf16.gmra.mrb[64].mxu0 %v961_v13  ;;  %v1279_v13 = vld [vmem:[#allocation2 + $0xca] sm:$0xff] }
 0x2f8   :  { %2547 = vmatprep.mubr.bf16.mxu0 %v9275_v33  ;;  %v919_v33 = vld [vmem:[#allocation2 + $0x211] sm:$0xff]  ;;  %v1336_v16 = vpack.c.bf16 %v1279_v13, %v1278_v14 }
 0x2f9   :  { %v9415_v36 = vpack.c.bf16 %v920_v39, %v919_v33  ;;  %v934_v33 = vld [vmem:[#allocation2 + $0x2c1] sm:$0xff]  ;;  %v1292_v13 = vld [vmem:[#allocation2 + $0x16a] sm:$0xff] }
 0x2fa   :  { %7531 = vmatprep.mubr.bf16.mxu1 %v1336_v16  ;;  %v1293_v16 = vld [vmem:[#allocation2 + $0x172] sm:$0xff] }
 0x2fb   :  { %v1343_v30 = vpack.c.bf16 %v1293_v16, %v1292_v13  ;;  %v1083_v16 = vld [vmem:[#allocation2 + $0x98] sm:$0xff] }
 0x2fd   :  { %7532 = vmatmul.mubr.bf16.gmra.mrb[12].mxu1 %v1337_v31  ;;  %v941_v31 = vld [vmem:[#allocation2 + $0x319] sm:$0xff] }
 0x2fe   :  { %7535 = vmatprep.mubr.bf16.mxu1 %v1338_v51 }
 0x2ff   :  { %2548 = vmatmul.mubr.bf16.gmra.mrb[68].mxu0 %v9407_v28 }
 0x300   :  { %2555 = vmatprep.mubr.bf16.mxu0 %v9279_v11  ;;  %v921_v11 = vld [vmem:[#allocation2 + $0x229] sm:$0xff] }
 0x301   :  { %v9419_v56 = vpack.c.bf16 %v922_v2, %v921_v11  ;;  %v1286_v11 = vld [vmem:[#allocation2 + $0x122] sm:$0xff]  ;;  %v1287_v2 = vld [vmem:[#allocation2 + $0x12a] sm:$0xff] }
 0x302   :  { %v1340_v49 = vpack.c.bf16 %v1287_v2, %v1286_v11  ;;  %v1076_v2 = vld [vmem:[#allocation2 + $0x48] sm:$0xff] }
 0x305   :  { %7536 = vmatmul.mubr.bf16.gmra.mrb[16].mxu1 %v1339_v34  ;;  %v1298_v34 = vld [vmem:[#allocation2 + $0x1e2] sm:$0xff] }
 0x306   :  { %7539 = vmatprep.mubr.bf16.mxu1 %v1340_v49  ;;  %v1077_v49 = vld [vmem:[#allocation2 + $0x50] sm:$0xff] }
 0x307   :  { %2556 = vmatmul.mubr.bf16.gmra.mrb[72].mxu0 %v9411_v37  ;;  %v1139_v41 = vpack.c.bf16 %v1077_v49, %v1076_v2  ;;  %v1314_v49 = vld [vmem:[#allocation2 + $0x2a2] sm:$0xff] }
 0x308   :  { %2563 = vmatprep.mubr.bf16.mxu0 %v9283_v19  ;;  %v923_v19 = vld [vmem:[#allocation2 + $0x241] sm:$0xff] }
 0x309   :  { %v9423_v6 = vpack.c.bf16 %v924_v9, %v923_v19  ;;  %v938_v19 = vld [vmem:[#allocation2 + $0x2f1] sm:$0xff] }
 0x30d   :  { %7540 = vmatmul.mubr.bf16.gmra.mrb[20].mxu1 %v1341_v60 }
 0x30f   :  { %2564 = vmatmul.mubr.bf16.gmra.mrb[76].mxu0 %v9415_v36 }
 0x310   :  { %2571 = vmatprep.mubr.bf16.mxu0 %v9287_v47  ;;  %v925_v47 = vld [vmem:[#allocation2 + $0x259] sm:$0xff] }
 0x311   :  { %v9427_v61 = vpack.c.bf16 %v926_v8, %v925_v47  ;;  %v1290_v47 = vld [vmem:[#allocation2 + $0x152] sm:$0xff]  ;;  %v1291_v8 = vld [vmem:[#allocation2 + $0x15a] sm:$0xff] }
 0x312   :  { %v1342_v14 = vpack.c.bf16 %v1291_v8, %v1290_v47  ;;  %v1305_v47 = vld [vmem:[#allocation2 + $0x232] sm:$0xff] }
 0x314   :  { %7543 = vmatprep.mubr.bf16.mxu1 %v1342_v14  ;;  %v1081_v14 = vld [vmem:[#allocation2 + $0x80] sm:$0xff] }
 0x315   :  { %7544 = vmatmul.mubr.bf16.gmra.mrb[24].mxu1 %v1343_v30 }
 0x316   :  { %7547 = vmatprep.mubr.bf16.mxu1 %v9400_v62  ;;  %v8686_v62 = vld [vmem:[#allocation3 + $0xf8] sm:$0xff] }
 0x317   :  { %2572 = vmatmul.mubr.bf16.gmra.mrb[80].mxu0 %v9419_v56 }
 0x318   :  { %2579 = vmatprep.mubr.bf16.mxu0 %v9291_v48  ;;  %v927_v48 = vld [vmem:[#allocation2 + $0x271] sm:$0xff] }
 0x319   :  { %v9431_v25 = vpack.c.bf16 %v928_v35, %v927_v48  ;;  %v942_v48 = vld [vmem:[#allocation2 + $0x321] sm:$0xff]  ;;  %v1039_v35 = vld [vmem:[#allocation2 + $0x332] sm:$0xff] }
 0x31f   :  { %2580 = vmatmul.mubr.bf16.gmra.mrb[84].mxu0 %v9423_v6 }
 0x320   :  { %2587 = vmatprep.mubr.bf16.mxu0 %v9295_v54  ;;  %v929_v54 = vld [vmem:[#allocation2 + $0x289] sm:$0xff] }
 0x321   :  { %v9435_v42 = vpack.c.bf16 %v930_v26, %v929_v54  ;;  %v1040_v54 = vld [vmem:[#allocation2 + $0x33a] sm:$0xff]  ;;  %v9460_v26 = vpack.c.bf16 %v942_v48, %v941_v31 }
 0x322   :  { %v9462_v18 = vpack.c.bf16 %v1040_v54, %v1039_v35  ;;  %v1308_v48 = vld [vmem:[#allocation2 + $0x25a] sm:$0xff]  ;;  %v1309_v35 = vld [vmem:[#allocation2 + $0x262] sm:$0xff] }
 0x323   :  { %v1351_v54 = vpack.c.bf16 %v1309_v35, %v1308_v48  ;;  %v1098_v35 = vld [vmem:[#allocation2 + $0x150] sm:$0xff] }
 0x327   :  { %2588 = vmatmul.mubr.bf16.gmra.mrb[88].mxu0 %v9427_v61 }
 0x328   :  { %2595 = vmatprep.mubr.bf16.mxu0 %v9299_v44  ;;  %v931_v44 = vld [vmem:[#allocation2 + $0x2a1] sm:$0xff] }
 0x329   :  { %v9439_v27 = vpack.c.bf16 %v932_v15, %v931_v44  ;;  %v1299_v44 = vld [vmem:[#allocation2 + $0x1ea] sm:$0xff] }
 0x32a   :  { %v1346_v15 = vpack.c.bf16 %v1299_v44, %v1298_v34  ;;  %v1312_v34 = vld [vmem:[#allocation2 + $0x28a] sm:$0xff]  ;;  %v1313_v44 = vld [vmem:[#allocation2 + $0x292] sm:$0xff] }
 0x32f   :  { %2596 = vmatmul.mubr.bf16.gmra.mrb[92].mxu0 %v9431_v25 }
 0x330   :  { %2603 = vmatprep.mubr.bf16.mxu0 %v9303_v53  ;;  %v933_v53 = vld [vmem:[#allocation2 + $0x2b9] sm:$0xff] }
 0x331   :  { %v9443_v39 = vpack.c.bf16 %v934_v33, %v933_v53  ;;  %v1300_v53 = vld [vmem:[#allocation2 + $0x1fa] sm:$0xff]  ;;  %v1301_v33 = vld [vmem:[#allocation2 + $0x202] sm:$0xff] }
 0x332   :  { %v1347_v11 = vpack.c.bf16 %v1301_v33, %v1300_v53  ;;  %v1089_v53 = vld [vmem:[#allocation2 + $0xe0] sm:$0xff] }
 0x337   :  { %2604 = vmatmul.mubr.bf16.gmra.mrb[96].mxu0 %v9435_v42 }
 0x338   :  { %2611 = vmatprep.mubr.bf16.mxu0 %v9307_v63  ;;  %v935_v63 = vld [vmem:[#allocation2 + $0x2d1] sm:$0xff] }
 0x339   :  { %v9447_v1 = vpack.c.bf16 %v936_v32, %v935_v63  ;;  %v1302_v63 = vld [vmem:[#allocation2 + $0x212] sm:$0xff]  ;;  %v1303_v32 = vld [vmem:[#allocation2 + $0x21a] sm:$0xff] }
 0x33f   :  { %2612 = vmatmul.mubr.bf16.gmra.mrb[100].mxu0 %v9439_v27 }
 0x340   :  { %2619 = vmatprep.mubr.bf16.mxu0 %v9311_v5  ;;  %v937_v5 = vld [vmem:[#allocation2 + $0x2e9] sm:$0xff] }
 0x341   :  { %v9451_v9 = vpack.c.bf16 %v938_v19, %v937_v5  ;;  %v1348_v5 = vpack.c.bf16 %v1303_v32, %v1302_v63  ;;  %v1304_v19 = vld [vmem:[#allocation2 + $0x22a] sm:$0xff] }
 0x342   :  { %v1349_v8 = vpack.c.bf16 %v1305_v47, %v1304_v19  ;;  %v1093_v32 = vld [vmem:[#allocation2 + $0x110] sm:$0xff]  ;;  %v1095_v19 = vld [vmem:[#allocation2 + $0x128] sm:$0xff] }
 0x347   :  { %2620 = vmatmul.mubr.bf16.gmra.mrb[104].mxu0 %v9443_v39 }
 0x348   :  { %2627 = vmatprep.mubr.bf16.mxu0 %v9315_v7  ;;  %v939_v7 = vld [vmem:[#allocation2 + $0x301] sm:$0xff] }
 0x34f   :  { %2628 = vmatmul.mubr.bf16.gmra.mrb[108].mxu0 %v9447_v1 }
 0x350   :  { %2635 = vmatprep.mubr.bf16.mxu0 %v9319_v12  ;;  %v9456_v12 = vpack.c.bf16 %v940_v17, %v939_v7  ;;  %v1306_v7 = vld [vmem:[#allocation2 + $0x242] sm:$0xff]  ;;  %v1307_v17 = vld [vmem:[#allocation2 + $0x24a] sm:$0xff] }
 0x351   :  { %v1350_v31 = vpack.c.bf16 %v1307_v17, %v1306_v7 }
 0x357   :  { %2636 = vmatmul.mubr.bf16.gmra.mrb[112].mxu0 %v9451_v9 }
 0x358   :  { %2643 = vmatprep.mubr.bf16.mxu0 %v9323_v50  ;;  %v1296_v50 = vld [vmem:[#allocation2 + $0x19a] sm:$0xff] }
 0x359   :  { %v1345_v51 = vpack.c.bf16 %v1297_v46, %v1296_v50  ;;  %v1085_v50 = vld [vmem:[#allocation2 + $0xb0] sm:$0xff] }
 0x35b   :  { %7548 = vmatmul.mubr.bf16.gmra.mrb[28].mxu1 %v1345_v51  ;;  %v1087_v51 = vld [vmem:[#allocation2 + $0xc8] sm:$0xff] }
 0x35c   :  { %7551 = vmatprep.mubr.bf16.mxu1 %v1346_v15  ;;  %v1353_v15 = vpack.c.bf16 %v1313_v44, %v1312_v34  ;;  %v1199_v34 = vld [vmem:[#allocation2 + $0x189] sm:$0xff] }
 0x35f   :  { %2644 = vmatmul.mubr.bf16.gmra.mrb[116].mxu0 %v9456_v12 }
 0x360   :  { %2651 = vmatprep.mubr.bf16.mxu0 %v9326_v22  ;;  %v1074_v22 = vld [vmem:[#allocation2 + $0x30] sm:$0xff] }
 0x361   :  { %v1138_v43 = vpack.c.bf16 %v1075_v29, %v1074_v22  ;;  %v1310_v22 = vld [vmem:[#allocation2 + $0x272] sm:$0xff]  ;;  %v1311_v29 = vld [vmem:[#allocation2 + $0x27a] sm:$0xff] }
 0x363   :  { %7552 = vmatmul.mubr.bf16.gmra.mrb[32].mxu1 %v1347_v11  ;;  %v1091_v11 = vld [vmem:[#allocation2 + $0xf8] sm:$0xff] }
 0x364   :  { %7555 = vmatprep.mubr.bf16.mxu1 %v1348_v5 }
 0x367   :  { %2652 = vmatmul.mubr.bf16.gmra.mrb[120].mxu0 %v9460_v26 }
 0x368   :  { %2659 = vmatprep.mubr.bf16.mxu0 %v9462_v18 }
 0x36b   :  { %7556 = vmatmul.mubr.bf16.gmra.mrb[36].mxu1 %v1349_v8  ;;  %v1318_v8 = vld [vmem:[#allocation2 + $0x2d2] sm:$0xff] }
 0x36c   :  { %7559 = vmatprep.mubr.bf16.mxu1 %v1350_v31 }
 0x36f   :  { %2660 = vmatmul.mubr.bf16.gmra.mrb[124].mxu0 %v8686_v62 }
 0x370   :  { %2700 = vmatprep.mubr.bf16.mxu0 %v9332_v40  ;;  %v1078_v40 = vld [vmem:[#allocation2 + $0x60] sm:$0xff] }
 0x371   :  { %v1140_v60 = vpack.c.bf16 %v1079_v57, %v1078_v40  ;;  %v1316_v57 = vld [vmem:[#allocation2 + $0x2ba] sm:$0xff] }
 0x373   :  { %7560 = vmatmul.mubr.bf16.gmra.mrb[40].mxu1 %v1351_v54  ;;  %v1099_v54 = vld [vmem:[#allocation2 + $0x158] sm:$0xff] }
 0x377   :  { %2701 = vmatmul.mubr.bf16.vlgmr.msra.gmra.mrb[0].mxu0 %v1138_v43  ;;  %v1352_v43 = vpack.c.bf16 %v1311_v29, %v1310_v22  ;;  %v1100_v22 = vld [vmem:[#allocation2 + $0x168] sm:$0xff]  ;;  %v1101_v29 = vld [vmem:[#allocation2 + $0x170] sm:$0xff] }
 0x378   :  { %2708 = vmatprep.mubr.bf16.mxu0 %v9338_v23  ;;  %v1080_v23 = vld [vmem:[#allocation2 + $0x78] sm:$0xff] }
 0x379   :  { %v1141_v13 = vpack.c.bf16 %v1081_v14, %v1080_v23  ;;  %7563 = vmatprep.mubr.bf16.mxu1 %v1352_v43  ;;  %v1319_v23 = vld [vmem:[#allocation2 + $0x2da] sm:$0xff] }
 0x37a   :  { %v1356_v14 = vpack.c.bf16 %v1319_v23, %v1318_v8  ;;  %v1198_v43 = vld [vmem:[#allocation2 + $0x181] sm:$0xff] }
 0x37b   :  { %7564 = vmatmul.mubr.bf16.gmra.mrb[44].mxu1 %v1353_v15  ;;  %v1248_v15 = vpack.c.bf16 %v1199_v34, %v1198_v43  ;;  %v1107_v8 = vld [vmem:[#allocation2 + $0x1e8] sm:$0xff] }
 0x37f   :  { %2709 = vmatmul.mubr.bf16.gmra.mrb[4].mxu0 %v1139_v41  ;;  %v1315_v41 = vld [vmem:[#allocation2 + $0x2aa] sm:$0xff] }
 0x380   :  { %2716 = vmatprep.mubr.bf16.mxu0 %v9344_v45  ;;  %v1082_v45 = vld [vmem:[#allocation2 + $0x90] sm:$0xff]  ;;  %v1354_v40 = vpack.c.bf16 %v1315_v41, %v1314_v49 }
 0x381   :  { %v1142_v30 = vpack.c.bf16 %v1083_v16, %v1082_v45  ;;  %v1321_v45 = vld [vmem:[#allocation2 + $0x2f2] sm:$0xff] }
 0x382   :  { %7567 = vmatprep.mubr.bf16.mxu1 %v1354_v40  ;;  %v1328_v40 = vld [vmem:[#allocation2 + $0x34a] sm:$0xff] }
 0x387   :  { %2717 = vmatmul.mubr.bf16.gmra.mrb[8].mxu0 %v1140_v60  ;;  %v1317_v60 = vld [vmem:[#allocation2 + $0x2c2] sm:$0xff] }
 0x388   :  { %2724 = vmatprep.mubr.bf16.mxu0 %v9350_v55  ;;  %v1084_v55 = vld [vmem:[#allocation2 + $0xa8] sm:$0xff]  ;;  %v1355_v63 = vpack.c.bf16 %v1317_v60, %v1316_v57  ;;  %v1104_v60 = vld [vmem:[#allocation2 + $0x198] sm:$0xff] }
 0x389   :  { %v1143_v46 = vpack.c.bf16 %v1085_v50, %v1084_v55  ;;  %v1150_v55 = vpack.c.bf16 %v1099_v54, %v1098_v35  ;;  %v1322_v50 = vld [vmem:[#allocation2 + $0x302] sm:$0xff]  ;;  %v1111_v35 = vld [vmem:[#allocation2 + $0x218] sm:$0xff] }
 0x38a   :  { %7568 = vmatmul.mubr.bf16.gmra.mrb[48].mxu1 %v1355_v63  ;;  %v9497_v63 = vld [vmem:[#allocation2 + $0x8] sm:$0xff] }
 0x38b   :  { %7571 = vmatprep.mubr.bf16.mxu1 %v1356_v14  ;;  %v1108_v14 = vld [vmem:[#allocation2 + $0x1f8] sm:$0xff] }
 0x38f   :  { %2725 = vmatmul.mubr.bf16.gmra.mrb[12].mxu0 %v1141_v13  ;;  %v1320_v13 = vld [vmem:[#allocation2 + $0x2ea] sm:$0xff] }
 0x390   :  { %2732 = vmatprep.mubr.bf16.mxu0 %v9356_v3  ;;  %v1086_v3 = vld [vmem:[#allocation2 + $0xc0] sm:$0xff]  ;;  %v1357_v16 = vpack.c.bf16 %v1321_v45, %v1320_v13 }
 0x391   :  { %v1144_v62 = vpack.c.bf16 %v1087_v51, %v1086_v3  ;;  %v1325_v3 = vld [vmem:[#allocation2 + $0x322] sm:$0xff] }
 0x392   :  { %7572 = vmatmul.mubr.bf16.gmra.mrb[52].mxu1 %v1357_v16  ;;  %v1109_v13 = vld [vmem:[#allocation2 + $0x200] sm:$0xff] }
 0x393   :  { %v1155_v45 = vpack.c.bf16 %v1109_v13, %v1108_v14 }
 0x397   :  { %2733 = vmatmul.mubr.bf16.gmra.mrb[16].mxu0 %v1142_v30  ;;  %v1097_v30 = vld [vmem:[#allocation2 + $0x140] sm:$0xff] }
 0x398   :  { %2740 = vmatprep.mubr.bf16.mxu0 %v9362_v58  ;;  %v1088_v58 = vld [vmem:[#allocation2 + $0xd8] sm:$0xff] }
 0x399   :  { %v1145_v33 = vpack.c.bf16 %v1089_v53, %v1088_v58 }
 0x39f   :  { %2741 = vmatmul.mubr.bf16.gmra.mrb[20].mxu0 %v1143_v46  ;;  %v1324_v46 = vld [vmem:[#allocation2 + $0x31a] sm:$0xff] }
 0x3a0   :  { %2748 = vmatprep.mubr.bf16.mxu0 %v9367_v20  ;;  %v1090_v20 = vld [vmem:[#allocation2 + $0xf0] sm:$0xff] }
 0x3a1   :  { %v1146_v2 = vpack.c.bf16 %v1091_v11, %v1090_v20  ;;  %v1103_v20 = vld [vmem:[#allocation2 + $0x188] sm:$0xff]  ;;  %v1200_v11 = vld [vmem:[#allocation2 + $0x199] sm:$0xff] }
 0x3a7   :  { %2749 = vmatmul.mubr.bf16.gmra.mrb[24].mxu0 %v1144_v62  ;;  %v1359_v62 = vpack.c.bf16 %v1325_v3, %v1324_v46 }
 0x3a8   :  { %2756 = vmatprep.mubr.bf16.mxu0 %v9371_v21  ;;  %v1092_v21 = vld [vmem:[#allocation2 + $0x108] sm:$0xff] }
 0x3a9   :  { %v1147_v5 = vpack.c.bf16 %v1093_v32, %v1092_v21  ;;  %v1153_v21 = vpack.c.bf16 %v9497_v63, %v1104_v60  ;;  %v1123_v60 = vld [vmem:[#allocation2 + $0x2a8] sm:$0xff] }
 0x3af   :  { %2757 = vmatmul.mubr.bf16.gmra.mrb[28].mxu0 %v1145_v33 }
 0x3b0   :  { %2764 = vmatprep.mubr.bf16.mxu0 %v9376_v38  ;;  %v1094_v38 = vld [vmem:[#allocation2 + $0x120] sm:$0xff] }
 0x3b1   :  { %v1148_v47 = vpack.c.bf16 %v1095_v19, %v1094_v38 }
 0x3b7   :  { %2765 = vmatmul.mubr.bf16.gmra.mrb[32].mxu0 %v1146_v2  ;;  %v1201_v2 = vld [vmem:[#allocation2 + $0x1a1] sm:$0xff] }
 0x3b8   :  { %2772 = vmatprep.mubr.bf16.mxu0 %v9380_v4  ;;  %v1096_v4 = vld [vmem:[#allocation2 + $0x138] sm:$0xff]  ;;  %v9478_v17 = vpop.f32.mrb[0].mxu1  ;;  %v1249_v41 = vpack.c.bf16 %v1201_v2, %v1200_v11  ;;  %v1121_v2 = vld [vmem:[#allocation2 + $0x290] sm:$0xff] }
 0x3b9   :  { %v1149_v7 = vpack.c.bf16 %v1097_v30, %v1096_v4 }
 0x3bf   :  { %2773 = vmatmul.mubr.bf16.gmra.mrb[36].mxu0 %v1147_v5 }
 0x3c0   :  { %2780 = vmatprep.mubr.bf16.mxu0 %v9385_v24  ;;  %v9480_v24 = vpop.f32.mrb[1].mxu1 }
 0x3c1   :  { %v9482_v31 = vpop.f32.mrb[2].mxu1 }
 0x3c2   :  { %v9484_v48 = vpop.f32.mrb[3].mxu1 }
 0x3c3   :  { %v9489_v44 = vpop.f32.mrb[4].mxu1 }
 0x3c4   :  { %v9491_v58 = vpop.f32.mrb[5].mxu1 }
 0x3c5   :  { %v9493_v53 = vpop.f32.mrb[6].mxu1 }
 0x3c6   :  { %v9495_v33 = vpop.f32.mrb[7].mxu1 }
 0x3c7   :  { %2781 = vmatmul.mubr.bf16.gmra.mrb[40].mxu0 %v1148_v47  ;;  %v1106_v47 = vld [vmem:[#allocation2 + $0x1e0] sm:$0xff] }
 0x3c8   :  { %2788 = vmatprep.mubr.bf16.mxu0 %v9389_v52  ;;  %v1323_v52 = vld [vmem:[#allocation2 + $0x30a] sm:$0xff]  ;;  %v9500_v32 = vpop.f32.mrb[8].mxu1  ;;  %v1154_v23 = vpack.c.bf16 %v1107_v8, %v1106_v47  ;;  %v1125_v47 = vld [vmem:[#allocation2 + $0x2c0] sm:$0xff] }
 0x3c9   :  { %v1358_v51 = vpack.c.bf16 %v1323_v52, %v1322_v50  ;;  %v9502_v5 = vpop.f32.mrb[9].mxu1 }
 0x3ca   :  { %v9504_v38 = vpop.f32.mrb[10].mxu1 }
 0x3cb   :  { %7575 = vmatprep.mubr.bf16.mxu1 %v1358_v51  ;;  %v9506_v19 = vpop.f32.mrb[11].mxu1 }
 0x3cc   :  { %7576 = vmatmul.mubr.bf16.gmra.mrb[56].mxu1 %v1359_v62  ;;  %v1115_v62 = vld [vmem:[#allocation2 + $0x248] sm:$0xff] }
 0x3cd   :  { %7579 = vmatprep.mubr.bf16.mxu1 %v9462_v18  ;;  %v1329_v18 = vld [vmem:[#allocation2 + $0x352] sm:$0xff] }
 0x3ce   :  { %v1361_v57 = vpack.c.bf16 %v1329_v18, %v1328_v40 }
 0x3cf   :  { %2789 = vmatmul.mubr.bf16.gmra.mrb[44].mxu0 %v1149_v7 }
 0x3d0   :  { %2796 = vmatprep.mubr.bf16.mxu0 %v9394_v59  ;;  %v1151_v59 = vpack.c.bf16 %v1101_v29, %v1100_v22  ;;  %v9510_v16 = vpop.f32.mrb[12].mxu1  ;;  %v1117_v29 = vld [vmem:[#allocation2 + $0x260] sm:$0xff] }
 0x3d1   :  { %v9512_v4 = vpop.f32.mrb[13].mxu1 }
 0x3d2   :  { %v9514_v30 = vpop.f32.mrb[14].mxu1 }
 0x3d3   :  { %v9516_v7 = vpop.f32.mrb[15].mxu1 }
 0x3d4   :  { %7580 = vmatmul.mubr.bf16.gmra.mrb[60].mxu1 %v1361_v57 }
 0x3d7   :  { %2797 = vmatmul.mubr.bf16.gmra.mrb[48].mxu0 %v1150_v55  ;;  %v1113_v55 = vld [vmem:[#allocation2 + $0x230] sm:$0xff] }
 0x3d8   :  { %2804 = vmatprep.mubr.bf16.mxu0 %v9398_v10  ;;  %v1102_v10 = vld [vmem:[#allocation2 + $0x180] sm:$0xff]  ;;  %v9520_v52 = vpop.f32.mrb[16].mxu1 }
 0x3d9   :  { %v1152_v49 = vpack.c.bf16 %v1103_v20, %v1102_v10  ;;  %v9522_v46 = vpop.f32.mrb[17].mxu1  ;;  %v1119_v20 = vld [vmem:[#allocation2 + $0x278] sm:$0xff] }
 0x3da   :  { %v9524_v3 = vpop.f32.mrb[18].mxu1 }
 0x3db   :  { %v9526_v51 = vpop.f32.mrb[19].mxu1 }
 0x3df   :  { %2805 = vmatmul.mubr.bf16.gmra.mrb[52].mxu0 %v1151_v59 }
 0x3e0   :  { %2812 = vmatprep.mubr.bf16.mxu0 %v1248_v15  ;;  %v9530_v34 = vpop.f32.mrb[20].mxu1 }
 0x3e1   :  { %v9532_v59 = vpop.f32.mrb[21].mxu1 }
 0x3e2   :  { %v9534_v15 = vpop.f32.mrb[22].mxu1 }
 0x3e3   :  { %v9536_v10 = vpop.f32.mrb[23].mxu1 }
 0x3e7   :  { %2813 = vmatmul.mubr.bf16.gmra.mrb[56].mxu0 %v1152_v49 }
 0x3e8   :  { %2820 = vmatprep.mubr.bf16.mxu0 %v1249_v41  ;;  %v9540_v41 = vpop.f32.mrb[24].mxu1 }
 0x3e9   :  { %v9542_v40 = vpop.f32.mrb[25].mxu1 }
 0x3ea   :  { %v9544_v18 = vpop.f32.mrb[26].mxu1 }
 0x3eb   :  { %v9546_v57 = vpop.f32.mrb[27].mxu1 }
 0x3ef   :  { %2821 = vmatmul.mubr.bf16.gmra.mrb[60].mxu0 %v1153_v21 }
 0x3f0   :  { %2828 = vmatprep.mubr.bf16.mxu0 %v9407_v28  ;;  %v1110_v28 = vld [vmem:[#allocation2 + $0x210] sm:$0xff] }
 0x3f1   :  { %v1156_v54 = vpack.c.bf16 %v1111_v35, %v1110_v28  ;;  %v1127_v28 = vld [vmem:[#allocation2 + $0x2d8] sm:$0xff] }
 0x3f7   :  { %2829 = vmatmul.mubr.bf16.gmra.mrb[64].mxu0 %v1154_v23 }
 0x3f8   :  { %2836 = vmatprep.mubr.bf16.mxu0 %v9411_v37  ;;  %v1112_v37 = vld [vmem:[#allocation2 + $0x228] sm:$0xff] }
 0x3f9   :  { %v1157_v50 = vpack.c.bf16 %v1113_v55, %v1112_v37  ;;  %v1129_v37 = vld [vmem:[#allocation2 + $0x2f0] sm:$0xff] }
 0x3ff   :  { %2837 = vmatmul.mubr.bf16.gmra.mrb[68].mxu0 %v1155_v45 }
 0x400   :  { %2844 = vmatprep.mubr.bf16.mxu0 %v9415_v36  ;;  %v1114_v36 = vld [vmem:[#allocation2 + $0x240] sm:$0xff] }
 0x401   :  { %v1158_v22 = vpack.c.bf16 %v1115_v62, %v1114_v36 }
 0x407   :  { %2845 = vmatmul.mubr.bf16.gmra.mrb[72].mxu0 %v1156_v54  ;;  %v1128_v54 = vld [vmem:[#allocation2 + $0x2e8] sm:$0xff] }
 0x408   :  { %2852 = vmatprep.mubr.bf16.mxu0 %v9419_v56  ;;  %v1116_v56 = vld [vmem:[#allocation2 + $0x258] sm:$0xff]  ;;  %v1165_v62 = vpack.c.bf16 %v1129_v37, %v1128_v54 }
 0x409   :  { %v1159_v43 = vpack.c.bf16 %v1117_v29, %v1116_v56 }
 0x40f   :  { %2853 = vmatmul.mubr.bf16.gmra.mrb[76].mxu0 %v1157_v50 }
 0x410   :  { %2860 = vmatprep.mubr.bf16.mxu0 %v9423_v6  ;;  %v1118_v6 = vld [vmem:[#allocation2 + $0x270] sm:$0xff] }
 0x411   :  { %v1160_v11 = vpack.c.bf16 %v1119_v20, %v1118_v6 }
 0x417   :  { %2861 = vmatmul.mubr.bf16.gmra.mrb[80].mxu0 %v1158_v22 }
 0x418   :  { %2868 = vmatprep.mubr.bf16.mxu0 %v9427_v61  ;;  %v1120_v61 = vld [vmem:[#allocation2 + $0x288] sm:$0xff] }
 0x419   :  { %v1161_v49 = vpack.c.bf16 %v1121_v2, %v1120_v61  ;;  %v1130_v61 = vld [vmem:[#allocation2 + $0x300] sm:$0xff]  ;;  %v1131_v2 = vld [vmem:[#allocation2 + $0x308] sm:$0xff] }
 0x41f   :  { %2869 = vmatmul.mubr.bf16.gmra.mrb[84].mxu0 %v1159_v43 }
 0x420   :  { %2876 = vmatprep.mubr.bf16.mxu0 %v9431_v25  ;;  %v1122_v25 = vld [vmem:[#allocation2 + $0x2a0] sm:$0xff] }
 0x421   :  { %v1162_v21 = vpack.c.bf16 %v1123_v60, %v1122_v25 }
 0x427   :  { %2877 = vmatmul.mubr.bf16.gmra.mrb[88].mxu0 %v1160_v11 }
 0x428   :  { %2884 = vmatprep.mubr.bf16.mxu0 %v9435_v42  ;;  %v1124_v42 = vld [vmem:[#allocation2 + $0x2b8] sm:$0xff] }
 0x429   :  { %v1163_v8 = vpack.c.bf16 %v1125_v47, %v1124_v42 }
 0x42e   :  { %v9550_v23 = vpop.f32.mrb[28].mxu1 }
 0x42f   :  { %2885 = vmatmul.mubr.bf16.gmra.mrb[92].mxu0 %v1161_v49  ;;  %v9552_v14 = vpop.f32.mrb[29].mxu1 }
 0x430   :  { %2892 = vmatprep.mubr.bf16.mxu0 %v9439_v27  ;;  %v9554_v13 = vpop.f32.mrb[30].mxu1  ;;  %v1126_v27 = vld [vmem:[#allocation2 + $0x2d0] sm:$0xff] }
 0x431   :  { %v9556_v45 = vpop.f32.mrb[31].mxu1  ;;  %v1164_v35 = vpack.c.bf16 %v1127_v28, %v1126_v27  ;;  %v1133_v27 = vld [vmem:[#allocation2 + $0x320] sm:$0xff]  ;;  %v1230_v28 = vld [vmem:[#allocation2 + $0x331] sm:$0xff] }
 0x436   :  { %v9566_v22 = vpop.f32.mrb[32].mxu1 }
 0x437   :  { %2893 = vmatmul.mubr.bf16.gmra.mrb[96].mxu0 %v1162_v21  ;;  %v9568_v56 = vpop.f32.mrb[33].mxu1  ;;  %v1166_v21 = vpack.c.bf16 %v1131_v2, %v1130_v61 }
 0x438   :  { %2900 = vmatprep.mubr.bf16.mxu0 %v9443_v39  ;;  %v9562_v39 = vld [vmem:[%s12552_s2] ss:$0 sm:$0xff]  ;;  %v9574_v20 = vpop.f32.mrb[34].mxu1 }
 0x43f   :  { %2901 = vmatmul.mubr.bf16.gmra.mrb[100].mxu0 %v1163_v8 }
 0x440   :  { %2908 = vmatprep.mubr.bf16.mxu0 %v9447_v1 }
 0x447   :  { %2909 = vmatmul.mubr.bf16.gmra.mrb[104].mxu0 %v1164_v35  ;;  %v1231_v35 = vld [vmem:[#allocation2 + $0x339] sm:$0xff] }
 0x448   :  { %2916 = vmatprep.mubr.bf16.mxu0 %v9451_v9  ;;  %v9576_v9 = vpop.f32.mrb[35].mxu1 }
 0x44a   :  { %v2702_v55 = vpop.f32.mrb[0].mxu0 }
 0x44b   :  { %v7679_v50 = vadd.f32 %v9562_v39, %v2702_v55  ;;  %v2704_v36 = vpop.f32.mrb[1].mxu0 }
 0x44c   :  { %v2705_v1 = vpop.f32.mrb[2].mxu0 }
 0x44d   :  { %v7680_v29 = vadd.f32 %v9562_v39, %v2705_v1  ;;  %v9572_v43 = vadd.f32 %v7679_v50, %v9480_v24  ;;  %v2707_v6 = vpop.f32.mrb[3].mxu0 }
 0x44f   :  { %12645 = vst [vmem:[#allocation13_spill] sm:$0xff] %v9572_v43  ;;  %v9579_v11 = vadd.f32 %v7680_v29, %v9484_v48  ;;  %2917 = vmatmul.mubr.bf16.gmra.mrb[108].mxu0 %v1165_v62  ;;  %v1264_v62 = vpack.c.bf16 %v1231_v35, %v1230_v28 }
 0x450   :  { %2924 = vmatprep.mubr.bf16.mxu0 %v9456_v12  ;;  %v1132_v12 = vld [vmem:[#allocation2 + $0x318] sm:$0xff] }
 0x451   :  { %12646 = vst [vmem:[#allocation14_spill] sm:$0xff] %v9579_v11  ;;  %v1167_v50 = vpack.c.bf16 %v1133_v27, %v1132_v12 }
 0x452   :  { %v2710_v49 = vpop.f32.mrb[4].mxu0 }
 0x453   :  { %v7681_v25 = vadd.f32 %v9562_v39, %v2710_v49  ;;  %v2712_v60 = vpop.f32.mrb[5].mxu0  ;;  %v1134_v49 = vld [vmem:[#allocation2 + $0x330] sm:$0xff] }
 0x454   :  { %v2713_v24 = vpop.f32.mrb[6].mxu0  ;;  %v1232_v60 = vld [vmem:[#allocation2 + $0x349] sm:$0xff] }
 0x455   :  { %v9584_v42 = vadd.f32 %v7681_v25, %v9478_v17  ;;  %v7682_v47 = vadd.f32 %v9562_v39, %v2713_v24  ;;  %v2715_v8 = vpop.f32.mrb[7].mxu0  ;;  %v9592_v17 = vpop.f32.mrb[36].mxu1  ;;  %v1135_v25 = vld [vmem:[#allocation2 + $0x338] sm:$0xff] }
 0x456   :  { %v9594_v1 = vpop.f32.mrb[37].mxu1 }
 0x457   :  { %v9588_v48 = vadd.f32 %v7682_v47, %v9482_v31  ;;  %2925 = vmatmul.mubr.bf16.gmra.mrb[112].mxu0 %v1166_v21  ;;  %v9600_v6 = vpop.f32.mrb[38].mxu1  ;;  %v1233_v21 = vld [vmem:[#allocation2 + $0x351] sm:$0xff] }
 0x458   :  { %2932 = vmatprep.mubr.bf16.mxu0 %v9460_v26  ;;  %v9602_v61 = vpop.f32.mrb[39].mxu1  ;;  %v1265_v27 = vpack.c.bf16 %v1233_v21, %v1232_v60 }
 0x459   :  { %12647 = vst [vmem:[#allocation15_spill] sm:$0xff] %v9588_v48 }
 0x45a   :  { %v2718_v54 = vpop.f32.mrb[8].mxu0 }
 0x45b   :  { %v7683_v37 = vadd.f32 %v9562_v39, %v2718_v54  ;;  %v2720_v55 = vpop.f32.mrb[9].mxu0 }
 0x45c   :  { %v2721_v36 = vpop.f32.mrb[10].mxu0 }
 0x45d   :  { %v7684_v31 = vadd.f32 %v9562_v39, %v2721_v36  ;;  %v9598_v29 = vadd.f32 %v7683_v37, %v9491_v58  ;;  %v2723_v26 = vpop.f32.mrb[11].mxu0  ;;  %v1168_v58 = vpack.c.bf16 %v1135_v25, %v1134_v49  ;;  %v1136_v37 = vld [vmem:[#allocation2 + $0x348] sm:$0xff] }
 0x45f   :  { %12648 = vst [vmem:[#allocation16_spill] sm:$0xff] %v9598_v29  ;;  %v9605_v2 = vadd.f32 %v7684_v31, %v9495_v33  ;;  %2933 = vmatmul.mubr.bf16.gmra.mrb[116].mxu0 %v1167_v50  ;;  %v9617_v31 = vpop.f32.mrb[40].mxu1 }
 0x460   :  { %2940 = vmatprep.mubr.bf16.mxu0 %v1264_v62  ;;  %v1169_v62 = vpack.c.bf16 %v9497_v63, %v1136_v37 }
 0x461   :  { %12649 = vst [vmem:[#allocation17_spill] sm:$0xff] %v9605_v2 }
 0x462   :  { %v2726_v24 = vpop.f32.mrb[12].mxu0 }
 0x463   :  { %v7685_v47 = vadd.f32 %v9562_v39, %v2726_v24  ;;  %v2728_v8 = vpop.f32.mrb[13].mxu0 }
 0x464   :  { %v2729_v12 = vpop.f32.mrb[14].mxu0 }
 0x465   :  { %v9609_v28 = vadd.f32 %v7685_v47, %v9489_v44  ;;  %v7686_v35 = vadd.f32 %v9562_v39, %v2729_v12  ;;  %v2731_v33 = vpop.f32.mrb[15].mxu0  ;;  %v9619_v44 = vpop.f32.mrb[41].mxu1 }
 0x466   :  { %v9625_v60 = vpop.f32.mrb[42].mxu1 }
 0x467   :  { %v9613_v54 = vadd.f32 %v7686_v35, %v9493_v53  ;;  %2941 = vmatmul.mubr.bf16.gmra.mrb[120].mxu0 %v1168_v58  ;;  %v9627_v21 = vpop.f32.mrb[43].mxu1 }
 0x468   :  { %2948 = vmatprep.mubr.bf16.mxu0 %v1265_v27 }
 0x469   :  { %12650 = vst [vmem:[#allocation18_spill] sm:$0xff] %v9613_v54 }
 0x46a   :  { %v2734_v55 = vpop.f32.mrb[16].mxu0 }
 0x46b   :  { %v7687_v50 = vadd.f32 %v9562_v39, %v2734_v55  ;;  %v2736_v36 = vpop.f32.mrb[17].mxu0  ;;  %v8689_v55 = vld [vmem:[#allocation8] sm:$0xff]  }
 0x46c   :  { %v2737_v26 = vpop.f32.mrb[18].mxu0  ;;  %5175 = vmatpush1.bf16.msra.mxu1 %v8689_v55 }
 0x46d   :  { %v7688_v49 = vadd.f32 %v9562_v39, %v2737_v26  ;;  %v9623_v25 = vadd.f32 %v7687_v50, %v9502_v5  ;;  %v2739_v53 = vpop.f32.mrb[19].mxu0  ;;  %v9641_v50 = vpop.f32.mrb[44].mxu1  ;;  %5176 = vmatprep.subr.bf16.mxu1 %v12560_v0 }
 0x46f   :  { %v9630_v24 = vadd.f32 %v7688_v49, %v9506_v19  ;;  %2949 = vmatmul.mubr.bf16.gmra.mrb[124].mxu0 %v1169_v62  ;;  %v9643_v62 = vpop.f32.mrb[45].mxu1 }
 0x470   :  { %v9649_v53 = vpop.f32.mrb[46].mxu1 }
 0x471   :  { %12651 = vst [vmem:[#allocation19_spill] sm:$0xff] %v9630_v24 }
 0x472   :  { %v2742_v63 = vpop.f32.mrb[20].mxu0 }
 0x473   :  { %v7689_v47 = vadd.f32 %v9562_v39, %v2742_v63  ;;  %v2744_v8 = vpop.f32.mrb[21].mxu0 }
 0x474   :  { %v2745_v58 = vpop.f32.mrb[22].mxu0 }
 0x475   :  { %v9634_v12 = vadd.f32 %v7689_v47, %v9500_v32  ;;  %v7690_v5 = vadd.f32 %v9562_v39, %v2745_v58  ;;  %v2747_v27 = vpop.f32.mrb[23].mxu0 }
 0x477   :  { %v9638_v35 = vadd.f32 %v7690_v5, %v9504_v38  ;;  %v9651_v38 = vpop.f32.mrb[47].mxu1 }
 0x479   :  { %12652 = vst [vmem:[#allocation20_spill] sm:$0xff] %v9638_v35 }
 0x47a   :  { %v2750_v33 = vpop.f32.mrb[24].mxu0 }
 0x47b   :  { %v7691_v37 = vadd.f32 %v9562_v39, %v2750_v33  ;;  %v2752_v19 = vpop.f32.mrb[25].mxu0 }
 0x47c   :  { %v2753_v36 = vpop.f32.mrb[26].mxu0  ;;  %v8690_v19 = vld [vmem:[#allocation8 + $0x8] sm:$0xff]  }
 0x47d   :  { %v7692_v26 = vadd.f32 %v9562_v39, %v2753_v36  ;;  %v9647_v32 = vadd.f32 %v7691_v37, %v9512_v4  ;;  %v2755_v49 = vpop.f32.mrb[27].mxu0  ;;  %5177 = vmatpush1.bf16.msra.mxu1 %v8690_v19  ;;  %v3318_v19 = vmul.f32 %v9572_v43, %v9572_v43 }
 0x47e   :  { %v9666_v49 = vpop.f32.mrb[48].mxu1  ;;  %5178 = vmatprep.subr.bf16.mxu1 %v12560_v0 }
 0x47f   :  { %12653 = vst [vmem:[#allocation21_spill] sm:$0xff] %v9647_v32  ;;  %v9655_v63 = vadd.f32 %v7692_v26, %v9516_v7  ;;  %v8691_v26 = vld [vmem:[#allocation8 + $0x10] sm:$0xff]   ;;  %12657 = vst [vmem:[#allocation25_spill] sm:$0xff] %v9666_v49  ;;  %v3321_v49 = vmul.f32 %v9588_v48, %v9588_v48 }
 0x481   :  { %12654 = vst [vmem:[#allocation22_spill] sm:$0xff] %v9655_v63  ;;  %5179 = vmatpush1.bf16.msra.mxu1 %v8691_v26 }
 0x482   :  { %v2758_v47 = vpop.f32.mrb[28].mxu0 }
 0x483   :  { %v7693_v8 = vadd.f32 %v9562_v39, %v2758_v47  ;;  %v2760_v58 = vpop.f32.mrb[29].mxu0 }
 0x484   :  { %v2761_v5 = vpop.f32.mrb[30].mxu0 }
 0x485   :  { %v9659_v27 = vadd.f32 %v7693_v8, %v9510_v16  ;;  %v7694_v4 = vadd.f32 %v9562_v39, %v2761_v5  ;;  %v2763_v33 = vpop.f32.mrb[31].mxu0  ;;  %v9669_v16 = vpop.f32.mrb[49].mxu1  ;;  %v3319_v8 = vmul.f32 %v9579_v11, %v9579_v11 }
 0x486   :  { %12658 = vst [vmem:[#allocation26_spill] sm:$0xff] %v9669_v16 }
 0x487   :  { %12655 = vst [vmem:[#allocation23_spill] sm:$0xff] %v9659_v27  ;;  %v9663_v37 = vadd.f32 %v7694_v4, %v9514_v30  ;;  %v9677_v4 = vpop.f32.mrb[50].mxu1 }
 0x488   :  { %12660 = vst [vmem:[#allocation28_spill] sm:$0xff] %v9677_v4  ;;  %v9679_v33 = vpop.f32.mrb[51].mxu1 }
 0x489   :  { %12656 = vst [vmem:[#allocation24_spill] sm:$0xff] %v9663_v37  ;;  %12661 = vst [vmem:[#allocation29_spill] sm:$0xff] %v9679_v33 }
 0x48a   :  { %v2766_v55 = vpop.f32.mrb[32].mxu0 }
 0x48b   :  { %v7695_v36 = vadd.f32 %v9562_v39, %v2766_v55  ;;  %v2768_v7 = vpop.f32.mrb[33].mxu0  ;;  %v3248_v55 = vadd.f32 %v9579_v11, %v9572_v43 }
 0x48c   :  { %v2769_v47 = vpop.f32.mrb[34].mxu0  ;;  %v3320_v7 = vmul.f32 %v9584_v42, %v9584_v42 }
 0x48d   :  { %v7696_v30 = vadd.f32 %v9562_v39, %v2769_v47  ;;  %v9675_v58 = vadd.f32 %v7695_v36, %v9522_v46  ;;  %v2771_v5 = vpop.f32.mrb[35].mxu0  ;;  %v12663_v46 = vmov 0   ;;  %v3382_v36 = vadd.f32 %v3319_v8, %v3318_v19 }
 0x48e   :  { %5180 = vmatprep.subr.bf16.mxu1 %v12663_v46  ;;  %v3249_v47 = vadd.f32 %v3248_v55, %v9584_v42 }
 0x48f   :  { %12659 = vst [vmem:[#allocation27_spill] sm:$0xff] %v9675_v58  ;;  %v9688_v0 = vadd.f32 %v7696_v30, %v9526_v51  ;;  %v3383_v4 = vadd.f32 %v3382_v36, %v3320_v7  ;;  %v3322_v51 = vmul.f32 %v9598_v29, %v9598_v29 }
 0x490   :  { %v3250_v16 = vadd.f32 %v3249_v47, %v9588_v48  ;;  %v8692_v47 = vld [vmem:[#allocation8 + $0x18] sm:$0xff]  }
 0x491   :  { %12662 = vst [vmem:[#allocation30_spill] sm:$0xff] %v9688_v0  ;;  %v3384_v19 = vadd.f32 %v3383_v4, %v3321_v49  ;;  %5181 = vmatpush1.bf16.msra.mxu1 %v8692_v47  ;;  %v8693_v49 = vld [vmem:[#allocation8 + $0x20] sm:$0xff]  }
 0x492   :  { %v2774_v5 = vpop.f32.mrb[36].mxu0  ;;  %v3251_v55 = vadd.f32 %v3250_v16, %v9598_v29  ;;  %v9712_v16 = vpop.f32.mrb[52].mxu1  ;;  %5182 = vmatprep.subr.bf16.mxu1 %v12663_v46 }
 0x493   :  { %v7697_v33 = vadd.f32 %v9562_v39, %v2774_v5  ;;  %v2776_v11 = vpop.f32.mrb[37].mxu0  ;;  %v3385_v36 = vadd.f32 %v3384_v19, %v3322_v51  ;;  %v9715_v4 = vpop.f32.mrb[53].mxu1 }
 0x494   :  { %v2777_v43 = vpop.f32.mrb[38].mxu0  ;;  %v3323_v11 = vmul.f32 %v9605_v2, %v9605_v2  ;;  %v3252_v48 = vadd.f32 %v3251_v55, %v9605_v2  ;;  %v3325_v2 = vmul.f32 %v9613_v54, %v9613_v54 }
 0x495   :  { %v9699_v26 = vadd.f32 %v7697_v33, %v9520_v52  ;;  %v7698_v8 = vadd.f32 %v9562_v39, %v2777_v43  ;;  %v2779_v30 = vpop.f32.mrb[39].mxu0  ;;  %v3324_v52 = vmul.f32 %v9609_v28, %v9609_v28  ;;  %5183 = vmatpush1.bf16.msra.mxu1 %v8693_v49 }
 0x496   :  { %v3386_v51 = vadd.f32 %v3385_v36, %v3323_v11  ;;  %5184 = vmatprep.subr.bf16.mxu1 %v12663_v46 }
 0x497   :  { %v9704_v7 = vadd.f32 %v7698_v8, %v9524_v3  ;;  %v3253_v8 = vadd.f32 %v3252_v48, %v9609_v28 }
 0x499   :  { %12664 = vst [vmem:[#allocation31_spill] sm:$0xff] %v9704_v7  ;;  %v3254_v48 = vadd.f32 %v3253_v8, %v9613_v54 }
 0x49a   :  { %v2782_v5 = vpop.f32.mrb[40].mxu0 }
 0x49b   :  { %v7699_v43 = vadd.f32 %v9562_v39, %v2782_v5  ;;  %v2784_v33 = vpop.f32.mrb[41].mxu0  ;;  %v9722_v5 = vpop.f32.mrb[54].mxu1  ;;  %v3255_v11 = vadd.f32 %v3254_v48, %v9623_v25  ;;  %v3328_v48 = vmul.f32 %v9634_v12, %v9634_v12 }
 0x49c   :  { %v2785_v3 = vpop.f32.mrb[42].mxu0  ;;  %v9724_v47 = vpop.f32.mrb[55].mxu1  ;;  %v3387_v33 = vadd.f32 %v3386_v51, %v3324_v52 }
 0x49d   :  { %v7700_v30 = vadd.f32 %v9562_v39, %v2785_v3  ;;  %v9720_v19 = vadd.f32 %v7699_v43, %v9532_v59  ;;  %v2787_v55 = vpop.f32.mrb[43].mxu0  ;;  %v3326_v59 = vmul.f32 %v9623_v25, %v9623_v25  ;;  %v3256_v54 = vadd.f32 %v3255_v11, %v9630_v24  ;;  %v8695_v11 = vld [vmem:[#allocation8 + $0x30] sm:$0xff]  }
 0x49e   :  { %v3388_v43 = vadd.f32 %v3387_v33, %v3325_v2 }
 0x49f   :  { %v9729_v29 = vadd.f32 %v7700_v30, %v9536_v10  ;;  %v3327_v10 = vmul.f32 %v9630_v24, %v9630_v24  ;;  %v9754_v24 = vpop.f32.mrb[56].mxu1 }
 0x4a0   :  { %v3389_v55 = vadd.f32 %v3388_v43, %v3326_v59  ;;  %v3257_v59 = vadd.f32 %v3256_v54, %v9634_v12  ;;  %v3330_v54 = vmul.f32 %v9647_v32, %v9647_v32 }
 0x4a2   :  { %v2790_v36 = vpop.f32.mrb[44].mxu0  ;;  %v3390_v33 = vadd.f32 %v3389_v55, %v3327_v10 }
 0x4a3   :  { %v7701_v52 = vadd.f32 %v9562_v39, %v2790_v36  ;;  %v2792_v3 = vpop.f32.mrb[45].mxu0  ;;  %v8694_v36 = vld [vmem:[#allocation8 + $0x28] sm:$0xff]  }
 0x4a4   :  { %v2793_v51 = vpop.f32.mrb[46].mxu0  ;;  %v3391_v3 = vadd.f32 %v3390_v33, %v3328_v48  ;;  %5185 = vmatpush1.bf16.msra.mxu1 %v8694_v36  ;;  %v9763_v48 = vpop.f32.mrb[57].mxu1 }
 0x4a5   :  { %v9740_v49 = vadd.f32 %v7701_v52, %v9530_v34  ;;  %v7702_v8 = vadd.f32 %v9562_v39, %v2793_v51  ;;  %v2795_v30 = vpop.f32.mrb[47].mxu0  ;;  %v3329_v34 = vmul.f32 %v9638_v35, %v9638_v35  ;;  %5186 = vmatprep.subr.bf16.mxu1 %v12663_v46  ;;  %v9765_v33 = vpop.f32.mrb[58].mxu1 }
 0x4a7   :  { %v9747_v2 = vadd.f32 %v7702_v8, %v9534_v15  ;;  %v3258_v15 = vadd.f32 %v3257_v59, %v9638_v35  ;;  %v9771_v59 = vpop.f32.mrb[59].mxu1  ;;  %v3332_v35 = vmul.f32 %v9659_v27, %v9659_v27 }
 0x4a8   :  { %5187 = vmatpush1.bf16.msra.mxu1 %v8695_v11 }
 0x4a9   :  { %v3259_v36 = vadd.f32 %v3258_v15, %v9647_v32  ;;  %5188 = vmatprep.subr.bf16.mxu1 %v12663_v46 }
 0x4aa   :  { %v2798_v43 = vpop.f32.mrb[48].mxu0 }
 0x4ab   :  { %v7703_v52 = vadd.f32 %v9562_v39, %v2798_v43  ;;  %v2800_v51 = vpop.f32.mrb[49].mxu0  ;;  %v3392_v43 = vadd.f32 %v3391_v3, %v3329_v34 }
 0x4ac   :  { %v2801_v30 = vpop.f32.mrb[50].mxu0 }
 0x4ad   :  { %v7704_v55 = vadd.f32 %v9562_v39, %v2801_v30  ;;  %v9761_v10 = vadd.f32 %v7703_v52, %v9542_v40  ;;  %v2803_v8 = vpop.f32.mrb[51].mxu0  ;;  %v3393_v30 = vadd.f32 %v3392_v43, %v3330_v54  ;;  %v3331_v40 = vmul.f32 %v9655_v63, %v9655_v63 }
 0x4ae   :  { %v3260_v8 = vadd.f32 %v3259_v36, %v9655_v63  ;;  %v3333_v36 = vmul.f32 %v9663_v37, %v9663_v37 }
 0x4af   :  { %v9769_v51 = vadd.f32 %v7704_v55, %v9546_v57  ;;  %v3394_v15 = vadd.f32 %v3393_v30, %v3331_v40  ;;  %v3334_v30 = vmul.f32 %v9675_v58, %v9675_v58  ;;  %v8696_v40 = vld [vmem:[#allocation8 + $0x38] sm:$0xff]  }
 0x4b0   :  { %v3261_v11 = vadd.f32 %v3260_v8, %v9659_v27  ;;  %5189 = vmatpush1.bf16.msra.mxu1 %v8696_v40 }
 0x4b1   :  { %v3395_v32 = vadd.f32 %v3394_v15, %v3332_v35  ;;  %v8697_v35 = vld [vmem:[#allocation8 + $0x40] sm:$0xff]   ;;  %v9795_v15 = vpop.f32.mrb[60].mxu1  ;;  %5190 = vmatprep.subr.bf16.mxu1 %v12663_v46 }
 0x4b2   :  { %v2806_v52 = vpop.f32.mrb[52].mxu0 }
 0x4b3   :  { %v7705_v3 = vadd.f32 %v9562_v39, %v2806_v52  ;;  %v2808_v34 = vpop.f32.mrb[53].mxu0  ;;  %v3262_v52 = vadd.f32 %v3261_v11, %v9663_v37 }
 0x4b4   :  { %v2809_v57 = vpop.f32.mrb[54].mxu0  ;;  %5191 = vmatpush1.bf16.msra.mxu1 %v8697_v35 }
 0x4b5   :  { %v9782_v55 = vadd.f32 %v7705_v3, %v9540_v41  ;;  %v7706_v54 = vadd.f32 %v9562_v39, %v2809_v57  ;;  %v2811_v43 = vpop.f32.mrb[55].mxu0  ;;  %v3263_v41 = vadd.f32 %v3262_v52, %v9675_v58  ;;  %v3396_v3 = vadd.f32 %v3395_v32, %v3333_v36  ;;  %5192 = vmatprep.subr.bf16.mxu1 %v12663_v46 }
 0x4b7   :  { %v9788_v63 = vadd.f32 %v7706_v54, %v9544_v18  ;;  %v9798_v18 = vpop.f32.mrb[61].mxu1  ;;  %v3397_v11 = vadd.f32 %v3396_v3, %v3334_v30  ;;  %v3335_v54 = vmul.f32 %v9688_v0, %v9688_v0 }
 0x4b8   :  { %v9806_v52 = vpop.f32.mrb[62].mxu1 }
 0x4b9   :  { %v9808_v40 = vpop.f32.mrb[63].mxu1  ;;  %v3398_v3 = vadd.f32 %v3397_v11, %v3335_v54 }
 0x4ba   :  { %v2814_v8 = vpop.f32.mrb[56].mxu0 }
 0x4bb   :  { %v7707_v34 = vadd.f32 %v9562_v39, %v2814_v8  ;;  %v2816_v57 = vpop.f32.mrb[57].mxu0  ;;  %v3264_v8 = vadd.f32 %v3263_v41, %v9688_v0 }
 0x4bc   :  { %v2817_v43 = vpop.f32.mrb[58].mxu0  ;;  %v3336_v57 = vmul.f32 %v9699_v26, %v9699_v26 }
 0x4bd   :  { %v7708_v37 = vadd.f32 %v9562_v39, %v2817_v43  ;;  %v9804_v32 = vadd.f32 %v7707_v34, %v9552_v14  ;;  %v2819_v36 = vpop.f32.mrb[59].mxu0  ;;  %v3265_v14 = vadd.f32 %v3264_v8, %v9699_v26 }
 0x4be   :  { %v3399_v43 = vadd.f32 %v3398_v3, %v3336_v57  ;;  %v3337_v36 = vmul.f32 %v9704_v7, %v9704_v7 }
 0x4bf   :  { %v9814_v30 = vadd.f32 %v7708_v37, %v9556_v45  ;;  %v3266_v27 = vadd.f32 %v3265_v14, %v9704_v7  ;;  %v3338_v45 = vmul.f32 %v9720_v19, %v9720_v19  ;;  %v8698_v14 = vld [vmem:[#allocation8 + $0x48] sm:$0xff]  }
 0x4c0   :  { %v3400_v8 = vadd.f32 %v3399_v43, %v3337_v36  ;;  %5193 = vmatpush1.bf16.msra.mxu1 %v8698_v14 }
 0x4c1   :  { %v3267_v54 = vadd.f32 %v3266_v27, %v9720_v19  ;;  %5194 = vmatprep.subr.bf16.mxu1 %v12663_v46 }
 0x4c2   :  { %v2822_v34 = vpop.f32.mrb[60].mxu0  ;;  %v3401_v3 = vadd.f32 %v3400_v8, %v3338_v45 }
 0x4c3   :  { %v7709_v58 = vadd.f32 %v9562_v39, %v2822_v34  ;;  %v2824_v41 = vpop.f32.mrb[61].mxu0  ;;  %v3339_v34 = vmul.f32 %v9729_v29, %v9729_v29  ;;  %v3268_v7 = vadd.f32 %v3267_v54, %v9729_v29  ;;  %v3341_v54 = vmul.f32 %v9747_v2, %v9747_v2 }
 0x4c4   :  { %v2825_v0 = vpop.f32.mrb[62].mxu0 }
 0x4c5   :  { %v9825_v37 = vadd.f32 %v7709_v58, %v9550_v23  ;;  %v7710_v35 = vadd.f32 %v9562_v39, %v2825_v0  ;;  %v2827_v11 = vpop.f32.mrb[63].mxu0  ;;  %v3340_v23 = vmul.f32 %v9740_v49, %v9740_v49  ;;  %v3269_v43 = vadd.f32 %v3268_v7, %v9740_v49 }
 0x4c7   :  { %v9830_v57 = vadd.f32 %v7710_v35, %v9554_v13  ;;  %v3402_v13 = vadd.f32 %v3401_v3, %v3339_v34  ;;  %v3270_v14 = vadd.f32 %v3269_v43, %v9747_v2  ;;  %v3342_v3 = vmul.f32 %v9761_v10, %v9761_v10 }
 0x4c9   :  { %v3403_v11 = vadd.f32 %v3402_v13, %v3340_v23  ;;  %v3271_v7 = vadd.f32 %v3270_v14, %v9761_v10 }
 0x4ca   :  { %v2830_v41 = vpop.f32.mrb[64].mxu0 }
 0x4cb   :  { %v7711_v0 = vadd.f32 %v9562_v39, %v2830_v41  ;;  %v2832_v58 = vpop.f32.mrb[65].mxu0  ;;  %v3404_v41 = vadd.f32 %v3403_v11, %v3341_v54 }
 0x4cc   :  { %v2833_v27 = vpop.f32.mrb[66].mxu0 }
 0x4cd   :  { %v7712_v36 = vadd.f32 %v9562_v39, %v2833_v27  ;;  %v9842_v45 = vadd.f32 %v7711_v0, %v9568_v56  ;;  %v2835_v35 = vpop.f32.mrb[67].mxu0  ;;  %v3405_v23 = vadd.f32 %v3404_v41, %v3342_v3  ;;  %v3343_v27 = vmul.f32 %v9769_v51, %v9769_v51 }
 0x4ce   :  { %v3344_v35 = vmul.f32 %v9782_v55, %v9782_v55 }
 0x4cf   :  { %v9847_v8 = vadd.f32 %v7712_v36, %v9576_v9  ;;  %v3272_v36 = vadd.f32 %v3271_v7, %v9769_v51  ;;  %v3406_v54 = vadd.f32 %v3405_v23, %v3343_v27 }
 0x4d1   :  { %v3273_v14 = vadd.f32 %v3272_v36, %v9782_v55 }
 0x4d2   :  { %v2838_v34 = vpop.f32.mrb[68].mxu0 }
 0x4d3   :  { %v7713_v56 = vadd.f32 %v9562_v39, %v2838_v34  ;;  %v2840_v0 = vpop.f32.mrb[69].mxu0  ;;  %v3407_v34 = vadd.f32 %v3406_v54, %v3344_v35  ;;  %v3274_v7 = vadd.f32 %v3273_v14, %v9788_v63  ;;  %v3347_v54 = vmul.f32 %v9814_v30, %v9814_v30 }
 0x4d4   :  { %v2841_v58 = vpop.f32.mrb[70].mxu0 }
 0x4d5   :  { %v9857_v9 = vadd.f32 %v7713_v56, %v9566_v22  ;;  %v7714_v13 = vadd.f32 %v9562_v39, %v2841_v58  ;;  %v2843_v43 = vpop.f32.mrb[71].mxu0  ;;  %v3345_v22 = vmul.f32 %v9788_v63, %v9788_v63  ;;  %v3346_v58 = vmul.f32 %v9804_v32, %v9804_v32 }
 0x4d7   :  { %v9864_v11 = vadd.f32 %v7714_v13, %v9574_v20  ;;  %v3275_v13 = vadd.f32 %v3274_v7, %v9804_v32  ;;  %v3408_v43 = vadd.f32 %v3407_v34, %v3345_v22 }
 0x4d9   :  { %v3409_v35 = vadd.f32 %v3408_v43, %v3346_v58 }
 0x4da   :  { %v2846_v3 = vpop.f32.mrb[72].mxu0 }
 0x4db   :  { %v7715_v41 = vadd.f32 %v9562_v39, %v2846_v3  ;;  %v2848_v56 = vpop.f32.mrb[73].mxu0  ;;  %v3276_v3 = vadd.f32 %v3275_v13, %v9814_v30 }
 0x4dc   :  { %v2849_v0 = vpop.f32.mrb[74].mxu0  ;;  %v3348_v56 = vmul.f32 %v9825_v37, %v9825_v37 }
 0x4dd   :  { %v7716_v20 = vadd.f32 %v9562_v39, %v2849_v0  ;;  %v9875_v23 = vadd.f32 %v7715_v41, %v9594_v1  ;;  %v2851_v27 = vpop.f32.mrb[75].mxu0  ;;  %v3277_v34 = vadd.f32 %v3276_v3, %v9825_v37 }
 0x4de   :  { %v3410_v27 = vadd.f32 %v3409_v35, %v3347_v54  ;;  %v3350_v35 = vmul.f32 %v9842_v45, %v9842_v45 }
 0x4df   :  { %v9879_v36 = vadd.f32 %v7716_v20, %v9602_v61  ;;  %v3349_v20 = vmul.f32 %v9830_v57, %v9830_v57  ;;  %v3278_v43 = vadd.f32 %v3277_v34, %v9830_v57 }
 0x4e0   :  { %v3411_v58 = vadd.f32 %v3410_v27, %v3348_v56 }
 0x4e2   :  { %v2854_v14 = vpop.f32.mrb[76].mxu0 }
 0x4e3   :  { %v7717_v1 = vadd.f32 %v9562_v39, %v2854_v14  ;;  %v2856_v41 = vpop.f32.mrb[77].mxu0  ;;  %v3279_v14 = vadd.f32 %v3278_v43, %v9842_v45 }
 0x4e4   :  { %v2857_v0 = vpop.f32.mrb[78].mxu0 }
 0x4e5   :  { %v9889_v61 = vadd.f32 %v7717_v1, %v9592_v17  ;;  %v7718_v22 = vadd.f32 %v9562_v39, %v2857_v0  ;;  %v2859_v7 = vpop.f32.mrb[79].mxu0  ;;  %v3412_v17 = vadd.f32 %v3411_v58, %v3349_v20  ;;  %v3351_v0 = vmul.f32 %v9847_v8, %v9847_v8 }
 0x4e6   :  { %v3352_v7 = vmul.f32 %v9857_v9, %v9857_v9 }
 0x4e7   :  { %v9895_v13 = vadd.f32 %v7718_v22, %v9600_v6  ;;  %v3413_v56 = vadd.f32 %v3412_v17, %v3350_v35  ;;  %v3280_v22 = vadd.f32 %v3279_v14, %v9847_v8  ;;  %v3353_v17 = vmul.f32 %v9864_v11, %v9864_v11 }
 0x4e9   :  { %v3414_v20 = vadd.f32 %v3413_v56, %v3351_v0  ;;  %v3281_v43 = vadd.f32 %v3280_v22, %v9857_v9 }
 0x4ea   :  { %v2862_v54 = vpop.f32.mrb[80].mxu0 }
 0x4eb   :  { %v7719_v3 = vadd.f32 %v9562_v39, %v2862_v54  ;;  %v2864_v1 = vpop.f32.mrb[81].mxu0  ;;  %v3415_v54 = vadd.f32 %v3414_v20, %v3352_v7  ;;  %v3282_v14 = vadd.f32 %v3281_v43, %v9864_v11  ;;  %v3355_v20 = vmul.f32 %v9879_v36, %v9879_v36 }
 0x4ec   :  { %v2865_v41 = vpop.f32.mrb[82].mxu0 }
 0x4ed   :  { %v7720_v6 = vadd.f32 %v9562_v39, %v2865_v41  ;;  %v9906_v27 = vadd.f32 %v7719_v3, %v9619_v44  ;;  %v2867_v34 = vpop.f32.mrb[83].mxu0  ;;  %v3354_v41 = vmul.f32 %v9875_v23, %v9875_v23 }
 0x4ee   :  { %v3416_v34 = vadd.f32 %v3415_v54, %v3353_v17 }
 0x4ef   :  { %v9912_v58 = vadd.f32 %v7720_v6, %v9627_v21  ;;  %v3283_v6 = vadd.f32 %v3282_v14, %v9875_v23 }
 0x4f0   :  { %v3417_v7 = vadd.f32 %v3416_v34, %v3354_v41 }
 0x4f2   :  { %v2870_v35 = vpop.f32.mrb[84].mxu0 }
 0x4f3   :  { %v7721_v44 = vadd.f32 %v9562_v39, %v2870_v35  ;;  %v2872_v3 = vpop.f32.mrb[85].mxu0  ;;  %v3284_v35 = vadd.f32 %v3283_v6, %v9879_v36 }
 0x4f4   :  { %v2873_v1 = vpop.f32.mrb[86].mxu0 }
 0x4f5   :  { %v9922_v21 = vadd.f32 %v7721_v44, %v9617_v31  ;;  %v7722_v56 = vadd.f32 %v9562_v39, %v2873_v1  ;;  %v2875_v0 = vpop.f32.mrb[87].mxu0  ;;  %v3356_v31 = vmul.f32 %v9889_v61, %v9889_v61  ;;  %v3285_v54 = vadd.f32 %v3284_v35, %v9889_v61 }
 0x4f6   :  { %v3418_v0 = vadd.f32 %v3417_v7, %v3355_v20  ;;  %v3358_v7 = vmul.f32 %v9906_v27, %v9906_v27 }
 0x4f7   :  { %12665 = vst [vmem:[#allocation32_spill] sm:$0xff] %v9922_v21  ;;  %v9927_v22 = vadd.f32 %v7722_v56, %v9625_v60  ;;  %v3357_v56 = vmul.f32 %v9895_v13, %v9895_v13  ;;  %v3286_v34 = vadd.f32 %v3285_v54, %v9895_v13 }
 0x4f8   :  { %v3419_v41 = vadd.f32 %v3418_v0, %v3356_v31 }
 0x4f9   :  { %12666 = vst [vmem:[#allocation33_spill] sm:$0xff] %v9927_v22 }
 0x4fa   :  { %v2878_v43 = vpop.f32.mrb[88].mxu0  ;;  %v3420_v35 = vadd.f32 %v3419_v41, %v3357_v56  ;;  %v8699_v56 = vld [vmem:[#allocation8 + $0x50] sm:$0xff]  }
 0x4fb   :  { %v7723_v44 = vadd.f32 %v9562_v39, %v2878_v43  ;;  %v2880_v3 = vpop.f32.mrb[89].mxu0  ;;  %v3287_v43 = vadd.f32 %v3286_v34, %v9906_v27  ;;  %5195 = vmatpush1.bf16.msra.mxu1 %v8699_v56  ;;  %v8704_v56 = vld [vmem:[#allocation8 + $0x208] sm:$0xff]  }
 0x4fc   :  { %v2881_v1 = vpop.f32.mrb[90].mxu0  ;;  %v3421_v31 = vadd.f32 %v3420_v35, %v3358_v7  ;;  %5196 = vmatprep.subr.bf16.mxu1 %v12663_v46 }
 0x4fd   :  { %v7724_v60 = vadd.f32 %v9562_v39, %v2881_v1  ;;  %v9938_v17 = vadd.f32 %v7723_v44, %v9643_v62  ;;  %v2883_v14 = vpop.f32.mrb[91].mxu0  ;;  %v3359_v1 = vmul.f32 %v9912_v58, %v9912_v58 }
 0x4fe   :  { %v3360_v14 = vmul.f32 %v9922_v21, %v9922_v21 }
 0x4ff   :  { %12667 = vst [vmem:[#allocation34_spill] sm:$0xff] %v9938_v17  ;;  %v9943_v6 = vadd.f32 %v7724_v60, %v9651_v38  ;;  %v3288_v60 = vadd.f32 %v3287_v43, %v9912_v58  ;;  %v3422_v34 = vadd.f32 %v3421_v31, %v3359_v1  ;;  %v3362_v1 = vmul.f32 %v9938_v17, %v9938_v17 }
 0x501   :  { %12668 = vst [vmem:[#allocation35_spill] sm:$0xff] %v9943_v6  ;;  %v3289_v7 = vadd.f32 %v3288_v60, %v9922_v21 }
 0x502   :  { %v2886_v20 = vpop.f32.mrb[92].mxu0 }
 0x503   :  { %v7725_v62 = vadd.f32 %v9562_v39, %v2886_v20  ;;  %v2888_v44 = vpop.f32.mrb[93].mxu0  ;;  %v8702_v20 = vld [vmem:[#allocation8 + $0x200] sm:$0xff]   ;;  %v3290_v31 = vadd.f32 %v3289_v7, %v9927_v22 }
 0x504   :  { %v2889_v3 = vpop.f32.mrb[94].mxu0  ;;  %7583 = vmatprep.subr.bf16.mxu0 %v8702_v20  ;;  %v8701_v7 = vld [vmem:[#allocation8 + $0x60] sm:$0xff]  }
 0x505   :  { %v9953_v38 = vadd.f32 %v7725_v62, %v9641_v50  ;;  %v7726_v0 = vadd.f32 %v9562_v39, %v2889_v3  ;;  %v2891_v54 = vpop.f32.mrb[95].mxu0  ;;  %v3423_v50 = vadd.f32 %v3422_v34, %v3360_v14  ;;  %v3361_v62 = vmul.f32 %v9927_v22, %v9927_v22  ;;  %7584 = vmatpush3.bf16.msra.mxu0 %v8702_v20 }
 0x506   :  { %v12669_v54 = vld [vmem:[#allocation26_spill] sm:$0xff]  ;;  %v3291_v34 = vadd.f32 %v3290_v31, %v9938_v17  ;;  %7585 = vmatprep.subr.bf16.mxu0 %v8704_v56 }
 0x507   :  { %v9960_v41 = vadd.f32 %v7726_v0, %v9649_v53  ;;  %v8700_v53 = vld [vmem:[#allocation8 + $0x58] sm:$0xff]  }
 0x508   :  { %5197 = vmatpush1.bf16.msra.mxu1 %v8700_v53  ;;  %v3292_v53 = vadd.f32 %v3291_v34, %v9943_v6 }
 0x509   :  { %5198 = vmatprep.subr.bf16.mxu1 %v12663_v46  ;;  %7586 = vmatpush3.bf16.msra.mxu0 %v8704_v56 }
 0x50a   :  { %v2894_v35 = vpop.f32.mrb[96].mxu0  ;;  %v3293_v56 = vadd.f32 %v3292_v53, %v9953_v38  ;;  %v8708_v53 = vld [vmem:[#allocation8 + $0x220] sm:$0xff]  }
 0x50b   :  { %v7727_v44 = vadd.f32 %v9562_v39, %v2894_v35  ;;  %v2896_v43 = vpop.f32.mrb[97].mxu0  ;;  %v3424_v35 = vadd.f32 %v3423_v50, %v3361_v62  ;;  %v3364_v50 = vmul.f32 %v9953_v38, %v9953_v38 }
 0x50c   :  { %v2897_v3 = vpop.f32.mrb[98].mxu0  ;;  %v12671_v43 = vld [vmem:[#allocation29_spill] sm:$0xff]  ;;  %5199 = vmatpush1.bf16.msra.mxu1 %v8701_v7 }
 0x50d   :  { %v7728_v0 = vadd.f32 %v9562_v39, %v2897_v3  ;;  %v9972_v60 = vadd.f32 %v7727_v44, %v12669_v54  ;;  %v2899_v14 = vpop.f32.mrb[99].mxu0  ;;  %v3425_v20 = vadd.f32 %v3424_v35, %v3362_v1  ;;  %v3363_v3 = vmul.f32 %v9943_v6, %v9943_v6  ;;  %v8705_v44 = vld [vmem:[#allocation8 + $0x210] sm:$0xff]   ;;  %5200 = vmatprep.subr.bf16.mxu1 %v12663_v46  ;;  %v12672_v35 = vld [vmem:[#allocation25_spill] sm:$0xff]  ;;  %v8707_v6 = vld [vmem:[#allocation8 + $0x218] sm:$0xff]  }
 0x50e   :  { %7587 = vmatprep.subr.bf16.mxu0 %v8705_v44  ;;  %v8703_v14 = vld [vmem:[#allocation8 + $0x68] sm:$0xff]  }
 0x50f   :  { %12670 = vst [vmem:[#allocation26_spill] sm:$0xff] %v9972_v60  ;;  %v9976_v21 = vadd.f32 %v7728_v0, %v12671_v43  ;;  %7588 = vmatpush3.bf16.msra.mxu0 %v8705_v44  ;;  %v3426_v1 = vadd.f32 %v3425_v20, %v3363_v3  ;;  %v8706_v20 = vld [vmem:[#allocation8 + $0x70] sm:$0xff]   ;;  %v3294_v3 = vadd.f32 %v3293_v56, %v9960_v41 }
 0x510   :  { %5201 = vmatpush1.bf16.msra.mxu1 %v8703_v14  ;;  %7589 = vmatprep.subr.bf16.mxu0 %v8707_v6  ;;  %v3366_v44 = vmul.f32 %v9972_v60, %v9972_v60 }
 0x511   :  { %v3427_v17 = vadd.f32 %v3426_v1, %v3364_v50  ;;  %5202 = vmatprep.subr.bf16.mxu1 %v12663_v46  ;;  %v3295_v50 = vadd.f32 %v3294_v3, %v9972_v60  ;;  %v3367_v56 = vmul.f32 %v9976_v21, %v9976_v21  ;;  %v3968_v3 = vld [vmem:[#allocation2 + $0x9] sm:$0xff] }
 0x512   :  { %v2902_v54 = vpop.f32.mrb[100].mxu0 }
 0x513   :  { %v7729_v62 = vadd.f32 %v9562_v39, %v2902_v54  ;;  %v2904_v31 = vpop.f32.mrb[101].mxu0  ;;  %v3365_v54 = vmul.f32 %v9960_v41, %v9960_v41  ;;  %7590 = vmatpush3.bf16.msra.mxu0 %v8707_v6  ;;  %v3296_v60 = vadd.f32 %v3295_v50, %v9976_v21  ;;  %v8713_v50 = vld [vmem:[#allocation8 + $0x238] sm:$0xff]  }
 0x514   :  { %v2905_v0 = vpop.f32.mrb[102].mxu0  ;;  %v12673_v31 = vld [vmem:[#allocation28_spill] sm:$0xff]  ;;  %5203 = vmatpush1.bf16.msra.mxu1 %v8706_v20  ;;  %7591 = vmatprep.subr.bf16.mxu0 %v8708_v53 }
 0x515   :  { %v9988_v43 = vadd.f32 %v7729_v62, %v12672_v35  ;;  %v7730_v34 = vadd.f32 %v9562_v39, %v2905_v0  ;;  %v2907_v7 = vpop.f32.mrb[103].mxu0  ;;  %v3428_v0 = vadd.f32 %v3427_v17, %v3365_v54  ;;  %5204 = vmatprep.subr.bf16.mxu1 %v12663_v46  ;;  %v8710_v17 = vld [vmem:[#allocation8 + $0x228] sm:$0xff]  }
 0x516   :  { %v3967_v54 = vld [vmem:[#allocation2 + $0x1] sm:$0xff] }
 0x517   :  { %v9994_v22 = vadd.f32 %v7730_v34, %v12673_v31  ;;  %v8709_v34 = vld [vmem:[#allocation8 + $0x78] sm:$0xff]   ;;  %7592 = vmatpush3.bf16.msra.mxu0 %v8708_v53  ;;  %v3429_v6 = vadd.f32 %v3428_v0, %v3366_v44  ;;  %v3368_v44 = vmul.f32 %v9988_v43, %v9988_v43  ;;  %v8767_v0 = vld [vmem:[#allocation2 + $0x8] sm:$0xff] }
 0x518   :  { %5205 = vmatpush1.bf16.msra.mxu1 %v8709_v34  ;;  %7593 = vmatprep.subr.bf16.mxu0 %v8710_v17  ;;  %v3297_v34 = vadd.f32 %v3296_v60, %v9988_v43 }
 0x519   :  { %5463 = vmatprep.subr.bf16.mxu1 %v12663_v46 }
 0x51a   :  { %v2910_v62 = vpop.f32.mrb[104].mxu0  ;;  %v3298_v60 = vadd.f32 %v3297_v34, %v9994_v22  ;;  %v8714_v34 = vld [vmem:[#allocation8 + $0x88] sm:$0xff]  }
 0x51b   :  { %v7731_v14 = vadd.f32 %v9562_v39, %v2910_v62  ;;  %v2912_v1 = vpop.f32.mrb[105].mxu0  ;;  %v4031_v62 = vpack.c.bf16 %v3968_v3, %v3967_v54  ;;  %7594 = vmatpush3.bf16.msra.mxu0 %v8710_v17 }
 0x51c   :  { %v2913_v35 = vpop.f32.mrb[106].mxu0  ;;  %v3871_v1 = vld [vmem:[#allocation2] sm:$0xff] }
 0x51d   :  { %v7732_v7 = vadd.f32 %v9562_v39, %v2913_v35  ;;  %v10007_v31 = vadd.f32 %v7731_v14, %v9715_v4  ;;  %v2915_v20 = vpop.f32.mrb[107].mxu0  ;;  %v3935_v35 = vpack.c.bf16 %v8767_v0, %v3871_v1  ;;  %5206 = vmatprep.mubr.bf16.mxu1 %v4031_v62  ;;  %v8711_v4 = vld [vmem:[#allocation8 + $0x230] sm:$0xff]   ;;  %v8712_v14 = vld [vmem:[#allocation8 + $0x80] sm:$0xff]  }
 0x51e   :  { %v3430_v20 = vadd.f32 %v3429_v6, %v3367_v56  ;;  %7595 = vmatprep.subr.bf16.mxu0 %v8711_v4  ;;  %v10030_v1 = vld [vmem:[%s12552_s2] ss:$0 sm:$0xff] }
 0x51f   :  { %v10013_v53 = vadd.f32 %v7732_v7, %v9724_v47  ;;  %5207 = vmatmul.mubr.bf16.vlgmr.msra.gmra.mrb[64].mxu1 %v3935_v35  ;;  %v3369_v47 = vmul.f32 %v9994_v22, %v9994_v22  ;;  %7596 = vmatpush3.bf16.msra.mxu0 %v8711_v4  ;;  %v3370_v6 = vmul.f32 %v10007_v31, %v10007_v31 }
 0x520   :  { %5464 = vmatpush1.bf16.msra.mxu1 %v8712_v14  ;;  %v3431_v3 = vadd.f32 %v3430_v20, %v3368_v44  ;;  %7597 = vmatprep.subr.bf16.mxu0 %v8713_v50  ;;  %v3299_v0 = vadd.f32 %v3298_v60, %v10007_v31 }
 0x521   :  { %5465 = vmatprep.subr.bf16.mxu1 %v12663_v46 }
 0x522   :  { %v2918_v54 = vpop.f32.mrb[108].mxu0  ;;  %v3432_v35 = vadd.f32 %v3431_v3, %v3369_v47 }
 0x523   :  { %v7733_v7 = vadd.f32 %v9562_v39, %v2918_v54  ;;  %v2920_v17 = vpop.f32.mrb[109].mxu0  ;;  %7598 = vmatpush3.bf16.msra.mxu0 %v8713_v50  ;;  %v3300_v54 = vadd.f32 %v3299_v0, %v10013_v53 }
 0x524   :  { %v2921_v62 = vpop.f32.mrb[110].mxu0  ;;  %v3433_v14 = vadd.f32 %v3432_v35, %v3370_v6  ;;  %5466 = vmatpush1.bf16.msra.mxu1 %v8714_v34 }
 0x525   :  { %v10025_v56 = vadd.f32 %v7733_v7, %v9712_v16  ;;  %v7734_v39 = vadd.f32 %v10030_v1, %v2921_v62  ;;  %v2923_v44 = vpop.f32.mrb[111].mxu0  ;;  %v3371_v16 = vmul.f32 %v10013_v53, %v10013_v53  ;;  %5467 = vmatprep.subr.bf16.mxu1 %v12663_v46 }
 0x527   :  { %v10035_v4 = vadd.f32 %v7734_v39, %v9722_v5  ;;  %v3372_v7 = vmul.f32 %v10025_v56, %v10025_v56  ;;  %v3434_v3 = vadd.f32 %v3433_v14, %v3371_v16  ;;  %v3301_v5 = vadd.f32 %v3300_v54, %v10025_v56 }
 0x529   :  { %v3435_v39 = vadd.f32 %v3434_v3, %v3372_v7  ;;  %v3373_v44 = vmul.f32 %v10035_v4, %v10035_v4  ;;  %v3302_v35 = vadd.f32 %v3301_v5, %v10035_v4 }
 0x52a   :  { %v2926_v20 = vpop.f32.mrb[112].mxu0 }
 0x52b   :  { %v7735_v17 = vadd.f32 %v10030_v1, %v2926_v20  ;;  %v2928_v62 = vpop.f32.mrb[113].mxu0 }
 0x52c   :  { %v2929_v60 = vpop.f32.mrb[114].mxu0 }
 0x52d   :  { %v7736_v50 = vadd.f32 %v10030_v1, %v2929_v60  ;;  %v10046_v47 = vadd.f32 %v7735_v17, %v9763_v48  ;;  %v2931_v6 = vpop.f32.mrb[115].mxu0  ;;  %v3436_v48 = vadd.f32 %v3435_v39, %v3373_v44 }
 0x52f   :  { %v10052_v0 = vadd.f32 %v7736_v50, %v9771_v59  ;;  %v3374_v14 = vmul.f32 %v10046_v47, %v10046_v47  ;;  %v3303_v20 = vadd.f32 %v3302_v35, %v10046_v47 }
 0x531   :  { %v3437_v7 = vadd.f32 %v3436_v48, %v3374_v14  ;;  %v3375_v62 = vmul.f32 %v10052_v0, %v10052_v0  ;;  %v3304_v5 = vadd.f32 %v3303_v20, %v10052_v0  ;;  %v8715_v14 = vld [vmem:[#allocation8 + $0x90] sm:$0xff]  }
 0x532   :  { %v2934_v16 = vpop.f32.mrb[116].mxu0  ;;  %5468 = vmatpush1.bf16.msra.mxu1 %v8715_v14 }
 0x533   :  { %v7737_v34 = vadd.f32 %v10030_v1, %v2934_v16  ;;  %v2936_v54 = vpop.f32.mrb[117].mxu0  ;;  %v3438_v39 = vadd.f32 %v3437_v7, %v3375_v62  ;;  %5469 = vmatprep.subr.bf16.mxu1 %v12663_v46 }
 0x534   :  { %v2937_v17 = vpop.f32.mrb[118].mxu0 }
 0x535   :  { %v10062_v59 = vadd.f32 %v7737_v34, %v9754_v24  ;;  %v7738_v60 = vadd.f32 %v10030_v1, %v2937_v17  ;;  %v2939_v3 = vpop.f32.mrb[119].mxu0 }
 0x537   :  { %v3376_v50 = vmul.f32 %v10062_v59, %v10062_v59  ;;  %v10069_v6 = vadd.f32 %v7738_v60, %v9765_v33  ;;  %v3305_v44 = vadd.f32 %v3304_v5, %v10062_v59 }
 0x539   :  { %v3439_v16 = vadd.f32 %v3438_v39, %v3376_v50  ;;  %v3377_v24 = vmul.f32 %v10069_v6, %v10069_v6  ;;  %v3306_v33 = vadd.f32 %v3305_v44, %v10069_v6 }
 0x53a   :  { %v2942_v35 = vpop.f32.mrb[120].mxu0 }
 0x53b   :  { %v7739_v48 = vadd.f32 %v10030_v1, %v2942_v35  ;;  %v2944_v34 = vpop.f32.mrb[121].mxu0  ;;  %v3440_v3 = vadd.f32 %v3439_v16, %v3377_v24 }
 0x53c   :  { %v2945_v54 = vpop.f32.mrb[122].mxu0 }
 0x53d   :  { %v7740_v20 = vadd.f32 %v10030_v1, %v2945_v54  ;;  %v10077_v17 = vadd.f32 %v7739_v48, %v9798_v18  ;;  %v2947_v7 = vpop.f32.mrb[123].mxu0 }
 0x53f   :  { %12674 = vst [vmem:[#allocation29_spill] sm:$0xff] %v10077_v17  ;;  %v3307_v62 = vadd.f32 %v3306_v33, %v10077_v17  ;;  %v3378_v60 = vmul.f32 %v10077_v17, %v10077_v17  ;;  %v10085_v5 = vadd.f32 %v7740_v20, %v9808_v40 }
 0x541   :  { %12675 = vst [vmem:[#allocation25_spill] sm:$0xff] %v10085_v5  ;;  %v3441_v50 = vadd.f32 %v3440_v3, %v3378_v60  ;;  %v3308_v39 = vadd.f32 %v3307_v62, %v10085_v5  ;;  %v3379_v18 = vmul.f32 %v10085_v5, %v10085_v5  ;;  %v8716_v3 = vld [vmem:[#allocation8 + $0x98] sm:$0xff]  }
 0x542   :  { %v2950_v35 = vpop.f32.mrb[124].mxu0  ;;  %5470 = vmatpush1.bf16.msra.mxu1 %v8716_v3  ;;  %v3246_v3 = vld [vmem:[%s12553_s3] sm:$0x1] }
 0x543   :  { %v3442_v44 = vadd.f32 %v3441_v50, %v3379_v18  ;;  %v7741_v14 = vadd.f32 %v10030_v1, %v2950_v35  ;;  %v2952_v48 = vpop.f32.mrb[125].mxu0  ;;  %5471 = vmatprep.subr.bf16.mxu1 %v12663_v46 }
 0x544   :  { %v2953_v34 = vpop.f32.mrb[126].mxu0 }
 0x545   :  { %v10092_v54 = vadd.f32 %v7741_v14, %v9795_v15  ;;  %v7742_v16 = vadd.f32 %v10030_v1, %v2953_v34  ;;  %v2955_v24 = vpop.f32.mrb[127].mxu0 }
 0x547   :  { %12676 = vst [vmem:[#allocation28_spill] sm:$0xff] %v10092_v54  ;;  %v3309_v40 = vadd.f32 %v3308_v39, %v10092_v54  ;;  %v3380_v20 = vmul.f32 %v10092_v54, %v10092_v54  ;;  %v3243_v33 = vadd.f32 %v7742_v16, %v9806_v52 }
 0x549   :  { %v3443_v7 = vadd.f32 %v3442_v44, %v3380_v20  ;;  %v3310_v62 = vadd.f32 %v3309_v40, %v3243_v33  ;;  %v3381_v60 = vmul.f32 %v3243_v33, %v3243_v33  ;;  %v8717_v20 = vld [vmem:[#allocation8 + $0xa0] sm:$0xff]  }
 0x54a   :  { %5472 = vmatpush1.bf16.msra.mxu1 %v8717_v20  ;;  %v12682_v20 = vld [vmem:[#allocation17_spill] sm:$0xff] }
 0x54b   :  { %v3311_v50 = vrot.slane %v3310_v62, 4  ;;  %v3444_v18 = vadd.f32 %v3443_v7, %v3381_v60  ;;  %5473 = vmatprep.subr.bf16.mxu1 %v12663_v46 }
 0x54d   :  { %v3312_v35 = vadd.f32 %v3311_v50, %v3310_v62  ;;  %v3445_v15 = vrot.slane %v3444_v18, 4  ;;  %v3458_v62 = vlaneseq }
 0x54f   :  { %v3313_v1 = vrot.slane %v3312_v35, 2  ;;  %v3446_v14 = vadd.f32 %v3445_v15, %v3444_v18  ;;  %v3459_v60 = vshrl.u32 %v3458_v62, 7 }
 0x551   :  { %v3314_v48 = vadd.f32 %v3313_v1, %v3312_v35  ;;  %v3447_v39 = vrot.slane %v3446_v14, 2  ;;  %v10104_v50 = vsub.s32 0, %v3459_v60  ;;  %v3247_v35 = vld [vmem:[%s12554_s4] sm:$0x1] }
 0x553   :  { %v3315_v34 = vrot.slane %v3314_v48, 1  ;;  %v3448_v24 = vadd.f32 %v3447_v39, %v3446_v14  ;;  %12677 = vst [vmem:[#allocation36_spill] sm:$0xff] %v10104_v50 }
 0x555   :  { %v3316_v54 = vadd.f32 %v3315_v34, %v3314_v48  ;;  %v3449_v5 = vrot.slane %v3448_v24, 1  ;;  %v12678_v48 = vld [vmem:[#allocation13_spill] sm:$0xff]  ;;  %v12679_v34 = vld [vmem:[#allocation14_spill] sm:$0xff] }
 0x557   :  { %v3317_v52 = vmul.f32 0.001953125, %v3316_v54  ;;  %v3450_v44 = vadd.f32 %v3449_v5, %v3448_v24  ;;  %v8718_v5 = vld [vmem:[#allocation8 + $0xa8] sm:$0xff]  }
 0x558   :  { %5474 = vmatpush1.bf16.msra.mxu1 %v8718_v5 }
 0x559   :  { %v3451_v16 = vmul.f32 0.001953125, %v3450_v44  ;;  %v3452_v40 = vmul.f32 %v3317_v52, %v3317_v52  ;;  %5475 = vmatprep.subr.bf16.mxu1 %v12663_v46 }
 0x55b   :  { %v3453_v17 = vsub.f32 %v3451_v16, %v3452_v40  ;;  %v12680_v16 = vld [vmem:[#allocation15_spill] sm:$0xff]  ;;  %v12681_v40 = vld [vmem:[#allocation16_spill] sm:$0xff] }
 0x55d   :  { %v3454_v7 = vadd.f32 1e-05, %v3453_v17 }
 0x55f   :  { %8761 = vrsqrt.f32 %v3454_v7 }
 0x569   :  { %v8762_v18 = vpop.eup %8761 }
 0x56a   :  { %v3456_v54 = vmul.f32 %v8762_v18, %v3246_v3 }
 0x56c   :  { %v10110_v17 = vrot.slane %v3456_v54, %v10104_v50  ;;  %v3527_v15 = vmul.f32 %v3456_v54, %v3317_v52  ;;  %v12684_v54 = vld [vmem:[#allocation19_spill] sm:$0xff] }
 0x56e   :  { %v3526_v1 = vmul.f32 %v10110_v17, %v3243_v33  ;;  %v3528_v14 = vsub.f32 %v3247_v35, %v3527_v15  ;;  %v10116_v39 = vmul.f32 %v10110_v17, %v12678_v48  ;;  %v10120_v24 = vmul.f32 %v10110_v17, %v12679_v34  ;;  %v12685_v15 = vld [vmem:[#allocation20_spill] sm:$0xff] }
 0x56f   :  { %v10124_v44 = vmul.f32 %v10110_v17, %v9584_v42  ;;  %v10128_v52 = vmul.f32 %v10110_v17, %v12680_v16  ;;  %v10132_v33 = vmul.f32 %v10110_v17, %v12681_v40  ;;  %v10136_v7 = vmul.f32 %v10110_v17, %v12682_v20  ;;  %v12683_v42 = vld [vmem:[#allocation18_spill] sm:$0xff]  ;;  %v12688_v40 = vld [vmem:[#allocation23_spill] sm:$0xff] }
 0x570   :  { %v10139_v62 = vrot.slane %v3528_v14, %v10104_v50  ;;  %v10143_v60 = vmul.f32 %v10110_v17, %v9609_v28  ;;  %v10147_v3 = vmul.f32 %v10110_v17, %v12683_v42  ;;  %v10151_v18 = vmul.f32 %v10110_v17, %v9623_v25  ;;  %v12686_v14 = vld [vmem:[#allocation21_spill] sm:$0xff]  ;;  %v12687_v25 = vld [vmem:[#allocation22_spill] sm:$0xff] }
 0x571   :  { %v10155_v5 = vmul.f32 %v10110_v17, %v12684_v54  ;;  %v10159_v35 = vmul.f32 %v10110_v17, %v9634_v12  ;;  %v10163_v28 = vmul.f32 %v10110_v17, %v12685_v15  ;;  %v10167_v48 = vmul.f32 %v10110_v17, %v12686_v14  ;;  %v12690_v12 = vld [vmem:[#allocation24_spill] sm:$0xff]  ;;  %v12691_v54 = vld [vmem:[#allocation27_spill] sm:$0xff]  ;;  %v12692_v14 = vld [vmem:[#allocation30_spill] sm:$0xff] }
 0x572   :  { %v3598_v34 = vadd.f32 %v10139_v62, %v3526_v1  ;;  %v10172_v16 = vmul.f32 %v10110_v17, %v12687_v25  ;;  %v10176_v20 = vmul.f32 %v10110_v17, %v12688_v40  ;;  %v10180_v42 = vmul.f32 %v10110_v17, %v12690_v12  ;;  %v12693_v25 = vld [vmem:[#allocation31_spill] sm:$0xff] }
 0x573   :  { %v10184_v15 = vmul.f32 %v10110_v17, %v12691_v54  ;;  %v10188_v50 = vmul.f32 %v10110_v17, %v12692_v14  ;;  %v10192_v1 = vmul.f32 %v10110_v17, %v9699_v26  ;;  %v10196_v40 = vmul.f32 %v10110_v17, %v12693_v25 }
 0x574   :  { %12689 = vst [vmem:[#allocation13_spill] sm:$0xff] %v10176_v20  ;;  %v3662_v20 = vmax.f32 %v3598_v34, 0.0  ;;  %v10200_v12 = vmul.f32 %v10110_v17, %v9720_v19  ;;  %v10204_v54 = vmul.f32 %v10110_v17, %v9729_v29  ;;  %v10208_v14 = vmul.f32 %v10110_v17, %v9740_v49  ;;  %v12697_v34 = vld [vmem:[#allocation32_spill] sm:$0xff] }
 0x575   :  { %v10212_v26 = vmul.f32 %v10110_v17, %v9747_v2  ;;  %v10216_v25 = vmul.f32 %v10110_v17, %v9761_v10  ;;  %v10220_v19 = vmul.f32 %v10110_v17, %v9769_v51  ;;  %v10224_v29 = vmul.f32 %v10110_v17, %v9782_v55 }
 0x576   :  { %v10228_v49 = vmul.f32 %v10110_v17, %v9788_v63  ;;  %v10232_v2 = vmul.f32 %v10110_v17, %v9804_v32  ;;  %v10236_v10 = vmul.f32 %v10110_v17, %v9814_v30  ;;  %v10240_v51 = vmul.f32 %v10110_v17, %v9825_v37  ;;  %3726 = vst [vmem:[#allocation2 + $0x339] sm:$0xff] %v3662_v20  ;;  %v12699_v20 = vld [vmem:[#allocation33_spill] sm:$0xff] }
 0x577   :  { %v10244_v55 = vmul.f32 %v10110_v17, %v9830_v57  ;;  %v10248_v63 = vmul.f32 %v10110_v17, %v9842_v45  ;;  %v10252_v32 = vmul.f32 %v10110_v17, %v9847_v8  ;;  %v10256_v30 = vmul.f32 %v10110_v17, %v9857_v9 }
 0x578   :  { %v10260_v37 = vmul.f32 %v10110_v17, %v9864_v11  ;;  %v10264_v57 = vmul.f32 %v10110_v17, %v9875_v23  ;;  %v10268_v45 = vmul.f32 %v10110_v17, %v9879_v36  ;;  %v10272_v8 = vmul.f32 %v10110_v17, %v9889_v61 }
 0x579   :  { %v10276_v9 = vmul.f32 %v10110_v17, %v9895_v13  ;;  %v10280_v11 = vmul.f32 %v10110_v17, %v9906_v27  ;;  %v10284_v23 = vmul.f32 %v10110_v17, %v9912_v58  ;;  %v10288_v36 = vmul.f32 %v10110_v17, %v12697_v34 }
 0x57a   :  { %12694 = vst [vmem:[#allocation14_spill] sm:$0xff] %v10272_v8  ;;  %v10292_v61 = vmul.f32 %v10110_v17, %v12699_v20  ;;  %v12700_v8 = vld [vmem:[#allocation34_spill] sm:$0xff]  ;;  %v10304_v58 = vmul.f32 %v10110_v17, %v9953_v38  ;;  %v10308_v34 = vmul.f32 %v10110_v17, %v9960_v41  ;;  %v10324_v38 = vmul.f32 %v10110_v17, %v9994_v22 }
 0x57b   :  { %12695 = vst [vmem:[#allocation15_spill] sm:$0xff] %v10276_v9  ;;  %12696 = vst [vmem:[#allocation16_spill] sm:$0xff] %v10284_v23  ;;  %v10296_v13 = vmul.f32 %v10110_v17, %v12700_v8  ;;  %v12701_v9 = vld [vmem:[#allocation35_spill] sm:$0xff]  ;;  %v10316_v8 = vmul.f32 %v10110_v17, %v9976_v21  ;;  %v10328_v41 = vmul.f32 %v10110_v17, %v10007_v31 }
 0x57c   :  { %12698 = vst [vmem:[#allocation17_spill] sm:$0xff] %v10288_v36  ;;  %v10300_v27 = vmul.f32 %v10110_v17, %v12701_v9  ;;  %v8719_v23 = vld [vmem:[#allocation8 + $0xb0] sm:$0xff]   ;;  %v12702_v36 = vld [vmem:[#allocation26_spill] sm:$0xff]  ;;  %v10320_v9 = vmul.f32 %v10110_v17, %v9988_v43  ;;  %v10336_v21 = vmul.f32 %v10110_v17, %v10025_v56  ;;  %v10340_v43 = vmul.f32 %v10110_v17, %v10035_v4  ;;  %v12705_v4 = vld [vmem:[#allocation29_spill] sm:$0xff] }
 0x57d   :  { %v10312_v20 = vmul.f32 %v10110_v17, %v12702_v36  ;;  %v10332_v36 = vmul.f32 %v10110_v17, %v10013_v53  ;;  %5476 = vmatpush1.bf16.msra.mxu1 %v8719_v23  ;;  %v10344_v22 = vmul.f32 %v10110_v17, %v10046_v47  ;;  %v10348_v31 = vmul.f32 %v10110_v17, %v10052_v0  ;;  %v12706_v47 = vld [vmem:[#allocation25_spill] sm:$0xff]  ;;  %v12707_v0 = vld [vmem:[#allocation28_spill] sm:$0xff] }
 0x57e   :  { %v10352_v53 = vmul.f32 %v10110_v17, %v10062_v59  ;;  %5477 = vmatprep.subr.bf16.mxu1 %v12663_v46  ;;  %v10357_v56 = vmul.f32 %v10110_v17, %v10069_v6  ;;  %v10361_v23 = vmul.f32 %v10110_v17, %v12705_v4  ;;  %v10373_v59 = vadd.f32 %v10139_v62, %v10116_v39 }
 0x57f   :  { %12703 = vst [vmem:[#allocation18_spill] sm:$0xff] %v10344_v22  ;;  %12704 = vst [vmem:[#allocation19_spill] sm:$0xff] %v10348_v31  ;;  %v10365_v22 = vmul.f32 %v10110_v17, %v12706_v47  ;;  %v10369_v31 = vmul.f32 %v10110_v17, %v12707_v0  ;;  %v10377_v6 = vadd.f32 %v10139_v62, %v10120_v24  ;;  %v12708_v0 = vld [vmem:[#allocation13_spill] sm:$0xff] }
 0x580   :  { %v10381_v4 = vadd.f32 %v10139_v62, %v10124_v44  ;;  %v10385_v47 = vadd.f32 %v10139_v62, %v10128_v52  ;;  %v10389_v17 = vadd.f32 %v10139_v62, %v10132_v33  ;;  %v10393_v39 = vadd.f32 %v10139_v62, %v10136_v7 }
 0x581   :  { %v10397_v24 = vadd.f32 %v10139_v62, %v10143_v60  ;;  %v10401_v44 = vadd.f32 %v10139_v62, %v10147_v3  ;;  %v10405_v52 = vadd.f32 %v10139_v62, %v10151_v18  ;;  %v10409_v33 = vadd.f32 %v10139_v62, %v10155_v5 }
 0x582   :  { %v10413_v7 = vadd.f32 %v10139_v62, %v10159_v35  ;;  %v10417_v60 = vadd.f32 %v10139_v62, %v10163_v28  ;;  %v10421_v3 = vadd.f32 %v10139_v62, %v10167_v48  ;;  %v10425_v18 = vadd.f32 %v10139_v62, %v10172_v16 }
 0x583   :  { %v10429_v5 = vadd.f32 %v10139_v62, %v12708_v0  ;;  %v10433_v35 = vadd.f32 %v10139_v62, %v10180_v42  ;;  %v10437_v28 = vadd.f32 %v10139_v62, %v10184_v15  ;;  %v10441_v48 = vadd.f32 %v10139_v62, %v10188_v50 }
 0x584   :  { %v10445_v16 = vadd.f32 %v10139_v62, %v10192_v1  ;;  %v10449_v0 = vadd.f32 %v10139_v62, %v10196_v40  ;;  %v10453_v42 = vadd.f32 %v10139_v62, %v10200_v12  ;;  %v10457_v15 = vadd.f32 %v10139_v62, %v10204_v54 }
 0x585   :  { %v10461_v50 = vadd.f32 %v10139_v62, %v10208_v14  ;;  %v10465_v1 = vadd.f32 %v10139_v62, %v10212_v26  ;;  %v10469_v40 = vadd.f32 %v10139_v62, %v10216_v25  ;;  %v10473_v12 = vadd.f32 %v10139_v62, %v10220_v19 }
 0x586   :  { %12709 = vst [vmem:[#allocation20_spill] sm:$0xff] %v10453_v42  ;;  %12710 = vst [vmem:[#allocation21_spill] sm:$0xff] %v10457_v15  ;;  %v10477_v54 = vadd.f32 %v10139_v62, %v10224_v29  ;;  %v10481_v14 = vadd.f32 %v10139_v62, %v10228_v49  ;;  %v10485_v26 = vadd.f32 %v10139_v62, %v10232_v2 }
 0x587   :  { %v10489_v25 = vadd.f32 %v10139_v62, %v10236_v10  ;;  %v10493_v19 = vadd.f32 %v10139_v62, %v10240_v51  ;;  %v10497_v29 = vadd.f32 %v10139_v62, %v10244_v55  ;;  %v10501_v49 = vadd.f32 %v10139_v62, %v10248_v63 }
 0x588   :  { %v10505_v2 = vadd.f32 %v10139_v62, %v10252_v32  ;;  %v10509_v10 = vadd.f32 %v10139_v62, %v10256_v30  ;;  %v10513_v51 = vadd.f32 %v10139_v62, %v10260_v37  ;;  %v10517_v55 = vadd.f32 %v10139_v62, %v10264_v57 }
 0x589   :  { %12711 = vst [vmem:[#allocation22_spill] sm:$0xff] %v10501_v49  ;;  %v10521_v63 = vadd.f32 %v10139_v62, %v10268_v45  ;;  %v12716_v49 = vld [vmem:[#allocation14_spill] sm:$0xff]  ;;  %v10533_v37 = vadd.f32 %v10139_v62, %v10280_v11  ;;  %v10553_v11 = vadd.f32 %v10139_v62, %v10300_v27  ;;  %v10573_v27 = vadd.f32 %v10139_v62, %v10320_v9 }
 0x58a   :  { %12712 = vst [vmem:[#allocation23_spill] sm:$0xff] %v10505_v2  ;;  %12713 = vst [vmem:[#allocation24_spill] sm:$0xff] %v10513_v51  ;;  %v10525_v32 = vadd.f32 %v10139_v62, %v12716_v49  ;;  %v12717_v2 = vld [vmem:[#allocation15_spill] sm:$0xff]  ;;  %v12719_v51 = vld [vmem:[#allocation16_spill] sm:$0xff]  ;;  %v10545_v49 = vadd.f32 %v10139_v62, %v10292_v61  ;;  %v10565_v61 = vadd.f32 %v10139_v62, %v10312_v20 }
 0x58b   :  { %12714 = vst [vmem:[#allocation27_spill] sm:$0xff] %v10517_v55  ;;  %12715 = vst [vmem:[#allocation30_spill] sm:$0xff] %v10521_v63  ;;  %v10529_v30 = vadd.f32 %v10139_v62, %v12717_v2  ;;  %v10537_v57 = vadd.f32 %v10139_v62, %v12719_v51  ;;  %v12721_v55 = vld [vmem:[#allocation17_spill] sm:$0xff]  ;;  %v10549_v2 = vadd.f32 %v10139_v62, %v10296_v13 }
 0x58c   :  { %12718 = vst [vmem:[#allocation31_spill] sm:$0xff] %v10533_v37  ;;  %v10541_v45 = vadd.f32 %v10139_v62, %v12721_v55  ;;  %12723 = vst [vmem:[#allocation34_spill] sm:$0xff] %v10545_v49  ;;  %v10557_v51 = vadd.f32 %v10139_v62, %v10304_v58  ;;  %v10561_v55 = vadd.f32 %v10139_v62, %v10308_v34 }
 0x58d   :  { %12720 = vst [vmem:[#allocation32_spill] sm:$0xff] %v10537_v57  ;;  %12724 = vst [vmem:[#allocation35_spill] sm:$0xff] %v10549_v2  ;;  %v10569_v13 = vadd.f32 %v10139_v62, %v10316_v8  ;;  %v10577_v58 = vadd.f32 %v10139_v62, %v10324_v38  ;;  %v10581_v34 = vadd.f32 %v10139_v62, %v10328_v41 }
 0x58e   :  { %12722 = vst [vmem:[#allocation33_spill] sm:$0xff] %v10541_v45  ;;  %12725 = vst [vmem:[#allocation26_spill] sm:$0xff] %v10553_v11  ;;  %v8720_v45 = vld [vmem:[#allocation8 + $0xb8] sm:$0xff]   ;;  %v10585_v20 = vadd.f32 %v10139_v62, %v10332_v36  ;;  %v10589_v8 = vadd.f32 %v10139_v62, %v10336_v21  ;;  %v10593_v9 = vadd.f32 %v10139_v62, %v10340_v43 }
 0x58f   :  { %12726 = vst [vmem:[#allocation29_spill] sm:$0xff] %v10561_v55  ;;  %12727 = vst [vmem:[#allocation25_spill] sm:$0xff] %v10565_v61  ;;  %5478 = vmatpush1.bf16.msra.mxu1 %v8720_v45  ;;  %v10605_v36 = vadd.f32 %v10139_v62, %v10352_v53  ;;  %v10609_v21 = vadd.f32 %v10139_v62, %v10357_v56  ;;  %v10614_v43 = vadd.f32 %v10139_v62, %v10361_v23 }
 0x590   :  { %12728 = vst [vmem:[#allocation28_spill] sm:$0xff] %v10573_v27  ;;  %12729 = vst [vmem:[#allocation13_spill] sm:$0xff] %v10577_v58  ;;  %v12731_v27 = vld [vmem:[#allocation18_spill] sm:$0xff]  ;;  %v12732_v58 = vld [vmem:[#allocation19_spill] sm:$0xff]  ;;  %5479 = vmatprep.subr.bf16.mxu1 %v12663_v46  ;;  %v10618_v45 = vadd.f32 %v10139_v62, %v10365_v22  ;;  %v12596_v53 = vmax.f32 %v10373_v59, 0.0  ;;  %v12599_v23 = vmax.f32 %v10393_v39, 0.0 }
 0x591   :  { %12730 = vst [vmem:[#allocation14_spill] sm:$0xff] %v10581_v34  ;;  %v10597_v38 = vadd.f32 %v10139_v62, %v12731_v27  ;;  %v10601_v41 = vadd.f32 %v10139_v62, %v12732_v58  ;;  %12733 = vst [vmem:[#allocation15_spill] sm:$0xff] %v10609_v21  ;;  %v10622_v27 = vadd.f32 %v10139_v62, %v10369_v31  ;;  %v12597_v58 = vmax.f32 %v10377_v6, 0.0 }
 0x592   :  { %12734 = vst [vmem:[#allocation16_spill] sm:$0xff] %v10614_v43  ;;  %12735 = vst [vmem:[#allocation17_spill] sm:$0xff] %v10618_v45  ;;  %v12598_v21 = vmax.f32 %v10389_v17, 0.0  ;;  %v12600_v45 = vmax.f32 %v10405_v52, 0.0  ;;  %v12601_v62 = vmax.f32 %v10409_v33, 0.0  ;;  %v12736_v43 = vmax.f32 %v10381_v4, 0.0 }
 0x593   :  { %3663 = vst [vmem:[#allocation2 + $0x19] sm:$0xff] %v12596_v53  ;;  %3664 = vst [vmem:[#allocation2 + $0x21] sm:$0xff] %v12597_v58  ;;  %v12737_v22 = vmax.f32 %v10385_v47, 0.0  ;;  %v12602_v53 = vmax.f32 %v10425_v18, 0.0  ;;  %v12603_v31 = vmax.f32 %v10429_v5, 0.0  ;;  %v12738_v58 = vmax.f32 %v10397_v24, 0.0 }
 0x594   :  { %3665 = vst [vmem:[#allocation2 + $0x31] sm:$0xff] %v12736_v43  ;;  %3667 = vst [vmem:[#allocation2 + $0x49] sm:$0xff] %v12598_v21  ;;  %v12739_v43 = vmax.f32 %v10401_v44, 0.0  ;;  %v12608_v21 = vmax.f32 %v10461_v50, 0.0  ;;  %v3630_v56 = vmax.f32 %v10497_v29, 0.0  ;;  %v12762_v46 = vmax.f32 %v10509_v10, 0.0 }
 0x595   :  { %3666 = vst [vmem:[#allocation2 + $0x39] sm:$0xff] %v12737_v22  ;;  %3668 = vst [vmem:[#allocation2 + $0x51] sm:$0xff] %v12599_v23  ;;  %v12604_v22 = vmax.f32 %v10441_v48, 0.0  ;;  %v12740_v23 = vmax.f32 %v10413_v7, 0.0 }
 0x596   :  { %3669 = vst [vmem:[#allocation2 + $0x61] sm:$0xff] %v12738_v58  ;;  %3670 = vst [vmem:[#allocation2 + $0x69] sm:$0xff] %v12739_v43  ;;  %v12741_v58 = vmax.f32 %v10417_v60, 0.0  ;;  %v12742_v43 = vmax.f32 %v10421_v3, 0.0 }
 0x597   :  { %3671 = vst [vmem:[#allocation2 + $0x79] sm:$0xff] %v12600_v45  ;;  %3672 = vst [vmem:[#allocation2 + $0x81] sm:$0xff] %v12601_v62  ;;  %v12607_v45 = vmax.f32 %v10457_v15, 0.0  ;;  %v3629_v62 = vmax.f32 %v10493_v19, 0.0  ;;  %v12754_v15 = vmax.f32 %v10473_v12, 0.0 }
 0x598   :  { %3673 = vst [vmem:[#allocation2 + $0x91] sm:$0xff] %v12740_v23  ;;  %3674 = vst [vmem:[#allocation2 + $0x99] sm:$0xff] %v12741_v58  ;;  %v12743_v23 = vmax.f32 %v10433_v35, 0.0  ;;  %v12744_v58 = vmax.f32 %v10437_v28, 0.0 }
 0x599   :  { %3675 = vst [vmem:[#allocation2 + $0xa9] sm:$0xff] %v12742_v43  ;;  %3676 = vst [vmem:[#allocation2 + $0xb1] sm:$0xff] %v12602_v53  ;;  %v12745_v53 = vmax.f32 %v10445_v16, 0.0  ;;  %v12748_v43 = vld [vmem:[#allocation22_spill] sm:$0xff] }
 0x59a   :  { %3677 = vst [vmem:[#allocation2 + $0xc1] sm:$0xff] %v12603_v31  ;;  %3678 = vst [vmem:[#allocation2 + $0xc9] sm:$0xff] %v12743_v23  ;;  %v12746_v31 = vmax.f32 %v10449_v0, 0.0  ;;  %v12747_v23 = vmax.f32 %v10453_v42, 0.0  ;;  %v12753_v42 = vld [vmem:[#allocation27_spill] sm:$0xff] }
 0x59b   :  { %3679 = vst [vmem:[#allocation2 + $0xd9] sm:$0xff] %v12744_v58  ;;  %3680 = vst [vmem:[#allocation2 + $0xe1] sm:$0xff] %v12604_v22  ;;  %v12752_v58 = vld [vmem:[#allocation24_spill] sm:$0xff]  ;;  %v12758_v22 = vmax.f32 %v10489_v25, 0.0 }
 0x59c   :  { %3681 = vst [vmem:[#allocation2 + $0xf1] sm:$0xff] %v12745_v53  ;;  %3682 = vst [vmem:[#allocation2 + $0xf9] sm:$0xff] %v12746_v31  ;;  %v12749_v53 = vmax.f32 %v10465_v1, 0.0  ;;  %v12750_v31 = vmax.f32 %v10469_v40, 0.0 }
 0x59d   :  { %3683 = vst [vmem:[#allocation2 + $0x109] sm:$0xff] %v12747_v23  ;;  %3684 = vst [vmem:[#allocation2 + $0x111] sm:$0xff] %v12607_v45  ;;  %v12751_v23 = vld [vmem:[#allocation23_spill] sm:$0xff]  ;;  %v12755_v45 = vmax.f32 %v10477_v54, 0.0 }
 0x59e   :  { %3685 = vst [vmem:[#allocation2 + $0x121] sm:$0xff] %v12608_v21  ;;  %3686 = vst [vmem:[#allocation2 + $0x129] sm:$0xff] %v12749_v53  ;;  %v12756_v21 = vmax.f32 %v10481_v14, 0.0  ;;  %v12757_v53 = vmax.f32 %v10485_v26, 0.0  ;;  %v12761_v29 = vmax.f32 %v12751_v23, 0.0  ;;  %v4644_v19 = vld [vmem:[#allocation2 + $0x6a] sm:$0xff] }
 0x59f   :  { %3687 = vst [vmem:[#allocation2 + $0x139] sm:$0xff] %v12750_v31  ;;  %3688 = vst [vmem:[#allocation2 + $0x141] sm:$0xff] %v12754_v15  ;;  %v12759_v15 = vmax.f32 %v12748_v43, 0.0  ;;  %v4642_v31 = vld [vmem:[#allocation2 + $0x52] sm:$0xff] }
 0x5a0   :  { %3689 = vst [vmem:[#allocation2 + $0x151] sm:$0xff] %v12755_v45  ;;  %3690 = vst [vmem:[#allocation2 + $0x159] sm:$0xff] %v12756_v21  ;;  %v12760_v45 = vld [vmem:[#allocation33_spill] sm:$0xff]  ;;  %v12769_v21 = vld [vmem:[#allocation28_spill] sm:$0xff] }
 0x5a1   :  { %3691 = vst [vmem:[#allocation2 + $0x169] sm:$0xff] %v12757_v53  ;;  %3692 = vst [vmem:[#allocation2 + $0x171] sm:$0xff] %v12758_v22  ;;  %v12765_v53 = vmax.f32 %v10521_v63, 0.0  ;;  %v3873_v22 = vld [vmem:[#allocation2 + $0x18] sm:$0xff] }
 0x5a2   :  { %3693 = vst [vmem:[#allocation2 + $0x181] sm:$0xff] %v3629_v62  ;;  %3694 = vst [vmem:[#allocation2 + $0x189] sm:$0xff] %v3630_v56  ;;  %v12763_v62 = vmax.f32 %v12752_v58, 0.0  ;;  %v12764_v56 = vmax.f32 %v12753_v42, 0.0  ;;  %v12770_v42 = vld [vmem:[#allocation13_spill] sm:$0xff] }
 0x5a3   :  { %3695 = vst [vmem:[#allocation2 + $0x1c9] sm:$0xff] %v12759_v15  ;;  %3696 = vst [vmem:[#allocation2 + $0x1d1] sm:$0xff] %v12761_v29  ;;  %v12766_v29 = vmax.f32 %v10525_v32, 0.0  ;;  %v3874_v15 = vld [vmem:[#allocation2 + $0x20] sm:$0xff] }
 0x5a4   :  { %3697 = vst [vmem:[#allocation2 + $0x1e1] sm:$0xff] %v12762_v46  ;;  %3698 = vst [vmem:[#allocation2 + $0x1e9] sm:$0xff] %v12763_v62  ;;  %v12767_v46 = vmax.f32 %v10529_v30, 0.0  ;;  %v12768_v62 = vmax.f32 %v10533_v37, 0.0  ;;  %v4640_v37 = vld [vmem:[#allocation2 + $0x3a] sm:$0xff] }
 0x5a5   :  { %3699 = vst [vmem:[#allocation2 + $0x1f9] sm:$0xff] %v12764_v56  ;;  %3700 = vst [vmem:[#allocation2 + $0x201] sm:$0xff] %v12765_v53  ;;  %v4639_v56 = vld [vmem:[#allocation2 + $0x32] sm:$0xff]  ;;  %v12771_v53 = vmax.f32 %v10537_v57, 0.0  ;;  %v3661_v57 = vmax.f32 %v10622_v27, 0.0  ;;  %v12792_v27 = vmax.f32 %v10601_v41, 0.0 }
 0x5a6   :  { %3701 = vst [vmem:[#allocation2 + $0x211] sm:$0xff] %v12766_v29  ;;  %3702 = vst [vmem:[#allocation2 + $0x219] sm:$0xff] %v12767_v46  ;;  %v12772_v29 = vmax.f32 %v12760_v45, 0.0  ;;  %v12773_v46 = vmax.f32 %v10545_v49, 0.0  ;;  %v12779_v49 = vld [vmem:[#allocation15_spill] sm:$0xff]  ;;  %v12780_v45 = vld [vmem:[#allocation16_spill] sm:$0xff] }
 0x5a7   :  { %3703 = vst [vmem:[#allocation2 + $0x229] sm:$0xff] %v12768_v62  ;;  %3704 = vst [vmem:[#allocation2 + $0x231] sm:$0xff] %v12771_v53  ;;  %v12774_v62 = vmax.f32 %v10549_v2, 0.0  ;;  %v12775_v53 = vmax.f32 %v10553_v11, 0.0  ;;  %v4641_v2 = vld [vmem:[#allocation2 + $0x4a] sm:$0xff]  ;;  %v3659_v11 = vmax.f32 %v12780_v45, 0.0 }
 0x5a8   :  { %3705 = vst [vmem:[#allocation2 + $0x241] sm:$0xff] %v12772_v29  ;;  %3706 = vst [vmem:[#allocation2 + $0x249] sm:$0xff] %v12773_v46  ;;  %v12776_v29 = vmax.f32 %v10557_v51, 0.0  ;;  %v12777_v46 = vmax.f32 %v10561_v55, 0.0  ;;  %v12785_v55 = vld [vmem:[#allocation17_spill] sm:$0xff]  ;;  %v12786_v45 = vmax.f32 %v10585_v20, 0.0 }
 0x5a9   :  { %3707 = vst [vmem:[#allocation2 + $0x259] sm:$0xff] %v12774_v62  ;;  %3708 = vst [vmem:[#allocation2 + $0x261] sm:$0xff] %v12775_v53  ;;  %v12778_v62 = vmax.f32 %v10565_v61, 0.0  ;;  %v12781_v53 = vmax.f32 %v10569_v13, 0.0  ;;  %v4643_v61 = vld [vmem:[#allocation2 + $0x62] sm:$0xff]  ;;  %v3660_v63 = vmax.f32 %v12785_v55, 0.0  ;;  %v10801_v55 = vpack.c.bf16 %v4640_v37, %v4639_v56 }
 0x5aa   :  { %3709 = vst [vmem:[#allocation2 + $0x271] sm:$0xff] %v12776_v29  ;;  %3710 = vst [vmem:[#allocation2 + $0x279] sm:$0xff] %v12777_v46  ;;  %v12782_v29 = vmax.f32 %v12769_v21, 0.0  ;;  %v12783_v46 = vmax.f32 %v12770_v42, 0.0  ;;  %v12797_v56 = vmax.f32 %v10389_v17, 0.0  ;;  %v12802_v17 = vmax.f32 %v10409_v33, 0.0 }
 0x5ab   :  { %3711 = vst [vmem:[#allocation2 + $0x289] sm:$0xff] %v12778_v62  ;;  %3712 = vst [vmem:[#allocation2 + $0x291] sm:$0xff] %v12781_v53  ;;  %v12784_v62 = vmax.f32 %v10581_v34, 0.0  ;;  %v12787_v53 = vmax.f32 %v10589_v8, 0.0  ;;  %v12791_v34 = vmax.f32 %v10377_v6, 0.0  ;;  %v12796_v6 = vmax.f32 %v10385_v47, 0.0  ;;  %7599 = vmatprep.mubr.bf16.mxu0 %v10801_v55 }
 0x5ac   :  { %3713 = vst [vmem:[#allocation2 + $0x2a1] sm:$0xff] %v12782_v29  ;;  %3714 = vst [vmem:[#allocation2 + $0x2a9] sm:$0xff] %v12783_v46  ;;  %v12788_v29 = vmax.f32 %v10593_v9, 0.0  ;;  %v12789_v46 = vmax.f32 %v10597_v38, 0.0  ;;  %v12800_v47 = vmax.f32 %v10401_v44, 0.0  ;;  %v12806_v44 = vmax.f32 %v10425_v18, 0.0 }
 0x5ad   :  { %3715 = vst [vmem:[#allocation2 + $0x2b9] sm:$0xff] %v12784_v62  ;;  %3716 = vst [vmem:[#allocation2 + $0x2c1] sm:$0xff] %v12786_v45  ;;  %v12790_v62 = vmax.f32 %v10373_v59, 0.0  ;;  %v12793_v45 = vmax.f32 %v10605_v36, 0.0  ;;  %v12795_v59 = vmax.f32 %v10381_v4, 0.0  ;;  %v12799_v4 = vmax.f32 %v10397_v24, 0.0 }
 0x5ae   :  { %3717 = vst [vmem:[#allocation2 + $0x2d1] sm:$0xff] %v12787_v53  ;;  %3718 = vst [vmem:[#allocation2 + $0x2d9] sm:$0xff] %v12788_v29  ;;  %v12794_v53 = vmax.f32 %v12779_v49, 0.0  ;;  %v10809_v29 = vpack.c.bf16 %v3874_v15, %v3873_v22  ;;  %v12804_v15 = vmax.f32 %v10417_v60, 0.0  ;;  %v12805_v24 = vmax.f32 %v10421_v3, 0.0 }
 0x5af   :  { %3719 = vst [vmem:[#allocation2 + $0x2e9] sm:$0xff] %v12789_v46  ;;  %v4032_v42 = vpack.c.bf16 %v12791_v34, %v12790_v62  ;;  %3720 = vst [vmem:[#allocation2 + $0x2f1] sm:$0xff] %v12792_v27  ;;  %v10811_v46 = vpack.c.bf16 %v4642_v31, %v4641_v2  ;;  %v4033_v37 = vpack.c.bf16 %v12796_v6, %v12795_v59  ;;  %v12803_v31 = vmax.f32 %v10413_v7, 0.0  ;;  %v4648_v59 = vld [vmem:[#allocation2 + $0x9a] sm:$0xff] }
 0x5b0   :  { %3721 = vst [vmem:[#allocation2 + $0x301] sm:$0xff] %v12793_v45  ;;  %3722 = vst [vmem:[#allocation2 + $0x309] sm:$0xff] %v12794_v53  ;;  %v10818_v34 = vpack.c.bf16 %v4644_v19, %v4643_v61  ;;  %v4645_v61 = vld [vmem:[#allocation2 + $0x7a] sm:$0xff]  ;;  %v4646_v19 = vld [vmem:[#allocation2 + $0x82] sm:$0xff]  ;;  %v10847_v27 = vpack.c.bf16 %v12806_v44, %v12805_v24  ;;  %v12808_v33 = vmax.f32 %v10433_v35, 0.0  ;;  %v12809_v7 = vmax.f32 %v10437_v28, 0.0 }
 0x5b1   :  { %3723 = vst [vmem:[#allocation2 + $0x319] sm:$0xff] %v3659_v11  ;;  %3724 = vst [vmem:[#allocation2 + $0x321] sm:$0xff] %v3660_v63  ;;  %5214 = vmatprep.mubr.bf16.mxu1 %v4032_v42  ;;  %v12798_v11 = vmax.f32 %v10393_v39, 0.0  ;;  %7600 = vmatmul.mubr.bf16.vlgmr.msra.gmra.mrb[128].mxu0 %v10811_v46  ;;  %v4035_v42 = vpack.c.bf16 %v12800_v47, %v12799_v4  ;;  %v3875_v63 = vld [vmem:[#allocation2 + $0x30] sm:$0xff]  ;;  %v3876_v39 = vld [vmem:[#allocation2 + $0x38] sm:$0xff]  ;;  %v10841_v62 = vpack.c.bf16 %v12804_v15, %v12803_v31 }
 0x5b2   :  { %3725 = vst [vmem:[#allocation2 + $0x331] sm:$0xff] %v3661_v57  ;;  %5215 = vmatmul.mubr.bf16.gmra.mrb[68].mxu1 %v10809_v29  ;;  %7603 = vmatprep.mubr.bf16.mxu0 %v10818_v34  ;;  %v12801_v57 = vmax.f32 %v10405_v52, 0.0  ;;  %v12807_v52 = vmax.f32 %v10429_v5, 0.0  ;;  %v4647_v53 = vld [vmem:[#allocation2 + $0x92] sm:$0xff]  ;;  %v12810_v60 = vmax.f32 %v10441_v48, 0.0  ;;  %v12811_v3 = vmax.f32 %v10445_v16, 0.0 }
 0x5b3   :  { %v4034_v22 = vpack.c.bf16 %v12798_v11, %v12797_v56  ;;  %5222 = vmatprep.mubr.bf16.mxu1 %v4033_v37  ;;  %v12812_v18 = vmax.f32 %v10449_v0, 0.0  ;;  %v12813_v56 = vld [vmem:[#allocation20_spill] sm:$0xff]  ;;  %v12815_v11 = vld [vmem:[#allocation21_spill] sm:$0xff]  ;;  %v12817_v47 = vmax.f32 %v10461_v50, 0.0  ;;  %v12818_v28 = vmax.f32 %v10465_v1, 0.0 }
 0x5b4   :  { %v10835_v2 = vpack.c.bf16 %v12802_v17, %v12801_v57  ;;  %v10853_v45 = vpack.c.bf16 %v12808_v33, %v12807_v52  ;;  %v10859_v6 = vpack.c.bf16 %v12810_v60, %v12809_v7  ;;  %v12814_v5 = vmax.f32 %v12813_v56, 0.0  ;;  %v12835_v7 = vld [vmem:[#allocation31_spill] sm:$0xff]  ;;  %v12837_v60 = vld [vmem:[#allocation32_spill] sm:$0xff] }
 0x5b5   :  { %v10865_v37 = vpack.c.bf16 %v12812_v18, %v12811_v3  ;;  %v12816_v35 = vmax.f32 %v12815_v11, 0.0  ;;  %v10877_v57 = vpack.c.bf16 %v12818_v28, %v12817_v47  ;;  %v12819_v48 = vmax.f32 %v10469_v40, 0.0  ;;  %v12839_v18 = vld [vmem:[#allocation33_spill] sm:$0xff]  ;;  %v3878_v47 = vld [vmem:[#allocation2 + $0x50] sm:$0xff] }
 0x5b6   :  { %v12820_v16 = vmax.f32 %v10473_v12, 0.0  ;;  %v10885_v0 = vpack.c.bf16 %v3876_v39, %v3875_v63  ;;  %v10887_v31 = vpack.c.bf16 %v4646_v19, %v4645_v61  ;;  %v12821_v15 = vmax.f32 %v10477_v54, 0.0  ;;  %v4649_v28 = vld [vmem:[#allocation2 + $0xaa] sm:$0xff] }
 0x5b7   :  { %v10871_v4 = vpack.c.bf16 %v12816_v35, %v12814_v5  ;;  %v12822_v24 = vmax.f32 %v10481_v14, 0.0  ;;  %v12823_v50 = vmax.f32 %v10485_v26, 0.0  ;;  %v12824_v1 = vmax.f32 %v10489_v25, 0.0  ;;  %v12829_v25 = vld [vmem:[#allocation27_spill] sm:$0xff]  ;;  %v12841_v5 = vld [vmem:[#allocation34_spill] sm:$0xff] }
 0x5b8   :  { %v10883_v17 = vpack.c.bf16 %v12820_v16, %v12819_v48  ;;  %v10901_v40 = vpack.c.bf16 %v4648_v59, %v4647_v53  ;;  %v12825_v12 = vmax.f32 %v12748_v43, 0.0  ;;  %v12826_v63 = vmax.f32 %v12751_v23, 0.0  ;;  %v12831_v43 = vld [vmem:[#allocation30_spill] sm:$0xff]  ;;  %v12843_v48 = vld [vmem:[#allocation35_spill] sm:$0xff] }
 0x5b9   :  { %v10893_v44 = vpack.c.bf16 %v12822_v24, %v12821_v15  ;;  %v10899_v52 = vpack.c.bf16 %v12824_v1, %v12823_v50  ;;  %7604 = vmatmul.mubr.bf16.gmra.mrb[132].mxu0 %v10887_v31  ;;  %v12827_v54 = vmax.f32 %v10509_v10, 0.0  ;;  %v12828_v14 = vmax.f32 %v12752_v58, 0.0  ;;  %v3877_v10 = vld [vmem:[#allocation2 + $0x48] sm:$0xff]  ;;  %v12848_v1 = vld [vmem:[#allocation29_spill] sm:$0xff] }
 0x5ba   :  { %v10907_v39 = vpack.c.bf16 %v12826_v63, %v12825_v12  ;;  %5223 = vmatmul.mubr.bf16.gmra.mrb[72].mxu1 %v10885_v0  ;;  %7607 = vmatprep.mubr.bf16.mxu0 %v10901_v40  ;;  %v12830_v61 = vmax.f32 %v12829_v25, 0.0  ;;  %v12832_v19 = vmax.f32 %v12831_v43, 0.0  ;;  %v12833_v33 = vmax.f32 %v10525_v32, 0.0  ;;  %v4650_v32 = vld [vmem:[#allocation2 + $0xb2] sm:$0xff]  ;;  %v12845_v16 = vld [vmem:[#allocation26_spill] sm:$0xff] }
 0x5bb   :  { %v10915_v26 = vpack.c.bf16 %v12828_v14, %v12827_v54  ;;  %5230 = vmatprep.mubr.bf16.mxu1 %v4034_v22  ;;  %v12834_v53 = vmax.f32 %v10529_v30, 0.0  ;;  %v12836_v58 = vmax.f32 %v12835_v7, 0.0  ;;  %v12838_v3 = vmax.f32 %v12837_v60, 0.0  ;;  %v12850_v54 = vld [vmem:[#allocation25_spill] sm:$0xff]  ;;  %v12856_v60 = vld [vmem:[#allocation14_spill] sm:$0xff] }
 0x5bc   :  { %v10922_v23 = vpack.c.bf16 %v12832_v19, %v12830_v61  ;;  %v12840_v56 = vmax.f32 %v12839_v18, 0.0  ;;  %v12842_v11 = vmax.f32 %v12841_v5, 0.0  ;;  %v12844_v30 = vmax.f32 %v12843_v48, 0.0  ;;  %v4651_v43 = vld [vmem:[#allocation2 + $0xc2] sm:$0xff]  ;;  %v4652_v19 = vld [vmem:[#allocation2 + $0xca] sm:$0xff] }
 0x5bd   :  { %v10928_v59 = vpack.c.bf16 %v12834_v53, %v12833_v33  ;;  %v10934_v22 = vpack.c.bf16 %v12838_v3, %v12836_v58  ;;  %v12846_v15 = vmax.f32 %v12845_v16, 0.0  ;;  %v12847_v50 = vmax.f32 %v10557_v51, 0.0  ;;  %v12854_v53 = vld [vmem:[#allocation13_spill] sm:$0xff] }
 0x5be   :  { %v10940_v35 = vpack.c.bf16 %v12842_v11, %v12840_v56  ;;  %v12849_v12 = vmax.f32 %v12848_v1, 0.0  ;;  %v12851_v14 = vmax.f32 %v12850_v54, 0.0  ;;  %v12852_v25 = vmax.f32 %v10569_v13, 0.0  ;;  %v4654_v1 = vld [vmem:[#allocation2 + $0xe2] sm:$0xff]  ;;  %v4656_v54 = vld [vmem:[#allocation2 + $0xfa] sm:$0xff] }
 0x5bf   :  { %v10946_v24 = vpack.c.bf16 %v12846_v15, %v12844_v30  ;;  %v12853_v33 = vmax.f32 %v12769_v21, 0.0  ;;  %v12855_v7 = vmax.f32 %v12854_v53, 0.0  ;;  %v12857_v51 = vmax.f32 %v12856_v60, 0.0  ;;  %v4660_v53 = vld [vmem:[#allocation2 + $0x12a] sm:$0xff] }
 0x5c0   :  { %v10952_v63 = vpack.c.bf16 %v12849_v12, %v12847_v50  ;;  %v10958_v61 = vpack.c.bf16 %v12852_v25, %v12851_v14  ;;  %v12858_v3 = vmax.f32 %v10585_v20, 0.0  ;;  %v12859_v56 = vmax.f32 %v10589_v8, 0.0  ;;  %v4655_v12 = vld [vmem:[#allocation2 + $0xf2] sm:$0xff]  ;;  %v3882_v25 = vld [vmem:[#allocation2 + $0x80] sm:$0xff] }
 0x5c1   :  { %v10964_v58 = vpack.c.bf16 %v12855_v7, %v12853_v33  ;;  %v12860_v13 = vmax.f32 %v10593_v9, 0.0  ;;  %v12861_v11 = vmax.f32 %v10597_v38, 0.0  ;;  %v12862_v21 = vmax.f32 %v10601_v41, 0.0  ;;  %v3879_v9 = vld [vmem:[#allocation2 + $0x60] sm:$0xff]  ;;  %v3880_v38 = vld [vmem:[#allocation2 + $0x68] sm:$0xff] }
 0x5c2   :  { %v10970_v18 = vpack.c.bf16 %v12858_v3, %v12857_v51  ;;  %v12863_v30 = vmax.f32 %v10605_v36, 0.0  ;;  %v12864_v16 = vmax.f32 %v12779_v49, 0.0  ;;  %v10990_v20 = vpack.c.bf16 %v3878_v47, %v3877_v10  ;;  %v4653_v41 = vld [vmem:[#allocation2 + $0xda] sm:$0xff]  ;;  %v8722_v10 = vld [vmem:[#allocation8 + $0xc8] sm:$0xff]  }
 0x5c3   :  { %v10976_v5 = vpack.c.bf16 %v12860_v13, %v12859_v56  ;;  %v10982_v48 = vpack.c.bf16 %v12862_v21, %v12861_v11  ;;  %v4708_v50 = vpack.c.bf16 %v4650_v32, %v4649_v28  ;;  %v4709_v8 = vpack.c.bf16 %v4652_v19, %v4651_v43  ;;  %v8721_v36 = vld [vmem:[#allocation8 + $0xc0] sm:$0xff]   ;;  %v8723_v32 = vld [vmem:[#allocation8 + $0xd0] sm:$0xff]   ;;  %v3884_v3 = vld [vmem:[#allocation2 + $0x98] sm:$0xff] }
 0x5c4   :  { %v10988_v15 = vpack.c.bf16 %v12864_v16, %v12863_v30  ;;  %5231 = vmatmul.mubr.bf16.gmra.mrb[76].mxu1 %v10990_v20  ;;  %v10993_v14 = vpack.c.bf16 %v3880_v38, %v3879_v9  ;;  %v4710_v49 = vpack.c.bf16 %v4654_v1, %v4653_v41  ;;  %v4711_v47 = vpack.c.bf16 %v4656_v54, %v4655_v12  ;;  %v4657_v43 = vld [vmem:[#allocation2 + $0x10a] sm:$0xff]  ;;  %v4658_v19 = vld [vmem:[#allocation2 + $0x112] sm:$0xff]  ;;  %v4659_v33 = vld [vmem:[#allocation2 + $0x122] sm:$0xff] }
 0x5c5   :  { %7608 = vmatmul.mubr.bf16.gmra.mrb[136].mxu0 %v4708_v50  ;;  %5238 = vmatprep.mubr.bf16.mxu1 %v4035_v42  ;;  %v12865_v28 = vmov 0   ;;  %v3881_v42 = vld [vmem:[#allocation2 + $0x78] sm:$0xff]  ;;  %v4712_v60 = vpack.c.bf16 %v4658_v19, %v4657_v43  ;;  %v4713_v51 = vpack.c.bf16 %v4660_v53, %v4659_v33  ;;  %v4662_v13 = vld [vmem:[#allocation2 + $0x142] sm:$0xff]  ;;  %v4665_v38 = vld [vmem:[#allocation2 + $0x16a] sm:$0xff] }
 0x5c6   :  { %7611 = vmatprep.mubr.bf16.mxu0 %v4709_v8  ;;  %5480 = vmatpush1.bf16.msra.mxu1 %v8721_v36  ;;  %v10999_v7 = vpack.c.bf16 %v3882_v25, %v3881_v42  ;;  %v4661_v56 = vld [vmem:[#allocation2 + $0x13a] sm:$0xff]  ;;  %v4663_v11 = vld [vmem:[#allocation2 + $0x152] sm:$0xff]  ;;  %v3885_v9 = vld [vmem:[#allocation2 + $0xa8] sm:$0xff] }
 0x5c7   :  { %5481 = vmatprep.subr.bf16.mxu1 %v12865_v28  ;;  %v4664_v21 = vld [vmem:[#allocation2 + $0x15a] sm:$0xff]  ;;  %v4714_v16 = vpack.c.bf16 %v4662_v13, %v4661_v56  ;;  %v4666_v41 = vld [vmem:[#allocation2 + $0x172] sm:$0xff]  ;;  %v4667_v1 = vld [vmem:[#allocation2 + $0x182] sm:$0xff] }
 0x5c8   :  { %v4715_v50 = vpack.c.bf16 %v4664_v21, %v4663_v11  ;;  %v8724_v8 = vld [vmem:[#allocation8 + $0xd8] sm:$0xff]   ;;  %v4668_v12 = vld [vmem:[#allocation2 + $0x18a] sm:$0xff]  ;;  %v4716_v36 = vpack.c.bf16 %v4666_v41, %v4665_v38  ;;  %v4671_v25 = vld [vmem:[#allocation2 + $0x1e2] sm:$0xff] }
 0x5c9   :  { %v3888_v42 = vld [vmem:[#allocation2 + $0xc8] sm:$0xff]  ;;  %v8725_v53 = vld [vmem:[#allocation8 + $0xe0] sm:$0xff]  }
 0x5ca   :  { %5482 = vmatpush1.bf16.msra.mxu1 %v8722_v10  ;;  %v4670_v10 = vld [vmem:[#allocation2 + $0x1a2] sm:$0xff]  ;;  %v4672_v43 = vld [vmem:[#allocation2 + $0x1ea] sm:$0xff]  ;;  %v4676_v56 = vld [vmem:[#allocation2 + $0x21a] sm:$0xff] }
 0x5cb   :  { %5483 = vmatprep.subr.bf16.mxu1 %v12865_v28  ;;  %v4719_v33 = vpack.c.bf16 %v4672_v43, %v4671_v25  ;;  %v3896_v43 = vld [vmem:[#allocation2 + $0x128] sm:$0xff] }
 0x5cc   :  { %5239 = vmatmul.mubr.bf16.gmra.mrb[80].mxu1 %v10993_v14 }
 0x5cd   :  { %7612 = vmatmul.mubr.bf16.gmra.mrb[140].mxu0 %v4710_v49  ;;  %5246 = vmatprep.mubr.bf16.mxu1 %v10835_v2  ;;  %v3883_v2 = vld [vmem:[#allocation2 + $0x90] sm:$0xff]  ;;  %v4717_v49 = vpack.c.bf16 %v4668_v12, %v4667_v1  ;;  %v8726_v12 = vld [vmem:[#allocation8 + $0xe8] sm:$0xff]  }
 0x5ce   :  { %7615 = vmatprep.mubr.bf16.mxu0 %v4711_v47  ;;  %5484 = vmatpush1.bf16.msra.mxu1 %v8723_v32  ;;  %v11004_v30 = vpack.c.bf16 %v3884_v3, %v3883_v2  ;;  %v3887_v47 = vld [vmem:[#allocation2 + $0xc0] sm:$0xff]  ;;  %v4675_v3 = vld [vmem:[#allocation2 + $0x212] sm:$0xff] }
 0x5cf   :  { %5485 = vmatprep.subr.bf16.mxu1 %v12865_v28  ;;  %v11013_v19 = vpack.c.bf16 %v3888_v42, %v3887_v47  ;;  %v4674_v2 = vld [vmem:[#allocation2 + $0x202] sm:$0xff]  ;;  %v4721_v21 = vpack.c.bf16 %v4676_v56, %v4675_v3  ;;  %v4684_v47 = vld [vmem:[#allocation2 + $0x27a] sm:$0xff]  ;;  %v8727_v56 = vld [vmem:[#allocation8 + $0xf0] sm:$0xff]  }
 0x5d2   :  { %5486 = vmatpush1.bf16.msra.mxu1 %v8724_v8  ;;  %v4678_v8 = vld [vmem:[#allocation2 + $0x232] sm:$0xff] }
 0x5d3   :  { %5487 = vmatprep.subr.bf16.mxu1 %v12865_v28 }
 0x5d4   :  { %5247 = vmatmul.mubr.bf16.gmra.mrb[84].mxu1 %v10999_v7 }
 0x5d5   :  { %7616 = vmatmul.mubr.bf16.gmra.mrb[144].mxu0 %v4712_v60  ;;  %5254 = vmatprep.mubr.bf16.mxu1 %v10841_v62  ;;  %v3886_v62 = vld [vmem:[#allocation2 + $0xb0] sm:$0xff]  ;;  %v3889_v60 = vld [vmem:[#allocation2 + $0xd8] sm:$0xff] }
 0x5d6   :  { %7619 = vmatprep.mubr.bf16.mxu0 %v4713_v51  ;;  %v11009_v54 = vpack.c.bf16 %v3886_v62, %v3885_v9  ;;  %v4673_v51 = vld [vmem:[#allocation2 + $0x1fa] sm:$0xff]  ;;  %5488 = vmatpush1.bf16.msra.mxu1 %v8725_v53  ;;  %v4679_v9 = vld [vmem:[#allocation2 + $0x242] sm:$0xff]  ;;  %v4680_v62 = vld [vmem:[#allocation2 + $0x24a] sm:$0xff] }
 0x5d7   :  { %5489 = vmatprep.subr.bf16.mxu1 %v12865_v28  ;;  %v4720_v11 = vpack.c.bf16 %v4674_v2, %v4673_v51  ;;  %v4723_v1 = vpack.c.bf16 %v4680_v62, %v4679_v9  ;;  %v4686_v53 = vld [vmem:[#allocation2 + $0x292] sm:$0xff] }
 0x5da   :  { %5490 = vmatpush1.bf16.msra.mxu1 %v8726_v12  ;;  %v4694_v12 = vld [vmem:[#allocation2 + $0x2f2] sm:$0xff] }
 0x5db   :  { %5491 = vmatprep.subr.bf16.mxu1 %v12865_v28 }
 0x5dc   :  { %5255 = vmatmul.mubr.bf16.gmra.mrb[88].mxu1 %v11004_v30 }
 0x5dd   :  { %7620 = vmatmul.mubr.bf16.gmra.mrb[148].mxu0 %v4714_v16  ;;  %5262 = vmatprep.mubr.bf16.mxu1 %v10847_v27  ;;  %v4669_v27 = vld [vmem:[#allocation2 + $0x19a] sm:$0xff] }
 0x5de   :  { %7623 = vmatprep.mubr.bf16.mxu0 %v4715_v50  ;;  %v4718_v32 = vpack.c.bf16 %v4670_v10, %v4669_v27  ;;  %v3892_v16 = vld [vmem:[#allocation2 + $0xf8] sm:$0xff]  ;;  %v4677_v50 = vld [vmem:[#allocation2 + $0x22a] sm:$0xff]  ;;  %v4682_v27 = vld [vmem:[#allocation2 + $0x262] sm:$0xff]  ;;  %5492 = vmatpush1.bf16.msra.mxu1 %v8727_v56 }
 0x5df   :  { %v4722_v41 = vpack.c.bf16 %v4678_v8, %v4677_v50  ;;  %v4683_v10 = vld [vmem:[#allocation2 + $0x272] sm:$0xff]  ;;  %v4692_v50 = vld [vmem:[#allocation2 + $0x2da] sm:$0xff]  ;;  %5493 = vmatprep.subr.bf16.mxu1 %v12865_v28 }
 0x5e0   :  { %v4725_v25 = vpack.c.bf16 %v4684_v47, %v4683_v10  ;;  %v4000_v10 = vld [vmem:[#allocation2 + $0x1b9] sm:$0xff]  ;;  %v3901_v47 = vld [vmem:[#allocation2 + $0x168] sm:$0xff] }
 0x5e1   :  { %v3909_v56 = vld [vmem:[#allocation2 + $0x1f8] sm:$0xff] }
 0x5e4   :  { %5263 = vmatmul.mubr.bf16.gmra.mrb[92].mxu1 %v11009_v54 }
 0x5e5   :  { %7624 = vmatmul.mubr.bf16.gmra.mrb[152].mxu0 %v4716_v36  ;;  %5270 = vmatprep.mubr.bf16.mxu1 %v10853_v45  ;;  %v3890_v45 = vld [vmem:[#allocation2 + $0xe0] sm:$0xff]  ;;  %v3893_v36 = vld [vmem:[#allocation2 + $0x108] sm:$0xff] }
 0x5e6   :  { %7627 = vmatprep.mubr.bf16.mxu0 %v4717_v49  ;;  %v11018_v13 = vpack.c.bf16 %v3890_v45, %v3889_v60  ;;  %v4681_v49 = vld [vmem:[#allocation2 + $0x25a] sm:$0xff]  ;;  %v4687_v60 = vld [vmem:[#allocation2 + $0x2a2] sm:$0xff]  ;;  %v4688_v45 = vld [vmem:[#allocation2 + $0x2aa] sm:$0xff] }
 0x5e7   :  { %v4727_v3 = vpack.c.bf16 %v4688_v45, %v4687_v60  ;;  %v3907_v45 = vld [vmem:[#allocation2 + $0x1e0] sm:$0xff] }
 0x5ec   :  { %5271 = vmatmul.mubr.bf16.gmra.mrb[96].mxu1 %v11013_v19 }
 0x5ed   :  { %7628 = vmatmul.mubr.bf16.gmra.mrb[156].mxu0 %v4718_v32  ;;  %5278 = vmatprep.mubr.bf16.mxu1 %v10859_v6  ;;  %v3891_v6 = vld [vmem:[#allocation2 + $0xf0] sm:$0xff]  ;;  %v4724_v32 = vpack.c.bf16 %v4682_v27, %v4681_v49  ;;  %v8728_v49 = vld [vmem:[#allocation8 + $0xf8] sm:$0xff]  }
 0x5ee   :  { %7631 = vmatprep.mubr.bf16.mxu0 %v4719_v33  ;;  %v11022_v38 = vpack.c.bf16 %v3892_v16, %v3891_v6  ;;  %v4685_v33 = vld [vmem:[#allocation2 + $0x28a] sm:$0xff]  ;;  %v4690_v6 = vld [vmem:[#allocation2 + $0x2c2] sm:$0xff]  ;;  %v4691_v16 = vld [vmem:[#allocation2 + $0x2d2] sm:$0xff]  ;;  %5494 = vmatpush1.bf16.msra.mxu1 %v8728_v49 }
 0x5ef   :  { %v4726_v2 = vpack.c.bf16 %v4686_v53, %v4685_v33  ;;  %v4729_v62 = vpack.c.bf16 %v4692_v50, %v4691_v16  ;;  %v3999_v27 = vld [vmem:[#allocation2 + $0x1b1] sm:$0xff]  ;;  %5752 = vmatprep.subr.bf16.mxu1 %v12865_v28 }
 0x5f0   :  { %v3906_v53 = vld [vmem:[#allocation2 + $0x1d0] sm:$0xff] }
 0x5f1   :  { %v3914_v16 = vld [vmem:[#allocation2 + $0x230] sm:$0xff] }
 0x5f4   :  { %5279 = vmatmul.mubr.bf16.gmra.mrb[100].mxu1 %v11018_v13 }
 0x5f5   :  { %7632 = vmatmul.mubr.bf16.gmra.mrb[160].mxu0 %v4720_v11  ;;  %5286 = vmatprep.mubr.bf16.mxu1 %v10865_v37  ;;  %v3894_v37 = vld [vmem:[#allocation2 + $0x110] sm:$0xff]  ;;  %v3897_v11 = vld [vmem:[#allocation2 + $0x138] sm:$0xff] }
 0x5f6   :  { %7635 = vmatprep.mubr.bf16.mxu0 %v4721_v21  ;;  %v11027_v42 = vpack.c.bf16 %v3894_v37, %v3893_v36  ;;  %v4689_v21 = vld [vmem:[#allocation2 + $0x2ba] sm:$0xff] }
 0x5f7   :  { %v4728_v9 = vpack.c.bf16 %v4690_v6, %v4689_v21  ;;  %v3912_v21 = vld [vmem:[#allocation2 + $0x218] sm:$0xff] }
 0x5fc   :  { %5287 = vmatmul.mubr.bf16.gmra.mrb[104].mxu1 %v11022_v38 }
 0x5fd   :  { %7636 = vmatmul.mubr.bf16.gmra.mrb[164].mxu0 %v4722_v41  ;;  %5294 = vmatprep.mubr.bf16.mxu1 %v10871_v4  ;;  %v3895_v4 = vld [vmem:[#allocation2 + $0x120] sm:$0xff]  ;;  %v3900_v41 = vld [vmem:[#allocation2 + $0x158] sm:$0xff] }
 0x5fe   :  { %7639 = vmatprep.mubr.bf16.mxu0 %v4723_v1  ;;  %v11031_v51 = vpack.c.bf16 %v3896_v43, %v3895_v4  ;;  %v4693_v1 = vld [vmem:[#allocation2 + $0x2ea] sm:$0xff] }
 0x5ff   :  { %v4730_v37 = vpack.c.bf16 %v4694_v12, %v4693_v1  ;;  %v3903_v4 = vld [vmem:[#allocation2 + $0x1b0] sm:$0xff]  ;;  %v8769_v43 = vld [vmem:[#allocation2 + $0x8] sm:$0xff]  ;;  %v3920_v1 = vld [vmem:[#allocation2 + $0x278] sm:$0xff] }
 0x600   :  { %v3951_v33 = vpack.c.bf16 %v8769_v43, %v3903_v4 }
 0x604   :  { %5295 = vmatmul.mubr.bf16.gmra.mrb[108].mxu1 %v11027_v42 }
 0x605   :  { %7640 = vmatmul.mubr.bf16.gmra.mrb[168].mxu0 %v4724_v32  ;;  %5302 = vmatprep.mubr.bf16.mxu1 %v10877_v57  ;;  %v3898_v57 = vld [vmem:[#allocation2 + $0x140] sm:$0xff]  ;;  %v3902_v32 = vld [vmem:[#allocation2 + $0x170] sm:$0xff] }
 0x606   :  { %7643 = vmatprep.mubr.bf16.mxu0 %v4725_v25  ;;  %v11036_v8 = vpack.c.bf16 %v3898_v57, %v3897_v11  ;;  %v11045_v25 = vpack.c.bf16 %v3902_v32, %v3901_v47  ;;  %v3910_v11 = vld [vmem:[#allocation2 + $0x200] sm:$0xff] }
 0x607   :  { %v11057_v57 = vpack.c.bf16 %v3910_v11, %v3909_v56  ;;  %v3926_v47 = vld [vmem:[#allocation2 + $0x2c0] sm:$0xff] }
 0x60c   :  { %5303 = vmatmul.mubr.bf16.gmra.mrb[112].mxu1 %v11031_v51 }
 0x60d   :  { %7644 = vmatmul.mubr.bf16.gmra.mrb[172].mxu0 %v4726_v2  ;;  %5310 = vmatprep.mubr.bf16.mxu1 %v10883_v17  ;;  %v3899_v17 = vld [vmem:[#allocation2 + $0x150] sm:$0xff]  ;;  %v3908_v2 = vld [vmem:[#allocation2 + $0x1e8] sm:$0xff] }
 0x60e   :  { %7647 = vmatprep.mubr.bf16.mxu0 %v4727_v3  ;;  %v11040_v36 = vpack.c.bf16 %v3900_v41, %v3899_v17  ;;  %v11053_v3 = vpack.c.bf16 %v3908_v2, %v3907_v45  ;;  %v3918_v17 = vld [vmem:[#allocation2 + $0x260] sm:$0xff] }
 0x614   :  { %5311 = vmatmul.mubr.bf16.gmra.mrb[116].mxu1 %v11036_v8 }
 0x615   :  { %7648 = vmatmul.mubr.bf16.gmra.mrb[176].mxu0 %v4728_v9  ;;  %5318 = vmatprep.mubr.bf16.mxu1 %v10893_v44  ;;  %v4047_v44 = vpack.c.bf16 %v4000_v10, %v3999_v27  ;;  %v3916_v9 = vld [vmem:[#allocation2 + $0x248] sm:$0xff] }
 0x616   :  { %7651 = vmatprep.mubr.bf16.mxu0 %v4729_v62  ;;  %v3924_v27 = vld [vmem:[#allocation2 + $0x2a8] sm:$0xff] }
 0x61c   :  { %5319 = vmatmul.mubr.bf16.gmra.mrb[120].mxu1 %v11040_v36 }
 0x61d   :  { %7652 = vmatmul.mubr.bf16.gmra.mrb[180].mxu0 %v4730_v37  ;;  %5326 = vmatprep.mubr.bf16.mxu1 %v10899_v52  ;;  %v3905_v52 = vld [vmem:[#allocation2 + $0x1c8] sm:$0xff]  ;;  %v3922_v37 = vld [vmem:[#allocation2 + $0x290] sm:$0xff] }
 0x61e   :  { %v11049_v60 = vpack.c.bf16 %v3906_v53, %v3905_v52  ;;  %v3929_v53 = vld [vmem:[#allocation2 + $0x2e8] sm:$0xff] }
 0x624   :  { %5327 = vmatmul.mubr.bf16.gmra.mrb[124].mxu1 %v11045_v25 }
 0x625   :  { %5334 = vmatprep.mubr.bf16.mxu1 %v4047_v44  ;;  %v3927_v44 = vld [vmem:[#allocation2 + $0x2d0] sm:$0xff] }
 0x62c   :  { %5335 = vmatmul.mubr.bf16.gmra.mrb[128].mxu1 %v3951_v33 }
 0x62d   :  { %5342 = vmatprep.mubr.bf16.mxu1 %v10907_v39  ;;  %v3911_v39 = vld [vmem:[#allocation2 + $0x210] sm:$0xff] }
 0x62e   :  { %v11061_v6 = vpack.c.bf16 %v3912_v21, %v3911_v39  ;;  %v3931_v21 = vld [vmem:[#allocation2 + $0x300] sm:$0xff] }
 0x634   :  { %5343 = vmatmul.mubr.bf16.gmra.mrb[132].mxu1 %v11049_v60 }
 0x635   :  { %5350 = vmatprep.mubr.bf16.mxu1 %v10915_v26  ;;  %v3913_v26 = vld [vmem:[#allocation2 + $0x228] sm:$0xff] }
 0x636   :  { %v11065_v50 = vpack.c.bf16 %v3914_v16, %v3913_v26  ;;  %v4029_v16 = vld [vmem:[#allocation2 + $0x319] sm:$0xff] }
 0x63c   :  { %5351 = vmatmul.mubr.bf16.gmra.mrb[136].mxu1 %v11053_v3 }
 0x63d   :  { %5358 = vmatprep.mubr.bf16.mxu1 %v10922_v23  ;;  %v3915_v23 = vld [vmem:[#allocation2 + $0x240] sm:$0xff] }
 0x63e   :  { %v11069_v62 = vpack.c.bf16 %v3916_v9, %v3915_v23  ;;  %v4030_v23 = vld [vmem:[#allocation2 + $0x321] sm:$0xff] }
 0x644   :  { %5359 = vmatmul.mubr.bf16.gmra.mrb[140].mxu1 %v11057_v57 }
 0x645   :  { %5366 = vmatprep.mubr.bf16.mxu1 %v10928_v59  ;;  %v3917_v59 = vld [vmem:[#allocation2 + $0x258] sm:$0xff] }
 0x646   :  { %v11073_v41 = vpack.c.bf16 %v3918_v17, %v3917_v59 }
 0x64c   :  { %5367 = vmatmul.mubr.bf16.gmra.mrb[144].mxu1 %v11061_v6 }
 0x64d   :  { %5374 = vmatprep.mubr.bf16.mxu1 %v10934_v22  ;;  %v3919_v22 = vld [vmem:[#allocation2 + $0x270] sm:$0xff] }
 0x64e   :  { %v11077_v12 = vpack.c.bf16 %v3920_v1, %v3919_v22  ;;  %v4062_v22 = vpack.c.bf16 %v4030_v23, %v4029_v16  ;;  %v8730_v23 = vld [vmem:[#allocation8 + $0x108] sm:$0xff]  }
 0x654   :  { %5375 = vmatmul.mubr.bf16.gmra.mrb[148].mxu1 %v11065_v50 }
 0x655   :  { %5382 = vmatprep.mubr.bf16.mxu1 %v10940_v35  ;;  %v3921_v35 = vld [vmem:[#allocation2 + $0x288] sm:$0xff] }
 0x656   :  { %v11081_v49 = vpack.c.bf16 %v3922_v37, %v3921_v35  ;;  %v3934_v35 = vld [vmem:[#allocation2 + $0x320] sm:$0xff] }
 0x65c   :  { %5383 = vmatmul.mubr.bf16.gmra.mrb[152].mxu1 %v11069_v62 }
 0x65d   :  { %5390 = vmatprep.mubr.bf16.mxu1 %v10946_v24  ;;  %v3923_v24 = vld [vmem:[#allocation2 + $0x2a0] sm:$0xff] }
 0x65e   :  { %v11085_v10 = vpack.c.bf16 %v3924_v27, %v3923_v24 }
 0x664   :  { %5391 = vmatmul.mubr.bf16.gmra.mrb[156].mxu1 %v11073_v41 }
 0x665   :  { %5398 = vmatprep.mubr.bf16.mxu1 %v10952_v63  ;;  %v3925_v63 = vld [vmem:[#allocation2 + $0x2b8] sm:$0xff] }
 0x666   :  { %v11089_v32 = vpack.c.bf16 %v3926_v47, %v3925_v63  ;;  %v4063_v47 = vld [vmem:[#allocation2 + $0x2] sm:$0xff] }
 0x66c   :  { %5399 = vmatmul.mubr.bf16.gmra.mrb[160].mxu1 %v11077_v12 }
 0x66d   :  { %5406 = vmatprep.mubr.bf16.mxu1 %v10958_v61 }
 0x674   :  { %5407 = vmatmul.mubr.bf16.gmra.mrb[164].mxu1 %v11081_v49 }
 0x675   :  { %5414 = vmatprep.mubr.bf16.mxu1 %v10964_v58  ;;  %v3928_v58 = vld [vmem:[#allocation2 + $0x2d8] sm:$0xff] }
 0x676   :  { %v11101_v52 = vpack.c.bf16 %v3928_v58, %v3927_v44  ;;  %v4064_v44 = vld [vmem:[#allocation2 + $0xa] sm:$0xff] }
 0x67c   :  { %5415 = vmatmul.mubr.bf16.gmra.mrb[168].mxu1 %v11085_v10 }
 0x67d   :  { %5422 = vmatprep.mubr.bf16.mxu1 %v10970_v18 }
 0x684   :  { %5423 = vmatmul.mubr.bf16.gmra.mrb[172].mxu1 %v11089_v32  ;;  %v11093_v61 = vpop.f32.mrb[128].mxu0 }
 0x685   :  { %5430 = vmatprep.mubr.bf16.mxu1 %v10976_v5  ;;  %v11095_v4 = vpop.f32.mrb[129].mxu0  ;;  %v3930_v5 = vld [vmem:[#allocation2 + $0x2f0] sm:$0xff] }
 0x686   :  { %v11097_v43 = vpop.f32.mrb[130].mxu0  ;;  %v11113_v11 = vpack.c.bf16 %v3930_v5, %v3929_v53  ;;  %v4127_v5 = vpack.c.bf16 %v4064_v44, %v4063_v47  ;;  %v8731_v47 = vld [vmem:[#allocation8 + $0x110] sm:$0xff]  }
 0x687   :  { %v11099_v33 = vpop.f32.mrb[131].mxu0 }
 0x68c   :  { %5431 = vmatmul.mubr.bf16.gmra.mrb[176].mxu1 %v11101_v52  ;;  %v11105_v18 = vpop.f32.mrb[132].mxu0 }
 0x68d   :  { %5438 = vmatprep.mubr.bf16.mxu1 %v10982_v48  ;;  %v11107_v45 = vpop.f32.mrb[133].mxu0  ;;  %v3932_v48 = vld [vmem:[#allocation2 + $0x308] sm:$0xff] }
 0x68e   :  { %v11109_v2 = vpop.f32.mrb[134].mxu0  ;;  %v11125_v17 = vpack.c.bf16 %v3932_v48, %v3931_v21  ;;  %v8729_v48 = vld [vmem:[#allocation8 + $0x100] sm:$0xff]  }
 0x68f   :  { %v11111_v56 = vpop.f32.mrb[135].mxu0 }
 0x694   :  { %5439 = vmatmul.mubr.bf16.gmra.mrb[180].mxu1 %v11113_v11 }
 0x695   :  { %5446 = vmatprep.mubr.bf16.mxu1 %v10988_v15  ;;  %v3933_v15 = vld [vmem:[#allocation2 + $0x318] sm:$0xff] }
 0x696   :  { %v11136_v63 = vpack.c.bf16 %v3934_v35, %v3933_v15  ;;  %v4066_v15 = vld [vmem:[#allocation2 + $0x22] sm:$0xff] }
 0x698   :  { %v11117_v39 = vpop.f32.mrb[136].mxu0 }
 0x699   :  { %v11119_v26 = vpop.f32.mrb[137].mxu0 }
 0x69a   :  { %v11121_v9 = vpop.f32.mrb[138].mxu0 }
 0x69b   :  { %v11123_v59 = vpop.f32.mrb[139].mxu0 }
 0x69c   :  { %5447 = vmatmul.mubr.bf16.gmra.mrb[184].mxu1 %v11125_v17 }
 0x69d   :  { %5454 = vmatprep.mubr.bf16.mxu1 %v4062_v22  ;;  %v4065_v22 = vld [vmem:[#allocation2 + $0x1a] sm:$0xff] }
 0x6a0   :  { %v11128_v1 = vpop.f32.mrb[140].mxu0 }
 0x6a1   :  { %v11130_v37 = vpop.f32.mrb[141].mxu0 }
 0x6a2   :  { %v11132_v24 = vpop.f32.mrb[142].mxu0 }
 0x6a3   :  { %v11134_v27 = vpop.f32.mrb[143].mxu0 }
 0x6a4   :  { %5455 = vmatmul.mubr.bf16.gmra.mrb[188].mxu1 %v11136_v63 }
 0x6a5   :  { %5495 = vmatprep.mubr.bf16.mxu1 %v10809_v29 }
 0x6a8   :  { %v11140_v58 = vpop.f32.mrb[144].mxu0 }
 0x6a9   :  { %12866 = vst [vmem:[#allocation18_spill] sm:$0xff] %v11140_v58  ;;  %v11142_v53 = vpop.f32.mrb[145].mxu0 }
 0x6aa   :  { %v11144_v21 = vpop.f32.mrb[146].mxu0 }
 0x6ab   :  { %12867 = vst [vmem:[#allocation19_spill] sm:$0xff] %v11144_v21  ;;  %v11146_v16 = vpop.f32.mrb[147].mxu0  ;;  %v11158_v21 = vpack.c.bf16 %v4066_v15, %v4065_v22 }
 0x6ac   :  { %5496 = vmatmul.mubr.bf16.vlgmr.msra.gmra.mrb[64].mxu1 %v4127_v5 }
 0x6ad   :  { %5503 = vmatprep.mubr.bf16.mxu1 %v10885_v0  ;;  %5753 = vmatpush1.bf16.msra.mxu1 %v8729_v48  ;;  %v8732_v0 = vld [vmem:[#allocation8 + $0x118] sm:$0xff]  }
 0x6ae   :  { %5754 = vmatprep.subr.bf16.mxu1 %v12865_v28 }
 0x6b0   :  { %v11150_v29 = vpop.f32.mrb[148].mxu0 }
 0x6b1   :  { %v11152_v35 = vpop.f32.mrb[149].mxu0  ;;  %5755 = vmatpush1.bf16.msra.mxu1 %v8730_v23 }
 0x6b2   :  { %v11154_v58 = vpop.f32.mrb[150].mxu0  ;;  %5756 = vmatprep.subr.bf16.mxu1 %v12865_v28 }
 0x6b3   :  { %12868 = vst [vmem:[#allocation22_spill] sm:$0xff] %v11154_v58  ;;  %v11156_v44 = vpop.f32.mrb[151].mxu0  ;;  %v8733_v58 = vld [vmem:[#allocation8 + $0x120] sm:$0xff]  }
 0x6b4   :  { %5504 = vmatmul.mubr.bf16.gmra.mrb[68].mxu1 %v11158_v21 }
 0x6b5   :  { %5511 = vmatprep.mubr.bf16.mxu1 %v10990_v20  ;;  %5757 = vmatpush1.bf16.msra.mxu1 %v8731_v47  ;;  %v8734_v20 = vld [vmem:[#allocation8 + $0x128] sm:$0xff]  }
 0x6b6   :  { %5758 = vmatprep.subr.bf16.mxu1 %v12865_v28 }
 0x6b8   :  { %v11164_v5 = vpop.f32.mrb[152].mxu0 }
 0x6b9   :  { %12869 = vst [vmem:[#allocation23_spill] sm:$0xff] %v11164_v5  ;;  %v11166_v48 = vpop.f32.mrb[153].mxu0  ;;  %5759 = vmatpush1.bf16.msra.mxu1 %v8732_v0  ;;  %v8735_v0 = vld [vmem:[#allocation8 + $0x130] sm:$0xff]  }
 0x6ba   :  { %v11168_v23 = vpop.f32.mrb[154].mxu0  ;;  %5760 = vmatprep.subr.bf16.mxu1 %v12865_v28 }
 0x6bb   :  { %12870 = vst [vmem:[#allocation24_spill] sm:$0xff] %v11168_v23  ;;  %v11170_v22 = vpop.f32.mrb[155].mxu0 }
 0x6bc   :  { %5512 = vmatmul.mubr.bf16.gmra.mrb[72].mxu1 %v10801_v55  ;;  %v8736_v55 = vld [vmem:[#allocation8 + $0x138] sm:$0xff]  }
 0x6bd   :  { %5519 = vmatprep.mubr.bf16.mxu1 %v10993_v14  ;;  %5761 = vmatpush1.bf16.msra.mxu1 %v8733_v58 }
 0x6be   :  { %5762 = vmatprep.subr.bf16.mxu1 %v12865_v28 }
 0x6c0   :  { %v11176_v15 = vpop.f32.mrb[156].mxu0 }
 0x6c1   :  { %12871 = vst [vmem:[#allocation28_spill] sm:$0xff] %v11176_v15  ;;  %v11178_v47 = vpop.f32.mrb[157].mxu0  ;;  %5763 = vmatpush1.bf16.msra.mxu1 %v8734_v20  ;;  %v8737_v20 = vld [vmem:[#allocation8 + $0x140] sm:$0xff]  }
 0x6c2   :  { %12872 = vst [vmem:[#allocation15_spill] sm:$0xff] %v11178_v47  ;;  %v11180_v5 = vpop.f32.mrb[158].mxu0  ;;  %5764 = vmatprep.subr.bf16.mxu1 %v12865_v28  ;;  %v8753_v47 = vld [vmem:[#allocation8 + $0x1c0] sm:$0xff]  }
 0x6c3   :  { %12873 = vst [vmem:[#allocation16_spill] sm:$0xff] %v11180_v5  ;;  %v11182_v23 = vpop.f32.mrb[159].mxu0 }
 0x6c4   :  { %12874 = vst [vmem:[#allocation17_spill] sm:$0xff] %v11182_v23  ;;  %5520 = vmatmul.mubr.bf16.gmra.mrb[76].mxu1 %v10811_v46  ;;  %v8738_v46 = vld [vmem:[#allocation8 + $0x148] sm:$0xff]  }
 0x6c5   :  { %5527 = vmatprep.mubr.bf16.mxu1 %v10999_v7  ;;  %5765 = vmatpush1.bf16.msra.mxu1 %v8735_v0 }
 0x6c6   :  { %5766 = vmatprep.subr.bf16.mxu1 %v12865_v28 }
 0x6c8   :  { %v11188_v14 = vpop.f32.mrb[160].mxu0 }
 0x6c9   :  { %12875 = vst [vmem:[#allocation20_spill] sm:$0xff] %v11188_v14  ;;  %v11190_v58 = vpop.f32.mrb[161].mxu0  ;;  %5767 = vmatpush1.bf16.msra.mxu1 %v8736_v55  ;;  %v8739_v55 = vld [vmem:[#allocation8 + $0x150] sm:$0xff]  }
 0x6ca   :  { %12876 = vst [vmem:[#allocation21_spill] sm:$0xff] %v11190_v58  ;;  %v11192_v15 = vpop.f32.mrb[162].mxu0  ;;  %5768 = vmatprep.subr.bf16.mxu1 %v12865_v28 }
 0x6cb   :  { %12877 = vst [vmem:[#allocation27_spill] sm:$0xff] %v11192_v15  ;;  %v11194_v5 = vpop.f32.mrb[163].mxu0 }
 0x6cc   :  { %12878 = vst [vmem:[#allocation30_spill] sm:$0xff] %v11194_v5  ;;  %5528 = vmatmul.mubr.bf16.gmra.mrb[80].mxu1 %v10818_v34  ;;  %v8745_v5 = vld [vmem:[#allocation8 + $0x180] sm:$0xff]  }
 0x6cd   :  { %5535 = vmatprep.mubr.bf16.mxu1 %v11004_v30  ;;  %5769 = vmatpush1.bf16.msra.mxu1 %v8737_v20 }
 0x6ce   :  { %5770 = vmatprep.subr.bf16.mxu1 %v12865_v28 }
 0x6d0   :  { %v11200_v7 = vpop.f32.mrb[164].mxu0 }
 0x6d1   :  { %12879 = vst [vmem:[#allocation31_spill] sm:$0xff] %v11200_v7  ;;  %v11202_v0 = vpop.f32.mrb[165].mxu0  ;;  %5771 = vmatpush1.bf16.msra.mxu1 %v8738_v46  ;;  %v8740_v46 = vld [vmem:[#allocation8 + $0x158] sm:$0xff]  }
 0x6d2   :  { %12880 = vst [vmem:[#allocation32_spill] sm:$0xff] %v11202_v0  ;;  %v11204_v14 = vpop.f32.mrb[166].mxu0  ;;  %5772 = vmatprep.subr.bf16.mxu1 %v12865_v28  ;;  %v4354_v0 = vld [vmem:[#allocation2 + $0x3a] sm:$0xff] }
 0x6d3   :  { %12881 = vst [vmem:[#allocation33_spill] sm:$0xff] %v11204_v14  ;;  %v11206_v15 = vpop.f32.mrb[167].mxu0 }
 0x6d4   :  { %12882 = vst [vmem:[#allocation34_spill] sm:$0xff] %v11206_v15  ;;  %5536 = vmatmul.mubr.bf16.gmra.mrb[84].mxu1 %v10887_v31  ;;  %v4077_v31 = vld [vmem:[#allocation2 + $0xaa] sm:$0xff] }
 0x6d5   :  { %5543 = vmatprep.mubr.bf16.mxu1 %v11009_v54  ;;  %5773 = vmatpush1.bf16.msra.mxu1 %v8739_v55  ;;  %v4078_v54 = vld [vmem:[#allocation2 + $0xb2] sm:$0xff] }
 0x6d6   :  { %5774 = vmatprep.subr.bf16.mxu1 %v12865_v28 }
 0x6d8   :  { %v11212_v34 = vpop.f32.mrb[168].mxu0 }
 0x6d9   :  { %12883 = vst [vmem:[#allocation35_spill] sm:$0xff] %v11212_v34  ;;  %v11214_v30 = vpop.f32.mrb[169].mxu0  ;;  %5775 = vmatpush1.bf16.msra.mxu1 %v8740_v46 }
 0x6da   :  { %12884 = vst [vmem:[#allocation26_spill] sm:$0xff] %v11214_v30  ;;  %v11216_v20 = vpop.f32.mrb[170].mxu0  ;;  %5776 = vmatprep.subr.bf16.mxu1 %v12865_v28 }
 0x6db   :  { %12885 = vst [vmem:[#allocation29_spill] sm:$0xff] %v11216_v20  ;;  %v11218_v14 = vpop.f32.mrb[171].mxu0  ;;  %v11231_v20 = vpack.c.bf16 %v4078_v54, %v4077_v31  ;;  %v8741_v31 = vld [vmem:[#allocation8 + $0x160] sm:$0xff]  }
 0x6dc   :  { %12886 = vst [vmem:[#allocation25_spill] sm:$0xff] %v11218_v14  ;;  %5544 = vmatmul.mubr.bf16.gmra.mrb[88].mxu1 %v10901_v40 }
 0x6dd   :  { %5551 = vmatprep.mubr.bf16.mxu1 %v11013_v19  ;;  %v4079_v19 = vld [vmem:[#allocation2 + $0xc2] sm:$0xff]  ;;  %5777 = vmatpush1.bf16.msra.mxu1 %v8741_v31 }
 0x6de   :  { %5778 = vmatprep.subr.bf16.mxu1 %v12865_v28  ;;  %v8742_v31 = vld [vmem:[#allocation8 + $0x168] sm:$0xff]  }
 0x6e0   :  { %v11222_v7 = vpop.f32.mrb[172].mxu0 }
 0x6e1   :  { %12887 = vst [vmem:[#allocation13_spill] sm:$0xff] %v11222_v7  ;;  %v11224_v55 = vpop.f32.mrb[173].mxu0  ;;  %v4080_v7 = vld [vmem:[#allocation2 + $0xca] sm:$0xff]  ;;  %5779 = vmatpush1.bf16.msra.mxu1 %v8742_v31  ;;  %v4189_v31 = vld [vmem:[#allocation2 + $0x180] sm:$0xff] }
 0x6e2   :  { %12888 = vst [vmem:[#allocation14_spill] sm:$0xff] %v11224_v55  ;;  %v11227_v34 = vpop.f32.mrb[174].mxu0  ;;  %v11243_v15 = vpack.c.bf16 %v4080_v7, %v4079_v19  ;;  %v4084_v19 = vld [vmem:[#allocation2 + $0xfa] sm:$0xff]  ;;  %5780 = vmatprep.subr.bf16.mxu1 %v12865_v28 }
 0x6e3   :  { %12889 = vst [vmem:[#allocation37_spill] sm:$0xff] %v11227_v34  ;;  %v11229_v30 = vpop.f32.mrb[175].mxu0  ;;  %v4082_v34 = vld [vmem:[#allocation2 + $0xe2] sm:$0xff] }
 0x6e4   :  { %12890 = vst [vmem:[#allocation38_spill] sm:$0xff] %v11229_v30  ;;  %5552 = vmatmul.mubr.bf16.gmra.mrb[92].mxu1 %v11231_v20  ;;  %v4094_v30 = vld [vmem:[#allocation2 + $0x172] sm:$0xff] }
 0x6e5   :  { %5559 = vmatprep.mubr.bf16.mxu1 %v11018_v13  ;;  %v4081_v13 = vld [vmem:[#allocation2 + $0xda] sm:$0xff] }
 0x6e6   :  { %v11256_v7 = vpack.c.bf16 %v4082_v34, %v4081_v13  ;;  %v4088_v13 = vld [vmem:[#allocation2 + $0x12a] sm:$0xff] }
 0x6e8   :  { %v11235_v40 = vpop.f32.mrb[176].mxu0 }
 0x6e9   :  { %12891 = vst [vmem:[#allocation39_spill] sm:$0xff] %v11235_v40  ;;  %v11237_v14 = vpop.f32.mrb[177].mxu0 }
 0x6ea   :  { %12892 = vst [vmem:[#allocation40_spill] sm:$0xff] %v11237_v14  ;;  %v11239_v46 = vpop.f32.mrb[178].mxu0 }
 0x6eb   :  { %12893 = vst [vmem:[#allocation41_spill] sm:$0xff] %v11239_v46  ;;  %v11241_v55 = vpop.f32.mrb[179].mxu0 }
 0x6ec   :  { %12894 = vst [vmem:[#allocation42_spill] sm:$0xff] %v11241_v55  ;;  %5560 = vmatmul.mubr.bf16.gmra.mrb[96].mxu1 %v11243_v15  ;;  %v4086_v55 = vld [vmem:[#allocation2 + $0x112] sm:$0xff] }
 0x6ed   :  { %5567 = vmatprep.mubr.bf16.mxu1 %v11022_v38  ;;  %v4083_v38 = vld [vmem:[#allocation2 + $0xf2] sm:$0xff] }
 0x6f0   :  { %v11247_v54 = vpop.f32.mrb[180].mxu0 }
 0x6f1   :  { %12895 = vst [vmem:[#allocation43_spill] sm:$0xff] %v11247_v54  ;;  %v11249_v40 = vpop.f32.mrb[181].mxu0  ;;  %v11260_v54 = vpack.c.bf16 %v4084_v19, %v4083_v38  ;;  %v4089_v19 = vld [vmem:[#allocation2 + $0x13a] sm:$0xff] }
 0x6f2   :  { %12896 = vst [vmem:[#allocation44_spill] sm:$0xff] %v11249_v40  ;;  %v11252_v14 = vpop.f32.mrb[182].mxu0  ;;  %v4085_v40 = vld [vmem:[#allocation2 + $0x10a] sm:$0xff] }
 0x6f3   :  { %12897 = vst [vmem:[#allocation45_spill] sm:$0xff] %v11252_v14  ;;  %v11254_v46 = vpop.f32.mrb[183].mxu0  ;;  %v11265_v34 = vpack.c.bf16 %v4086_v55, %v4085_v40  ;;  %v4090_v14 = vld [vmem:[#allocation2 + $0x142] sm:$0xff]  ;;  %v4092_v40 = vld [vmem:[#allocation2 + $0x15a] sm:$0xff] }
 0x6f4   :  { %12898 = vst [vmem:[#allocation46_spill] sm:$0xff] %v11254_v46  ;;  %5568 = vmatmul.mubr.bf16.gmra.mrb[100].mxu1 %v11256_v7  ;;  %v11274_v55 = vpack.c.bf16 %v4090_v14, %v4089_v19  ;;  %v4096_v19 = vld [vmem:[#allocation2 + $0x1ba] sm:$0xff] }
 0x6f5   :  { %5575 = vmatprep.mubr.bf16.mxu1 %v11027_v42  ;;  %v4087_v42 = vld [vmem:[#allocation2 + $0x122] sm:$0xff] }
 0x6f6   :  { %v11269_v38 = vpack.c.bf16 %v4088_v13, %v4087_v42  ;;  %v4190_v42 = vld [vmem:[#allocation2 + $0x188] sm:$0xff] }
 0x6f7   :  { %v4238_v46 = vpack.c.bf16 %v4190_v42, %v4189_v31  ;;  %v4100_v42 = vld [vmem:[#allocation2 + $0x1ea] sm:$0xff] }
 0x6fc   :  { %5576 = vmatmul.mubr.bf16.gmra.mrb[104].mxu1 %v11260_v54 }
 0x6fd   :  { %5583 = vmatprep.mubr.bf16.mxu1 %v11031_v51  ;;  %v8743_v51 = vld [vmem:[#allocation8 + $0x170] sm:$0xff]  }
 0x6fe   :  { %5781 = vmatpush1.bf16.msra.mxu1 %v8743_v51  ;;  %v4093_v51 = vld [vmem:[#allocation2 + $0x16a] sm:$0xff] }
 0x6ff   :  { %5782 = vmatprep.subr.bf16.mxu1 %v12865_v28  ;;  %v11282_v14 = vpack.c.bf16 %v4094_v30, %v4093_v51  ;;  %v4099_v30 = vld [vmem:[#allocation2 + $0x1e2] sm:$0xff] }
 0x700   :  { %v4102_v51 = vld [vmem:[#allocation2 + $0x202] sm:$0xff] }
 0x704   :  { %5584 = vmatmul.mubr.bf16.gmra.mrb[108].mxu1 %v11265_v34 }
 0x705   :  { %5591 = vmatprep.mubr.bf16.mxu1 %v11036_v8  ;;  %v4091_v8 = vld [vmem:[#allocation2 + $0x152] sm:$0xff] }
 0x706   :  { %v11278_v13 = vpack.c.bf16 %v4092_v40, %v4091_v8  ;;  %v4097_v40 = vld [vmem:[#allocation2 + $0x1ca] sm:$0xff] }
 0x70c   :  { %5592 = vmatmul.mubr.bf16.gmra.mrb[112].mxu1 %v11269_v38 }
 0x70d   :  { %5599 = vmatprep.mubr.bf16.mxu1 %v11040_v36  ;;  %v8744_v36 = vld [vmem:[#allocation8 + $0x178] sm:$0xff]  }
 0x70e   :  { %5783 = vmatpush1.bf16.msra.mxu1 %v8744_v36  ;;  %v11291_v36 = vpack.c.bf16 %v4100_v42, %v4099_v30  ;;  %v4108_v30 = vld [vmem:[#allocation2 + $0x24a] sm:$0xff] }
 0x70f   :  { %6041 = vmatprep.subr.bf16.mxu1 %v12865_v28 }
 0x714   :  { %5600 = vmatmul.mubr.bf16.gmra.mrb[116].mxu1 %v11274_v55 }
 0x715   :  { %5607 = vmatprep.mubr.bf16.mxu1 %v11045_v25  ;;  %v4095_v25 = vld [vmem:[#allocation2 + $0x1b2] sm:$0xff] }
 0x716   :  { %v4143_v8 = vpack.c.bf16 %v4096_v19, %v4095_v25  ;;  %v4104_v19 = vld [vmem:[#allocation2 + $0x21a] sm:$0xff] }
 0x71c   :  { %5608 = vmatmul.mubr.bf16.gmra.mrb[120].mxu1 %v11278_v13 }
 0x71d   :  { %5615 = vmatprep.mubr.bf16.mxu1 %v4238_v46  ;;  %v4098_v46 = vld [vmem:[#allocation2 + $0x1d2] sm:$0xff] }
 0x71e   :  { %v11287_v31 = vpack.c.bf16 %v4098_v46, %v4097_v40  ;;  %v4106_v40 = vld [vmem:[#allocation2 + $0x232] sm:$0xff] }
 0x724   :  { %5616 = vmatmul.mubr.bf16.gmra.mrb[124].mxu1 %v11282_v14 }
 0x725   :  { %5623 = vmatprep.mubr.bf16.mxu1 %v11049_v60  ;;  %v4101_v60 = vld [vmem:[#allocation2 + $0x1fa] sm:$0xff] }
 0x726   :  { %v11295_v25 = vpack.c.bf16 %v4102_v51, %v4101_v60  ;;  %v4110_v60 = vld [vmem:[#allocation2 + $0x262] sm:$0xff] }
 0x72c   :  { %5624 = vmatmul.mubr.bf16.gmra.mrb[128].mxu1 %v4143_v8 }
 0x72d   :  { %5631 = vmatprep.mubr.bf16.mxu1 %v11053_v3  ;;  %v4103_v3 = vld [vmem:[#allocation2 + $0x212] sm:$0xff] }
 0x72e   :  { %v11299_v8 = vpack.c.bf16 %v4104_v19, %v4103_v3  ;;  %v4112_v3 = vld [vmem:[#allocation2 + $0x27a] sm:$0xff] }
 0x734   :  { %5632 = vmatmul.mubr.bf16.gmra.mrb[132].mxu1 %v11287_v31 }
 0x735   :  { %5639 = vmatprep.mubr.bf16.mxu1 %v11057_v57  ;;  %v4105_v57 = vld [vmem:[#allocation2 + $0x22a] sm:$0xff] }
 0x736   :  { %v11303_v46 = vpack.c.bf16 %v4106_v40, %v4105_v57  ;;  %v4114_v57 = vld [vmem:[#allocation2 + $0x292] sm:$0xff] }
 0x73c   :  { %5640 = vmatmul.mubr.bf16.gmra.mrb[136].mxu1 %v11291_v36 }
 0x73d   :  { %5647 = vmatprep.mubr.bf16.mxu1 %v11061_v6  ;;  %v4107_v6 = vld [vmem:[#allocation2 + $0x242] sm:$0xff] }
 0x73e   :  { %v11307_v42 = vpack.c.bf16 %v4108_v30, %v4107_v6  ;;  %v4116_v6 = vld [vmem:[#allocation2 + $0x2aa] sm:$0xff] }
 0x744   :  { %5648 = vmatmul.mubr.bf16.gmra.mrb[140].mxu1 %v11295_v25 }
 0x745   :  { %5655 = vmatprep.mubr.bf16.mxu1 %v11065_v50  ;;  %v4109_v50 = vld [vmem:[#allocation2 + $0x25a] sm:$0xff] }
 0x746   :  { %v11311_v51 = vpack.c.bf16 %v4110_v60, %v4109_v50  ;;  %v4118_v50 = vld [vmem:[#allocation2 + $0x2c2] sm:$0xff] }
 0x74c   :  { %5656 = vmatmul.mubr.bf16.gmra.mrb[144].mxu1 %v11299_v8 }
 0x74d   :  { %5663 = vmatprep.mubr.bf16.mxu1 %v11069_v62  ;;  %v4111_v62 = vld [vmem:[#allocation2 + $0x272] sm:$0xff] }
 0x74e   :  { %v11315_v19 = vpack.c.bf16 %v4112_v3, %v4111_v62  ;;  %v4120_v62 = vld [vmem:[#allocation2 + $0x2da] sm:$0xff] }
 0x754   :  { %5664 = vmatmul.mubr.bf16.gmra.mrb[148].mxu1 %v11303_v46 }
 0x755   :  { %5671 = vmatprep.mubr.bf16.mxu1 %v11073_v41  ;;  %v4113_v41 = vld [vmem:[#allocation2 + $0x28a] sm:$0xff] }
 0x756   :  { %v11319_v40 = vpack.c.bf16 %v4114_v57, %v4113_v41  ;;  %v4122_v41 = vld [vmem:[#allocation2 + $0x2f2] sm:$0xff] }
 0x75c   :  { %5672 = vmatmul.mubr.bf16.gmra.mrb[152].mxu1 %v11307_v42 }
 0x75d   :  { %5679 = vmatprep.mubr.bf16.mxu1 %v11077_v12  ;;  %v4115_v12 = vld [vmem:[#allocation2 + $0x2a2] sm:$0xff] }
 0x75e   :  { %v11323_v30 = vpack.c.bf16 %v4116_v6, %v4115_v12  ;;  %v4124_v12 = vld [vmem:[#allocation2 + $0x30a] sm:$0xff] }
 0x75f   :  { %v4221_v6 = vld [vmem:[#allocation2 + $0x330] sm:$0xff] }
 0x764   :  { %5680 = vmatmul.mubr.bf16.gmra.mrb[156].mxu1 %v11311_v51 }
 0x765   :  { %5687 = vmatprep.mubr.bf16.mxu1 %v11081_v49  ;;  %v4117_v49 = vld [vmem:[#allocation2 + $0x2ba] sm:$0xff] }
 0x766   :  { %v11327_v60 = vpack.c.bf16 %v4118_v50, %v4117_v49 }
 0x76c   :  { %5688 = vmatmul.mubr.bf16.gmra.mrb[160].mxu1 %v11315_v19 }
 0x76d   :  { %5695 = vmatprep.mubr.bf16.mxu1 %v11085_v10  ;;  %v4119_v10 = vld [vmem:[#allocation2 + $0x2d2] sm:$0xff] }
 0x76e   :  { %v11331_v3 = vpack.c.bf16 %v4120_v62, %v4119_v10  ;;  %v4125_v10 = vld [vmem:[#allocation2 + $0x31a] sm:$0xff] }
 0x774   :  { %5696 = vmatmul.mubr.bf16.gmra.mrb[164].mxu1 %v11319_v40 }
 0x775   :  { %5703 = vmatprep.mubr.bf16.mxu1 %v11089_v32  ;;  %v4121_v32 = vld [vmem:[#allocation2 + $0x2ea] sm:$0xff] }
 0x776   :  { %v11335_v57 = vpack.c.bf16 %v4122_v41, %v4121_v32  ;;  %v4255_v32 = vld [vmem:[#allocation2 + $0x19] sm:$0xff] }
 0x777   :  { %v4353_v41 = vld [vmem:[#allocation2 + $0x32] sm:$0xff] }
 0x77c   :  { %5704 = vmatmul.mubr.bf16.gmra.mrb[168].mxu1 %v11323_v30 }
 0x77d   :  { %5711 = vmatprep.mubr.bf16.mxu1 %v11101_v52  ;;  %v4123_v52 = vld [vmem:[#allocation2 + $0x302] sm:$0xff] }
 0x77e   :  { %v11339_v49 = vpack.c.bf16 %v4124_v12, %v4123_v52  ;;  %v4416_v52 = vpack.c.bf16 %v4354_v0, %v4353_v41  ;;  %v8746_v12 = vld [vmem:[#allocation8 + $0x188] sm:$0xff]   ;;  %v4260_v0 = vld [vmem:[#allocation2 + $0x51] sm:$0xff]  ;;  %v8749_v41 = vld [vmem:[#allocation8 + $0x1a0] sm:$0xff]  }
 0x784   :  { %5712 = vmatmul.mubr.bf16.gmra.mrb[172].mxu1 %v11327_v60 }
 0x785   :  { %5719 = vmatprep.mubr.bf16.mxu1 %v11113_v11  ;;  %v4222_v11 = vld [vmem:[#allocation2 + $0x338] sm:$0xff] }
 0x786   :  { %v4254_v50 = vpack.c.bf16 %v4222_v11, %v4221_v6  ;;  %v4257_v6 = vld [vmem:[#allocation2 + $0x31] sm:$0xff]  ;;  %v4258_v11 = vld [vmem:[#allocation2 + $0x39] sm:$0xff] }
 0x78c   :  { %5720 = vmatmul.mubr.bf16.gmra.mrb[176].mxu1 %v11331_v3 }
 0x78d   :  { %5727 = vmatprep.mubr.bf16.mxu1 %v11125_v17  ;;  %v4126_v17 = vld [vmem:[#allocation2 + $0x322] sm:$0xff] }
 0x78e   :  { %v11342_v62 = vpack.c.bf16 %v4126_v17, %v4125_v10  ;;  %v4356_v10 = vld [vmem:[#allocation2 + $0x52] sm:$0xff] }
 0x78f   :  { %v8747_v17 = vld [vmem:[#allocation8 + $0x190] sm:$0xff]  }
 0x794   :  { %5728 = vmatmul.mubr.bf16.gmra.mrb[180].mxu1 %v11335_v57 }
 0x795   :  { %5735 = vmatprep.mubr.bf16.mxu1 %v11136_v63  ;;  %v4256_v63 = vld [vmem:[#allocation2 + $0x21] sm:$0xff] }
 0x796   :  { %v4319_v58 = vpack.c.bf16 %v4256_v63, %v4255_v32  ;;  %v4357_v32 = vld [vmem:[#allocation2 + $0x62] sm:$0xff]  ;;  %v4358_v63 = vld [vmem:[#allocation2 + $0x6a] sm:$0xff] }
 0x79c   :  { %5736 = vmatmul.mubr.bf16.gmra.mrb[184].mxu1 %v11339_v49 }
 0x79d   :  { %5743 = vmatprep.mubr.bf16.mxu1 %v4254_v50  ;;  %v4355_v50 = vld [vmem:[#allocation2 + $0x4a] sm:$0xff] }
 0x79e   :  { %v4417_v23 = vpack.c.bf16 %v4356_v10, %v4355_v50  ;;  %v4359_v50 = vld [vmem:[#allocation2 + $0x7a] sm:$0xff]  ;;  %v4360_v10 = vld [vmem:[#allocation2 + $0x82] sm:$0xff] }
 0x7a4   :  { %5744 = vmatmul.mubr.bf16.gmra.mrb[188].mxu1 %v11342_v62 }
 0x7a5   :  { %5784 = vmatprep.mubr.bf16.mxu1 %v11158_v21  ;;  %v11347_v21 = vpack.c.bf16 %v4258_v11, %v4257_v6  ;;  %v4261_v6 = vld [vmem:[#allocation2 + $0x61] sm:$0xff]  ;;  %v4262_v11 = vld [vmem:[#allocation2 + $0x69] sm:$0xff] }
 0x7ac   :  { %5785 = vmatmul.mubr.bf16.vlgmr.msra.gmra.mrb[64].mxu1 %v4319_v58  ;;  %v8748_v58 = vld [vmem:[#allocation8 + $0x198] sm:$0xff]  }
 0x7ad   :  { %5792 = vmatprep.mubr.bf16.mxu1 %v4416_v52  ;;  %6042 = vmatpush1.bf16.msra.mxu1 %v8745_v5  ;;  %v4259_v5 = vld [vmem:[#allocation2 + $0x49] sm:$0xff] }
 0x7ae   :  { %6043 = vmatprep.subr.bf16.mxu1 %v12865_v28  ;;  %v11352_v52 = vpack.c.bf16 %v4260_v0, %v4259_v5  ;;  %v4419_v5 = vpack.c.bf16 %v4360_v10, %v4359_v50  ;;  %v8752_v0 = vld [vmem:[#allocation8 + $0x1b8] sm:$0xff]  }
 0x7af   :  { %v4265_v50 = vld [vmem:[#allocation2 + $0x91] sm:$0xff]  ;;  %v4266_v10 = vld [vmem:[#allocation2 + $0x99] sm:$0xff] }
 0x7b1   :  { %6044 = vmatpush1.bf16.msra.mxu1 %v8746_v12  ;;  %v4418_v12 = vpack.c.bf16 %v4358_v63, %v4357_v32  ;;  %v4263_v32 = vld [vmem:[#allocation2 + $0x79] sm:$0xff]  ;;  %v4264_v63 = vld [vmem:[#allocation2 + $0x81] sm:$0xff] }
 0x7b2   :  { %6045 = vmatprep.subr.bf16.mxu1 %v12865_v28 }
 0x7b4   :  { %5793 = vmatmul.mubr.bf16.gmra.mrb[68].mxu1 %v11347_v21 }
 0x7b5   :  { %5800 = vmatprep.mubr.bf16.mxu1 %v4417_v23  ;;  %6046 = vmatpush1.bf16.msra.mxu1 %v8747_v17  ;;  %v8750_v23 = vld [vmem:[#allocation8 + $0x1a8] sm:$0xff]   ;;  %v8751_v17 = vld [vmem:[#allocation8 + $0x1b0] sm:$0xff]  }
 0x7b6   :  { %6047 = vmatprep.subr.bf16.mxu1 %v12865_v28 }
 0x7b9   :  { %6048 = vmatpush1.bf16.msra.mxu1 %v8748_v58  ;;  %v11357_v58 = vpack.c.bf16 %v4262_v11, %v4261_v6  ;;  %v8754_v11 = vld [vmem:[#allocation8 + $0x1c8] sm:$0xff]  }
 0x7ba   :  { %6049 = vmatprep.subr.bf16.mxu1 %v12865_v28 }
 0x7bc   :  { %5801 = vmatmul.mubr.bf16.gmra.mrb[72].mxu1 %v11352_v52 }
 0x7bd   :  { %5808 = vmatprep.mubr.bf16.mxu1 %v4418_v12  ;;  %6050 = vmatpush1.bf16.msra.mxu1 %v8749_v41  ;;  %v4361_v41 = vld [vmem:[#allocation2 + $0x92] sm:$0xff]  ;;  %v4362_v12 = vld [vmem:[#allocation2 + $0x9a] sm:$0xff] }
 0x7be   :  { %6051 = vmatprep.subr.bf16.mxu1 %v12865_v28  ;;  %v4420_v6 = vpack.c.bf16 %v4362_v12, %v4361_v41  ;;  %v4269_v41 = vld [vmem:[#allocation2 + $0xc1] sm:$0xff]  ;;  %v4270_v12 = vld [vmem:[#allocation2 + $0xc9] sm:$0xff] }
 0x7c1   :  { %6052 = vmatpush1.bf16.msra.mxu1 %v8750_v23  ;;  %v11362_v23 = vpack.c.bf16 %v4264_v63, %v4263_v32  ;;  %v8756_v63 = vld [vmem:[#allocation8 + $0x1d8] sm:$0xff]  }
 0x7c2   :  { %6053 = vmatprep.subr.bf16.mxu1 %v12865_v28 }
 0x7c4   :  { %5809 = vmatmul.mubr.bf16.gmra.mrb[76].mxu1 %v11357_v58 }
 0x7c5   :  { %5816 = vmatprep.mubr.bf16.mxu1 %v4419_v5  ;;  %6054 = vmatpush1.bf16.msra.mxu1 %v8751_v17  ;;  %v8755_v17 = vld [vmem:[#allocation8 + $0x1d0] sm:$0xff]   ;;  %v11367_v5 = vpack.c.bf16 %v4266_v10, %v4265_v50 }
 0x7c6   :  { %6055 = vmatprep.subr.bf16.mxu1 %v12865_v28  ;;  %v4273_v10 = vld [vmem:[#allocation2 + $0xf1] sm:$0xff] }
 0x7c9   :  { %6056 = vmatpush1.bf16.msra.mxu1 %v8752_v0  ;;  %v4267_v0 = vld [vmem:[#allocation2 + $0xa9] sm:$0xff] }
 0x7ca   :  { %6057 = vmatprep.subr.bf16.mxu1 %v12865_v28 }
 0x7cc   :  { %5817 = vmatmul.mubr.bf16.gmra.mrb[80].mxu1 %v11362_v23 }
 0x7cd   :  { %5824 = vmatprep.mubr.bf16.mxu1 %v4420_v6  ;;  %6058 = vmatpush1.bf16.msra.mxu1 %v8753_v47  ;;  %v4268_v47 = vld [vmem:[#allocation2 + $0xb1] sm:$0xff]  ;;  %v11378_v6 = vpack.c.bf16 %v4270_v12, %v4269_v41  ;;  %v4277_v41 = vld [vmem:[#allocation2 + $0x121] sm:$0xff]  ;;  %v4278_v12 = vld [vmem:[#allocation2 + $0x129] sm:$0xff] }
 0x7ce   :  { %6059 = vmatprep.subr.bf16.mxu1 %v12865_v28  ;;  %v11373_v32 = vpack.c.bf16 %v4268_v47, %v4267_v0  ;;  %v4276_v47 = vld [vmem:[#allocation2 + $0x111] sm:$0xff] }
 0x7d1   :  { %6060 = vmatpush1.bf16.msra.mxu1 %v8754_v11  ;;  %v4272_v11 = vld [vmem:[#allocation2 + $0xe1] sm:$0xff] }
 0x7d2   :  { %6061 = vmatprep.subr.bf16.mxu1 %v12865_v28 }
 0x7d4   :  { %5825 = vmatmul.mubr.bf16.gmra.mrb[84].mxu1 %v11367_v5 }
 0x7d5   :  { %5832 = vmatprep.mubr.bf16.mxu1 %v11231_v20  ;;  %6062 = vmatpush1.bf16.msra.mxu1 %v8755_v17  ;;  %v4271_v20 = vld [vmem:[#allocation2 + $0xd9] sm:$0xff] }
 0x7d6   :  { %6063 = vmatprep.subr.bf16.mxu1 %v12865_v28  ;;  %v11382_v50 = vpack.c.bf16 %v4272_v11, %v4271_v20  ;;  %v4274_v17 = vld [vmem:[#allocation2 + $0xf9] sm:$0xff]  ;;  %v11396_v20 = vpack.c.bf16 %v4278_v12, %v4277_v41  ;;  %v4280_v11 = vld [vmem:[#allocation2 + $0x141] sm:$0xff]  ;;  %v4382_v41 = vld [vmem:[#allocation2 + $0x18a] sm:$0xff] }
 0x7d7   :  { %v11387_v0 = vpack.c.bf16 %v4274_v17, %v4273_v10  ;;  %v4281_v10 = vld [vmem:[#allocation2 + $0x151] sm:$0xff]  ;;  %v4282_v17 = vld [vmem:[#allocation2 + $0x159] sm:$0xff] }
 0x7d9   :  { %6064 = vmatpush1.bf16.msra.mxu1 %v8756_v63 }
 0x7da   :  { %6065 = vmatprep.subr.bf16.mxu1 %v12865_v28 }
 0x7dc   :  { %5833 = vmatmul.mubr.bf16.gmra.mrb[88].mxu1 %v11373_v32 }
 0x7dd   :  { %5840 = vmatprep.mubr.bf16.mxu1 %v11243_v15  ;;  %v8757_v15 = vld [vmem:[#allocation8 + $0x1e0] sm:$0xff]  }
 0x7de   :  { %6066 = vmatpush1.bf16.msra.mxu1 %v8757_v15 }
 0x7df   :  { %6067 = vmatprep.subr.bf16.mxu1 %v12865_v28 }
 0x7e4   :  { %5841 = vmatmul.mubr.bf16.gmra.mrb[92].mxu1 %v11378_v6 }
 0x7e5   :  { %5848 = vmatprep.mubr.bf16.mxu1 %v11256_v7  ;;  %v4275_v7 = vld [vmem:[#allocation2 + $0x109] sm:$0xff] }
 0x7e6   :  { %v11391_v63 = vpack.c.bf16 %v4276_v47, %v4275_v7  ;;  %v11405_v7 = vpack.c.bf16 %v4282_v17, %v4281_v10  ;;  %v4284_v47 = vld [vmem:[#allocation2 + $0x171] sm:$0xff] }
 0x7e7   :  { %v4288_v17 = vld [vmem:[#allocation2 + $0x1d1] sm:$0xff] }
 0x7ec   :  { %5849 = vmatmul.mubr.bf16.gmra.mrb[96].mxu1 %v11382_v50 }
 0x7ed   :  { %5856 = vmatprep.mubr.bf16.mxu1 %v11260_v54  ;;  %v8758_v54 = vld [vmem:[#allocation8 + $0x1e8] sm:$0xff]  }
 0x7ee   :  { %6068 = vmatpush1.bf16.msra.mxu1 %v8758_v54  ;;  %v4381_v54 = vld [vmem:[#allocation2 + $0x182] sm:$0xff] }
 0x7ef   :  { %6069 = vmatprep.subr.bf16.mxu1 %v12865_v28 }
 0x7f4   :  { %5857 = vmatmul.mubr.bf16.gmra.mrb[100].mxu1 %v11387_v0 }
 0x7f5   :  { %5864 = vmatprep.mubr.bf16.mxu1 %v11265_v34  ;;  %v4279_v34 = vld [vmem:[#allocation2 + $0x139] sm:$0xff] }
 0x7f6   :  { %v11400_v15 = vpack.c.bf16 %v4280_v11, %v4279_v34  ;;  %v4430_v34 = vpack.c.bf16 %v4382_v41, %v4381_v54  ;;  %v4285_v11 = vld [vmem:[#allocation2 + $0x181] sm:$0xff]  ;;  %v4290_v54 = vld [vmem:[#allocation2 + $0x1e9] sm:$0xff] }
 0x7fc   :  { %5865 = vmatmul.mubr.bf16.gmra.mrb[104].mxu1 %v11391_v63 }
 0x7fd   :  { %5872 = vmatprep.mubr.bf16.mxu1 %v11269_v38  ;;  %v8759_v38 = vld [vmem:[#allocation8 + $0x1f0] sm:$0xff]  }
 0x7fe   :  { %6070 = vmatpush1.bf16.msra.mxu1 %v8759_v38  ;;  %v4286_v38 = vld [vmem:[#allocation2 + $0x189] sm:$0xff] }
 0x7ff   :  { %6071 = vmatprep.subr.bf16.mxu1 %v12865_v28  ;;  %v11412_v28 = vld [vmem:[#allocation8 + $0x200] sm:$0xff]   ;;  %v11415_v10 = vpack.c.bf16 %v4286_v38, %v4285_v11 }
 0x800   :  { %v4294_v38 = vld [vmem:[#allocation2 + $0x219] sm:$0xff] }
 0x804   :  { %5873 = vmatmul.mubr.bf16.gmra.mrb[108].mxu1 %v11396_v20 }
 0x805   :  { %5880 = vmatprep.mubr.bf16.mxu1 %v11274_v55  ;;  %v4283_v55 = vld [vmem:[#allocation2 + $0x169] sm:$0xff] }
 0x806   :  { %v11409_v12 = vpack.c.bf16 %v4284_v47, %v4283_v55  ;;  %v4289_v47 = vld [vmem:[#allocation2 + $0x1e1] sm:$0xff] }
 0x807   :  { %v11420_v41 = vpack.c.bf16 %v4290_v54, %v4289_v47  ;;  %v4298_v47 = vld [vmem:[#allocation2 + $0x249] sm:$0xff] }
 0x80c   :  { %5881 = vmatmul.mubr.bf16.gmra.mrb[112].mxu1 %v11400_v15 }
 0x80d   :  { %5888 = vmatprep.mubr.bf16.mxu1 %v11278_v13  ;;  %v8760_v13 = vld [vmem:[#allocation8 + $0x1f8] sm:$0xff]  }
 0x80e   :  { %6072 = vmatpush1.bf16.msra.mxu1 %v8760_v13  ;;  %v4292_v13 = vld [vmem:[#allocation2 + $0x201] sm:$0xff] }
 0x80f   :  { %7663 = vmatprep.subr.bf16.mxu1 %v11412_v28 }
 0x814   :  { %5889 = vmatmul.mubr.bf16.gmra.mrb[116].mxu1 %v11405_v7 }
 0x815   :  { %5896 = vmatprep.mubr.bf16.mxu1 %v11282_v14  ;;  %v4287_v14 = vld [vmem:[#allocation2 + $0x1c9] sm:$0xff] }
 0x816   :  { %v4335_v55 = vpack.c.bf16 %v4288_v17, %v4287_v14  ;;  %v4296_v17 = vld [vmem:[#allocation2 + $0x231] sm:$0xff] }
 0x81c   :  { %5897 = vmatmul.mubr.bf16.gmra.mrb[120].mxu1 %v11409_v12 }
 0x81d   :  { %5904 = vmatprep.mubr.bf16.mxu1 %v4430_v34  ;;  %v4291_v34 = vld [vmem:[#allocation2 + $0x1f9] sm:$0xff] }
 0x81e   :  { %v11424_v11 = vpack.c.bf16 %v4292_v13, %v4291_v34  ;;  %v4300_v34 = vld [vmem:[#allocation2 + $0x261] sm:$0xff] }
 0x824   :  { %5905 = vmatmul.mubr.bf16.gmra.mrb[124].mxu1 %v11415_v10 }
 0x825   :  { %5912 = vmatprep.mubr.bf16.mxu1 %v11287_v31  ;;  %v4293_v31 = vld [vmem:[#allocation2 + $0x211] sm:$0xff] }
 0x826   :  { %v11428_v14 = vpack.c.bf16 %v4294_v38, %v4293_v31  ;;  %v4302_v31 = vld [vmem:[#allocation2 + $0x279] sm:$0xff] }
 0x82c   :  { %5913 = vmatmul.mubr.bf16.gmra.mrb[128].mxu1 %v4335_v55 }
 0x82d   :  { %5920 = vmatprep.mubr.bf16.mxu1 %v11291_v36  ;;  %v4295_v36 = vld [vmem:[#allocation2 + $0x229] sm:$0xff] }
 0x82e   :  { %v11432_v55 = vpack.c.bf16 %v4296_v17, %v4295_v36  ;;  %v4304_v36 = vld [vmem:[#allocation2 + $0x291] sm:$0xff] }
 0x834   :  { %5921 = vmatmul.mubr.bf16.gmra.mrb[132].mxu1 %v11420_v41 }
 0x835   :  { %5928 = vmatprep.mubr.bf16.mxu1 %v11295_v25  ;;  %v4297_v25 = vld [vmem:[#allocation2 + $0x241] sm:$0xff] }
 0x836   :  { %v11436_v54 = vpack.c.bf16 %v4298_v47, %v4297_v25  ;;  %v4306_v25 = vld [vmem:[#allocation2 + $0x2a9] sm:$0xff] }
 0x83c   :  { %5929 = vmatmul.mubr.bf16.gmra.mrb[136].mxu1 %v11424_v11 }
 0x83d   :  { %5936 = vmatprep.mubr.bf16.mxu1 %v11299_v8  ;;  %v4299_v8 = vld [vmem:[#allocation2 + $0x259] sm:$0xff] }
 0x83e   :  { %v11440_v13 = vpack.c.bf16 %v4300_v34, %v4299_v8  ;;  %v4308_v8 = vld [vmem:[#allocation2 + $0x2c1] sm:$0xff] }
 0x844   :  { %5937 = vmatmul.mubr.bf16.gmra.mrb[140].mxu1 %v11428_v14 }
 0x845   :  { %5944 = vmatprep.mubr.bf16.mxu1 %v11303_v46  ;;  %v4301_v46 = vld [vmem:[#allocation2 + $0x271] sm:$0xff] }
 0x846   :  { %v11444_v38 = vpack.c.bf16 %v4302_v31, %v4301_v46  ;;  %v4310_v46 = vld [vmem:[#allocation2 + $0x2d9] sm:$0xff] }
 0x84c   :  { %5945 = vmatmul.mubr.bf16.gmra.mrb[144].mxu1 %v11432_v55 }
 0x84d   :  { %5952 = vmatprep.mubr.bf16.mxu1 %v11307_v42  ;;  %v4303_v42 = vld [vmem:[#allocation2 + $0x289] sm:$0xff] }
 0x84e   :  { %v11448_v17 = vpack.c.bf16 %v4304_v36, %v4303_v42  ;;  %v4312_v42 = vld [vmem:[#allocation2 + $0x2f1] sm:$0xff] }
 0x854   :  { %5953 = vmatmul.mubr.bf16.gmra.mrb[148].mxu1 %v11436_v54 }
 0x855   :  { %5960 = vmatprep.mubr.bf16.mxu1 %v11311_v51  ;;  %v4305_v51 = vld [vmem:[#allocation2 + $0x2a1] sm:$0xff] }
 0x856   :  { %v11452_v47 = vpack.c.bf16 %v4306_v25, %v4305_v51  ;;  %v4314_v51 = vld [vmem:[#allocation2 + $0x309] sm:$0xff] }
 0x85c   :  { %5961 = vmatmul.mubr.bf16.gmra.mrb[152].mxu1 %v11440_v13 }
 0x85d   :  { %5968 = vmatprep.mubr.bf16.mxu1 %v11315_v19  ;;  %v4307_v19 = vld [vmem:[#allocation2 + $0x2b9] sm:$0xff] }
 0x85e   :  { %v11456_v34 = vpack.c.bf16 %v4308_v8, %v4307_v19  ;;  %v4316_v19 = vld [vmem:[#allocation2 + $0x321] sm:$0xff]  ;;  %v4413_v8 = vld [vmem:[#allocation2 + $0x332] sm:$0xff] }
 0x864   :  { %5969 = vmatmul.mubr.bf16.gmra.mrb[156].mxu1 %v11444_v38 }
 0x865   :  { %5976 = vmatprep.mubr.bf16.mxu1 %v11319_v40  ;;  %v4309_v40 = vld [vmem:[#allocation2 + $0x2d1] sm:$0xff] }
 0x866   :  { %v11460_v31 = vpack.c.bf16 %v4310_v46, %v4309_v40 }
 0x86c   :  { %5977 = vmatmul.mubr.bf16.gmra.mrb[160].mxu1 %v11448_v17 }
 0x86d   :  { %5984 = vmatprep.mubr.bf16.mxu1 %v11323_v30  ;;  %v4311_v30 = vld [vmem:[#allocation2 + $0x2e9] sm:$0xff] }
 0x86e   :  { %v11464_v36 = vpack.c.bf16 %v4312_v42, %v4311_v30  ;;  %v4318_v30 = vld [vmem:[#allocation2 + $0x339] sm:$0xff] }
 0x874   :  { %5985 = vmatmul.mubr.bf16.gmra.mrb[164].mxu1 %v11452_v47 }
 0x875   :  { %5992 = vmatprep.mubr.bf16.mxu1 %v11327_v60  ;;  %v4313_v60 = vld [vmem:[#allocation2 + $0x301] sm:$0xff] }
 0x876   :  { %v11468_v25 = vpack.c.bf16 %v4314_v51, %v4313_v60  ;;  %v4448_v60 = vld [vmem:[#allocation2 + $0x38] sm:$0xff] }
 0x87c   :  { %5993 = vmatmul.mubr.bf16.gmra.mrb[168].mxu1 %v11456_v34 }
 0x87d   :  { %6000 = vmatprep.mubr.bf16.mxu1 %v11331_v3  ;;  %v4315_v3 = vld [vmem:[#allocation2 + $0x319] sm:$0xff] }
 0x87e   :  { %v11472_v40 = vpack.c.bf16 %v4316_v19, %v4315_v3  ;;  %v8771_v3 = vld [vmem:[#allocation8 + $0x208] sm:$0xff]  }
 0x87f   :  { %v4449_v19 = vld [vmem:[#allocation2 + $0x48] sm:$0xff] }
 0x884   :  { %6001 = vmatmul.mubr.bf16.gmra.mrb[172].mxu1 %v11460_v31 }
 0x885   :  { %6008 = vmatprep.mubr.bf16.mxu1 %v11335_v57  ;;  %v4414_v57 = vld [vmem:[#allocation2 + $0x33a] sm:$0xff] }
 0x886   :  { %v11474_v46 = vpack.c.bf16 %v4414_v57, %v4413_v8  ;;  %v4450_v8 = vld [vmem:[#allocation2 + $0x50] sm:$0xff] }
 0x887   :  { %v4512_v57 = vpack.c.bf16 %v4450_v8, %v4449_v19  ;;  %v8777_v8 = vld [vmem:[#allocation8 + $0x238] sm:$0xff]  }
 0x88c   :  { %6009 = vmatmul.mubr.bf16.gmra.mrb[176].mxu1 %v11464_v36 }
 0x88d   :  { %6016 = vmatprep.mubr.bf16.mxu1 %v11339_v49  ;;  %v4317_v49 = vld [vmem:[#allocation2 + $0x331] sm:$0xff] }
 0x88e   :  { %v11478_v42 = vpack.c.bf16 %v4318_v30, %v4317_v49  ;;  %v8772_v49 = vld [vmem:[#allocation8 + $0x210] sm:$0xff]   ;;  %v4451_v30 = vld [vmem:[#allocation2 + $0x60] sm:$0xff] }
 0x894   :  { %6017 = vmatmul.mubr.bf16.gmra.mrb[180].mxu1 %v11468_v25 }
 0x895   :  { %6024 = vmatprep.mubr.bf16.mxu1 %v11342_v62  ;;  %v4447_v62 = vld [vmem:[#allocation2 + $0x30] sm:$0xff] }
 0x896   :  { %v4511_v51 = vpack.c.bf16 %v4448_v60, %v4447_v62  ;;  %v4452_v62 = vld [vmem:[#allocation2 + $0x68] sm:$0xff]  ;;  %v8774_v60 = vld [vmem:[#allocation8 + $0x220] sm:$0xff]  }
 0x89c   :  { %6025 = vmatmul.mubr.bf16.gmra.mrb[184].mxu1 %v11472_v40 }
 0x89d   :  { %6032 = vmatprep.mubr.bf16.mxu1 %v11474_v46 }
 0x8a4   :  { %6033 = vmatmul.mubr.bf16.gmra.mrb[188].mxu1 %v11478_v42 }
 0x8a5   :  { %6073 = vmatprep.mubr.bf16.mxu1 %v11347_v21  ;;  %v8773_v21 = vld [vmem:[#allocation8 + $0x218] sm:$0xff]  }
 0x8ac   :  { %6074 = vmatmul.mubr.bf16.vlgmr.msra.gmra.mrb[64].mxu1 %v4511_v51  ;;  %v4453_v51 = vld [vmem:[#allocation2 + $0x78] sm:$0xff] }
 0x8ad   :  { %6081 = vmatprep.mubr.bf16.mxu1 %v11352_v52  ;;  %7671 = vmatpush3.bf16.msra.mxu1 %v11412_v28  ;;  %v4513_v52 = vpack.c.bf16 %v4452_v62, %v4451_v30  ;;  %v8775_v28 = vld [vmem:[#allocation8 + $0x228] sm:$0xff]   ;;  %v4458_v30 = vld [vmem:[#allocation2 + $0xb0] sm:$0xff] }
 0x8ae   :  { %7664 = vmatprep.subr.bf16.mxu1 %v8771_v3 }
 0x8b1   :  { %7672 = vmatpush3.bf16.msra.mxu1 %v8771_v3  ;;  %v4454_v3 = vld [vmem:[#allocation2 + $0x80] sm:$0xff] }
 0x8b2   :  { %7665 = vmatprep.subr.bf16.mxu1 %v8772_v49  ;;  %v4514_v19 = vpack.c.bf16 %v4454_v3, %v4453_v51  ;;  %v4462_v51 = vld [vmem:[#allocation2 + $0xe0] sm:$0xff] }
 0x8b4   :  { %6082 = vmatmul.mubr.bf16.gmra.mrb[68].mxu1 %v4512_v57  ;;  %v4455_v57 = vld [vmem:[#allocation2 + $0x90] sm:$0xff] }
 0x8b5   :  { %6089 = vmatprep.mubr.bf16.mxu1 %v11357_v58  ;;  %7673 = vmatpush3.bf16.msra.mxu1 %v8772_v49  ;;  %v8776_v58 = vld [vmem:[#allocation8 + $0x230] sm:$0xff]   ;;  %v4456_v49 = vld [vmem:[#allocation2 + $0x98] sm:$0xff] }
 0x8b6   :  { %7666 = vmatprep.subr.bf16.mxu1 %v8773_v21 }
 0x8b9   :  { %7674 = vmatpush3.bf16.msra.mxu1 %v8773_v21  ;;  %v4515_v21 = vpack.c.bf16 %v4456_v49, %v4455_v57  ;;  %v4467_v49 = vld [vmem:[#allocation2 + $0x120] sm:$0xff] }
 0x8ba   :  { %7667 = vmatprep.subr.bf16.mxu1 %v8774_v60 }
 0x8bc   :  { %6090 = vmatmul.mubr.bf16.gmra.mrb[72].mxu1 %v4513_v52  ;;  %v4459_v52 = vld [vmem:[#allocation2 + $0xc0] sm:$0xff] }
 0x8bd   :  { %6097 = vmatprep.mubr.bf16.mxu1 %v11362_v23  ;;  %7675 = vmatpush3.bf16.msra.mxu1 %v8774_v60  ;;  %v4457_v23 = vld [vmem:[#allocation2 + $0xa8] sm:$0xff] }
 0x8be   :  { %7668 = vmatprep.subr.bf16.mxu1 %v8775_v28  ;;  %v4516_v62 = vpack.c.bf16 %v4458_v30, %v4457_v23  ;;  %v4460_v60 = vld [vmem:[#allocation2 + $0xc8] sm:$0xff]  ;;  %v4469_v23 = vld [vmem:[#allocation2 + $0x138] sm:$0xff] }
 0x8c1   :  { %7676 = vmatpush3.bf16.msra.mxu1 %v8775_v28  ;;  %v4517_v28 = vpack.c.bf16 %v4460_v60, %v4459_v52  ;;  %v4473_v60 = vld [vmem:[#allocation2 + $0x168] sm:$0xff] }
 0x8c2   :  { %7669 = vmatprep.subr.bf16.mxu1 %v8776_v58 }
 0x8c4   :  { %6098 = vmatmul.mubr.bf16.gmra.mrb[76].mxu1 %v4514_v19  ;;  %v4463_v19 = vld [vmem:[#allocation2 + $0xf0] sm:$0xff] }
 0x8c5   :  { %6105 = vmatprep.mubr.bf16.mxu1 %v11367_v5  ;;  %7677 = vmatpush3.bf16.msra.mxu1 %v8776_v58  ;;  %v4461_v5 = vld [vmem:[#allocation2 + $0xd8] sm:$0xff] }
 0x8c6   :  { %7670 = vmatprep.subr.bf16.mxu1 %v8777_v8  ;;  %v4518_v3 = vpack.c.bf16 %v4462_v51, %v4461_v5  ;;  %v4573_v5 = vld [vmem:[#allocation2 + $0x199] sm:$0xff] }
 0x8c7   :  { %v4475_v51 = vld [vmem:[#allocation2 + $0x180] sm:$0xff] }
 0x8c9   :  { %7678 = vmatpush3.bf16.msra.mxu1 %v8777_v8  ;;  %v4465_v8 = vld [vmem:[#allocation2 + $0x108] sm:$0xff] }
 0x8cc   :  { %6106 = vmatmul.mubr.bf16.gmra.mrb[80].mxu1 %v4515_v21 }
 0x8cd   :  { %6113 = vmatprep.mubr.bf16.mxu1 %v11373_v32  ;;  %v4464_v32 = vld [vmem:[#allocation2 + $0xf8] sm:$0xff] }
 0x8ce   :  { %v4519_v58 = vpack.c.bf16 %v4464_v32, %v4463_v19 }
 0x8d4   :  { %6114 = vmatmul.mubr.bf16.gmra.mrb[84].mxu1 %v4516_v62  ;;  %v4471_v62 = vld [vmem:[#allocation2 + $0x150] sm:$0xff] }
 0x8d5   :  { %6121 = vmatprep.mubr.bf16.mxu1 %v11378_v6  ;;  %v4466_v6 = vld [vmem:[#allocation2 + $0x110] sm:$0xff] }
 0x8d6   :  { %v4520_v57 = vpack.c.bf16 %v4466_v6, %v4465_v8  ;;  %v4480_v6 = vld [vmem:[#allocation2 + $0x1e8] sm:$0xff] }
 0x8dc   :  { %6122 = vmatmul.mubr.bf16.gmra.mrb[88].mxu1 %v4517_v28 }
 0x8dd   :  { %6129 = vmatprep.mubr.bf16.mxu1 %v11382_v50  ;;  %v4468_v50 = vld [vmem:[#allocation2 + $0x128] sm:$0xff] }
 0x8de   :  { %v4521_v21 = vpack.c.bf16 %v4468_v50, %v4467_v49  ;;  %v4482_v49 = vld [vmem:[#allocation2 + $0x200] sm:$0xff] }
 0x8e4   :  { %6130 = vmatmul.mubr.bf16.gmra.mrb[92].mxu1 %v4518_v3  ;;  %v4476_v3 = vld [vmem:[#allocation2 + $0x188] sm:$0xff] }
 0x8e5   :  { %6137 = vmatprep.mubr.bf16.mxu1 %v11387_v0  ;;  %v4470_v0 = vld [vmem:[#allocation2 + $0x140] sm:$0xff]  ;;  %v4525_v32 = vpack.c.bf16 %v4476_v3, %v4475_v51 }
 0x8e6   :  { %v4522_v30 = vpack.c.bf16 %v4470_v0, %v4469_v23  ;;  %v4484_v23 = vld [vmem:[#allocation2 + $0x218] sm:$0xff]  ;;  %v4495_v3 = vld [vmem:[#allocation2 + $0x2a0] sm:$0xff] }
 0x8ec   :  { %6138 = vmatmul.mubr.bf16.gmra.mrb[96].mxu1 %v4519_v58  ;;  %v11497_v58 = vld [vmem:[#allocation2 + $0x8] sm:$0xff] }
 0x8ed   :  { %6145 = vmatprep.mubr.bf16.mxu1 %v11391_v63  ;;  %v4472_v63 = vld [vmem:[#allocation2 + $0x158] sm:$0xff] }
 0x8ee   :  { %v4523_v52 = vpack.c.bf16 %v4472_v63, %v4471_v62  ;;  %v4487_v63 = vld [vmem:[#allocation2 + $0x240] sm:$0xff] }
 0x8f4   :  { %6146 = vmatmul.mubr.bf16.gmra.mrb[100].mxu1 %v4520_v57 }
 0x8f5   :  { %6153 = vmatprep.mubr.bf16.mxu1 %v11396_v20  ;;  %v4474_v20 = vld [vmem:[#allocation2 + $0x170] sm:$0xff] }
 0x8f6   :  { %v4524_v28 = vpack.c.bf16 %v4474_v20, %v4473_v60  ;;  %v4489_v60 = vld [vmem:[#allocation2 + $0x258] sm:$0xff] }
 0x8fc   :  { %6154 = vmatmul.mubr.bf16.gmra.mrb[104].mxu1 %v4521_v21  ;;  %v4483_v21 = vld [vmem:[#allocation2 + $0x210] sm:$0xff] }
 0x8fd   :  { %6161 = vmatprep.mubr.bf16.mxu1 %v11400_v15  ;;  %v4574_v15 = vld [vmem:[#allocation2 + $0x1a1] sm:$0xff]  ;;  %v4529_v0 = vpack.c.bf16 %v4484_v23, %v4483_v21 }
 0x8fe   :  { %v4622_v19 = vpack.c.bf16 %v4574_v15, %v4573_v5  ;;  %v4493_v15 = vld [vmem:[#allocation2 + $0x288] sm:$0xff] }
 0x904   :  { %6162 = vmatmul.mubr.bf16.gmra.mrb[108].mxu1 %v4522_v30  ;;  %v4485_v30 = vld [vmem:[#allocation2 + $0x228] sm:$0xff] }
 0x905   :  { %6169 = vmatprep.mubr.bf16.mxu1 %v11405_v7  ;;  %v4477_v7 = vld [vmem:[#allocation2 + $0x198] sm:$0xff] }
 0x906   :  { %v4526_v8 = vpack.c.bf16 %v11497_v58, %v4477_v7 }
 0x90c   :  { %6170 = vmatmul.mubr.bf16.gmra.mrb[112].mxu1 %v4523_v52 }
 0x90d   :  { %6177 = vmatprep.mubr.bf16.mxu1 %v11409_v12  ;;  %v4479_v12 = vld [vmem:[#allocation2 + $0x1e0] sm:$0xff] }
 0x90e   :  { %v4527_v57 = vpack.c.bf16 %v4480_v6, %v4479_v12 }
 0x914   :  { %6178 = vmatmul.mubr.bf16.gmra.mrb[116].mxu1 %v4524_v28  ;;  %v4491_v28 = vld [vmem:[#allocation2 + $0x270] sm:$0xff] }
 0x915   :  { %6185 = vmatprep.mubr.bf16.mxu1 %v11415_v10  ;;  %v4481_v10 = vld [vmem:[#allocation2 + $0x1f8] sm:$0xff] }
 0x916   :  { %v4528_v50 = vpack.c.bf16 %v4482_v49, %v4481_v10 }
 0x91c   :  { %6186 = vmatmul.mubr.bf16.gmra.mrb[120].mxu1 %v4525_v32  ;;  %v4497_v32 = vld [vmem:[#allocation2 + $0x2b8] sm:$0xff] }
 0x91d   :  { %6193 = vmatprep.mubr.bf16.mxu1 %v4622_v19 }
 0x924   :  { %6194 = vmatmul.mubr.bf16.gmra.mrb[124].mxu1 %v4526_v8  ;;  %v4499_v8 = vld [vmem:[#allocation2 + $0x2d0] sm:$0xff] }
 0x925   :  { %6201 = vmatprep.mubr.bf16.mxu1 %v11420_v41  ;;  %v4486_v41 = vld [vmem:[#allocation2 + $0x230] sm:$0xff] }
 0x926   :  { %v4530_v62 = vpack.c.bf16 %v4486_v41, %v4485_v30  ;;  %v4503_v41 = vld [vmem:[#allocation2 + $0x300] sm:$0xff] }
 0x92c   :  { %6202 = vmatmul.mubr.bf16.gmra.mrb[128].mxu1 %v4527_v57  ;;  %v4501_v57 = vld [vmem:[#allocation2 + $0x2e8] sm:$0xff] }
 0x92d   :  { %6209 = vmatprep.mubr.bf16.mxu1 %v11424_v11  ;;  %v4488_v11 = vld [vmem:[#allocation2 + $0x248] sm:$0xff] }
 0x92e   :  { %v4531_v52 = vpack.c.bf16 %v4488_v11, %v4487_v63 }
 0x934   :  { %6210 = vmatmul.mubr.bf16.gmra.mrb[132].mxu1 %v4528_v50 }
 0x935   :  { %6217 = vmatprep.mubr.bf16.mxu1 %v11428_v14  ;;  %v4490_v14 = vld [vmem:[#allocation2 + $0x260] sm:$0xff] }
 0x936   :  { %v4532_v20 = vpack.c.bf16 %v4490_v14, %v4489_v60 }
 0x93c   :  { %6218 = vmatmul.mubr.bf16.gmra.mrb[136].mxu1 %v4529_v0 }
 0x93d   :  { %6225 = vmatprep.mubr.bf16.mxu1 %v11432_v55  ;;  %v4492_v55 = vld [vmem:[#allocation2 + $0x278] sm:$0xff] }
 0x93e   :  { %v4533_v5 = vpack.c.bf16 %v4492_v55, %v4491_v28  ;;  %v4505_v28 = vld [vmem:[#allocation2 + $0x318] sm:$0xff]  ;;  %v4506_v55 = vld [vmem:[#allocation2 + $0x320] sm:$0xff] }
 0x944   :  { %6226 = vmatmul.mubr.bf16.gmra.mrb[140].mxu1 %v4530_v62  ;;  %v4504_v62 = vld [vmem:[#allocation2 + $0x308] sm:$0xff] }
 0x945   :  { %6233 = vmatprep.mubr.bf16.mxu1 %v11436_v54  ;;  %v4494_v54 = vld [vmem:[#allocation2 + $0x290] sm:$0xff] }
 0x946   :  { %v4534_v51 = vpack.c.bf16 %v4494_v54, %v4493_v15 }
 0x94c   :  { %6234 = vmatmul.mubr.bf16.gmra.mrb[144].mxu1 %v4531_v52 }
 0x94d   :  { %6241 = vmatprep.mubr.bf16.mxu1 %v11440_v13  ;;  %v4496_v13 = vld [vmem:[#allocation2 + $0x2a8] sm:$0xff] }
 0x94e   :  { %v4535_v19 = vpack.c.bf16 %v4496_v13, %v4495_v3  ;;  %v4540_v13 = vpack.c.bf16 %v4506_v55, %v4505_v28 }
 0x954   :  { %6242 = vmatmul.mubr.bf16.gmra.mrb[148].mxu1 %v4532_v20  ;;  %v4539_v20 = vpack.c.bf16 %v4504_v62, %v4503_v41 }
 0x955   :  { %6249 = vmatprep.mubr.bf16.mxu1 %v11444_v38  ;;  %v4498_v38 = vld [vmem:[#allocation2 + $0x2c0] sm:$0xff] }
 0x956   :  { %v4536_v7 = vpack.c.bf16 %v4498_v38, %v4497_v32  ;;  %v4507_v38 = vld [vmem:[#allocation2 + $0x330] sm:$0xff] }
 0x95c   :  { %6250 = vmatmul.mubr.bf16.gmra.mrb[152].mxu1 %v4533_v5 }
 0x95d   :  { %6257 = vmatprep.mubr.bf16.mxu1 %v11448_v17  ;;  %v4500_v17 = vld [vmem:[#allocation2 + $0x2d8] sm:$0xff] }
 0x95e   :  { %v4537_v12 = vpack.c.bf16 %v4500_v17, %v4499_v8 }
 0x964   :  { %6258 = vmatmul.mubr.bf16.gmra.mrb[156].mxu1 %v4534_v51 }
 0x965   :  { %6265 = vmatprep.mubr.bf16.mxu1 %v11452_v47  ;;  %v11515_v47 = vld [vmem:[%s12556_s6] ss:$0 sm:$0xff] }
 0x96c   :  { %6266 = vmatmul.mubr.bf16.gmra.mrb[160].mxu1 %v4535_v19  ;;  %v4606_v19 = vld [vmem:[#allocation2 + $0x351] sm:$0xff] }
 0x96d   :  { %6273 = vmatprep.mubr.bf16.mxu1 %v11456_v34  ;;  %v4502_v34 = vld [vmem:[#allocation2 + $0x2f0] sm:$0xff] }
 0x96e   :  { %v4538_v0 = vpack.c.bf16 %v4502_v34, %v4501_v57 }
 0x974   :  { %6274 = vmatmul.mubr.bf16.gmra.mrb[164].mxu1 %v4536_v7  ;;  %v4508_v7 = vld [vmem:[#allocation2 + $0x338] sm:$0xff] }
 0x975   :  { %6281 = vmatprep.mubr.bf16.mxu1 %v11460_v31  ;;  %v4541_v34 = vpack.c.bf16 %v4508_v7, %v4507_v38 }
 0x97c   :  { %6282 = vmatmul.mubr.bf16.gmra.mrb[168].mxu1 %v4537_v12 }
 0x97d   :  { %6289 = vmatprep.mubr.bf16.mxu1 %v11464_v36 }
 0x97f   :  { %v6075_v6 = vpop.f32.mrb[64].mxu1 }
 0x980   :  { %v7743_v10 = vadd.f32 %v11515_v47, %v6075_v6  ;;  %v6077_v49 = vpop.f32.mrb[65].mxu1 }
 0x981   :  { %v6078_v50 = vpop.f32.mrb[66].mxu1 }
 0x982   :  { %v11519_v31 = vadd.f32 %v7743_v10, %v11095_v4  ;;  %v7744_v21 = vadd.f32 %v11515_v47, %v6078_v50  ;;  %v6080_v23 = vpop.f32.mrb[67].mxu1 }
 0x984   :  { %v11523_v36 = vadd.f32 %v7744_v21, %v11099_v33  ;;  %6290 = vmatmul.mubr.bf16.gmra.mrb[172].mxu1 %v4538_v0  ;;  %v4695_v0 = vld [vmem:[#allocation2 + $0x302] sm:$0xff] }
 0x985   :  { %6297 = vmatprep.mubr.bf16.mxu1 %v11468_v25 }
 0x987   :  { %v6083_v30 = vpop.f32.mrb[68].mxu1 }
 0x988   :  { %v7745_v63 = vadd.f32 %v11515_v47, %v6083_v30  ;;  %v6085_v11 = vpop.f32.mrb[69].mxu1  ;;  %v4696_v30 = vld [vmem:[#allocation2 + $0x30a] sm:$0xff] }
 0x989   :  { %v6086_v52 = vpop.f32.mrb[70].mxu1 }
 0x98a   :  { %v11528_v4 = vadd.f32 %v7745_v63, %v11093_v61  ;;  %v7746_v60 = vadd.f32 %v11515_v47, %v6086_v52  ;;  %v6088_v14 = vpop.f32.mrb[71].mxu1 }
 0x98b   :  { %v4698_v14 = vld [vmem:[#allocation2 + $0x322] sm:$0xff] }
 0x98c   :  { %v11532_v33 = vadd.f32 %v7746_v60, %v11097_v43  ;;  %6298 = vmatmul.mubr.bf16.gmra.mrb[176].mxu1 %v4539_v20  ;;  %v4697_v60 = vld [vmem:[#allocation2 + $0x31a] sm:$0xff] }
 0x98d   :  { %6305 = vmatprep.mubr.bf16.mxu1 %v11472_v40  ;;  %v4605_v40 = vld [vmem:[#allocation2 + $0x349] sm:$0xff] }
 0x98e   :  { %v4638_v12 = vpack.c.bf16 %v4606_v19, %v4605_v40 }
 0x98f   :  { %v6091_v25 = vpop.f32.mrb[72].mxu1 }
 0x990   :  { %v7747_v5 = vadd.f32 %v11515_v47, %v6091_v25  ;;  %v6093_v15 = vpop.f32.mrb[73].mxu1 }
 0x991   :  { %v6094_v54 = vpop.f32.mrb[74].mxu1 }
 0x992   :  { %v11537_v61 = vadd.f32 %v7747_v5, %v11107_v45  ;;  %v7748_v51 = vadd.f32 %v11515_v47, %v6094_v54  ;;  %v6096_v3 = vpop.f32.mrb[75].mxu1  ;;  %v4732_v5 = vpack.c.bf16 %v4698_v14, %v4697_v60  ;;  %v4702_v54 = vld [vmem:[#allocation2 + $0x352] sm:$0xff] }
 0x994   :  { %v11541_v43 = vadd.f32 %v7748_v51, %v11111_v56  ;;  %6306 = vmatmul.mubr.bf16.gmra.mrb[180].mxu1 %v4540_v13 }
 0x995   :  { %6313 = vmatprep.mubr.bf16.mxu1 %v11478_v42  ;;  %v4509_v42 = vld [vmem:[#allocation2 + $0x348] sm:$0xff] }
 0x996   :  { %v4542_v23 = vpack.c.bf16 %v11497_v58, %v4509_v42 }
 0x997   :  { %v6099_v32 = vpop.f32.mrb[76].mxu1 }
 0x998   :  { %v7749_v8 = vadd.f32 %v11515_v47, %v6099_v32  ;;  %v6101_v17 = vpop.f32.mrb[77].mxu1 }
 0x999   :  { %v6102_v45 = vpop.f32.mrb[78].mxu1 }
 0x99a   :  { %v11546_v6 = vadd.f32 %v7749_v8, %v11105_v18  ;;  %v7750_v57 = vadd.f32 %v11515_v47, %v6102_v45  ;;  %v6104_v56 = vpop.f32.mrb[79].mxu1 }
 0x99c   :  { %v11550_v10 = vadd.f32 %v7750_v57, %v11109_v2  ;;  %6314 = vmatmul.mubr.bf16.gmra.mrb[184].mxu1 %v4541_v34  ;;  %v4731_v2 = vpack.c.bf16 %v4696_v30, %v4695_v0 }
 0x99d   :  { %6321 = vmatprep.mubr.bf16.mxu1 %v4638_v12 }
 0x99f   :  { %v6107_v49 = vpop.f32.mrb[80].mxu1 }
 0x9a0   :  { %v7751_v50 = vadd.f32 %v11515_v47, %v6107_v49  ;;  %v6109_v21 = vpop.f32.mrb[81].mxu1 }
 0x9a1   :  { %v6110_v18 = vpop.f32.mrb[82].mxu1 }
 0x9a2   :  { %v11555_v41 = vadd.f32 %v7751_v50, %v11119_v26  ;;  %v7752_v62 = vadd.f32 %v11515_v47, %v6110_v18  ;;  %v6112_v63 = vpop.f32.mrb[83].mxu1  ;;  %v12899_v18 = vld [vmem:[#allocation18_spill] sm:$0xff] }
 0x9a4   :  { %v11559_v11 = vadd.f32 %v7752_v62, %v11123_v59  ;;  %6322 = vmatmul.mubr.bf16.gmra.mrb[188].mxu1 %v4542_v23  ;;  %v4701_v59 = vld [vmem:[#allocation2 + $0x34a] sm:$0xff] }
 0x9a5   :  { %7655 = vmatprep.mubr.bf16.mxu1 %v4731_v2  ;;  %v4734_v40 = vpack.c.bf16 %v4702_v54, %v4701_v59 }
 0x9a7   :  { %v6115_v52 = vpop.f32.mrb[84].mxu1 }
 0x9a8   :  { %v7753_v58 = vadd.f32 %v11515_v47, %v6115_v52  ;;  %v6117_v20 = vpop.f32.mrb[85].mxu1  ;;  %v12900_v52 = vld [vmem:[#allocation19_spill] sm:$0xff] }
 0x9a9   :  { %v6118_v25 = vpop.f32.mrb[86].mxu1 }
 0x9aa   :  { %v11563_v28 = vadd.f32 %v7753_v58, %v11117_v39  ;;  %v7754_v26 = vadd.f32 %v11515_v47, %v6118_v25  ;;  %v6120_v55 = vpop.f32.mrb[87].mxu1 }
 0x9ac   :  { %v11567_v15 = vadd.f32 %v7754_v26, %v11121_v9  ;;  %7656 = vmatmul.mubr.bf16.vlgmr.msra.gmra.mrb[192].mxu1 %v4732_v5 }
 0x9ad   :  { %7659 = vmatprep.mubr.bf16.mxu1 %v11474_v46 }
 0x9af   :  { %v6123_v51 = vpop.f32.mrb[88].mxu1 }
 0x9b0   :  { %v7755_v3 = vadd.f32 %v11515_v47, %v6123_v51  ;;  %v6125_v13 = vpop.f32.mrb[89].mxu1 }
 0x9b1   :  { %v6126_v19 = vpop.f32.mrb[90].mxu1 }
 0x9b2   :  { %v11572_v39 = vadd.f32 %v7755_v3, %v11130_v37  ;;  %v7756_v32 = vadd.f32 %v11515_v47, %v6126_v19  ;;  %v6128_v38 = vpop.f32.mrb[91].mxu1  ;;  %v12901_v19 = vld [vmem:[#allocation22_spill] sm:$0xff] }
 0x9b3   :  { %v6621_v38 = vadd.f32 %v11523_v36, %v11519_v31 }
 0x9b4   :  { %v11576_v9 = vadd.f32 %v7756_v32, %v11134_v27  ;;  %7660 = vmatmul.mubr.bf16.gmra.mrb[196].mxu1 %v4734_v40  ;;  %v6692_v32 = vmul.f32 %v11523_v36, %v11523_v36 }
 0x9b7   :  { %v6131_v7 = vpop.f32.mrb[92].mxu1 }
 0x9b8   :  { %v7757_v46 = vadd.f32 %v11515_v47, %v6131_v7  ;;  %v6133_v8 = vpop.f32.mrb[93].mxu1  ;;  %v6693_v7 = vmul.f32 %v11528_v4, %v11528_v4 }
 0x9b9   :  { %v6134_v17 = vpop.f32.mrb[94].mxu1 }
 0x9ba   :  { %v11580_v45 = vadd.f32 %v7757_v46, %v11128_v1  ;;  %v7758_v12 = vadd.f32 %v11515_v47, %v6134_v17  ;;  %v6136_v57 = vpop.f32.mrb[95].mxu1 }
 0x9bc   :  { %v11584_v37 = vadd.f32 %v7758_v12, %v11132_v24  ;;  %v6622_v12 = vadd.f32 %v6621_v38, %v11528_v4 }
 0x9bf   :  { %v6139_v56 = vpop.f32.mrb[96].mxu1 }
 0x9c0   :  { %v7759_v34 = vadd.f32 %v11515_v47, %v6139_v56  ;;  %v6141_v27 = vpop.f32.mrb[97].mxu1 }
 0x9c1   :  { %v6142_v42 = vpop.f32.mrb[98].mxu1 }
 0x9c2   :  { %v11588_v49 = vadd.f32 %v7759_v34, %v11142_v53  ;;  %v7760_v50 = vadd.f32 %v11515_v47, %v6142_v42  ;;  %v6144_v21 = vpop.f32.mrb[99].mxu1 }
 0x9c4   :  { %v11592_v1 = vadd.f32 %v7760_v50, %v11146_v16  ;;  %v6694_v50 = vmul.f32 %v11532_v33, %v11532_v33 }
 0x9c7   :  { %v6147_v23 = vpop.f32.mrb[100].mxu1 }
 0x9c8   :  { %v7761_v0 = vadd.f32 %v11515_v47, %v6147_v23  ;;  %v6149_v30 = vpop.f32.mrb[101].mxu1  ;;  %v6623_v23 = vadd.f32 %v6622_v12, %v11532_v33 }
 0x9c9   :  { %v6150_v24 = vpop.f32.mrb[102].mxu1 }
 0x9ca   :  { %v11596_v62 = vadd.f32 %v7761_v0, %v12899_v18  ;;  %v7762_v63 = vadd.f32 %v11515_v47, %v6150_v24  ;;  %v6152_v2 = vpop.f32.mrb[103].mxu1  ;;  %v6695_v0 = vmul.f32 %v11537_v61, %v11537_v61  ;;  %v6624_v24 = vadd.f32 %v6623_v23, %v11537_v61 }
 0x9cb   :  { %v6700_v23 = vmul.f32 %v11559_v11, %v11559_v11 }
 0x9cc   :  { %v11600_v53 = vadd.f32 %v7762_v63, %v12900_v52  ;;  %v6696_v52 = vmul.f32 %v11541_v43, %v11541_v43 }
 0x9cf   :  { %v6155_v60 = vpop.f32.mrb[104].mxu1 }
 0x9d0   :  { %v7763_v14 = vadd.f32 %v11515_v47, %v6155_v60  ;;  %v6157_v58 = vpop.f32.mrb[105].mxu1 }
 0x9d1   :  { %v6158_v16 = vpop.f32.mrb[106].mxu1 }
 0x9d2   :  { %v11604_v20 = vadd.f32 %v7763_v14, %v11152_v35  ;;  %v7764_v25 = vadd.f32 %v11515_v47, %v6158_v16  ;;  %v6160_v26 = vpop.f32.mrb[107].mxu1  ;;  %v12902_v14 = vld [vmem:[#allocation23_spill] sm:$0xff] }
 0x9d3   :  { %v6697_v26 = vmul.f32 %v11546_v6, %v11546_v6 }
 0x9d4   :  { %v11608_v55 = vadd.f32 %v7764_v25, %v11156_v44  ;;  %v6691_v44 = vmul.f32 %v11519_v31, %v11519_v31  ;;  %v6625_v25 = vadd.f32 %v6624_v24, %v11541_v43 }
 0x9d6   :  { %v6755_v17 = vadd.f32 %v6692_v32, %v6691_v44 }
 0x9d7   :  { %v6163_v5 = vpop.f32.mrb[108].mxu1 }
 0x9d8   :  { %v7765_v59 = vadd.f32 %v11515_v47, %v6163_v5  ;;  %v6165_v54 = vpop.f32.mrb[109].mxu1  ;;  %v6756_v42 = vadd.f32 %v6755_v17, %v6693_v7  ;;  %v12903_v5 = vld [vmem:[#allocation24_spill] sm:$0xff]  ;;  %v6699_v7 = vmul.f32 %v11555_v41, %v11555_v41 }
 0x9d9   :  { %v6166_v51 = vpop.f32.mrb[110].mxu1 }
 0x9da   :  { %v11612_v3 = vadd.f32 %v7765_v59, %v11150_v29  ;;  %v7766_v13 = vadd.f32 %v11515_v47, %v6166_v51  ;;  %v6168_v40 = vpop.f32.mrb[111].mxu1  ;;  %v6757_v30 = vadd.f32 %v6756_v42, %v6694_v50  ;;  %v6626_v51 = vadd.f32 %v6625_v25, %v11546_v6 }
 0x9db   :  { %v6698_v40 = vmul.f32 %v11550_v10, %v11550_v10 }
 0x9dc   :  { %v11616_v35 = vadd.f32 %v7766_v13, %v12901_v19  ;;  %v6758_v2 = vadd.f32 %v6757_v30, %v6695_v0  ;;  %v6627_v38 = vadd.f32 %v6626_v51, %v11550_v10  ;;  %v6701_v30 = vmul.f32 %v11563_v28, %v11563_v28 }
 0x9de   :  { %v6759_v54 = vadd.f32 %v6758_v2, %v6696_v52 }
 0x9df   :  { %v6171_v29 = vpop.f32.mrb[112].mxu1 }
 0x9e0   :  { %v7767_v46 = vadd.f32 %v11515_v47, %v6171_v29  ;;  %v6173_v8 = vpop.f32.mrb[113].mxu1  ;;  %v6760_v13 = vadd.f32 %v6759_v54, %v6697_v26  ;;  %v6702_v26 = vmul.f32 %v11567_v15, %v11567_v15 }
 0x9e1   :  { %v6174_v57 = vpop.f32.mrb[114].mxu1 }
 0x9e2   :  { %v11629_v56 = vadd.f32 %v7767_v46, %v11166_v48  ;;  %v7768_v34 = vadd.f32 %v11515_v47, %v6174_v57  ;;  %v6176_v27 = vpop.f32.mrb[115].mxu1  ;;  %v12904_v46 = vld [vmem:[#allocation15_spill] sm:$0xff]  ;;  %v6761_v57 = vadd.f32 %v6760_v13, %v6698_v40  ;;  %v6703_v13 = vmul.f32 %v11572_v39, %v11572_v39 }
 0x9e3   :  { %v12905_v27 = vld [vmem:[#allocation17_spill] sm:$0xff] }
 0x9e4   :  { %v11635_v21 = vadd.f32 %v7768_v34, %v11170_v22  ;;  %v6628_v34 = vadd.f32 %v6627_v38, %v11555_v41  ;;  %v6762_v50 = vadd.f32 %v6761_v57, %v6699_v7 }
 0x9e6   :  { %v6629_v0 = vadd.f32 %v6628_v34, %v11559_v11 }
 0x9e7   :  { %v6179_v48 = vpop.f32.mrb[116].mxu1 }
 0x9e8   :  { %v7769_v18 = vadd.f32 %v11515_v47, %v6179_v48  ;;  %v6181_v63 = vpop.f32.mrb[117].mxu1  ;;  %v6630_v2 = vadd.f32 %v6629_v0, %v11563_v28 }
 0x9e9   :  { %v6182_v60 = vpop.f32.mrb[118].mxu1  ;;  %v6763_v63 = vadd.f32 %v6762_v50, %v6700_v23  ;;  %v6705_v50 = vmul.f32 %v11580_v45, %v11580_v45  ;;  %v12911_v23 = vld [vmem:[#allocation30_spill] sm:$0xff] }
 0x9ea   :  { %v11645_v22 = vadd.f32 %v7769_v18, %v12902_v14  ;;  %v7770_v58 = vadd.f32 %v11515_v47, %v6182_v60  ;;  %v6184_v16 = vpop.f32.mrb[119].mxu1  ;;  %v12906_v60 = vld [vmem:[#allocation28_spill] sm:$0xff]  ;;  %v6631_v51 = vadd.f32 %v6630_v2, %v11567_v15 }
 0x9eb   :  { %v6764_v25 = vadd.f32 %v6763_v63, %v6701_v30 }
 0x9ec   :  { %v11652_v59 = vadd.f32 %v7770_v58, %v12903_v5  ;;  %v12907_v5 = vld [vmem:[#allocation16_spill] sm:$0xff] }
 0x9ed   :  { %v6765_v40 = vadd.f32 %v6764_v25, %v6702_v26  ;;  %v12913_v25 = vld [vmem:[#allocation20_spill] sm:$0xff] }
 0x9ef   :  { %v6187_v19 = vpop.f32.mrb[120].mxu1  ;;  %v6766_v7 = vadd.f32 %v6765_v40, %v6703_v13 }
 0x9f0   :  { %v7771_v32 = vadd.f32 %v11515_v47, %v6187_v19  ;;  %v6189_v44 = vpop.f32.mrb[121].mxu1  ;;  %v6632_v19 = vadd.f32 %v6631_v51, %v11572_v39 }
 0x9f1   :  { %v6190_v29 = vpop.f32.mrb[122].mxu1 }
 0x9f2   :  { %v11662_v8 = vadd.f32 %v7771_v32, %v12904_v46  ;;  %v7772_v17 = vadd.f32 %v11515_v47, %v6190_v29  ;;  %v6192_v12 = vpop.f32.mrb[123].mxu1  ;;  %v6704_v29 = vmul.f32 %v11576_v9, %v11576_v9 }
 0x9f4   :  { %v11667_v42 = vadd.f32 %v7772_v17, %v12905_v27  ;;  %v12909_v17 = vld [vmem:[#allocation21_spill] sm:$0xff]  ;;  %v6633_v27 = vadd.f32 %v6632_v19, %v11576_v9  ;;  %v6767_v30 = vadd.f32 %v6766_v7, %v6704_v29  ;;  %v12914_v19 = vld [vmem:[#allocation27_spill] sm:$0xff]  ;;  %v6709_v29 = vmul.f32 %v11596_v62, %v11596_v62 }
 0x9f7   :  { %v6195_v24 = vpop.f32.mrb[124].mxu1 }
 0x9f8   :  { %v7773_v48 = vadd.f32 %v11515_v47, %v6195_v24  ;;  %v6197_v18 = vpop.f32.mrb[125].mxu1  ;;  %v6634_v24 = vadd.f32 %v6633_v27, %v11580_v45 }
 0x9f9   :  { %v6198_v52 = vpop.f32.mrb[126].mxu1  ;;  %v6706_v18 = vmul.f32 %v11584_v37, %v11584_v37 }
 0x9fa   :  { %v11677_v14 = vadd.f32 %v7773_v48, %v12906_v60  ;;  %v7774_v58 = vadd.f32 %v11515_v47, %v6198_v52  ;;  %v6200_v16 = vpop.f32.mrb[127].mxu1  ;;  %v6768_v48 = vadd.f32 %v6767_v30, %v6705_v50  ;;  %v6635_v60 = vadd.f32 %v6634_v24, %v11584_v37 }
 0x9fc   :  { %v11683_v54 = vadd.f32 %v7774_v58, %v12907_v5  ;;  %v6707_v58 = vmul.f32 %v11588_v49, %v11588_v49  ;;  %v6769_v13 = vadd.f32 %v6768_v48, %v6706_v18  ;;  %v6636_v40 = vadd.f32 %v6635_v60, %v11588_v49 }
 0x9fe   :  { %12908 = vst [vmem:[#allocation18_spill] sm:$0xff] %v11683_v54  ;;  %v6637_v7 = vadd.f32 %v6636_v40, %v11592_v1 }
 0x9ff   :  { %v6203_v32 = vpop.f32.mrb[128].mxu1 }
 0xa00   :  { %v7775_v44 = vadd.f32 %v11515_v47, %v6203_v32  ;;  %v6205_v38 = vpop.f32.mrb[129].mxu1  ;;  %v6638_v27 = vadd.f32 %v6637_v7, %v11596_v62 }
 0xa01   :  { %v6206_v46 = vpop.f32.mrb[130].mxu1  ;;  %v6708_v38 = vmul.f32 %v11592_v1, %v11592_v1 }
 0xa02   :  { %v11693_v12 = vadd.f32 %v7775_v44, %v12909_v17  ;;  %v7776_v57 = vadd.f32 %v11515_v47, %v6206_v46  ;;  %v6208_v34 = vpop.f32.mrb[131].mxu1  ;;  %v6770_v44 = vadd.f32 %v6769_v13, %v6707_v58  ;;  %v6639_v60 = vadd.f32 %v6638_v27, %v11600_v53 }
 0xa03   :  { %v6711_v58 = vmul.f32 %v11604_v20, %v11604_v20 }
 0xa04   :  { %12910 = vst [vmem:[#allocation19_spill] sm:$0xff] %v11693_v12  ;;  %v11700_v0 = vadd.f32 %v7776_v57, %v12911_v23  ;;  %v6771_v34 = vadd.f32 %v6770_v44, %v6708_v38  ;;  %v12916_v23 = vld [vmem:[#allocation32_spill] sm:$0xff]  ;;  %v12920_v38 = vld [vmem:[#allocation31_spill] sm:$0xff] }
 0xa06   :  { %12912 = vst [vmem:[#allocation22_spill] sm:$0xff] %v11700_v0  ;;  %v6772_v18 = vadd.f32 %v6771_v34, %v6709_v29  ;;  %v12921_v34 = vld [vmem:[#allocation33_spill] sm:$0xff] }
 0xa07   :  { %v6211_v63 = vpop.f32.mrb[132].mxu1 }
 0xa08   :  { %v7777_v2 = vadd.f32 %v11515_v47, %v6211_v63  ;;  %v6213_v52 = vpop.f32.mrb[133].mxu1  ;;  %v6710_v63 = vmul.f32 %v11600_v53, %v11600_v53 }
 0xa09   :  { %v6214_v16 = vpop.f32.mrb[134].mxu1 }
 0xa0a   :  { %v11710_v26 = vadd.f32 %v7777_v2, %v12913_v25  ;;  %v7778_v5 = vadd.f32 %v11515_v47, %v6214_v16  ;;  %v6216_v51 = vpop.f32.mrb[135].mxu1  ;;  %v12918_v2 = vld [vmem:[#allocation34_spill] sm:$0xff]  ;;  %v6773_v16 = vadd.f32 %v6772_v18, %v6710_v63  ;;  %v6640_v25 = vadd.f32 %v6639_v60, %v11604_v20 }
 0xa0c   :  { %v11715_v32 = vadd.f32 %v7778_v5, %v12914_v19  ;;  %v6774_v40 = vadd.f32 %v6773_v16, %v6711_v58  ;;  %v6712_v19 = vmul.f32 %v11608_v55, %v11608_v55  ;;  %v6715_v58 = vmul.f32 %v11629_v56, %v11629_v56 }
 0xa0e   :  { %12915 = vst [vmem:[#allocation23_spill] sm:$0xff] %v11715_v32 }
 0xa0f   :  { %v6219_v46 = vpop.f32.mrb[136].mxu1 }
 0xa10   :  { %v7779_v17 = vadd.f32 %v11515_v47, %v6219_v46  ;;  %v6221_v57 = vpop.f32.mrb[137].mxu1 }
 0xa11   :  { %v6222_v50 = vpop.f32.mrb[138].mxu1  ;;  %v6713_v57 = vmul.f32 %v11612_v3, %v11612_v3 }
 0xa12   :  { %v11725_v30 = vadd.f32 %v7779_v17, %v12916_v23  ;;  %v7780_v24 = vadd.f32 %v11515_v47, %v6222_v50  ;;  %v6224_v48 = vpop.f32.mrb[139].mxu1  ;;  %v6641_v17 = vadd.f32 %v6640_v25, %v11608_v55  ;;  %v6775_v50 = vadd.f32 %v6774_v40, %v6712_v19  ;;  %v12923_v25 = vld [vmem:[#allocation26_spill] sm:$0xff] }
 0xa13   :  { %v6714_v48 = vmul.f32 %v11616_v35, %v11616_v35 }
 0xa14   :  { %12917 = vst [vmem:[#allocation24_spill] sm:$0xff] %v11725_v30  ;;  %v11731_v52 = vadd.f32 %v7780_v24, %v12918_v2  ;;  %v6642_v23 = vadd.f32 %v6641_v17, %v11612_v3  ;;  %v6776_v24 = vadd.f32 %v6775_v50, %v6713_v57  ;;  %v6717_v57 = vmul.f32 %v11645_v22, %v11645_v22 }
 0xa16   :  { %12919 = vst [vmem:[#allocation15_spill] sm:$0xff] %v11731_v52  ;;  %v6643_v60 = vadd.f32 %v6642_v23, %v11616_v35  ;;  %v6777_v40 = vadd.f32 %v6776_v24, %v6714_v48 }
 0xa17   :  { %v6227_v5 = vpop.f32.mrb[140].mxu1 }
 0xa18   :  { %v7781_v51 = vadd.f32 %v11515_v47, %v6227_v5  ;;  %v6229_v13 = vpop.f32.mrb[141].mxu1  ;;  %v6644_v19 = vadd.f32 %v6643_v60, %v11629_v56 }
 0xa19   :  { %v6230_v44 = vpop.f32.mrb[142].mxu1 }
 0xa1a   :  { %v11741_v7 = vadd.f32 %v7781_v51, %v12920_v38  ;;  %v7782_v29 = vadd.f32 %v11515_v47, %v6230_v44  ;;  %v6232_v46 = vpop.f32.mrb[143].mxu1  ;;  %v12925_v44 = vld [vmem:[#allocation25_spill] sm:$0xff]  ;;  %v6645_v17 = vadd.f32 %v6644_v19, %v11635_v21  ;;  %v6719_v19 = vmul.f32 %v11662_v8, %v11662_v8 }
 0xa1b   :  { %v6716_v46 = vmul.f32 %v11635_v21, %v11635_v21 }
 0xa1c   :  { %v11748_v27 = vadd.f32 %v7782_v29, %v12921_v34  ;;  %v6778_v29 = vadd.f32 %v6777_v40, %v6715_v58  ;;  %v6646_v24 = vadd.f32 %v6645_v17, %v11645_v22 }
 0xa1e   :  { %12922 = vst [vmem:[#allocation17_spill] sm:$0xff] %v11748_v27  ;;  %v6647_v40 = vadd.f32 %v6646_v24, %v11652_v59 }
 0xa1f   :  { %v6235_v18 = vpop.f32.mrb[144].mxu1 }
 0xa20   :  { %v7783_v63 = vadd.f32 %v11515_v47, %v6235_v18  ;;  %v6237_v2 = vpop.f32.mrb[145].mxu1  ;;  %v6779_v18 = vadd.f32 %v6778_v29, %v6716_v46  ;;  %v6648_v29 = vadd.f32 %v6647_v40, %v11662_v8 }
 0xa21   :  { %v6238_v16 = vpop.f32.mrb[146].mxu1 }
 0xa22   :  { %v11758_v5 = vadd.f32 %v7783_v63, %v12923_v25  ;;  %v7784_v51 = vadd.f32 %v11515_v47, %v6238_v16  ;;  %v6240_v13 = vpop.f32.mrb[147].mxu1  ;;  %v12927_v63 = vld [vmem:[#allocation35_spill] sm:$0xff]  ;;  %v6780_v16 = vadd.f32 %v6779_v18, %v6717_v57  ;;  %v6718_v25 = vmul.f32 %v11652_v59, %v11652_v59  ;;  %v12930_v18 = vld [vmem:[#allocation14_spill] sm:$0xff] }
 0xa23   :  { %v6720_v57 = vmul.f32 %v11667_v42, %v11667_v42 }
 0xa24   :  { %12924 = vst [vmem:[#allocation28_spill] sm:$0xff] %v11758_v5  ;;  %v11763_v38 = vadd.f32 %v7784_v51, %v12925_v44  ;;  %v12928_v51 = vld [vmem:[#allocation29_spill] sm:$0xff]  ;;  %v6781_v44 = vadd.f32 %v6780_v16, %v6718_v25  ;;  %v12932_v16 = vld [vmem:[#allocation38_spill] sm:$0xff] }
 0xa26   :  { %12926 = vst [vmem:[#allocation16_spill] sm:$0xff] %v11763_v38 }
 0xa27   :  { %v6243_v34 = vpop.f32.mrb[148].mxu1 }
 0xa28   :  { %v7785_v50 = vadd.f32 %v11515_v47, %v6243_v34  ;;  %v6245_v23 = vpop.f32.mrb[149].mxu1 }
 0xa29   :  { %v6246_v48 = vpop.f32.mrb[150].mxu1 }
 0xa2a   :  { %v11773_v2 = vadd.f32 %v7785_v50, %v12927_v63  ;;  %v7786_v60 = vadd.f32 %v11515_v47, %v6246_v48  ;;  %v6248_v58 = vpop.f32.mrb[151].mxu1  ;;  %v6782_v50 = vadd.f32 %v6781_v44, %v6719_v19  ;;  %v6722_v44 = vmul.f32 %v11683_v54, %v11683_v54 }
 0xa2b   :  { %v6721_v58 = vmul.f32 %v11677_v14, %v11677_v14 }
 0xa2c   :  { %v11779_v13 = vadd.f32 %v7786_v60, %v12928_v51  ;;  %v6649_v60 = vadd.f32 %v6648_v29, %v11667_v42  ;;  %v6783_v51 = vadd.f32 %v6782_v50, %v6720_v57  ;;  %v6723_v29 = vmul.f32 %v11693_v12, %v11693_v12 }
 0xa2e   :  { %12929 = vst [vmem:[#allocation21_spill] sm:$0xff] %v11779_v13  ;;  %v6650_v40 = vadd.f32 %v6649_v60, %v11677_v14  ;;  %v6784_v19 = vadd.f32 %v6783_v51, %v6721_v58 }
 0xa2f   :  { %v6251_v46 = vpop.f32.mrb[152].mxu1 }
 0xa30   :  { %v7787_v17 = vadd.f32 %v11515_v47, %v6251_v46  ;;  %v6253_v34 = vpop.f32.mrb[153].mxu1  ;;  %v6785_v60 = vadd.f32 %v6784_v19, %v6722_v44 }
 0xa31   :  { %v6254_v23 = vpop.f32.mrb[154].mxu1 }
 0xa32   :  { %v11789_v48 = vadd.f32 %v7787_v17, %v12930_v18  ;;  %v7788_v24 = vadd.f32 %v11515_v47, %v6254_v23  ;;  %v6256_v63 = vpop.f32.mrb[155].mxu1  ;;  %v6651_v23 = vadd.f32 %v6650_v40, %v11683_v54  ;;  %v6724_v40 = vmul.f32 %v11700_v0, %v11700_v0 }
 0xa33   :  { %v12934_v63 = vld [vmem:[#allocation13_spill] sm:$0xff]  ;;  %v6725_v54 = vmul.f32 %v11710_v26, %v11710_v26 }
 0xa34   :  { %12931 = vst [vmem:[#allocation30_spill] sm:$0xff] %v11789_v48  ;;  %v11796_v25 = vadd.f32 %v7788_v24, %v12932_v16  ;;  %v6652_v58 = vadd.f32 %v6651_v23, %v11693_v12  ;;  %v12936_v16 = vld [vmem:[#allocation37_spill] sm:$0xff]  ;;  %v12938_v23 = vld [vmem:[#allocation40_spill] sm:$0xff] }
 0xa36   :  { %12933 = vst [vmem:[#allocation20_spill] sm:$0xff] %v11796_v25 }
 0xa37   :  { %v6259_v46 = vpop.f32.mrb[156].mxu1 }
 0xa38   :  { %v7789_v17 = vadd.f32 %v11515_v47, %v6259_v46  ;;  %v6261_v34 = vpop.f32.mrb[157].mxu1  ;;  %v6786_v46 = vadd.f32 %v6785_v60, %v6723_v29 }
 0xa39   :  { %v6262_v18 = vpop.f32.mrb[158].mxu1  ;;  %v6653_v34 = vadd.f32 %v6652_v58, %v11700_v0  ;;  %v6726_v58 = vmul.f32 %v11715_v32, %v11715_v32  ;;  %v12939_v0 = vld [vmem:[#allocation42_spill] sm:$0xff] }
 0xa3a   :  { %v11806_v24 = vadd.f32 %v7789_v17, %v12934_v63  ;;  %v7790_v50 = vadd.f32 %v11515_v47, %v6262_v18  ;;  %v6264_v57 = vpop.f32.mrb[159].mxu1 }
 0xa3b   :  { %v6787_v57 = vadd.f32 %v6786_v46, %v6724_v40  ;;  %v6654_v19 = vadd.f32 %v6653_v34, %v11710_v26  ;;  %v6727_v46 = vmul.f32 %v11725_v30, %v11725_v30 }
 0xa3c   :  { %12935 = vst [vmem:[#allocation27_spill] sm:$0xff] %v11806_v24  ;;  %v11811_v51 = vadd.f32 %v7790_v50, %v12936_v16 }
 0xa3d   :  { %v6788_v16 = vadd.f32 %v6787_v57, %v6725_v54  ;;  %v6728_v54 = vmul.f32 %v11731_v52, %v11731_v52 }
 0xa3e   :  { %12937 = vst [vmem:[#allocation32_spill] sm:$0xff] %v11811_v51 }
 0xa3f   :  { %v6267_v17 = vpop.f32.mrb[160].mxu1  ;;  %v6789_v40 = vadd.f32 %v6788_v16, %v6726_v58  ;;  %v6729_v16 = vmul.f32 %v11741_v7, %v11741_v7  ;;  %v12942_v58 = vld [vmem:[#allocation41_spill] sm:$0xff] }
 0xa40   :  { %v7791_v63 = vadd.f32 %v11515_v47, %v6267_v17  ;;  %v6269_v18 = vpop.f32.mrb[161].mxu1  ;;  %v6655_v17 = vadd.f32 %v6654_v19, %v11715_v32 }
 0xa41   :  { %v6270_v44 = vpop.f32.mrb[162].mxu1 }
 0xa42   :  { %v11821_v50 = vadd.f32 %v7791_v63, %v12938_v23  ;;  %v7792_v29 = vadd.f32 %v11515_v47, %v6270_v44  ;;  %v6272_v60 = vpop.f32.mrb[163].mxu1  ;;  %v6656_v34 = vadd.f32 %v6655_v17, %v11725_v30  ;;  %v6790_v23 = vadd.f32 %v6789_v40, %v6727_v46  ;;  %v12943_v30 = vld [vmem:[#allocation44_spill] sm:$0xff] }
 0xa43   :  { %v12941_v60 = vld [vmem:[#allocation39_spill] sm:$0xff] }
 0xa44   :  { %v11827_v12 = vadd.f32 %v7792_v29, %v12939_v0  ;;  %v6657_v32 = vadd.f32 %v6656_v34, %v11731_v52  ;;  %v6731_v34 = vmul.f32 %v11758_v5, %v11758_v5 }
 0xa46   :  { %12940 = vst [vmem:[#allocation34_spill] sm:$0xff] %v11827_v12  ;;  %v6658_v46 = vadd.f32 %v6657_v32, %v11741_v7 }
 0xa47   :  { %v6275_v63 = vpop.f32.mrb[164].mxu1 }
 0xa48   :  { %v7793_v18 = vadd.f32 %v11515_v47, %v6275_v63  ;;  %v6277_v44 = vpop.f32.mrb[165].mxu1  ;;  %v6791_v63 = vadd.f32 %v6790_v23, %v6728_v54 }
 0xa49   :  { %v6278_v57 = vpop.f32.mrb[166].mxu1  ;;  %v6730_v44 = vmul.f32 %v11748_v27, %v11748_v27 }
 0xa4a   :  { %v11837_v0 = vadd.f32 %v7793_v18, %v12941_v60  ;;  %v7794_v19 = vadd.f32 %v11515_v47, %v6278_v57  ;;  %v6280_v29 = vpop.f32.mrb[167].mxu1  ;;  %v6792_v40 = vadd.f32 %v6791_v63, %v6729_v16 }
 0xa4b   :  { %v6659_v29 = vadd.f32 %v6658_v46, %v11748_v27  ;;  %v6732_v46 = vmul.f32 %v11763_v38, %v11763_v38  ;;  %v6733_v27 = vmul.f32 %v11773_v2, %v11773_v2 }
 0xa4c   :  { %v11844_v17 = vadd.f32 %v7794_v19, %v12942_v58  ;;  %v6793_v54 = vadd.f32 %v6792_v40, %v6730_v44  ;;  %v12945_v58 = vld [vmem:[#allocation46_spill] sm:$0xff] }
 0xa4d   :  { %v6660_v16 = vadd.f32 %v6659_v29, %v11758_v5  ;;  %v12947_v29 = vld [vmem:[#allocation43_spill] sm:$0xff] }
 0xa4f   :  { %v6283_v18 = vpop.f32.mrb[168].mxu1 }
 0xa50   :  { %v7795_v60 = vadd.f32 %v11515_v47, %v6283_v18  ;;  %v6285_v57 = vpop.f32.mrb[169].mxu1  ;;  %v6794_v18 = vadd.f32 %v6793_v54, %v6731_v34 }
 0xa51   :  { %v6286_v52 = vpop.f32.mrb[170].mxu1  ;;  %v6661_v57 = vadd.f32 %v6660_v16, %v11763_v38  ;;  %v6734_v16 = vmul.f32 %v11779_v13, %v11779_v13  ;;  %v12948_v38 = vld [vmem:[#allocation45_spill] sm:$0xff] }
 0xa52   :  { %v11854_v19 = vadd.f32 %v7795_v60, %v12943_v30  ;;  %v7796_v23 = vadd.f32 %v11515_v47, %v6286_v52  ;;  %v6288_v32 = vpop.f32.mrb[171].mxu1 }
 0xa53   :  { %v6795_v32 = vadd.f32 %v6794_v18, %v6732_v46  ;;  %v6662_v40 = vadd.f32 %v6661_v57, %v11773_v2  ;;  %v6735_v18 = vmul.f32 %v11789_v48, %v11789_v48 }
 0xa54   :  { %12944 = vst [vmem:[#allocation31_spill] sm:$0xff] %v11854_v19  ;;  %v11859_v63 = vadd.f32 %v7796_v23, %v12945_v58 }
 0xa55   :  { %v6796_v58 = vadd.f32 %v6795_v32, %v6733_v27  ;;  %v6736_v27 = vmul.f32 %v11796_v25, %v11796_v25 }
 0xa56   :  { %12946 = vst [vmem:[#allocation33_spill] sm:$0xff] %v11859_v63 }
 0xa57   :  { %v6291_v30 = vpop.f32.mrb[172].mxu1  ;;  %v6797_v46 = vadd.f32 %v6796_v58, %v6734_v16  ;;  %v6738_v58 = vmul.f32 %v11811_v51, %v11811_v51 }
 0xa58   :  { %v7797_v60 = vadd.f32 %v11515_v47, %v6291_v30  ;;  %v6293_v52 = vpop.f32.mrb[173].mxu1  ;;  %v6663_v30 = vadd.f32 %v6662_v40, %v11779_v13 }
 0xa59   :  { %v6294_v44 = vpop.f32.mrb[174].mxu1 }
 0xa5a   :  { %v11869_v23 = vadd.f32 %v7797_v60, %v12947_v29  ;;  %v7798_v34 = vadd.f32 %v11515_v47, %v6294_v44  ;;  %v6296_v54 = vpop.f32.mrb[175].mxu1  ;;  %v6664_v57 = vadd.f32 %v6663_v30, %v11789_v48  ;;  %v6798_v29 = vadd.f32 %v6797_v46, %v6735_v18 }
 0xa5b   :  { %v6739_v46 = vmul.f32 %v11821_v50, %v11821_v50 }
 0xa5c   :  { %v11875_v5 = vadd.f32 %v7798_v34, %v12948_v38  ;;  %v6665_v54 = vadd.f32 %v6664_v57, %v11796_v25  ;;  %v6737_v38 = vmul.f32 %v11806_v24, %v11806_v24  ;;  %v6799_v40 = vadd.f32 %v6798_v29, %v6736_v27 }
 0xa5d   :  { %v6740_v29 = vmul.f32 %v11827_v12, %v11827_v12 }
 0xa5e   :  { %12949 = vst [vmem:[#allocation26_spill] sm:$0xff] %v11875_v5  ;;  %v6666_v34 = vadd.f32 %v6665_v54, %v11806_v24  ;;  %v6800_v13 = vadd.f32 %v6799_v40, %v6737_v38  ;;  %v6741_v54 = vmul.f32 %v11837_v0, %v11837_v0 }
 0xa5f   :  { %v6299_v60 = vpop.f32.mrb[176].mxu1 }
 0xa60   :  { %v6301_v52 = vpop.f32.mrb[177].mxu1  ;;  %v6667_v18 = vadd.f32 %v6666_v34, %v11811_v51  ;;  %v6801_v57 = vadd.f32 %v6800_v13, %v6738_v58  ;;  %v6742_v13 = vmul.f32 %v11844_v17, %v11844_v17 }
 0xa61   :  { %v6302_v32 = vpop.f32.mrb[178].mxu1 }
 0xa62   :  { %v6304_v44 = vpop.f32.mrb[179].mxu1  ;;  %v6668_v25 = vadd.f32 %v6667_v18, %v11821_v50  ;;  %v6802_v48 = vadd.f32 %v6801_v57, %v6739_v46  ;;  %v6743_v18 = vmul.f32 %v11854_v19, %v11854_v19 }
 0xa64   :  { %v6669_v27 = vadd.f32 %v6668_v25, %v11827_v12  ;;  %v6803_v34 = vadd.f32 %v6802_v48, %v6740_v29  ;;  %v6744_v48 = vmul.f32 %v11859_v63, %v11859_v63 }
 0xa67   :  { %v6307_v16 = vpop.f32.mrb[180].mxu1 }
 0xa68   :  { %v6309_v30 = vpop.f32.mrb[181].mxu1 }
 0xa69   :  { %v6310_v52 = vpop.f32.mrb[182].mxu1  ;;  %v6670_v30 = vadd.f32 %v6669_v27, %v11837_v0 }
 0xa6a   :  { %v6312_v44 = vpop.f32.mrb[183].mxu1 }
 0xa6b   :  { %v6804_v44 = vadd.f32 %v6803_v34, %v6741_v54  ;;  %v6671_v58 = vadd.f32 %v6670_v30, %v11844_v17  ;;  %v6745_v54 = vmul.f32 %v11869_v23, %v11869_v23 }
 0xa6d   :  { %v6805_v25 = vadd.f32 %v6804_v44, %v6742_v13  ;;  %v6672_v46 = vadd.f32 %v6671_v58, %v11854_v19  ;;  %v7801_v44 = vadd.f32 %v11515_v47, %v6307_v16  ;;  %v7799_v58 = vadd.f32 %v11515_v47, %v6299_v60 }
 0xa6f   :  { %v6315_v38 = vpop.f32.mrb[184].mxu1  ;;  %v6673_v27 = vadd.f32 %v6672_v46, %v11859_v63  ;;  %v7800_v63 = vadd.f32 %v11515_v47, %v6302_v32 }
 0xa70   :  { %v6317_v40 = vpop.f32.mrb[185].mxu1 }
 0xa71   :  { %v6318_v51 = vpop.f32.mrb[186].mxu1  ;;  %v6806_v40 = vadd.f32 %v6805_v25, %v6743_v18  ;;  %v6674_v30 = vadd.f32 %v6673_v27, %v11869_v23  ;;  %v7802_v25 = vadd.f32 %v11515_v47, %v6310_v52 }
 0xa72   :  { %v6320_v24 = vpop.f32.mrb[187].mxu1 }
 0xa73   :  { %v6807_v34 = vadd.f32 %v6806_v40, %v6744_v48  ;;  %v6675_v40 = vadd.f32 %v6674_v30, %v11875_v5 }
 0xa75   :  { %v6808_v13 = vadd.f32 %v6807_v34, %v6745_v54 }
 0xa77   :  { %v6323_v57 = vpop.f32.mrb[188].mxu1 }
 0xa78   :  { %v6325_v12 = vpop.f32.mrb[189].mxu1  ;;  %v7805_v30 = vadd.f32 %v11515_v47, %v6323_v57 }
 0xa79   :  { %v6326_v29 = vpop.f32.mrb[190].mxu1  ;;  %v6746_v12 = vmul.f32 %v11875_v5, %v11875_v5 }
 0xa7a   :  { %v6328_v24 = vpop.f32.mrb[191].mxu1 }
 0xa7b   :  { %v6809_v34 = vadd.f32 %v6808_v13, %v6746_v12  ;;  %v7806_v13 = vadd.f32 %v11515_v47, %v6326_v29 }
 0xa7f   :  { %v7657_v18 = vpop.f32.mrb[192].mxu1 }
 0xa80   :  { %v11916_v24 = vadd.f32 %v7801_v44, %v7657_v18  ;;  %v6588_v46 = vpop.f32.mrb[193].mxu1 }
 0xa81   :  { %v11919_v19 = vadd.f32 %v7799_v58, %v6588_v46  ;;  %v7658_v48 = vpop.f32.mrb[194].mxu1  ;;  %v7803_v58 = vadd.f32 %v11515_v47, %v6315_v38 }
 0xa82   :  { %12950 = vst [vmem:[#allocation25_spill] sm:$0xff] %v11916_v24  ;;  %v11922_v16 = vadd.f32 %v7802_v25, %v7658_v48  ;;  %v6591_v27 = vpop.f32.mrb[195].mxu1  ;;  %v6749_v25 = vmul.f32 %v11916_v24, %v11916_v24 }
 0xa83   :  { %12951 = vst [vmem:[#allocation35_spill] sm:$0xff] %v11919_v19  ;;  %v6676_v54 = vadd.f32 %v6675_v40, %v11919_v19  ;;  %v6747_v60 = vmul.f32 %v11919_v19, %v11919_v19  ;;  %v11927_v52 = vadd.f32 %v7800_v63, %v6591_v27  ;;  %v7804_v63 = vadd.f32 %v11515_v47, %v6318_v51 }
 0xa84   :  { %12952 = vst [vmem:[#allocation29_spill] sm:$0xff] %v11922_v16 }
 0xa85   :  { %12953 = vst [vmem:[#allocation14_spill] sm:$0xff] %v11927_v52  ;;  %v6810_v44 = vadd.f32 %v6809_v34, %v6747_v60  ;;  %v6677_v18 = vadd.f32 %v6676_v54, %v11927_v52  ;;  %v6748_v32 = vmul.f32 %v11927_v52, %v11927_v52  ;;  %v6750_v54 = vmul.f32 %v11922_v16, %v11922_v16 }
 0xa87   :  { %v6678_v46 = vadd.f32 %v6677_v18, %v11916_v24  ;;  %v6811_v40 = vadd.f32 %v6810_v44, %v6748_v32  ;;  %v7661_v48 = vpop.f32.mrb[196].mxu1 }
 0xa88   :  { %v11939_v12 = vadd.f32 %v7805_v30, %v7661_v48  ;;  %v6604_v27 = vpop.f32.mrb[197].mxu1 }
 0xa89   :  { %v6812_v57 = vadd.f32 %v6811_v40, %v6749_v25  ;;  %v11943_v60 = vadd.f32 %v7803_v58, %v6604_v27  ;;  %v6679_v38 = vadd.f32 %v6678_v46, %v11922_v16  ;;  %v7662_v34 = vpop.f32.mrb[198].mxu1 }
 0xa8a   :  { %12954 = vst [vmem:[#allocation38_spill] sm:$0xff] %v11939_v12  ;;  %v11946_v52 = vadd.f32 %v7806_v13, %v7662_v34  ;;  %v6607_v44 = vpop.f32.mrb[199].mxu1  ;;  %v6753_v58 = vmul.f32 %v11939_v12, %v11939_v12 }
 0xa8b   :  { %12955 = vst [vmem:[#allocation13_spill] sm:$0xff] %v11943_v60  ;;  %v6680_v18 = vadd.f32 %v6679_v38, %v11943_v60  ;;  %v6751_v47 = vmul.f32 %v11943_v60, %v11943_v60  ;;  %v6813_v51 = vadd.f32 %v6812_v57, %v6750_v54  ;;  %v6608_v29 = vadd.f32 %v7804_v63, %v6607_v44 }
 0xa8c   :  { %v6754_v40 = vmul.f32 %v11946_v52, %v11946_v52 }
 0xa8d   :  { %v6814_v32 = vadd.f32 %v6813_v51, %v6751_v47  ;;  %v6681_v30 = vadd.f32 %v6680_v18, %v6608_v29  ;;  %v6752_v48 = vmul.f32 %v6608_v29, %v6608_v29 }
 0xa8f   :  { %v6682_v25 = vadd.f32 %v6681_v30, %v11939_v12  ;;  %v6815_v46 = vadd.f32 %v6814_v32, %v6752_v48 }
 0xa91   :  { %v6683_v13 = vadd.f32 %v6682_v25, %v11946_v52  ;;  %v6816_v27 = vadd.f32 %v6815_v46, %v6753_v58  ;;  %v6619_v58 = vld [vmem:[%s12557_s7] sm:$0x1]  ;;  %s8880_s7 = smov [#allocation9]  }
 0xa93   :  { %v6684_v38 = vrot.slane %v6683_v13, 4  ;;  %v6817_v34 = vadd.f32 %v6816_v27, %v6754_v40  ;;  %v12956_v40 = vld [vmem:[#allocation36_spill] sm:$0xff] }
 0xa95   :  { %v6685_v60 = vadd.f32 %v6684_v38, %v6683_v13  ;;  %v6818_v54 = vrot.slane %v6817_v34, 4 }
 0xa97   :  { %v6686_v63 = vrot.slane %v6685_v60, 2  ;;  %v6819_v57 = vadd.f32 %v6818_v54, %v6817_v34 }
 0xa99   :  { %v6687_v44 = vadd.f32 %v6686_v63, %v6685_v60  ;;  %v6820_v18 = vrot.slane %v6819_v57, 2  ;;  %v6620_v60 = vld [vmem:[%s12558_s8] sm:$0x1]  ;;  %s7105_s8 = sshll.u32 %s8880_s7, 4  ;;  %s7106_s8 = int_to_ptr.vmem [resolvable:$true] %s7105_s8 }
 0xa9a   :  { %s8845_s1 = scalar_lea.vmem %s7106_s8, 8192  ;;  %p8850_p11 = scmp.lt.s32.totalorder %s7106_s8, %s7106_s8 }
 0xa9b   :  { %v6688_v47 = vrot.slane %v6687_v44, 1  ;;  %v6821_v51 = vadd.f32 %v6820_v18, %v6819_v57  ;;  %v12957_v57 = vld [vmem:[#allocation18_spill] sm:$0xff]  ;;  %p8846_p10 = scmp.ne.s32.totalorder %s7106_s8, %s8845_s1  ;;  %p8851_p12 = scmp.lt.s32.totalorder %s8845_s1, %s8845_s1 }
 0xa9c   :  { %v12959_v18 = vld [vmem:[#allocation22_spill] sm:$0xff] }
 0xa9d   :  { %v6689_v16 = vadd.f32 %v6688_v47, %v6687_v44  ;;  %v6822_v24 = vrot.slane %v6821_v51, 1  ;;  %v12958_v44 = vld [vmem:[#allocation19_spill] sm:$0xff]  ;;  %p8852_p13 = por %p8851_p12, %p8850_p11 }
 0xa9e   :  { %v12960_v47 = vld [vmem:[#allocation23_spill] sm:$0xff] }
 0xa9f   :  { %v6690_v30 = vmul.f32 0.001953125, %v6689_v16  ;;  %v6823_v32 = vadd.f32 %v6822_v24, %v6821_v51  ;;  %v12961_v51 = vld [vmem:[#allocation24_spill] sm:$0xff]  ;;  %p8853_p0 = pnand %p8852_p13, %p8846_p10 }
 0xaa1   :  { %v6824_v48 = vmul.f32 0.001953125, %v6823_v32  ;;  %v6825_v12 = vmul.f32 %v6690_v30, %v6690_v30  ;;  %v12962_v32 = vld [vmem:[#allocation15_spill] sm:$0xff] }
 0xaa3   :  { %v6826_v19 = vsub.f32 %v6824_v48, %v6825_v12 }
 0xaa5   :  { %v6827_v5 = vadd.f32 1e-05, %v6826_v19 }
 0xaa7   :  { %8763 = vrsqrt.f32 %v6827_v5 }
 0xab1   :  { %v8764_v25 = vpop.eup %8763 }
 0xab2   :  { %v6829_v46 = vmul.f32 %v8764_v25, %v6619_v58  ;;  %v12963_v25 = vld [vmem:[#allocation17_spill] sm:$0xff] }
 0xab4   :  { %v11964_v13 = vrot.slane %v6829_v46, %v12956_v40  ;;  %v6900_v16 = vmul.f32 %v6829_v46, %v6690_v30  ;;  %v12964_v46 = vld [vmem:[#allocation28_spill] sm:$0xff] }
 0xab6   :  { %v6897_v24 = vmul.f32 %v11964_v13, %v6608_v29  ;;  %v6901_v27 = vsub.f32 %v6620_v60, %v6900_v16  ;;  %v11969_v5 = vmul.f32 %v11964_v13, %v11519_v31  ;;  %v11973_v19 = vmul.f32 %v11964_v13, %v11523_v36 }
 0xab7   :  { %v11977_v12 = vmul.f32 %v11964_v13, %v11528_v4  ;;  %v11981_v38 = vmul.f32 %v11964_v13, %v11532_v33  ;;  %v11985_v29 = vmul.f32 %v11964_v13, %v11537_v61  ;;  %v11989_v31 = vmul.f32 %v11964_v13, %v11541_v43 }
 0xab8   :  { %v11992_v34 = vrot.slane %v6901_v27, %v12956_v40  ;;  %v11996_v36 = vmul.f32 %v11964_v13, %v11546_v6  ;;  %v12000_v4 = vmul.f32 %v11964_v13, %v11550_v10  ;;  %v12004_v33 = vmul.f32 %v11964_v13, %v11555_v41  ;;  %v12965_v40 = vld [vmem:[#allocation16_spill] sm:$0xff]  ;;  %v12966_v27 = vld [vmem:[#allocation21_spill] sm:$0xff] }
 0xab9   :  { %v12008_v61 = vmul.f32 %v11964_v13, %v11559_v11  ;;  %v12012_v43 = vmul.f32 %v11964_v13, %v11563_v28  ;;  %v12016_v6 = vmul.f32 %v11964_v13, %v11567_v15  ;;  %v12020_v10 = vmul.f32 %v11964_v13, %v11572_v39 }
 0xaba   :  { %v6969_v54 = vadd.f32 %v11992_v34, %v6897_v24  ;;  %v12025_v41 = vmul.f32 %v11964_v13, %v11576_v9  ;;  %v12029_v11 = vmul.f32 %v11964_v13, %v11580_v45  ;;  %v12033_v28 = vmul.f32 %v11964_v13, %v11584_v37 }
 0xabb   :  { %v12037_v15 = vmul.f32 %v11964_v13, %v11588_v49  ;;  %v12041_v39 = vmul.f32 %v11964_v13, %v11592_v1  ;;  %v12045_v9 = vmul.f32 %v11964_v13, %v11596_v62  ;;  %v12049_v45 = vmul.f32 %v11964_v13, %v11600_v53 }
 0xabc   :  { %v7033_v63 = vmax.f32 %v6969_v54, 0.0  ;;  %v12053_v37 = vmul.f32 %v11964_v13, %v11604_v20  ;;  %v12057_v49 = vmul.f32 %v11964_v13, %v11608_v55  ;;  %v12061_v1 = vmul.f32 %v11964_v13, %v11612_v3  ;;  %v12967_v54 = vld [vmem:[#allocation30_spill] sm:$0xff] }
 0xabd   :  { %v12065_v62 = vmul.f32 %v11964_v13, %v11616_v35  ;;  %v12069_v53 = vmul.f32 %v11964_v13, %v11629_v56  ;;  %v12073_v20 = vmul.f32 %v11964_v13, %v11635_v21  ;;  %v12077_v55 = vmul.f32 %v11964_v13, %v11645_v22 }
 0xabe   :  { %7097 = vst [vmem:[#allocation9 + $0x1e8] sm:$0xff] %v7033_v63  ;;  %v12081_v3 = vmul.f32 %v11964_v13, %v11652_v59  ;;  %v12085_v35 = vmul.f32 %v11964_v13, %v11662_v8  ;;  %v12089_v56 = vmul.f32 %v11964_v13, %v11667_v42  ;;  %v12093_v21 = vmul.f32 %v11964_v13, %v11677_v14 }
 0xabf   :  { %v12097_v22 = vmul.f32 %v11964_v13, %v12957_v57  ;;  %v12101_v59 = vmul.f32 %v11964_v13, %v12958_v44  ;;  %v12105_v8 = vmul.f32 %v11964_v13, %v12959_v18  ;;  %v12109_v42 = vmul.f32 %v11964_v13, %v11710_v26  ;;  %v12968_v57 = vld [vmem:[#allocation20_spill] sm:$0xff]  ;;  %v12969_v18 = vld [vmem:[#allocation27_spill] sm:$0xff] }
 0xac0   :  { %v12113_v14 = vmul.f32 %v11964_v13, %v12960_v47  ;;  %v12117_v30 = vmul.f32 %v11964_v13, %v12961_v51  ;;  %v12121_v48 = vmul.f32 %v11964_v13, %v12962_v32  ;;  %v12125_v58 = vmul.f32 %v11964_v13, %v11741_v7  ;;  %v12970_v51 = vld [vmem:[#allocation32_spill] sm:$0xff] }
 0xac1   :  { %v12129_v26 = vmul.f32 %v11964_v13, %v12963_v25  ;;  %v12133_v60 = vmul.f32 %v11964_v13, %v12964_v46  ;;  %v12137_v16 = vmul.f32 %v11964_v13, %v12965_v40  ;;  %v12141_v24 = vmul.f32 %v11964_v13, %v11773_v2  ;;  %v12971_v25 = vld [vmem:[#allocation34_spill] sm:$0xff] }
 0xac2   :  { %v12145_v7 = vmul.f32 %v11964_v13, %v12966_v27  ;;  %v12149_v63 = vmul.f32 %v11964_v13, %v12967_v54  ;;  %v12153_v44 = vmul.f32 %v11964_v13, %v12968_v57  ;;  %v12157_v47 = vmul.f32 %v11964_v13, %v12969_v18  ;;  %v12974_v54 = vld [vmem:[#allocation31_spill] sm:$0xff]  ;;  %v12976_v18 = vld [vmem:[#allocation33_spill] sm:$0xff] }
 0xac3   :  { %v12161_v2 = vmul.f32 %v11964_v13, %v12970_v51  ;;  %v12165_v32 = vmul.f32 %v11964_v13, %v11821_v50  ;;  %v12169_v46 = vmul.f32 %v11964_v13, %v12971_v25  ;;  %v12173_v40 = vmul.f32 %v11964_v13, %v11837_v0  ;;  %v12979_v25 = vld [vmem:[#allocation26_spill] sm:$0xff] }
 0xac4   :  { %v12177_v27 = vmul.f32 %v11964_v13, %v11844_v17  ;;  %v12181_v57 = vmul.f32 %v11964_v13, %v12974_v54  ;;  %v12185_v50 = vmul.f32 %v11964_v13, %v12976_v18  ;;  %v12189_v51 = vmul.f32 %v11964_v13, %v11869_v23 }
 0xac5   :  { %12972 = vst [vmem:[#allocation37_spill] sm:$0xff] %v12173_v40  ;;  %v12193_v0 = vmul.f32 %v11964_v13, %v12979_v25  ;;  %v12981_v40 = vld [vmem:[#allocation35_spill] sm:$0xff] }
 0xac6   :  { %12973 = vst [vmem:[#allocation40_spill] sm:$0xff] %v12177_v27  ;;  %12975 = vst [vmem:[#allocation42_spill] sm:$0xff] %v12181_v57  ;;  %v12197_v17 = vmul.f32 %v11964_v13, %v12981_v40  ;;  %v12982_v27 = vld [vmem:[#allocation14_spill] sm:$0xff]  ;;  %v12983_v57 = vld [vmem:[#allocation25_spill] sm:$0xff] }
 0xac7   :  { %12977 = vst [vmem:[#allocation39_spill] sm:$0xff] %v12185_v50  ;;  %12978 = vst [vmem:[#allocation41_spill] sm:$0xff] %v12189_v51  ;;  %v12201_v54 = vmul.f32 %v11964_v13, %v12982_v27  ;;  %v12205_v18 = vmul.f32 %v11964_v13, %v12983_v57  ;;  %v12984_v50 = vld [vmem:[#allocation29_spill] sm:$0xff]  ;;  %v12221_v27 = vmul.f32 %v11964_v13, %v11946_v52 }
 0xac8   :  { %12980 = vst [vmem:[#allocation44_spill] sm:$0xff] %v12193_v0  ;;  %v12209_v23 = vmul.f32 %v11964_v13, %v12984_v50  ;;  %v12985_v51 = vld [vmem:[#allocation13_spill] sm:$0xff]  ;;  %v12986_v0 = vld [vmem:[#allocation38_spill] sm:$0xff]  ;;  %v12225_v57 = vadd.f32 %v11992_v34, %v11969_v5  ;;  %v12229_v50 = vadd.f32 %v11992_v34, %v11973_v19  ;;  %v12241_v52 = vadd.f32 %v11992_v34, %v11985_v29 }
 0xac9   :  { %v12213_v25 = vmul.f32 %v11964_v13, %v12985_v51  ;;  %v12217_v40 = vmul.f32 %v11964_v13, %v12986_v0  ;;  %v12233_v51 = vadd.f32 %v11992_v34, %v11977_v12  ;;  %v12237_v0 = vadd.f32 %v11992_v34, %v11981_v38 }
 0xaca   :  { %v12245_v13 = vadd.f32 %v11992_v34, %v11989_v31  ;;  %v12249_v5 = vadd.f32 %v11992_v34, %v11996_v36  ;;  %v12253_v19 = vadd.f32 %v11992_v34, %v12000_v4  ;;  %v12257_v12 = vadd.f32 %v11992_v34, %v12004_v33 }
 0xacb   :  { %v12261_v38 = vadd.f32 %v11992_v34, %v12008_v61  ;;  %v12265_v29 = vadd.f32 %v11992_v34, %v12012_v43  ;;  %v12269_v31 = vadd.f32 %v11992_v34, %v12016_v6  ;;  %v12273_v36 = vadd.f32 %v11992_v34, %v12020_v10 }
 0xacc   :  { %v12277_v4 = vadd.f32 %v11992_v34, %v12025_v41  ;;  %v12281_v33 = vadd.f32 %v11992_v34, %v12029_v11  ;;  %v12285_v61 = vadd.f32 %v11992_v34, %v12033_v28  ;;  %v12289_v43 = vadd.f32 %v11992_v34, %v12037_v15 }
 0xacd   :  { %v12293_v6 = vadd.f32 %v11992_v34, %v12041_v39  ;;  %v12297_v10 = vadd.f32 %v11992_v34, %v12045_v9  ;;  %v12301_v41 = vadd.f32 %v11992_v34, %v12049_v45  ;;  %v12305_v11 = vadd.f32 %v11992_v34, %v12053_v37 }
 0xace   :  { %v12309_v28 = vadd.f32 %v11992_v34, %v12057_v49  ;;  %v12313_v15 = vadd.f32 %v11992_v34, %v12061_v1  ;;  %v12317_v39 = vadd.f32 %v11992_v34, %v12065_v62  ;;  %v12321_v9 = vadd.f32 %v11992_v34, %v12069_v53 }
 0xacf   :  { %v12325_v45 = vadd.f32 %v11992_v34, %v12073_v20  ;;  %v12329_v37 = vadd.f32 %v11992_v34, %v12077_v55  ;;  %v12333_v49 = vadd.f32 %v11992_v34, %v12081_v3  ;;  %v12337_v1 = vadd.f32 %v11992_v34, %v12085_v35 }
 0xad0   :  { %v12341_v62 = vadd.f32 %v11992_v34, %v12089_v56  ;;  %v12345_v53 = vadd.f32 %v11992_v34, %v12093_v21  ;;  %v12349_v20 = vadd.f32 %v11992_v34, %v12097_v22  ;;  %v12353_v55 = vadd.f32 %v11992_v34, %v12101_v59 }
 0xad1   :  { %v12357_v3 = vadd.f32 %v11992_v34, %v12105_v8  ;;  %v12361_v35 = vadd.f32 %v11992_v34, %v12109_v42  ;;  %v12365_v56 = vadd.f32 %v11992_v34, %v12113_v14  ;;  %v12369_v21 = vadd.f32 %v11992_v34, %v12117_v30 }
 0xad2   :  { %v12373_v22 = vadd.f32 %v11992_v34, %v12121_v48  ;;  %v12377_v59 = vadd.f32 %v11992_v34, %v12125_v58  ;;  %v12381_v8 = vadd.f32 %v11992_v34, %v12129_v26  ;;  %v12385_v42 = vadd.f32 %v11992_v34, %v12133_v60 }
 0xad3   :  { %v12389_v14 = vadd.f32 %v11992_v34, %v12137_v16  ;;  %v12393_v30 = vadd.f32 %v11992_v34, %v12141_v24  ;;  %v12397_v48 = vadd.f32 %v11992_v34, %v12145_v7  ;;  %v12401_v58 = vadd.f32 %v11992_v34, %v12149_v63  ;;  %v12992_v63 = vld [vmem:[#allocation37_spill] sm:$0xff] }
 0xad4   :  { %v12405_v26 = vadd.f32 %v11992_v34, %v12153_v44  ;;  %v12409_v60 = vadd.f32 %v11992_v34, %v12157_v47  ;;  %v12413_v16 = vadd.f32 %v11992_v34, %v12161_v2  ;;  %v12417_v24 = vadd.f32 %v11992_v34, %v12165_v32 }
 0xad5   :  { %v12421_v7 = vadd.f32 %v11992_v34, %v12169_v46  ;;  %v12425_v44 = vadd.f32 %v11992_v34, %v12992_v63 }
 0xad6   :  { %12987 = vst [vmem:[#allocation46_spill] sm:$0xff] %v12405_v26  ;;  %12988 = vst [vmem:[#allocation43_spill] sm:$0xff] %v12409_v60  ;;  %v12993_v26 = vld [vmem:[#allocation40_spill] sm:$0xff]  ;;  %v12994_v60 = vld [vmem:[#allocation42_spill] sm:$0xff] }
 0xad7   :  { %12989 = vst [vmem:[#allocation45_spill] sm:$0xff] %v12413_v16  ;;  %12990 = vst [vmem:[#allocation36_spill] sm:$0xff] %v12417_v24  ;;  %v12429_v47 = vadd.f32 %v11992_v34, %v12993_v26  ;;  %v12433_v2 = vadd.f32 %v11992_v34, %v12994_v60  ;;  %v12995_v16 = vld [vmem:[#allocation39_spill] sm:$0xff]  ;;  %v12996_v24 = vld [vmem:[#allocation41_spill] sm:$0xff]  ;;  %v12449_v26 = vadd.f32 %v11992_v34, %v12197_v17 }
 0xad8   :  { %12991 = vst [vmem:[#allocation18_spill] sm:$0xff] %v12421_v7  ;;  %v12437_v32 = vadd.f32 %v11992_v34, %v12995_v16  ;;  %v12441_v46 = vadd.f32 %v11992_v34, %v12996_v24  ;;  %v12997_v7 = vld [vmem:[#allocation44_spill] sm:$0xff]  ;;  %v12453_v60 = vadd.f32 %v11992_v34, %v12201_v54  ;;  %v12457_v16 = vadd.f32 %v11992_v34, %v12205_v18 }
 0xad9   :  { %v12445_v63 = vadd.f32 %v11992_v34, %v12997_v7  ;;  %v12461_v24 = vadd.f32 %v11992_v34, %v12209_v23  ;;  %v12465_v7 = vadd.f32 %v11992_v34, %v12213_v25  ;;  %v12469_v17 = vadd.f32 %v11992_v34, %v12217_v40 }
 0xada   :  { %12998 = vst [vmem:[#allocation19_spill] sm:$0xff] %v12453_v60  ;;  %12999 = vst [vmem:[#allocation22_spill] sm:$0xff] %v12457_v16  ;;  %v12473_v54 = vadd.f32 %v11992_v34, %v12221_v27  ;;  %v6972_v60 = vmax.f32 %v12225_v57, 0.0  ;;  %v6973_v18 = vmax.f32 %v12229_v50, 0.0  ;;  %v6974_v16 = vmax.f32 %v12233_v51, 0.0 }
 0xadb   :  { %13000 = vst [vmem:[#allocation23_spill] sm:$0xff] %v12461_v24  ;;  %13001 = vst [vmem:[#allocation24_spill] sm:$0xff] %v12465_v7  ;;  %v6975_v23 = vmax.f32 %v12237_v0, 0.0  ;;  %v6976_v24 = vmax.f32 %v12241_v52, 0.0  ;;  %v6977_v25 = vmax.f32 %v12245_v13, 0.0  ;;  %v6978_v7 = vmax.f32 %v12249_v5, 0.0 }
 0xadc   :  { %13002 = vst [vmem:[#allocation15_spill] sm:$0xff] %v12469_v17  ;;  %v6979_v40 = vmax.f32 %v12253_v19, 0.0  ;;  %v6980_v17 = vmax.f32 %v12257_v12, 0.0  ;;  %7036 = vst [vmem:[#allocation9] sm:$0xff] %v6972_v60  ;;  %v6981_v34 = vmax.f32 %v12261_v38, 0.0  ;;  %v6982_v27 = vmax.f32 %v12265_v29, 0.0 }
 0xadd   :  { %v6983_v57 = vmax.f32 %v12269_v31, 0.0  ;;  %v6984_v50 = vmax.f32 %v12273_v36, 0.0  ;;  %7037 = vst [vmem:[#allocation9 + $0x8] sm:$0xff] %v6973_v18  ;;  %7038 = vst [vmem:[#allocation9 + $0x10] sm:$0xff] %v6974_v16  ;;  %v6985_v51 = vmax.f32 %v12277_v4, 0.0  ;;  %v6986_v0 = vmax.f32 %v12281_v33, 0.0 }
 0xade   :  { %7039 = vst [vmem:[#allocation9 + $0x18] sm:$0xff] %v6975_v23  ;;  %7040 = vst [vmem:[#allocation9 + $0x20] sm:$0xff] %v6976_v24  ;;  %v6987_v52 = vmax.f32 %v12285_v61, 0.0  ;;  %v6988_v13 = vmax.f32 %v12289_v43, 0.0  ;;  %v6989_v5 = vmax.f32 %v12293_v6, 0.0  ;;  %v6990_v19 = vmax.f32 %v12297_v10, 0.0 }
 0xadf   :  { %7041 = vst [vmem:[#allocation9 + $0x28] sm:$0xff] %v6977_v25  ;;  %7042 = vst [vmem:[#allocation9 + $0x30] sm:$0xff] %v6978_v7  ;;  %v6991_v12 = vmax.f32 %v12301_v41, 0.0  ;;  %v6992_v38 = vmax.f32 %v12305_v11, 0.0  ;;  %v6993_v29 = vmax.f32 %v12309_v28, 0.0  ;;  %v6994_v31 = vmax.f32 %v12313_v15, 0.0 }
 0xae0   :  { %7043 = vst [vmem:[#allocation9 + $0x38] sm:$0xff] %v6979_v40  ;;  %7044 = vst [vmem:[#allocation9 + $0x40] sm:$0xff] %v6980_v17  ;;  %v6995_v36 = vmax.f32 %v12317_v39, 0.0  ;;  %v6996_v4 = vmax.f32 %v12321_v9, 0.0  ;;  %v6997_v33 = vmax.f32 %v12325_v45, 0.0  ;;  %v6998_v61 = vmax.f32 %v12329_v37, 0.0 }
 0xae1   :  { %7045 = vst [vmem:[#allocation9 + $0x48] sm:$0xff] %v6981_v34  ;;  %7046 = vst [vmem:[#allocation9 + $0x50] sm:$0xff] %v6982_v27  ;;  %v6999_v43 = vmax.f32 %v12333_v49, 0.0  ;;  %v7000_v6 = vmax.f32 %v12337_v1, 0.0  ;;  %v7001_v10 = vmax.f32 %v12341_v62, 0.0  ;;  %v7002_v41 = vmax.f32 %v12345_v53, 0.0 }
 0xae2   :  { %7047 = vst [vmem:[#allocation9 + $0x58] sm:$0xff] %v6983_v57  ;;  %7048 = vst [vmem:[#allocation9 + $0x60] sm:$0xff] %v6984_v50  ;;  %v7003_v11 = vmax.f32 %v12349_v20, 0.0  ;;  %v7004_v28 = vmax.f32 %v12353_v55, 0.0  ;;  %v7005_v15 = vmax.f32 %v12357_v3, 0.0  ;;  %v7006_v39 = vmax.f32 %v12361_v35, 0.0 }
 0xae3   :  { %7049 = vst [vmem:[#allocation9 + $0x68] sm:$0xff] %v6985_v51  ;;  %7050 = vst [vmem:[#allocation9 + $0x70] sm:$0xff] %v6986_v0  ;;  %v7007_v9 = vmax.f32 %v12365_v56, 0.0  ;;  %v7008_v45 = vmax.f32 %v12369_v21, 0.0  ;;  %v7009_v37 = vmax.f32 %v12373_v22, 0.0  ;;  %v7010_v49 = vmax.f32 %v12377_v59, 0.0 }
 0xae4   :  { %7051 = vst [vmem:[#allocation9 + $0x78] sm:$0xff] %v6987_v52  ;;  %7052 = vst [vmem:[#allocation9 + $0x80] sm:$0xff] %v6988_v13  ;;  %v7011_v1 = vmax.f32 %v12381_v8, 0.0  ;;  %v7012_v62 = vmax.f32 %v12385_v42, 0.0  ;;  %v7013_v53 = vmax.f32 %v12389_v14, 0.0  ;;  %v7014_v20 = vmax.f32 %v12393_v30, 0.0 }
 0xae5   :  { %7053 = vst [vmem:[#allocation9 + $0x88] sm:$0xff] %v6989_v5  ;;  %7054 = vst [vmem:[#allocation9 + $0x90] sm:$0xff] %v6990_v19  ;;  %v7015_v55 = vmax.f32 %v12397_v48, 0.0  ;;  %v7016_v3 = vmax.f32 %v12401_v58, 0.0  ;;  %v13003_v35 = vld [vmem:[#allocation46_spill] sm:$0xff]  ;;  %v13004_v21 = vld [vmem:[#allocation43_spill] sm:$0xff] }
 0xae6   :  { %7055 = vst [vmem:[#allocation9 + $0x98] sm:$0xff] %v6991_v12  ;;  %7056 = vst [vmem:[#allocation9 + $0xa0] sm:$0xff] %v6992_v38  ;;  %v7017_v56 = vmax.f32 %v13003_v35, 0.0  ;;  %v7018_v22 = vmax.f32 %v13004_v21, 0.0  ;;  %v13005_v59 = vld [vmem:[#allocation45_spill] sm:$0xff]  ;;  %v13006_v42 = vld [vmem:[#allocation36_spill] sm:$0xff] }
 0xae7   :  { %7057 = vst [vmem:[#allocation9 + $0xa8] sm:$0xff] %v6993_v29  ;;  %7058 = vst [vmem:[#allocation9 + $0xb0] sm:$0xff] %v6994_v31  ;;  %v7019_v8 = vmax.f32 %v13005_v59, 0.0  ;;  %v7020_v60 = vmax.f32 %v13006_v42, 0.0  ;;  %v13007_v14 = vld [vmem:[#allocation18_spill] sm:$0xff]  ;;  %v7022_v48 = vmax.f32 %v12425_v44, 0.0 }
 0xae8   :  { %7059 = vst [vmem:[#allocation9 + $0xb8] sm:$0xff] %v6995_v36  ;;  %7060 = vst [vmem:[#allocation9 + $0xc0] sm:$0xff] %v6996_v4  ;;  %v7021_v30 = vmax.f32 %v13007_v14, 0.0  ;;  %v7023_v58 = vmax.f32 %v12429_v47, 0.0  ;;  %v7024_v16 = vmax.f32 %v12433_v2, 0.0  ;;  %v7025_v24 = vmax.f32 %v12437_v32, 0.0 }
 0xae9   :  { %7061 = vst [vmem:[#allocation9 + $0xc8] sm:$0xff] %v6997_v33  ;;  %7062 = vst [vmem:[#allocation9 + $0xd0] sm:$0xff] %v6998_v61  ;;  %v7026_v7 = vmax.f32 %v12441_v46, 0.0  ;;  %v7027_v17 = vmax.f32 %v12445_v63, 0.0  ;;  %v7028_v18 = vmax.f32 %v12449_v26, 0.0  ;;  %v13008_v44 = vld [vmem:[#allocation19_spill] sm:$0xff] }
 0xaea   :  { %7063 = vst [vmem:[#allocation9 + $0xd8] sm:$0xff] %v6999_v43  ;;  %7064 = vst [vmem:[#allocation9 + $0xe0] sm:$0xff] %v7000_v6  ;;  %v7029_v47 = vmax.f32 %v13008_v44, 0.0  ;;  %v13009_v2 = vld [vmem:[#allocation22_spill] sm:$0xff]  ;;  %v13010_v25 = vld [vmem:[#allocation23_spill] sm:$0xff]  ;;  %v7035_v63 = vmax.f32 %v12473_v54, 0.0 }
 0xaeb   :  { %7065 = vst [vmem:[#allocation9 + $0xe8] sm:$0xff] %v7001_v10  ;;  %7066 = vst [vmem:[#allocation9 + $0xf0] sm:$0xff] %v7002_v41  ;;  %v7030_v23 = vmax.f32 %v13009_v2, 0.0  ;;  %v7031_v40 = vmax.f32 %v13010_v25, 0.0  ;;  %v13011_v34 = vld [vmem:[#allocation24_spill] sm:$0xff]  ;;  %v13012_v32 = vld [vmem:[#allocation15_spill] sm:$0xff] }
 0xaec   :  { %7067 = vst [vmem:[#allocation9 + $0xf8] sm:$0xff] %v7003_v11  ;;  %7068 = vst [vmem:[#allocation9 + $0x100] sm:$0xff] %v7004_v28  ;;  %v7032_v27 = vmax.f32 %v13011_v34, 0.0  ;;  %v7034_v46 = vmax.f32 %v13012_v32, 0.0 }
 0xaed   :  { %7069 = vst [vmem:[#allocation9 + $0x108] sm:$0xff] %v7005_v15  ;;  %7070 = vst [vmem:[#allocation9 + $0x110] sm:$0xff] %v7006_v39 }
 0xaee   :  { %7071 = vst [vmem:[#allocation9 + $0x118] sm:$0xff] %v7007_v9  ;;  %7072 = vst [vmem:[#allocation9 + $0x120] sm:$0xff] %v7008_v45 }
 0xaef   :  { %7073 = vst [vmem:[#allocation9 + $0x128] sm:$0xff] %v7009_v37  ;;  %7074 = vst [vmem:[#allocation9 + $0x130] sm:$0xff] %v7010_v49 }
 0xaf0   :  { %7075 = vst [vmem:[#allocation9 + $0x138] sm:$0xff] %v7011_v1  ;;  %7076 = vst [vmem:[#allocation9 + $0x140] sm:$0xff] %v7012_v62 }
 0xaf1   :  { %7077 = vst [vmem:[#allocation9 + $0x148] sm:$0xff] %v7013_v53  ;;  %7078 = vst [vmem:[#allocation9 + $0x150] sm:$0xff] %v7014_v20 }
 0xaf2   :  { %7079 = vst [vmem:[#allocation9 + $0x158] sm:$0xff] %v7015_v55  ;;  %7080 = vst [vmem:[#allocation9 + $0x160] sm:$0xff] %v7016_v3 }
 0xaf3   :  { %7081 = vst [vmem:[#allocation9 + $0x168] sm:$0xff] %v7017_v56  ;;  %7082 = vst [vmem:[#allocation9 + $0x170] sm:$0xff] %v7018_v22 }
 0xaf4   :  { %7083 = vst [vmem:[#allocation9 + $0x178] sm:$0xff] %v7019_v8  ;;  %7084 = vst [vmem:[#allocation9 + $0x180] sm:$0xff] %v7020_v60 }
 0xaf5   :  { %7085 = vst [vmem:[#allocation9 + $0x188] sm:$0xff] %v7021_v30  ;;  %7086 = vst [vmem:[#allocation9 + $0x190] sm:$0xff] %v7022_v48 }
 0xaf6   :  { %7087 = vst [vmem:[#allocation9 + $0x198] sm:$0xff] %v7023_v58  ;;  %7088 = vst [vmem:[#allocation9 + $0x1a0] sm:$0xff] %v7024_v16 }
 0xaf7   :  { %7089 = vst [vmem:[#allocation9 + $0x1a8] sm:$0xff] %v7025_v24  ;;  %7090 = vst [vmem:[#allocation9 + $0x1b0] sm:$0xff] %v7026_v7 }
 0xaf8   :  { %7091 = vst [vmem:[#allocation9 + $0x1b8] sm:$0xff] %v7027_v17  ;;  %7092 = vst [vmem:[#allocation9 + $0x1c0] sm:$0xff] %v7028_v18 }
 0xaf9   :  { %7093 = vst [vmem:[#allocation9 + $0x1c8] sm:$0xff] %v7029_v47  ;;  %7094 = vst [vmem:[#allocation9 + $0x1d0] sm:$0xff] %v7030_v23 }
 0xafa   :  { %7095 = vst [vmem:[#allocation9 + $0x1d8] sm:$0xff] %v7031_v40  ;;  %7096 = vst [vmem:[#allocation9 + $0x1e0] sm:$0xff] %v7032_v27 }
 0xafb   :  { %7098 = vst [vmem:[#allocation9 + $0x1f0] sm:$0xff] %v7034_v46  ;;  %7099 = vst [vmem:[#allocation9 + $0x1f8] sm:$0xff] %v7035_v63 }
 0xafc   :  { %8856 = shalt.err (!%p8853_p0)
}
 0xafd   :  { %s8857_s15 = scalar_lea.hbm %s12559_s9, 8192 }
 0xafe   :  { %p8858_p1 = scmp.ne.s32.totalorder %s12559_s9, %s8857_s15  ;;  %p8861_p2 = scmp.lt.u32.totalorder %s8857_s15, %s12559_s9 }
 0xb00   :  { %p8863_p3 = pnand %p8861_p2, %p8858_p1 }
 0xb02   :  { %8866 = shalt.err (!%p8863_p3)
}
 0xb03   :  { %s8881_s20 = smov 128   ;;  %s8882_s23 = smov 8  }
 0xb04   :  { %7111 = dma.vmem_to_hbm [thread:$0]  %s7106_s8, 8192, %s12559_s9, [#allocation5], %s8881_s20, %s8881_s20, %s8882_s23  }
 0xb05   :  { %8871 = dma.done.wait [#allocation5], 8192  }
 0xb06   :  { %8872 = vsyncadd [#allocation5], 4294959104 }
 0xb07   :  { %7115 = vsyncpa [#allocation4], 1 }
 0xb08   :  { %7116 = vsyncpa [#allocation7], 1 }
 0xb09   :  { %7117 = vsyncpa [#allocation5], 1 }

</bundles_post_ra>
